<compile_context>
chip_gen: v7x
topology: tpu7x:2x2x1
jax: 0.10.0
libtpu: 0.0.40
codegen_flags: <defaults>
</compile_context>

<pallas_src>
import jax
import jax.numpy as jnp
from jax.experimental import pallas as pl
from jax.experimental.pallas import tpu as pltpu

# ----- model hyper-parameters (module defaults) -----
GLO_FEATURES = 16
POINT_FEATURES = 16
HIDDEN = 64
LAYERS = 2                       # two hidden layers (hard-coded in the kernel body)
COLOR_CHANNELS = 3
SH_DEGREE = 3
NUM_SH = (SH_DEGREE + 1) ** 2    # 16
FEATURE_SIZE = GLO_FEATURES + POINT_FEATURES      # 32
OUT_COEFFS = COLOR_CHANNELS * NUM_SH              # 48
OUT_PAD = 128                    # head padded to 128 lanes -> aligned in-kernel transpose

TM = 1024                        # points per grid tile (sweep 512-2048; 1024 is safe on
                                 # all generations incl. v5e and keeps VMEM ~3 MiB/tile)

# Real spherical-harmonics constants (standard eval_sh ordering, degree 3)
_C0 = 0.28209479177387814
_C1 = 0.4886025119029199
_C2 = (1.0925484305920792, -1.0925484305920792, 0.31539156525252005,
       -1.0925484305920792, 0.5462742152960396)
_C3 = (-0.5900435899266435, 2.890611442640554, -0.4570457994644658,
       0.3731763325901154, -0.4570457994644658, 1.445305721320277,
       -0.5900435899266435)


def _layernorm_1pass(x, eps=1e-5):
    # LayerNorm(elementwise_affine=False), single pass: var = E[x^2] - E[x]^2.
    mean = jnp.mean(x, axis=-1, keepdims=True)
    meansq = jnp.mean(x * x, axis=-1, keepdims=True)
    var = meansq - mean * mean
    return (x - mean) * jax.lax.rsqrt(var + eps)


def _sh_terms(x, y, z):
    """Degree-3 real SH basis terms. Orientation-agnostic (pure broadcasting)."""
    xx, yy, zz = x * x, y * y, z * z
    xy, yz, xz = x * y, y * z, x * z
    return [
        jnp.full_like(x, _C0),
        -_C1 * y, _C1 * z, -_C1 * x,
        _C2[0] * xy, _C2[1] * yz, _C2[2] * (2.0 * zz - xx - yy),
        _C2[3] * xz, _C2[4] * (xx - yy),
        _C3[0] * y * (3.0 * xx - yy), _C3[1] * xy * z,
        _C3[2] * y * (4.0 * zz - xx - yy),
        _C3[3] * z * (2.0 * zz - 3.0 * xx - 3.0 * yy),
        _C3[4] * x * (4.0 * zz - xx - yy),
        _C3[5] * z * (xx - yy), _C3[6] * x * (xx - 3.0 * yy),
    ]


def color_kernel(pos_t_ref, cam_ref, pf_ref,
                 w1_ref, b1_ref, w2_ref, b2_ref, w3_ref, b3_ref,
                 out_ref):
    # --- MLP on point features (glo_feature pre-folded into b1), point-major ---
    h = jnp.dot(pf_ref[...], w1_ref[...],
                preferred_element_type=jnp.float32) + b1_ref[...]        # (TM, 64)
    h = jnp.maximum(_layernorm_1pass(h), 0.0)
    h = jnp.dot(h, w2_ref[...],
                preferred_element_type=jnp.float32) + b2_ref[...]        # (TM, 64)
    h = jnp.maximum(_layernorm_1pass(h), 0.0)
    coeffs = jnp.dot(h, w3_ref[...],
                     preferred_element_type=jnp.float32) + b3_ref[...]   # (TM, 128)
    # One tile-aligned XLU transpose -> lane-dense coefficient rows.
    coeffs_t = coeffs.T                                                  # (128, TM)

    # --- view direction: F.normalize(positions - cam_pos), lane-major ---
    diff = pos_t_ref[...] - cam_ref[...]                                 # (3, TM)
    x = diff[0:1, :]
    y = diff[1:2, :]
    z = diff[2:3, :]
    sumsq = x * x + y * y + z * z                                        # (1, TM)
    inv = jax.lax.rsqrt(jnp.maximum(sumsq, 1e-24))   # clamp == max(norm, 1e-12), EUP rsqrt
    x = x * inv
    y = y * inv
    z = z * inv

    sh_mat = jnp.concatenate(_sh_terms(x, y, z), axis=0)                 # (16, TM)

    # --- contract SH coefficients with the SH basis, per color channel ---
    # TODO(synk): assumes channel-major grouping of the AffineMLP head (N, C, K);
    # AffineMLP source not provided — if it emits (N, K, C) the slicing must change.
    rows = []
    for c in range(COLOR_CHANNELS):
        cc = coeffs_t[c * NUM_SH:(c + 1) * NUM_SH, :]                    # (16, TM) lane-dense
        rows.append(jnp.sum(cc * sh_mat, axis=0, keepdims=True))         # (1, TM)
    pre = jnp.concatenate(rows, axis=0)                                  # (3, TM)

    # Lane-dense store: points on the 128-lane axis -> unmasked vst.
    out_ref[...] = jax.nn.sigmoid(pre)


def init_params(key):
    """Deterministic init mimicking torch.nn.Linear (uniform +-1/sqrt(fan_in)).
    Weights stored as (in, out) so the kernel does x @ W."""
    def linear(k, fan_in, fan_out):
        kw, kb = jax.random.split(k)
        bound = 1.0 / jnp.sqrt(jnp.float32(fan_in))
        w = jax.random.uniform(kw, (fan_in, fan_out), jnp.float32, -bound, bound)
        b = jax.random.uniform(kb, (1, fan_out), jnp.float32, -bound, bound)
        return w, b

    k1, k2, k3 = jax.random.split(key, 3)
    w1, b1 = linear(k1, FEATURE_SIZE, HIDDEN)
    w2, b2 = linear(k2, HIDDEN, HIDDEN)
    w3, b3 = linear(k3, HIDDEN, OUT_COEFFS)
    return (w1, b1, w2, b2, w3, b3)


@jax.jit
def color_model_forward(point_features, positions, cam_pos, glo_feature, params):
    n = positions.shape[0]
    w1, b1, w2, b2, w3, b3 = params

    # Fold the N-constant glo_feature into the first layer:
    #   concat([pf, glo]) @ W1 + b1 == pf @ W1[:16] + (b1 + glo @ W1[16:])
    glo = glo_feature.reshape(1, GLO_FEATURES).astype(jnp.float32)
    w1_pf = w1[:POINT_FEATURES, :]                                       # (16, 64)
    b1_eff = b1 + glo @ w1[POINT_FEATURES:, :]                           # (1, 64)

    # Zero-pad the head to 128 output lanes (aligned in-kernel transpose).
    w3_p = jnp.pad(w3, ((0, 0), (0, OUT_PAD - OUT_COEFFS)))              # (64, 128)
    b3_p = jnp.pad(b3, ((0, 0), (0, OUT_PAD - OUT_COEFFS)))              # (1, 128)

    pf = point_features.astype(jnp.float32)                              # (N, 16)
    # Lane-dense positions: (3, N) so the kernel gets (1, TM) x/y/z rows directly.
    pos_t = positions.astype(jnp.float32).T                              # (3, N)
    cam = cam_pos.reshape(3, 1).astype(jnp.float32)                      # (3, 1)

    # No padding copies: ragged tail tile is tolerated (rows are independent; the
    # masked output writeback discards out-of-range columns).
    grid = (pl.cdiv(n, TM),)

    out_t = pl.pallas_call(
        color_kernel,
        out_shape=jax.ShapeDtypeStruct((COLOR_CHANNELS, n), jnp.float32),
        grid_spec=pltpu.PrefetchScalarGridSpec(
            num_scalar_prefetch=0,
            grid=grid,
            in_specs=[
                pl.BlockSpec((COLOR_CHANNELS, TM), lambda i: (0, i)),     # positions^T
                pl.BlockSpec((COLOR_CHANNELS, 1), lambda i: (0, 0)),      # cam_pos
                pl.BlockSpec((TM, POINT_FEATURES), lambda i: (i, 0)),     # point feats
                pl.BlockSpec((POINT_FEATURES, HIDDEN), lambda i: (0, 0)), # W1[:16]
                pl.BlockSpec((1, HIDDEN), lambda i: (0, 0)),              # b1_eff
                pl.BlockSpec((HIDDEN, HIDDEN), lambda i: (0, 0)),         # W2
                pl.BlockSpec((1, HIDDEN), lambda i: (0, 0)),              # b2
                pl.BlockSpec((HIDDEN, OUT_PAD), lambda i: (0, 0)),        # W3 (padded)
                pl.BlockSpec((1, OUT_PAD), lambda i: (0, 0)),             # b3 (padded)
            ],
            out_specs=pl.BlockSpec((COLOR_CHANNELS, TM), lambda i: (0, i)),
        ),
        compiler_params=pltpu.CompilerParams(
            dimension_semantics=("parallel",),
            vmem_limit_bytes=32 * 1024 * 1024),
    )(pos_t, cam, pf, w1_pf, b1_eff, w2, b2, w3_p, b3_p)

    # Kernel emits colors lane-dense as (3, N); return point-major (N, 3) like the module.
    return out_t.T


@jax.jit
def _reference_forward(point_features, positions, cam_pos, glo_feature, params):
    """Pure-JAX reference mirroring the PyTorch module (for correctness check)."""
    w1, b1, w2, b2, w3, b3 = params
    n = positions.shape[0]
    glo = jnp.broadcast_to(glo_feature.reshape(1, GLO_FEATURES), (n, GLO_FEATURES))
    feat = jnp.concatenate([point_features, glo], axis=1)
    diff = positions - cam_pos.reshape(1, 3)
    norm = jnp.sqrt(jnp.sum(diff * diff, axis=-1, keepdims=True))
    dirs = diff / jnp.maximum(norm, 1e-12)
    x, y, z = dirs[:, 0:1], dirs[:, 1:2], dirs[:, 2:3]
    sh = jnp.concatenate(_sh_terms(x, y, z), axis=-1)                     # (N, 16)

    def ln(v, eps=1e-5):
        mean = jnp.mean(v, axis=-1, keepdims=True)
        var = jnp.mean(jnp.square(v - mean), axis=-1, keepdims=True)
        return (v - mean) * jax.lax.rsqrt(var + eps)

    hp = jax.lax.Precision.HIGHEST
    h = jnp.maximum(ln(jnp.dot(feat, w1, precision=hp) + b1), 0.0)
    h = jnp.maximum(ln(jnp.dot(h, w2, precision=hp) + b2), 0.0)
    coeffs = jnp.dot(h, w3, precision=hp) + b3
    coeffs = coeffs.reshape(n, COLOR_CHANNELS, NUM_SH)
    return jax.nn.sigmoid(jnp.einsum('nck,nk->nc', coeffs, sh))


if __name__ == "__main__":
    key = jax.random.PRNGKey(0)
    k_params, k_pf, k_pos, k_cam, k_glo = jax.random.split(key, 5)

    N = 1200  # exercises one full TM=1024 tile plus a ragged tail tile
    params = init_params(k_params)
    point_features = jax.random.normal(k_pf, (N, POINT_FEATURES), jnp.float32)
    positions = jax.random.normal(k_pos, (N, 3), jnp.float32) * 3.0
    cam_pos = jax.random.normal(k_cam, (3,), jnp.float32)
    glo_feature = jax.random.normal(k_glo, (1, GLO_FEATURES), jnp.float32)

    colors = color_model_forward(point_features, positions, cam_pos,
                                 glo_feature, params)
    colors = jax.block_until_ready(colors)

    assert colors.shape == (N, COLOR_CHANNELS)
    assert colors.dtype == jnp.float32
    assert bool(jnp.all(jnp.isfinite(colors)))
    assert bool(jnp.all((colors >= 0.0) & (colors <= 1.0)))   # sigmoid output

    ref = _reference_forward(point_features, positions, cam_pos, glo_feature, params)
    assert bool(jnp.all(jnp.abs(colors - ref) < 2e-3)), "mismatch vs reference"
    print("KERNEL_OK")
</pallas_src>

<mosaic_0001>
module attributes {stable_mosaic.version = 11 : i64} {
  func.func @color_kernel(%arg0: i32, %arg1: memref<3x1024xf32, #tpu.memory_space<vmem>>, %arg2: memref<3x1xf32, #tpu.memory_space<vmem>>, %arg3: memref<1024x16xf32, #tpu.memory_space<vmem>>, %arg4: memref<16x64xf32, #tpu.memory_space<vmem>>, %arg5: memref<1x64xf32, #tpu.memory_space<vmem>>, %arg6: memref<64x64xf32, #tpu.memory_space<vmem>>, %arg7: memref<1x64xf32, #tpu.memory_space<vmem>>, %arg8: memref<64x128xf32, #tpu.memory_space<vmem>>, %arg9: memref<1x128xf32, #tpu.memory_space<vmem>>, %arg10: memref<3x1024xf32, #tpu.memory_space<vmem>>) attributes {dimension_semantics = [#tpu.dimension_semantics<parallel>], iteration_bounds = array<i64: 2>, scalar_prefetch = 0 : i64, scratch_operands = 0 : i64, tpu.core_type = #tpu.core_type<tc>, window_params = [{transform_indices = @transform_0, window_bounds = array<i64: 3, 1024>}, {pipeline_mode = #tpu.pipeline_mode<synchronous>, transform_indices = @transform_1, window_bounds = array<i64: 3, 1>}, {transform_indices = @transform_2, window_bounds = array<i64: 1024, 16>}, {pipeline_mode = #tpu.pipeline_mode<synchronous>, transform_indices = @transform_3, window_bounds = array<i64: 16, 64>}, {pipeline_mode = #tpu.pipeline_mode<synchronous>, transform_indices = @transform_4, window_bounds = array<i64: 1, 64>}, {pipeline_mode = #tpu.pipeline_mode<synchronous>, transform_indices = @transform_5, window_bounds = array<i64: 64, 64>}, {pipeline_mode = #tpu.pipeline_mode<synchronous>, transform_indices = @transform_6, window_bounds = array<i64: 1, 64>}, {pipeline_mode = #tpu.pipeline_mode<synchronous>, transform_indices = @transform_7, window_bounds = array<i64: 64, 128>}, {pipeline_mode = #tpu.pipeline_mode<synchronous>, transform_indices = @transform_8, window_bounds = array<i64: 1, 128>}, {transform_indices = @transform_9, window_bounds = array<i64: 3, 1024>}]} {
    %c0 = arith.constant 0 : index
    %c0_0 = arith.constant 0 : index
    %0 = vector.load %arg3[%c0, %c0_0] : memref<1024x16xf32, #tpu.memory_space<vmem>>, vector<1024x16xf32>
    %c0_1 = arith.constant 0 : index
    %c0_2 = arith.constant 0 : index
    %1 = vector.load %arg4[%c0_1, %c0_2] : memref<16x64xf32, #tpu.memory_space<vmem>>, vector<16x64xf32>
    %cst = arith.constant dense<0.000000e+00> : vector<1024x64xf32>
    %2 = tpu.matmul %0, %1, %cst {dimension_numbers = #tpu.dot_dimension_numbers<[1], [0], [0], [1], [0, 0, 1, 1], [], []>} : vector<1024x16xf32>, vector<16x64xf32>, vector<1024x64xf32> -> vector<1024x64xf32>
    %c0_3 = arith.constant 0 : index
    %c0_4 = arith.constant 0 : index
    %3 = vector.load %arg5[%c0_3, %c0_4] : memref<1x64xf32, #tpu.memory_space<vmem>>, vector<1x64xf32>
    %4 = vector.broadcast %3 : vector<1x64xf32> to vector<1024x64xf32>
    %5 = arith.addf %2, %4 : vector<1024x64xf32>
    %cst_5 = arith.constant dense<0.000000e+00> : vector<1024xf32>
    %6 = vector.multi_reduction <add>, %5, %cst_5 [1] : vector<1024x64xf32> to vector<1024xf32>
    %7 = vector.shape_cast %6 : vector<1024xf32> to vector<1024x1xf32>
    %cst_6 = arith.constant 6.400000e+01 : f32
    %8 = vector.broadcast %cst_6 : f32 to vector<1024x1xf32>
    %9 = arith.divf %7, %8 : vector<1024x1xf32>
    %10 = arith.mulf %5, %5 : vector<1024x64xf32>
    %cst_7 = arith.constant dense<0.000000e+00> : vector<1024xf32>
    %11 = vector.multi_reduction <add>, %10, %cst_7 [1] : vector<1024x64xf32> to vector<1024xf32>
    %12 = vector.shape_cast %11 : vector<1024xf32> to vector<1024x1xf32>
    %cst_8 = arith.constant 6.400000e+01 : f32
    %13 = vector.broadcast %cst_8 : f32 to vector<1024x1xf32>
    %14 = arith.divf %12, %13 : vector<1024x1xf32>
    %15 = arith.mulf %9, %9 : vector<1024x1xf32>
    %16 = arith.subf %14, %15 : vector<1024x1xf32>
    %17 = vector.broadcast %9 : vector<1024x1xf32> to vector<1024x64xf32>
    %18 = arith.subf %5, %17 : vector<1024x64xf32>
    %cst_9 = arith.constant 9.99999974E-6 : f32
    %19 = vector.broadcast %cst_9 : f32 to vector<1024x1xf32>
    %20 = arith.addf %16, %19 : vector<1024x1xf32>
    %21 = math.rsqrt %20 : vector<1024x1xf32>
    %22 = vector.broadcast %21 : vector<1024x1xf32> to vector<1024x64xf32>
    %23 = arith.mulf %18, %22 : vector<1024x64xf32>
    %cst_10 = arith.constant 0.000000e+00 : f32
    %24 = vector.broadcast %cst_10 : f32 to vector<1024x64xf32>
    %25 = arith.maximumf %23, %24 : vector<1024x64xf32>
    %c0_11 = arith.constant 0 : index
    %c0_12 = arith.constant 0 : index
    %26 = vector.load %arg6[%c0_11, %c0_12] : memref<64x64xf32, #tpu.memory_space<vmem>>, vector<64x64xf32>
    %cst_13 = arith.constant dense<0.000000e+00> : vector<1024x64xf32>
    %27 = tpu.matmul %25, %26, %cst_13 {dimension_numbers = #tpu.dot_dimension_numbers<[1], [0], [0], [1], [0, 0, 1, 1], [], []>} : vector<1024x64xf32>, vector<64x64xf32>, vector<1024x64xf32> -> vector<1024x64xf32>
    %c0_14 = arith.constant 0 : index
    %c0_15 = arith.constant 0 : index
    %28 = vector.load %arg7[%c0_14, %c0_15] : memref<1x64xf32, #tpu.memory_space<vmem>>, vector<1x64xf32>
    %29 = vector.broadcast %28 : vector<1x64xf32> to vector<1024x64xf32>
    %30 = arith.addf %27, %29 : vector<1024x64xf32>
    %cst_16 = arith.constant dense<0.000000e+00> : vector<1024xf32>
    %31 = vector.multi_reduction <add>, %30, %cst_16 [1] : vector<1024x64xf32> to vector<1024xf32>
    %32 = vector.shape_cast %31 : vector<1024xf32> to vector<1024x1xf32>
    %cst_17 = arith.constant 6.400000e+01 : f32
    %33 = vector.broadcast %cst_17 : f32 to vector<1024x1xf32>
    %34 = arith.divf %32, %33 : vector<1024x1xf32>
    %35 = arith.mulf %30, %30 : vector<1024x64xf32>
    %cst_18 = arith.constant dense<0.000000e+00> : vector<1024xf32>
    %36 = vector.multi_reduction <add>, %35, %cst_18 [1] : vector<1024x64xf32> to vector<1024xf32>
    %37 = vector.shape_cast %36 : vector<1024xf32> to vector<1024x1xf32>
    %cst_19 = arith.constant 6.400000e+01 : f32
    %38 = vector.broadcast %cst_19 : f32 to vector<1024x1xf32>
    %39 = arith.divf %37, %38 : vector<1024x1xf32>
    %40 = arith.mulf %34, %34 : vector<1024x1xf32>
    %41 = arith.subf %39, %40 : vector<1024x1xf32>
    %42 = vector.broadcast %34 : vector<1024x1xf32> to vector<1024x64xf32>
    %43 = arith.subf %30, %42 : vector<1024x64xf32>
    %cst_20 = arith.constant 9.99999974E-6 : f32
    %44 = vector.broadcast %cst_20 : f32 to vector<1024x1xf32>
    %45 = arith.addf %41, %44 : vector<1024x1xf32>
    %46 = math.rsqrt %45 : vector<1024x1xf32>
    %47 = vector.broadcast %46 : vector<1024x1xf32> to vector<1024x64xf32>
    %48 = arith.mulf %43, %47 : vector<1024x64xf32>
    %cst_21 = arith.constant 0.000000e+00 : f32
    %49 = vector.broadcast %cst_21 : f32 to vector<1024x64xf32>
    %50 = arith.maximumf %48, %49 : vector<1024x64xf32>
    %c0_22 = arith.constant 0 : index
    %c0_23 = arith.constant 0 : index
    %51 = vector.load %arg8[%c0_22, %c0_23] : memref<64x128xf32, #tpu.memory_space<vmem>>, vector<64x128xf32>
    %cst_24 = arith.constant dense<0.000000e+00> : vector<1024x128xf32>
    %52 = tpu.matmul %50, %51, %cst_24 {dimension_numbers = #tpu.dot_dimension_numbers<[1], [0], [0], [1], [0, 0, 1, 1], [], []>} : vector<1024x64xf32>, vector<64x128xf32>, vector<1024x128xf32> -> vector<1024x128xf32>
    %c0_25 = arith.constant 0 : index
    %c0_26 = arith.constant 0 : index
    %53 = vector.load %arg9[%c0_25, %c0_26] : memref<1x128xf32, #tpu.memory_space<vmem>>, vector<1x128xf32>
    %54 = vector.broadcast %53 : vector<1x128xf32> to vector<1024x128xf32>
    %55 = arith.addf %52, %54 : vector<1024x128xf32>
    %56 = tpu.transpose %55, [1, 0] : vector<1024x128xf32> -> vector<128x1024xf32>
    %c0_27 = arith.constant 0 : index
    %c0_28 = arith.constant 0 : index
    %57 = vector.load %arg1[%c0_27, %c0_28] : memref<3x1024xf32, #tpu.memory_space<vmem>>, vector<3x1024xf32>
    %c0_29 = arith.constant 0 : index
    %c0_30 = arith.constant 0 : index
    %58 = vector.load %arg2[%c0_29, %c0_30] : memref<3x1xf32, #tpu.memory_space<vmem>>, vector<3x1xf32>
    %59 = vector.broadcast %58 : vector<3x1xf32> to vector<3x1024xf32>
    %60 = arith.subf %57, %59 : vector<3x1024xf32>
    %61 = vector.extract_strided_slice %60 {offsets = [0, 0], sizes = [1, 1024], strides = [1, 1]} : vector<3x1024xf32> to vector<1x1024xf32>
    %62 = vector.extract_strided_slice %60 {offsets = [1, 0], sizes = [1, 1024], strides = [1, 1]} : vector<3x1024xf32> to vector<1x1024xf32>
    %63 = vector.extract_strided_slice %60 {offsets = [2, 0], sizes = [1, 1024], strides = [1, 1]} : vector<3x1024xf32> to vector<1x1024xf32>
    %64 = arith.mulf %61, %61 : vector<1x1024xf32>
    %65 = arith.mulf %62, %62 : vector<1x1024xf32>
    %66 = arith.addf %64, %65 : vector<1x1024xf32>
    %67 = arith.mulf %63, %63 : vector<1x1024xf32>
    %68 = arith.addf %66, %67 : vector<1x1024xf32>
    %cst_31 = arith.constant 1.000000e-24 : f32
    %69 = vector.broadcast %cst_31 : f32 to vector<1x1024xf32>
    %70 = arith.maximumf %68, %69 : vector<1x1024xf32>
    %71 = math.rsqrt %70 : vector<1x1024xf32>
    %72 = arith.mulf %61, %71 : vector<1x1024xf32>
    %73 = arith.mulf %62, %71 : vector<1x1024xf32>
    %74 = arith.mulf %63, %71 : vector<1x1024xf32>
    %75 = arith.mulf %72, %72 : vector<1x1024xf32>
    %76 = arith.mulf %73, %73 : vector<1x1024xf32>
    %77 = arith.mulf %74, %74 : vector<1x1024xf32>
    %78 = arith.mulf %72, %73 : vector<1x1024xf32>
    %79 = arith.mulf %73, %74 : vector<1x1024xf32>
    %80 = arith.mulf %72, %74 : vector<1x1024xf32>
    %cst_32 = arith.constant 0.282094806 : f32
    %81 = vector.broadcast %cst_32 : f32 to vector<1x1024xf32>
    %cst_33 = arith.constant -0.488602519 : f32
    %82 = vector.broadcast %cst_33 : f32 to vector<1x1024xf32>
    %83 = arith.mulf %82, %73 : vector<1x1024xf32>
    %cst_34 = arith.constant 0.488602519 : f32
    %84 = vector.broadcast %cst_34 : f32 to vector<1x1024xf32>
    %85 = arith.mulf %84, %74 : vector<1x1024xf32>
    %cst_35 = arith.constant -0.488602519 : f32
    %86 = vector.broadcast %cst_35 : f32 to vector<1x1024xf32>
    %87 = arith.mulf %86, %72 : vector<1x1024xf32>
    %cst_36 = arith.constant 1.09254849 : f32
    %88 = vector.broadcast %cst_36 : f32 to vector<1x1024xf32>
    %89 = arith.mulf %88, %78 : vector<1x1024xf32>
    %cst_37 = arith.constant -1.09254849 : f32
    %90 = vector.broadcast %cst_37 : f32 to vector<1x1024xf32>
    %91 = arith.mulf %90, %79 : vector<1x1024xf32>
    %cst_38 = arith.constant 2.000000e+00 : f32
    %92 = vector.broadcast %cst_38 : f32 to vector<1x1024xf32>
    %93 = arith.mulf %92, %77 : vector<1x1024xf32>
    %94 = arith.subf %93, %75 : vector<1x1024xf32>
    %95 = arith.subf %94, %76 : vector<1x1024xf32>
    %cst_39 = arith.constant 0.31539157 : f32
    %96 = vector.broadcast %cst_39 : f32 to vector<1x1024xf32>
    %97 = arith.mulf %96, %95 : vector<1x1024xf32>
    %cst_40 = arith.constant -1.09254849 : f32
    %98 = vector.broadcast %cst_40 : f32 to vector<1x1024xf32>
    %99 = arith.mulf %98, %80 : vector<1x1024xf32>
    %100 = arith.subf %75, %76 : vector<1x1024xf32>
    %cst_41 = arith.constant 0.546274245 : f32
    %101 = vector.broadcast %cst_41 : f32 to vector<1x1024xf32>
    %102 = arith.mulf %101, %100 : vector<1x1024xf32>
    %cst_42 = arith.constant -0.590043604 : f32
    %103 = vector.broadcast %cst_42 : f32 to vector<1x1024xf32>
    %104 = arith.mulf %103, %73 : vector<1x1024xf32>
    %cst_43 = arith.constant 3.000000e+00 : f32
    %105 = vector.broadcast %cst_43 : f32 to vector<1x1024xf32>
    %106 = arith.mulf %105, %75 : vector<1x1024xf32>
    %107 = arith.subf %106, %76 : vector<1x1024xf32>
    %108 = arith.mulf %104, %107 : vector<1x1024xf32>
    %cst_44 = arith.constant 2.89061141 : f32
    %109 = vector.broadcast %cst_44 : f32 to vector<1x1024xf32>
    %110 = arith.mulf %109, %78 : vector<1x1024xf32>
    %111 = arith.mulf %110, %74 : vector<1x1024xf32>
    %cst_45 = arith.constant -0.457045794 : f32
    %112 = vector.broadcast %cst_45 : f32 to vector<1x1024xf32>
    %113 = arith.mulf %112, %73 : vector<1x1024xf32>
    %cst_46 = arith.constant 4.000000e+00 : f32
    %114 = vector.broadcast %cst_46 : f32 to vector<1x1024xf32>
    %115 = arith.mulf %114, %77 : vector<1x1024xf32>
    %116 = arith.subf %115, %75 : vector<1x1024xf32>
    %117 = arith.subf %116, %76 : vector<1x1024xf32>
    %118 = arith.mulf %113, %117 : vector<1x1024xf32>
    %cst_47 = arith.constant 0.373176336 : f32
    %119 = vector.broadcast %cst_47 : f32 to vector<1x1024xf32>
    %120 = arith.mulf %119, %74 : vector<1x1024xf32>
    %cst_48 = arith.constant 2.000000e+00 : f32
    %121 = vector.broadcast %cst_48 : f32 to vector<1x1024xf32>
    %122 = arith.mulf %121, %77 : vector<1x1024xf32>
    %cst_49 = arith.constant 3.000000e+00 : f32
    %123 = vector.broadcast %cst_49 : f32 to vector<1x1024xf32>
    %124 = arith.mulf %123, %75 : vector<1x1024xf32>
    %125 = arith.subf %122, %124 : vector<1x1024xf32>
    %cst_50 = arith.constant 3.000000e+00 : f32
    %126 = vector.broadcast %cst_50 : f32 to vector<1x1024xf32>
    %127 = arith.mulf %126, %76 : vector<1x1024xf32>
    %128 = arith.subf %125, %127 : vector<1x1024xf32>
    %129 = arith.mulf %120, %128 : vector<1x1024xf32>
    %cst_51 = arith.constant -0.457045794 : f32
    %130 = vector.broadcast %cst_51 : f32 to vector<1x1024xf32>
    %131 = arith.mulf %130, %72 : vector<1x1024xf32>
    %cst_52 = arith.constant 4.000000e+00 : f32
    %132 = vector.broadcast %cst_52 : f32 to vector<1x1024xf32>
    %133 = arith.mulf %132, %77 : vector<1x1024xf32>
    %134 = arith.subf %133, %75 : vector<1x1024xf32>
    %135 = arith.subf %134, %76 : vector<1x1024xf32>
    %136 = arith.mulf %131, %135 : vector<1x1024xf32>
    %cst_53 = arith.constant 1.44530571 : f32
    %137 = vector.broadcast %cst_53 : f32 to vector<1x1024xf32>
    %138 = arith.mulf %137, %74 : vector<1x1024xf32>
    %139 = arith.subf %75, %76 : vector<1x1024xf32>
    %140 = arith.mulf %138, %139 : vector<1x1024xf32>
    %cst_54 = arith.constant -0.590043604 : f32
    %141 = vector.broadcast %cst_54 : f32 to vector<1x1024xf32>
    %142 = arith.mulf %141, %72 : vector<1x1024xf32>
    %cst_55 = arith.constant 3.000000e+00 : f32
    %143 = vector.broadcast %cst_55 : f32 to vector<1x1024xf32>
    %144 = arith.mulf %143, %76 : vector<1x1024xf32>
    %145 = arith.subf %75, %144 : vector<1x1024xf32>
    %146 = arith.mulf %142, %145 : vector<1x1024xf32>
    %147 = tpu.concatenate %81, %83, %85, %87, %89, %91, %97, %99, %102, %108, %111, %118, %129, %136, %140, %146 in 0 : vector<1x1024xf32>, vector<1x1024xf32>, vector<1x1024xf32>, vector<1x1024xf32>, vector<1x1024xf32>, vector<1x1024xf32>, vector<1x1024xf32>, vector<1x1024xf32>, vector<1x1024xf32>, vector<1x1024xf32>, vector<1x1024xf32>, vector<1x1024xf32>, vector<1x1024xf32>, vector<1x1024xf32>, vector<1x1024xf32>, vector<1x1024xf32> -> vector<16x1024xf32>
    %148 = vector.extract_strided_slice %56 {offsets = [0, 0], sizes = [16, 1024], strides = [1, 1]} : vector<128x1024xf32> to vector<16x1024xf32>
    %149 = arith.mulf %148, %147 : vector<16x1024xf32>
    %cst_56 = arith.constant dense<0.000000e+00> : vector<1024xf32>
    %150 = vector.multi_reduction <add>, %149, %cst_56 [0] : vector<16x1024xf32> to vector<1024xf32>
    %151 = vector.shape_cast %150 : vector<1024xf32> to vector<1x1024xf32>
    %152 = vector.extract_strided_slice %56 {offsets = [16, 0], sizes = [16, 1024], strides = [1, 1]} : vector<128x1024xf32> to vector<16x1024xf32>
    %153 = arith.mulf %152, %147 : vector<16x1024xf32>
    %cst_57 = arith.constant dense<0.000000e+00> : vector<1024xf32>
    %154 = vector.multi_reduction <add>, %153, %cst_57 [0] : vector<16x1024xf32> to vector<1024xf32>
    %155 = vector.shape_cast %154 : vector<1024xf32> to vector<1x1024xf32>
    %156 = vector.extract_strided_slice %56 {offsets = [32, 0], sizes = [16, 1024], strides = [1, 1]} : vector<128x1024xf32> to vector<16x1024xf32>
    %157 = arith.mulf %156, %147 : vector<16x1024xf32>
    %cst_58 = arith.constant dense<0.000000e+00> : vector<1024xf32>
    %158 = vector.multi_reduction <add>, %157, %cst_58 [0] : vector<16x1024xf32> to vector<1024xf32>
    %159 = vector.shape_cast %158 : vector<1024xf32> to vector<1x1024xf32>
    %160 = tpu.concatenate %151, %155, %159 in 0 : vector<1x1024xf32>, vector<1x1024xf32>, vector<1x1024xf32> -> vector<3x1024xf32>
    %161 = arith.negf %160 : vector<3x1024xf32>
    %162 = math.exp %161 : vector<3x1024xf32>
    %cst_59 = arith.constant 1.000000e+00 : f32
    %163 = vector.broadcast %cst_59 : f32 to vector<3x1024xf32>
    %164 = arith.addf %163, %162 : vector<3x1024xf32>
    %165 = arith.divf %163, %164 : vector<3x1024xf32>
    %c0_60 = arith.constant 0 : index
    %c0_61 = arith.constant 0 : index
    %166 = vector.load %arg10[%c0_60, %c0_61] : memref<3x1024xf32, #tpu.memory_space<vmem>>, vector<3x1024xf32>
    tpu.vector_store %arg10[%c0_60, %c0_61], %165 {strides = array<i32>} : memref<3x1024xf32, #tpu.memory_space<vmem>>, vector<3x1024xf32>,
    return
  }
  func.func @transform_0(%arg0: i32) -> (i32, i32) {
    %c0_i32 = arith.constant 0 : i32
    %c0_i32_0 = arith.constant 0 : i32
    return %c0_i32, %arg0 : i32, i32
  }
  func.func @transform_1(%arg0: i32) -> (i32, i32) {
    %c0_i32 = arith.constant 0 : i32
    %c0_i32_0 = arith.constant 0 : i32
    %c0_i32_1 = arith.constant 0 : i32
    return %c0_i32, %c0_i32_0 : i32, i32
  }
  func.func @transform_2(%arg0: i32) -> (i32, i32) {
    %c0_i32 = arith.constant 0 : i32
    %c0_i32_0 = arith.constant 0 : i32
    return %arg0, %c0_i32 : i32, i32
  }
  func.func @transform_3(%arg0: i32) -> (i32, i32) {
    %c0_i32 = arith.constant 0 : i32
    %c0_i32_0 = arith.constant 0 : i32
    %c0_i32_1 = arith.constant 0 : i32
    return %c0_i32, %c0_i32_0 : i32, i32
  }
  func.func @transform_4(%arg0: i32) -> (i32, i32) {
    %c0_i32 = arith.constant 0 : i32
    %c0_i32_0 = arith.constant 0 : i32
    %c0_i32_1 = arith.constant 0 : i32
    return %c0_i32, %c0_i32_0 : i32, i32
  }
  func.func @transform_5(%arg0: i32) -> (i32, i32) {
    %c0_i32 = arith.constant 0 : i32
    %c0_i32_0 = arith.constant 0 : i32
    %c0_i32_1 = arith.constant 0 : i32
    return %c0_i32, %c0_i32_0 : i32, i32
  }
  func.func @transform_6(%arg0: i32) -> (i32, i32) {
    %c0_i32 = arith.constant 0 : i32
    %c0_i32_0 = arith.constant 0 : i32
    %c0_i32_1 = arith.constant 0 : i32
    return %c0_i32, %c0_i32_0 : i32, i32
  }
  func.func @transform_7(%arg0: i32) -> (i32, i32) {
    %c0_i32 = arith.constant 0 : i32
    %c0_i32_0 = arith.constant 0 : i32
    %c0_i32_1 = arith.constant 0 : i32
    return %c0_i32, %c0_i32_0 : i32, i32
  }
  func.func @transform_8(%arg0: i32) -> (i32, i32) {
    %c0_i32 = arith.constant 0 : i32
    %c0_i32_0 = arith.constant 0 : i32
    %c0_i32_1 = arith.constant 0 : i32
    return %c0_i32, %c0_i32_0 : i32, i32
  }
  func.func @transform_9(%arg0: i32) -> (i32, i32) {
    %c0_i32 = arith.constant 0 : i32
    %c0_i32_0 = arith.constant 0 : i32
    return %c0_i32, %arg0 : i32, i32
  }
}

</mosaic_0001>

<bundles_post_ra>
// kernel: color_model_forward.1
= control target key start
LH: loop header
LB: loop body
LE: loop exit
PB: predicated region body
PF: predicated region fallthrough
CT: control target
= control target key end

     0   :  { %14 = vsyncpa [#allocation3], 0  ;;  %s19161_s0 = inlined_call_operand.vmem [shape: f32[3,1200], index: 0, kind: input, shape index: {}]   ;;  %s19162_s1 = inlined_call_operand.vmem [shape: f32[3,1], index: 1, kind: input, shape index: {}]   ;;  %s19163_s2 = inlined_call_operand.vmem [shape: f32[1200,16], index: 2, kind: input, shape index: {}]   ;;  %s19164_s3 = inlined_call_operand.vmem [shape: f32[16,64], index: 3, kind: input, shape index: {}]   ;;  %s19165_s4 = inlined_call_operand.vmem [shape: f32[1,64], index: 4, kind: input, shape index: {}]   ;;  %s19166_s5 = inlined_call_operand.vmem [shape: f32[64,64], index: 5, kind: input, shape index: {}]   ;;  %s19167_s6 = inlined_call_operand.vmem [shape: f32[1,64], index: 6, kind: input, shape index: {}]   ;;  %s19168_s7 = inlined_call_operand.vmem [shape: f32[64,128], index: 7, kind: input, shape index: {}]   ;;  %s19169_s8 = inlined_call_operand.vmem [shape: f32[1,128], index: 8, kind: input, shape index: {}]   ;;  %s19170_s9 = inlined_call_operand.hbm [shape: f32[3,1200], index: 9, kind: output, shape index: {}]  }
   0x1   :  { %16 = vsyncpa [#allocation3 + $0x1], 0  ;;  %s12006_s30 = smov 0   ;;  %s12008_s10 = smov 0  }
   0x2   :  { %s12010_s11 = smov 0   ;;  %s12012_s12 = smov 0  }
   0x3 LB: > { %s12027_s13 = sadd.s32 4294967295, %s11951_s12   ;;  %s9793_s14 = sadd.s32 4294967294, %s11951_s12   ;;  %s11951_s12 = sphi %s12012_s12, %s20689_s12   ;;  %s11947_s11 = sphi %s12010_s11, %s20688_s11   ;;  %s11943_s10 = sphi %s12008_s10, %s20687_s10   ;;  %s11939_s30 = sphi %s12006_s30, %s20686_s30  }
   0x4   : > { %s12031_s15 = sadd.s32 1, %s11951_s12   ;;  %s228_s16 = sadd.s32 1, %s11947_s11 }
   0x5   : > { %s225_s17 = ssub.s32 %s11951_s12, %s12031_s15  ;;  %p238_p0 = scmp.ne.s32.totalorder %s11947_s11, %s11943_s10 }
   0x6   : > { %p226_p1 = scmp.eq.s32.totalorder %s225_s17, 0  ;;  %p239_p2 = scmp.eq.s32.totalorder %s12027_s13, 1 }
   0x7   : > { %p244_p3 = scmp.ne.s32.totalorder %s11943_s10, %s11939_s30  ;;  %p245_p4 = scmp.eq.s32.totalorder %s9793_s14, 1 }
   0x8   : > { %s12042_s18 = scalar_select %p226_p1, %s11947_s11, %s228_s16  }
   0x9   : > { %p12044_p5 = por %p239_p2, %p238_p0  ;;  %p12048_p6 = por %p245_p4, %p244_p3 }
   0xa   : > { %p9796_p7 = scmp.ge.s32.totalorder %s11951_s12, 1  ;;  %p318_p8 = scmp.lt.s32.totalorder %s11951_s12, 3 }
   0xc   : > { %p319_p9 = pnand %p9796_p7, %p318_p8 }
   0xe   : > { %322 = sbr.rel (%p319_p9) target bundleno = 1873 (0x751), region = 56 }
  0x15   : > { %v528_v0 = vld [vmem:[%s19164_s3] sm:$0xff]  ;;  %v529_v1 = vld [vmem:[%s19164_s3 + $0x8] sm:$0xff]  ;;  %s9800_s25 = sshll.u32 %s12027_s13, 7  ;;  %vm537_vm0 = vcmask 130048   ;;  %vm1627_vm1 = vcmask 523264   ;;  %s18199_s24 = sshll.u32 %s12027_s13, 3 }
  0x16   : > { %v11249_v2 = vpack.c.bf16 %v529_v1, %v528_v0  ;;  %p386_p10 = scmp.lt.s32.totalorder %s9800_s25, 149  ;;  %p372_p11 = scmp.lt.s32.totalorder %s18199_s24, 9  ;;  %vm9282_vm2 = vcmask 1040384   ;;  %vm9291_vm3 = vcmask 1041408   ;;  %vm9300_vm4 = vcmask 1042432  }
  0x17   : > { %vm9309_vm5 = vcmask 1043456   ;;  %vm9318_vm6 = vcmask 1044480   ;;  %vm9327_vm7 = vcmask 1045504   ;;  %vm9336_vm8 = vcmask 1046528   ;;  %s9710_s28 = ssub.s32 (%p12044_p5), 10, %s18199_s24 }
  0x18   : > { %11250 = vmatprep.subr.bf16.mxu0 %v11249_v2  ;;  %11285 = vmatprep.subr.bf16.mxu1 %v11249_v2  ;;  %s20691_s25 = smov (!%p386_p10, %s9800_s25), 149  ;;  %p9711_p12 = scmp.lt.s32.totalorder (%p12044_p5), %s9710_s28, 8 }
  0x19   : > { %11252 = vmatpush3.bf16.msra.mxu0 %v11249_v2  ;;  %11286 = vmatpush3.bf16.msra.mxu1 %v11249_v2  ;;  %s9801_s26 = sshll.u32 %s20691_s25, 3  ;;  %s364_s25 = sand.u32 1, %s11943_s10  }
  0x1a   : > { %s12064_s29 = scalar_lea.vmem %s19163_s2, %s9801_s26  ;;  %s9797_s21 = sshll.u32 %s364_s25, 5 }
  0x1b   : > { %v400_v3 = vld [vmem:[%s12064_s29] sm:$0xff]  ;;  %v401_v5 = vld [vmem:[%s12064_s29 + $0x8] sm:$0xff]  ;;  %v402_v7 = vld [vmem:[%s12064_s29 + $0x10] sm:$0xff]  ;;  %s18230_s26 = scalar_select %p372_p11, %s18199_s24, 9 }
  0x1c   : > { %v464_v4 = vld [vmem:[%s12064_s29 + $0x200] sm:$0xff]  ;;  %10641 = vmatprep.mubr.msk.f32.mxu0 %vm537_vm0, %v400_v3  ;;  %v465_v6 = vld [vmem:[%s12064_s29 + $0x208] sm:$0xff]  ;;  %v466_v8 = vld [vmem:[%s12064_s29 + $0x210] sm:$0xff]  ;;  %s18810_s22 = scalar_lea.vmem [#allocation2], %s9797_s21 }
  0x1d   : > { %10737 = vmatprep.mubr.msk.f32.mxu1 %vm537_vm0, %v464_v4  ;;  %10642 = vmatmul.mubr.msk.f32.vlgmr.msra.gmra.mrb[0].mxu0 %vm537_vm0, %v401_v5  ;;  %v403_v9 = vld [vmem:[%s12064_s29 + $0x18] sm:$0xff]  ;;  %v404_v11 = vld [vmem:[%s12064_s29 + $0x20] sm:$0xff]  ;;  %v405_v13 = vld [vmem:[%s12064_s29 + $0x28] sm:$0xff]  ;;  %s9799_s27 = sshll.u32 %s18230_s26, 2 }
  0x1e   : > { %10738 = vmatmul.mubr.msk.f32.vlgmr.msra.gmra.mrb[0].mxu1 %vm537_vm0, %v465_v6  ;;  %10644 = vmatprep.mubr.msk.f32.mxu0 %vm537_vm0, %v402_v7  ;;  %v467_v10 = vld [vmem:[%s12064_s29 + $0x218] sm:$0xff]  ;;  %v468_v12 = vld [vmem:[%s12064_s29 + $0x220] sm:$0xff]  ;;  %v469_v14 = vld [vmem:[%s12064_s29 + $0x228] sm:$0xff]  ;;  %s375_s14 = scalar_lea.vmem %s19161_s0, %s9799_s27  ;;  %s19106_s27 = scalar_lea.sflag [#allocation3], %s364_s25 }
  0x1f   : > { %10740 = vmatprep.mubr.msk.f32.mxu1 %vm537_vm0, %v466_v8  ;;  %v406_v15 = vld [vmem:[%s12064_s29 + $0x30] sm:$0xff]  ;;  %v407_v17 = vld [vmem:[%s12064_s29 + $0x38] sm:$0xff]  ;;  %v408_v19 = vld [vmem:[%s12064_s29 + $0x40] sm:$0xff] }
  0x20   : > { %v470_v16 = vld [vmem:[%s12064_s29 + $0x230] sm:$0xff]  ;;  %v471_v18 = vld [vmem:[%s12064_s29 + $0x238] sm:$0xff]  ;;  %v472_v20 = vld [vmem:[%s12064_s29 + $0x240] sm:$0xff] }
  0x21   : > { %10645 = vmatmul.mubr.msk.f32.gmra.mrb[2].mxu0 %vm537_vm0, %v403_v9  ;;  %v409_v21 = vld [vmem:[%s12064_s29 + $0x48] sm:$0xff]  ;;  %v410_v23 = vld [vmem:[%s12064_s29 + $0x50] sm:$0xff]  ;;  %v411_v25 = vld [vmem:[%s12064_s29 + $0x58] sm:$0xff] }
  0x22   : > { %10741 = vmatmul.mubr.msk.f32.gmra.mrb[2].mxu1 %vm537_vm0, %v467_v10  ;;  %10647 = vmatprep.mubr.msk.f32.mxu0 %vm537_vm0, %v404_v11  ;;  %v473_v22 = vld [vmem:[%s12064_s29 + $0x248] sm:$0xff]  ;;  %v474_v24 = vld [vmem:[%s12064_s29 + $0x250] sm:$0xff]  ;;  %v475_v26 = vld [vmem:[%s12064_s29 + $0x258] sm:$0xff] }
  0x23   : > { %10743 = vmatprep.mubr.msk.f32.mxu1 %vm537_vm0, %v468_v12  ;;  %v412_v27 = vld [vmem:[%s12064_s29 + $0x60] sm:$0xff]  ;;  %v413_v29 = vld [vmem:[%s12064_s29 + $0x68] sm:$0xff]  ;;  %v414_v31 = vld [vmem:[%s12064_s29 + $0x70] sm:$0xff] }
  0x24   : > { %v476_v28 = vld [vmem:[%s12064_s29 + $0x260] sm:$0xff]  ;;  %v477_v30 = vld [vmem:[%s12064_s29 + $0x268] sm:$0xff]  ;;  %v478_v32 = vld [vmem:[%s12064_s29 + $0x270] sm:$0xff] }
  0x25   : > { %10648 = vmatmul.mubr.msk.f32.gmra.mrb[4].mxu0 %vm537_vm0, %v405_v13  ;;  %v415_v33 = vld [vmem:[%s12064_s29 + $0x78] sm:$0xff]  ;;  %v416_v35 = vld [vmem:[%s12064_s29 + $0x80] sm:$0xff]  ;;  %v417_v37 = vld [vmem:[%s12064_s29 + $0x88] sm:$0xff] }
  0x26   : > { %10744 = vmatmul.mubr.msk.f32.gmra.mrb[4].mxu1 %vm537_vm0, %v469_v14  ;;  %10650 = vmatprep.mubr.msk.f32.mxu0 %vm537_vm0, %v406_v15  ;;  %v479_v34 = vld [vmem:[%s12064_s29 + $0x278] sm:$0xff]  ;;  %v480_v36 = vld [vmem:[%s12064_s29 + $0x280] sm:$0xff]  ;;  %v481_v38 = vld [vmem:[%s12064_s29 + $0x288] sm:$0xff] }
  0x27   : > { %10746 = vmatprep.mubr.msk.f32.mxu1 %vm537_vm0, %v470_v16  ;;  %v418_v39 = vld [vmem:[%s12064_s29 + $0x90] sm:$0xff]  ;;  %v419_v41 = vld [vmem:[%s12064_s29 + $0x98] sm:$0xff]  ;;  %v420_v43 = vld [vmem:[%s12064_s29 + $0xa0] sm:$0xff] }
  0x28   : > { %v482_v40 = vld [vmem:[%s12064_s29 + $0x290] sm:$0xff]  ;;  %v483_v42 = vld [vmem:[%s12064_s29 + $0x298] sm:$0xff]  ;;  %v484_v44 = vld [vmem:[%s12064_s29 + $0x2a0] sm:$0xff] }
  0x29   : > { %10651 = vmatmul.mubr.msk.f32.gmra.mrb[6].mxu0 %vm537_vm0, %v407_v17  ;;  %v421_v45 = vld [vmem:[%s12064_s29 + $0xa8] sm:$0xff]  ;;  %v422_v47 = vld [vmem:[%s12064_s29 + $0xb0] sm:$0xff]  ;;  %v423_v49 = vld [vmem:[%s12064_s29 + $0xb8] sm:$0xff] }
  0x2a   : > { %10747 = vmatmul.mubr.msk.f32.gmra.mrb[6].mxu1 %vm537_vm0, %v471_v18  ;;  %10653 = vmatprep.mubr.msk.f32.mxu0 %vm537_vm0, %v408_v19  ;;  %v485_v46 = vld [vmem:[%s12064_s29 + $0x2a8] sm:$0xff]  ;;  %v486_v48 = vld [vmem:[%s12064_s29 + $0x2b0] sm:$0xff]  ;;  %v487_v50 = vld [vmem:[%s12064_s29 + $0x2b8] sm:$0xff] }
  0x2b   : > { %10749 = vmatprep.mubr.msk.f32.mxu1 %vm537_vm0, %v472_v20  ;;  %v424_v51 = vld [vmem:[%s12064_s29 + $0xc0] sm:$0xff]  ;;  %v425_v53 = vld [vmem:[%s12064_s29 + $0xc8] sm:$0xff]  ;;  %v426_v55 = vld [vmem:[%s12064_s29 + $0xd0] sm:$0xff] }
  0x2c   : > { %v488_v52 = vld [vmem:[%s12064_s29 + $0x2c0] sm:$0xff]  ;;  %v489_v54 = vld [vmem:[%s12064_s29 + $0x2c8] sm:$0xff]  ;;  %v490_v56 = vld [vmem:[%s12064_s29 + $0x2d0] sm:$0xff] }
  0x2d   : > { %10654 = vmatmul.mubr.msk.f32.gmra.mrb[8].mxu0 %vm537_vm0, %v409_v21  ;;  %v427_v57 = vld [vmem:[%s12064_s29 + $0xd8] sm:$0xff]  ;;  %v428_v59 = vld [vmem:[%s12064_s29 + $0xe0] sm:$0xff]  ;;  %v429_v61 = vld [vmem:[%s12064_s29 + $0xe8] sm:$0xff] }
  0x2e   : > { %10750 = vmatmul.mubr.msk.f32.gmra.mrb[8].mxu1 %vm537_vm0, %v473_v22  ;;  %10656 = vmatprep.mubr.msk.f32.mxu0 %vm537_vm0, %v410_v23  ;;  %v491_v58 = vld [vmem:[%s12064_s29 + $0x2d8] sm:$0xff]  ;;  %v492_v60 = vld [vmem:[%s12064_s29 + $0x2e0] sm:$0xff]  ;;  %v493_v62 = vld [vmem:[%s12064_s29 + $0x2e8] sm:$0xff] }
  0x2f   : > { %10752 = vmatprep.mubr.msk.f32.mxu1 %vm537_vm0, %v474_v24  ;;  %v430_v63 = vld [vmem:[%s12064_s29 + $0xf0] sm:$0xff]  ;;  %v431_v1 = vld [vmem:[%s12064_s29 + $0xf8] sm:$0xff]  ;;  %v432_v3 = vld [vmem:[%s12064_s29 + $0x100] sm:$0xff] }
  0x30   : > { %v494_v0 = vld [vmem:[%s12064_s29 + $0x2f0] sm:$0xff]  ;;  %v495_v2 = vld [vmem:[%s12064_s29 + $0x2f8] sm:$0xff]  ;;  %v496_v4 = vld [vmem:[%s12064_s29 + $0x300] sm:$0xff] }
  0x31   : > { %10657 = vmatmul.mubr.msk.f32.gmra.mrb[10].mxu0 %vm537_vm0, %v411_v25  ;;  %v433_v5 = vld [vmem:[%s12064_s29 + $0x108] sm:$0xff]  ;;  %v434_v7 = vld [vmem:[%s12064_s29 + $0x110] sm:$0xff]  ;;  %v435_v9 = vld [vmem:[%s12064_s29 + $0x118] sm:$0xff] }
  0x32   : > { %10753 = vmatmul.mubr.msk.f32.gmra.mrb[10].mxu1 %vm537_vm0, %v475_v26  ;;  %10659 = vmatprep.mubr.msk.f32.mxu0 %vm537_vm0, %v412_v27  ;;  %v497_v6 = vld [vmem:[%s12064_s29 + $0x308] sm:$0xff]  ;;  %v498_v8 = vld [vmem:[%s12064_s29 + $0x310] sm:$0xff]  ;;  %v499_v10 = vld [vmem:[%s12064_s29 + $0x318] sm:$0xff] }
  0x33   : > { %10755 = vmatprep.mubr.msk.f32.mxu1 %vm537_vm0, %v476_v28  ;;  %v436_v11 = vld [vmem:[%s12064_s29 + $0x120] sm:$0xff]  ;;  %v437_v12 = vld [vmem:[%s12064_s29 + $0x128] sm:$0xff]  ;;  %v438_v15 = vld [vmem:[%s12064_s29 + $0x130] sm:$0xff] }
  0x34   : > { %v500_v13 = vld [vmem:[%s12064_s29 + $0x320] sm:$0xff]  ;;  %v501_v14 = vld [vmem:[%s12064_s29 + $0x328] sm:$0xff]  ;;  %v439_v16 = vld [vmem:[%s12064_s29 + $0x138] sm:$0xff] }
  0x35   : > { %10660 = vmatmul.mubr.msk.f32.gmra.mrb[12].mxu0 %vm537_vm0, %v413_v29  ;;  %v502_v17 = vld [vmem:[%s12064_s29 + $0x330] sm:$0xff]  ;;  %v503_v18 = vld [vmem:[%s12064_s29 + $0x338] sm:$0xff]  ;;  %v440_v19 = vld [vmem:[%s12064_s29 + $0x140] sm:$0xff] }
  0x36   : > { %10756 = vmatmul.mubr.msk.f32.gmra.mrb[12].mxu1 %vm537_vm0, %v477_v30  ;;  %10662 = vmatprep.mubr.msk.f32.mxu0 %vm537_vm0, %v414_v31  ;;  %v441_v20 = vld [vmem:[%s12064_s29 + $0x148] sm:$0xff]  ;;  %v504_v21 = vld [vmem:[%s12064_s29 + $0x340] sm:$0xff]  ;;  %v442_v23 = vld [vmem:[%s12064_s29 + $0x150] sm:$0xff] }
  0x37   : > { %10758 = vmatprep.mubr.msk.f32.mxu1 %vm537_vm0, %v478_v32  ;;  %v505_v22 = vld [vmem:[%s12064_s29 + $0x348] sm:$0xff]  ;;  %v443_v24 = vld [vmem:[%s12064_s29 + $0x158] sm:$0xff]  ;;  %v506_v25 = vld [vmem:[%s12064_s29 + $0x350] sm:$0xff] }
  0x38   : > { %v507_v26 = vld [vmem:[%s12064_s29 + $0x358] sm:$0xff]  ;;  %v444_v27 = vld [vmem:[%s12064_s29 + $0x160] sm:$0xff]  ;;  %v445_v28 = vld [vmem:[%s12064_s29 + $0x168] sm:$0xff] }
  0x39   : > { %10663 = vmatmul.mubr.msk.f32.gmra.mrb[14].mxu0 %vm537_vm0, %v415_v33  ;;  %v508_v29 = vld [vmem:[%s12064_s29 + $0x360] sm:$0xff]  ;;  %v509_v30 = vld [vmem:[%s12064_s29 + $0x368] sm:$0xff]  ;;  %v446_v31 = vld [vmem:[%s12064_s29 + $0x170] sm:$0xff] }
  0x3a   : > { %10759 = vmatmul.mubr.msk.f32.gmra.mrb[14].mxu1 %vm537_vm0, %v479_v34  ;;  %10665 = vmatprep.mubr.msk.f32.mxu0 %vm537_vm0, %v416_v35  ;;  %v447_v32 = vld [vmem:[%s12064_s29 + $0x178] sm:$0xff]  ;;  %v510_v33 = vld [vmem:[%s12064_s29 + $0x370] sm:$0xff]  ;;  %v448_v35 = vld [vmem:[%s12064_s29 + $0x180] sm:$0xff] }
  0x3b   : > { %10761 = vmatprep.mubr.msk.f32.mxu1 %vm537_vm0, %v480_v36  ;;  %v511_v34 = vld [vmem:[%s12064_s29 + $0x378] sm:$0xff]  ;;  %v449_v36 = vld [vmem:[%s12064_s29 + $0x188] sm:$0xff] }
  0x3d   : > { %10666 = vmatmul.mubr.msk.f32.gmra.mrb[16].mxu0 %vm537_vm0, %v417_v37  ;;  %v512_v37 = vld [vmem:[%s12064_s29 + $0x380] sm:$0xff] }
  0x3e   : > { %10762 = vmatmul.mubr.msk.f32.gmra.mrb[16].mxu1 %vm537_vm0, %v481_v38  ;;  %10668 = vmatprep.mubr.msk.f32.mxu0 %vm537_vm0, %v418_v39  ;;  %v513_v38 = vld [vmem:[%s12064_s29 + $0x388] sm:$0xff]  ;;  %v450_v39 = vld [vmem:[%s12064_s29 + $0x190] sm:$0xff] }
  0x3f   : > { %10764 = vmatprep.mubr.msk.f32.mxu1 %vm537_vm0, %v482_v40  ;;  %v451_v40 = vld [vmem:[%s12064_s29 + $0x198] sm:$0xff] }
  0x41   : > { %10669 = vmatmul.mubr.msk.f32.gmra.mrb[18].mxu0 %vm537_vm0, %v419_v41  ;;  %v514_v41 = vld [vmem:[%s12064_s29 + $0x390] sm:$0xff] }
  0x42   : > { %10765 = vmatmul.mubr.msk.f32.gmra.mrb[18].mxu1 %vm537_vm0, %v483_v42  ;;  %10671 = vmatprep.mubr.msk.f32.mxu0 %vm537_vm0, %v420_v43  ;;  %v515_v42 = vld [vmem:[%s12064_s29 + $0x398] sm:$0xff]  ;;  %v452_v43 = vld [vmem:[%s12064_s29 + $0x1a0] sm:$0xff] }
  0x43   : > { %10767 = vmatprep.mubr.msk.f32.mxu1 %vm537_vm0, %v484_v44  ;;  %v453_v44 = vld [vmem:[%s12064_s29 + $0x1a8] sm:$0xff] }
  0x45   : > { %10672 = vmatmul.mubr.msk.f32.gmra.mrb[20].mxu0 %vm537_vm0, %v421_v45  ;;  %v516_v45 = vld [vmem:[%s12064_s29 + $0x3a0] sm:$0xff] }
  0x46   : > { %10768 = vmatmul.mubr.msk.f32.gmra.mrb[20].mxu1 %vm537_vm0, %v485_v46  ;;  %10674 = vmatprep.mubr.msk.f32.mxu0 %vm537_vm0, %v422_v47  ;;  %v517_v46 = vld [vmem:[%s12064_s29 + $0x3a8] sm:$0xff]  ;;  %v454_v47 = vld [vmem:[%s12064_s29 + $0x1b0] sm:$0xff] }
  0x47   : > { %10770 = vmatprep.mubr.msk.f32.mxu1 %vm537_vm0, %v486_v48  ;;  %v455_v48 = vld [vmem:[%s12064_s29 + $0x1b8] sm:$0xff] }
  0x49   : > { %10675 = vmatmul.mubr.msk.f32.gmra.mrb[22].mxu0 %vm537_vm0, %v423_v49  ;;  %v518_v49 = vld [vmem:[%s12064_s29 + $0x3b0] sm:$0xff] }
  0x4a   : > { %10771 = vmatmul.mubr.msk.f32.gmra.mrb[22].mxu1 %vm537_vm0, %v487_v50  ;;  %10677 = vmatprep.mubr.msk.f32.mxu0 %vm537_vm0, %v424_v51  ;;  %v519_v50 = vld [vmem:[%s12064_s29 + $0x3b8] sm:$0xff]  ;;  %v456_v51 = vld [vmem:[%s12064_s29 + $0x1c0] sm:$0xff] }
  0x4b   : > { %10773 = vmatprep.mubr.msk.f32.mxu1 %vm537_vm0, %v488_v52  ;;  %v457_v52 = vld [vmem:[%s12064_s29 + $0x1c8] sm:$0xff] }
  0x4d   : > { %10678 = vmatmul.mubr.msk.f32.gmra.mrb[24].mxu0 %vm537_vm0, %v425_v53  ;;  %v520_v53 = vld [vmem:[%s12064_s29 + $0x3c0] sm:$0xff] }
  0x4e   : > { %10774 = vmatmul.mubr.msk.f32.gmra.mrb[24].mxu1 %vm537_vm0, %v489_v54  ;;  %10680 = vmatprep.mubr.msk.f32.mxu0 %vm537_vm0, %v426_v55  ;;  %v521_v54 = vld [vmem:[%s12064_s29 + $0x3c8] sm:$0xff]  ;;  %v458_v55 = vld [vmem:[%s12064_s29 + $0x1d0] sm:$0xff] }
  0x4f   : > { %10776 = vmatprep.mubr.msk.f32.mxu1 %vm537_vm0, %v490_v56  ;;  %v459_v56 = vld [vmem:[%s12064_s29 + $0x1d8] sm:$0xff] }
  0x51   : > { %10681 = vmatmul.mubr.msk.f32.gmra.mrb[26].mxu0 %vm537_vm0, %v427_v57  ;;  %v522_v57 = vld [vmem:[%s12064_s29 + $0x3d0] sm:$0xff] }
  0x52   : > { %10777 = vmatmul.mubr.msk.f32.gmra.mrb[26].mxu1 %vm537_vm0, %v491_v58  ;;  %10683 = vmatprep.mubr.msk.f32.mxu0 %vm537_vm0, %v428_v59  ;;  %v523_v58 = vld [vmem:[%s12064_s29 + $0x3d8] sm:$0xff]  ;;  %v460_v59 = vld [vmem:[%s12064_s29 + $0x1e0] sm:$0xff] }
  0x53   : > { %10779 = vmatprep.mubr.msk.f32.mxu1 %vm537_vm0, %v492_v60  ;;  %v461_v60 = vld [vmem:[%s12064_s29 + $0x1e8] sm:$0xff] }
  0x55   : > { %10684 = vmatmul.mubr.msk.f32.gmra.mrb[28].mxu0 %vm537_vm0, %v429_v61  ;;  %v524_v61 = vld [vmem:[%s12064_s29 + $0x3e0] sm:$0xff] }
  0x56   : > { %10780 = vmatmul.mubr.msk.f32.gmra.mrb[28].mxu1 %vm537_vm0, %v493_v62  ;;  %10686 = vmatprep.mubr.msk.f32.mxu0 %vm537_vm0, %v430_v63  ;;  %v525_v62 = vld [vmem:[%s12064_s29 + $0x3e8] sm:$0xff]  ;;  %v12316_v63 = vld [vmem:[%s19165_s4] ss:$0 sm:$0xff] }
  0x57   : > { %10782 = vmatprep.mubr.msk.f32.mxu1 %vm537_vm0, %v494_v0 }
  0x59   : > { %10687 = vmatmul.mubr.msk.f32.gmra.mrb[30].mxu0 %vm537_vm0, %v431_v1 }
  0x5a   : > { %10783 = vmatmul.mubr.msk.f32.gmra.mrb[30].mxu1 %vm537_vm0, %v495_v2  ;;  %10689 = vmatprep.mubr.msk.f32.mxu0 %vm537_vm0, %v432_v3  ;;  %v462_v2 = vld [vmem:[%s12064_s29 + $0x1f0] sm:$0xff]  ;;  %v463_v3 = vld [vmem:[%s12064_s29 + $0x1f8] sm:$0xff] }
  0x5b   : > { %10785 = vmatprep.mubr.msk.f32.mxu1 %vm537_vm0, %v496_v4 }
  0x5d   : > { %10690 = vmatmul.mubr.msk.f32.gmra.mrb[32].mxu0 %vm537_vm0, %v433_v5 }
  0x5e   : > { %10786 = vmatmul.mubr.msk.f32.gmra.mrb[32].mxu1 %vm537_vm0, %v497_v6  ;;  %10692 = vmatprep.mubr.msk.f32.mxu0 %vm537_vm0, %v434_v7 }
  0x5f   : > { %10788 = vmatprep.mubr.msk.f32.mxu1 %vm537_vm0, %v498_v8 }
  0x61   : > { %10693 = vmatmul.mubr.msk.f32.gmra.mrb[34].mxu0 %vm537_vm0, %v435_v9 }
  0x62   : > { %10789 = vmatmul.mubr.msk.f32.gmra.mrb[34].mxu1 %vm537_vm0, %v499_v10  ;;  %10695 = vmatprep.mubr.msk.f32.mxu0 %vm537_vm0, %v436_v11 }
  0x63   : > { %10791 = vmatprep.mubr.msk.f32.mxu1 %vm537_vm0, %v500_v13 }
  0x65   : > { %10696 = vmatmul.mubr.msk.f32.gmra.mrb[36].mxu0 %vm537_vm0, %v437_v12 }
  0x66   : > { %10792 = vmatmul.mubr.msk.f32.gmra.mrb[36].mxu1 %vm537_vm0, %v501_v14  ;;  %10698 = vmatprep.mubr.msk.f32.mxu0 %vm537_vm0, %v438_v15  ;;  %v526_v14 = vld [vmem:[%s12064_s29 + $0x3f0] sm:$0xff]  ;;  %v527_v15 = vld [vmem:[%s12064_s29 + $0x3f8] sm:$0xff] }
  0x67   : > { %10794 = vmatprep.mubr.msk.f32.mxu1 %vm537_vm0, %v502_v17 }
  0x69   : > { %10699 = vmatmul.mubr.msk.f32.gmra.mrb[38].mxu0 %vm537_vm0, %v439_v16 }
  0x6a   : > { %10795 = vmatmul.mubr.msk.f32.gmra.mrb[38].mxu1 %vm537_vm0, %v503_v18  ;;  %10701 = vmatprep.mubr.msk.f32.mxu0 %vm537_vm0, %v440_v19 }
  0x6b   : > { %10797 = vmatprep.mubr.msk.f32.mxu1 %vm537_vm0, %v504_v21 }
  0x6d   : > { %10702 = vmatmul.mubr.msk.f32.gmra.mrb[40].mxu0 %vm537_vm0, %v441_v20 }
  0x6e   : > { %10798 = vmatmul.mubr.msk.f32.gmra.mrb[40].mxu1 %vm537_vm0, %v505_v22  ;;  %10704 = vmatprep.mubr.msk.f32.mxu0 %vm537_vm0, %v442_v23 }
  0x6f   : > { %10800 = vmatprep.mubr.msk.f32.mxu1 %vm537_vm0, %v506_v25 }
  0x71   : > { %10705 = vmatmul.mubr.msk.f32.gmra.mrb[42].mxu0 %vm537_vm0, %v443_v24 }
  0x72   : > { %10801 = vmatmul.mubr.msk.f32.gmra.mrb[42].mxu1 %vm537_vm0, %v507_v26  ;;  %10707 = vmatprep.mubr.msk.f32.mxu0 %vm537_vm0, %v444_v27 }
  0x73   : > { %10803 = vmatprep.mubr.msk.f32.mxu1 %vm537_vm0, %v508_v29 }
  0x75   : > { %10708 = vmatmul.mubr.msk.f32.gmra.mrb[44].mxu0 %vm537_vm0, %v445_v28 }
  0x76   : > { %10804 = vmatmul.mubr.msk.f32.gmra.mrb[44].mxu1 %vm537_vm0, %v509_v30  ;;  %10710 = vmatprep.mubr.msk.f32.mxu0 %vm537_vm0, %v446_v31 }
  0x77   : > { %10806 = vmatprep.mubr.msk.f32.mxu1 %vm537_vm0, %v510_v33 }
  0x79   : > { %10711 = vmatmul.mubr.msk.f32.gmra.mrb[46].mxu0 %vm537_vm0, %v447_v32 }
  0x7a   : > { %10807 = vmatmul.mubr.msk.f32.gmra.mrb[46].mxu1 %vm537_vm0, %v511_v34  ;;  %10713 = vmatprep.mubr.msk.f32.mxu0 %vm537_vm0, %v448_v35 }
  0x7b   : > { %10809 = vmatprep.mubr.msk.f32.mxu1 %vm537_vm0, %v512_v37 }
  0x7d   : > { %10714 = vmatmul.mubr.msk.f32.gmra.mrb[48].mxu0 %vm537_vm0, %v449_v36 }
  0x7e   : > { %10810 = vmatmul.mubr.msk.f32.gmra.mrb[48].mxu1 %vm537_vm0, %v513_v38  ;;  %10716 = vmatprep.mubr.msk.f32.mxu0 %vm537_vm0, %v450_v39 }
  0x7f   : > { %10812 = vmatprep.mubr.msk.f32.mxu1 %vm537_vm0, %v514_v41 }
  0x81   : > { %10717 = vmatmul.mubr.msk.f32.gmra.mrb[50].mxu0 %vm537_vm0, %v451_v40 }
  0x82   : > { %10813 = vmatmul.mubr.msk.f32.gmra.mrb[50].mxu1 %vm537_vm0, %v515_v42  ;;  %10719 = vmatprep.mubr.msk.f32.mxu0 %vm537_vm0, %v452_v43 }
  0x83   : > { %10815 = vmatprep.mubr.msk.f32.mxu1 %vm537_vm0, %v516_v45 }
  0x85   : > { %10720 = vmatmul.mubr.msk.f32.gmra.mrb[52].mxu0 %vm537_vm0, %v453_v44 }
  0x86   : > { %10816 = vmatmul.mubr.msk.f32.gmra.mrb[52].mxu1 %vm537_vm0, %v517_v46  ;;  %10722 = vmatprep.mubr.msk.f32.mxu0 %vm537_vm0, %v454_v47 }
  0x87   : > { %10818 = vmatprep.mubr.msk.f32.mxu1 %vm537_vm0, %v518_v49 }
  0x89   : > { %10723 = vmatmul.mubr.msk.f32.gmra.mrb[54].mxu0 %vm537_vm0, %v455_v48 }
  0x8a   : > { %10819 = vmatmul.mubr.msk.f32.gmra.mrb[54].mxu1 %vm537_vm0, %v519_v50  ;;  %10725 = vmatprep.mubr.msk.f32.mxu0 %vm537_vm0, %v456_v51 }
  0x8b   : > { %10821 = vmatprep.mubr.msk.f32.mxu1 %vm537_vm0, %v520_v53 }
  0x8d   : > { %10726 = vmatmul.mubr.msk.f32.gmra.mrb[56].mxu0 %vm537_vm0, %v457_v52 }
  0x8e   : > { %10822 = vmatmul.mubr.msk.f32.gmra.mrb[56].mxu1 %vm537_vm0, %v521_v54  ;;  %10728 = vmatprep.mubr.msk.f32.mxu0 %vm537_vm0, %v458_v55 }
  0x8f   : > { %10824 = vmatprep.mubr.msk.f32.mxu1 %vm537_vm0, %v522_v57 }
  0x91   : > { %10729 = vmatmul.mubr.msk.f32.gmra.mrb[58].mxu0 %vm537_vm0, %v459_v56 }
  0x92   : > { %10825 = vmatmul.mubr.msk.f32.gmra.mrb[58].mxu1 %vm537_vm0, %v523_v58  ;;  %10731 = vmatprep.mubr.msk.f32.mxu0 %vm537_vm0, %v460_v59 }
  0x93   : > { %10827 = vmatprep.mubr.msk.f32.mxu1 %vm537_vm0, %v524_v61 }
  0x95   : > { %10732 = vmatmul.mubr.msk.f32.gmra.mrb[60].mxu0 %vm537_vm0, %v461_v60 }
  0x96   : > { %10828 = vmatmul.mubr.msk.f32.gmra.mrb[60].mxu1 %vm537_vm0, %v525_v62  ;;  %10734 = vmatprep.mubr.msk.f32.mxu0 %vm537_vm0, %v462_v2 }
  0x97   : > { %10830 = vmatprep.mubr.msk.f32.mxu1 %vm537_vm0, %v526_v14 }
  0x99   : > { %10735 = vmatmul.mubr.msk.f32.gmra.mrb[62].mxu0 %vm537_vm0, %v463_v3 }
  0x9a   : > { %10831 = vmatmul.mubr.msk.f32.gmra.mrb[62].mxu1 %vm537_vm0, %v527_v15 }
  0xf0   : > { %v10643_v0 = vpop.f32.mrb[0].mxu0 }
  0xf1   : > { %v10739_v1 = vpop.f32.mrb[0].mxu1  ;;  %v12322_v4 = vadd.f32 %v10643_v0, %v12316_v63  ;;  %v988_v6 = vpop.f32.mrb[1].mxu0 }
  0xf2   : > { %v12325_v5 = vadd.f32 %v10739_v1, %v12316_v63  ;;  %v1308_v7 = vpop.f32.mrb[1].mxu1  ;;  %v12330_v8 = vadd.f32 %v12316_v63, %v988_v6 }
  0xf3   : > { %v1631_v10 = vsel %vm1627_vm1, %v12322_v4, 0.0  ;;  %v2142_v11 = vmul.f32 %v12322_v4, %v12322_v4  ;;  %v12346_v19 = vadd.f32 %v12316_v63, %v1308_v7 }
  0xf4   : > { %19536 = vst [vmem:[#allocation5_spill] sm:$0xff] %v12325_v5  ;;  %v1823_v9 = vsel %vm1627_vm1, %v12325_v5, 0.0  ;;  %1632 = vadd.xlane.f32.xlu0 %v1631_v10  ;;  %v10646_v12 = vpop.f32.mrb[2].mxu0  ;;  %v1628_v21 = vsel %vm1627_vm1, %v12330_v8, 0.0  ;;  %v2141_v29 = vmul.f32 %v12330_v8, %v12330_v8 }
  0xf5   : > { %1824 = vadd.xlane.f32.xlu1 %v1823_v9  ;;  %v10742_v13 = vpop.f32.mrb[2].mxu1  ;;  %v12341_v16 = vadd.f32 %v10646_v12, %v12316_v63  ;;  %v998_v17 = vpop.f32.mrb[3].mxu0  ;;  %19537 = vst [vmem:[#allocation6_spill] sm:$0xff] %v12346_v19  ;;  %v2272_v20 = vsel %vm1627_vm1, %v2142_v11, 0.0  ;;  %v1820_v28 = vsel %vm1627_vm1, %v12346_v19, 0.0 }
  0xf6   : > { %v1318_v18 = vpop.f32.mrb[3].mxu1  ;;  %v12352_v24 = vadd.f32 %v10742_v13, %v12316_v63  ;;  %v12365_v35 = vadd.f32 %v12316_v63, %v998_v17  ;;  %v2269_v37 = vsel %vm1627_vm1, %v2141_v29, 0.0  ;;  %v3677_v17 = vld [vmem:[%s19166_s5] sm:$0xff] }
  0xf7   : > { %v1637_v25 = vsel %vm1627_vm1, %v12341_v16, 0.0  ;;  %v12368_v36 = vadd.f32 %v12316_v63, %v1318_v18  ;;  %v2144_v44 = vmul.f32 %v12341_v16, %v12341_v16  ;;  %v3678_v18 = vld [vmem:[%s19166_s5 + $0x8] sm:$0xff] }
  0xf8   : > { %1629 = vadd.xlane.f32.xlu0 %v1628_v21  ;;  %v10649_v22 = vpop.f32.mrb[4].mxu0  ;;  %19538 = vst [vmem:[#allocation7_spill] sm:$0xff] %v12352_v24  ;;  %v1829_v32 = vsel %vm1627_vm1, %v12352_v24, 0.0  ;;  %v1634_v42 = vsel %vm1627_vm1, %v12365_v35, 0.0  ;;  %v2143_v45 = vmul.f32 %v12365_v35, %v12365_v35 }
  0xf9   : > { %2273 = vadd.xlane.f32.xlu1 %v2272_v20  ;;  %v10745_v23 = vpop.f32.mrb[4].mxu1  ;;  %v1008_v26 = vpop.f32.mrb[5].mxu0  ;;  %19539 = vst [vmem:[#allocation8_spill] sm:$0xff] %v12368_v36  ;;  %v1826_v43 = vsel %vm1627_vm1, %v12368_v36, 0.0  ;;  %v12392_v48 = vadd.f32 %v10649_v22, %v12316_v63  ;;  %v2278_v52 = vsel %vm1627_vm1, %v2144_v44, 0.0  ;;  %v11253_v22 = vpack.c.bf16 %v3678_v18, %v3677_v17 }
  0xfa   : > { %v1328_v27 = vpop.f32.mrb[5].mxu1  ;;  %v12395_v49 = vadd.f32 %v12316_v63, %v1008_v26  ;;  %v2275_v53 = vsel %vm1627_vm1, %v2143_v45, 0.0  ;;  %v12408_v56 = vadd.f32 %v10745_v23, %v12316_v63 }
  0xfb   : > { %v12411_v57 = vadd.f32 %v12316_v63, %v1328_v27  ;;  %v1643_v58 = vsel %vm1627_vm1, %v12392_v48, 0.0  ;;  %v2146_v7 = vmul.f32 %v12392_v48, %v12392_v48  ;;  %11254 = vmatprep.subr.bf16.mxu1 %v11253_v22 }
  0xfc   : > { %1821 = vadd.xlane.f32.xlu0 %v1820_v28  ;;  %v10652_v30 = vpop.f32.mrb[6].mxu0  ;;  %19540 = vst [vmem:[#allocation9_spill] sm:$0xff] %v12408_v56  ;;  %v1640_v59 = vsel %vm1627_vm1, %v12395_v49, 0.0  ;;  %v1835_v1 = vsel %vm1627_vm1, %v12408_v56, 0.0  ;;  %v2145_v9 = vmul.f32 %v12395_v49, %v12395_v49  ;;  %11256 = vmatpush3.bf16.msra.mxu1 %v11253_v22  ;;  %v3683_v22 = vld [vmem:[%s19166_s5 + $0x30] sm:$0xff] }
  0xfd   : > { %1638 = vadd.xlane.f32.xlu1 %v1637_v25  ;;  %v12360_v31 = vpop.f32.mrb[6].mxu1  ;;  %v1018_v33 = vpop.f32.mrb[7].mxu0  ;;  %19541 = vst [vmem:[#allocation10_spill] sm:$0xff] %v12411_v57  ;;  %v1832_v2 = vsel %vm1627_vm1, %v12411_v57, 0.0  ;;  %v12442_v12 = vadd.f32 %v10652_v30, %v12316_v63  ;;  %v2284_v20 = vsel %vm1627_vm1, %v2146_v7, 0.0 }
  0xfe   : > { %v1338_v34 = vpop.f32.mrb[7].mxu1  ;;  %v12445_v13 = vadd.f32 %v12316_v63, %v1018_v33  ;;  %v2281_v21 = vsel %vm1627_vm1, %v2145_v9, 0.0  ;;  %v12465_v26 = vadd.f32 %v12360_v31, %v12316_v63  ;;  %v3679_v31 = vld [vmem:[%s19166_s5 + $0x10] sm:$0xff]  ;;  %v3680_v33 = vld [vmem:[%s19166_s5 + $0x18] sm:$0xff] }
  0xff   : > { %v12468_v27 = vadd.f32 %v12316_v63, %v1338_v34  ;;  %v1649_v28 = vsel %vm1627_vm1, %v12442_v12, 0.0  ;;  %v11257_v34 = vpack.c.bf16 %v3680_v33, %v3679_v31 }
 0x100   : > { %2270 = vadd.xlane.f32.xlu0 %v2269_v37  ;;  %v12371_v38 = vpop.f32.mrb[8].mxu0  ;;  %19542 = vst [vmem:[#allocation11_spill] sm:$0xff] %v12465_v26  ;;  %v1646_v29 = vsel %vm1627_vm1, %v12445_v13, 0.0 }
 0x101   : > { %1830 = vadd.xlane.f32.xlu1 %v1829_v32  ;;  %v12373_v39 = vpop.f32.mrb[8].mxu1  ;;  %v12375_v40 = vpop.f32.mrb[9].mxu0  ;;  %19543 = vst [vmem:[#allocation12_spill] sm:$0xff] %v12468_v27  ;;  %v1838_v44 = vsel %vm1627_vm1, %v12468_v27, 0.0  ;;  %11258 = vmatprep.subr.bf16.mxu1 %v11257_v34  ;;  %v12512_v17 = vadd.f32 %v12371_v38, %v12316_v63 }
 0x102   : > { %v12377_v41 = vpop.f32.mrb[9].mxu1  ;;  %11260 = vmatpush3.bf16.msra.mxu1 %v11257_v34  ;;  %v12516_v18 = vadd.f32 %v12316_v63, %v12375_v40  ;;  %v12536_v34 = vadd.f32 %v12373_v39, %v12316_v63 }
 0x104   : > { %1827 = vadd.xlane.f32.xlu0 %v1826_v43  ;;  %v12387_v46 = vpop.f32.mrb[10].mxu0  ;;  %v1841_v43 = vsel %vm1627_vm1, %v12465_v26, 0.0  ;;  %19544 = vst [vmem:[#allocation13_spill] sm:$0xff] %v12536_v34 }
 0x105   : > { %1635 = vadd.xlane.f32.xlu1 %v1634_v42  ;;  %v12389_v47 = vpop.f32.mrb[10].mxu1  ;;  %v12397_v50 = vpop.f32.mrb[11].mxu0 }
 0x106   : > { %v12399_v51 = vpop.f32.mrb[11].mxu1 }
 0x108   : > { %2276 = vadd.xlane.f32.xlu0 %v2275_v53  ;;  %v12403_v54 = vpop.f32.mrb[12].mxu0  ;;  %v3681_v53 = vld [vmem:[%s19166_s5 + $0x20] sm:$0xff] }
 0x109   : > { %2279 = vadd.xlane.f32.xlu1 %v2278_v52  ;;  %v12405_v55 = vpop.f32.mrb[12].mxu1  ;;  %v12417_v60 = vpop.f32.mrb[13].mxu0 }
 0x10a   : > { %v12419_v61 = vpop.f32.mrb[13].mxu1 }
 0x10c   : > { %1641 = vadd.xlane.f32.xlu0 %v1640_v59  ;;  %v12421_v62 = vpop.f32.mrb[14].mxu0  ;;  %v2148_v59 = vmul.f32 %v12442_v12, %v12442_v12 }
 0x10d   : > { %1644 = vadd.xlane.f32.xlu1 %v1643_v58  ;;  %v12423_v0 = vpop.f32.mrb[14].mxu1  ;;  %v12429_v3 = vpop.f32.mrb[15].mxu0  ;;  %v3682_v58 = vld [vmem:[%s19166_s5 + $0x28] sm:$0xff] }
 0x10e   : > { %v12431_v6 = vpop.f32.mrb[15].mxu1  ;;  %v2290_v38 = vsel %vm1627_vm1, %v2148_v59, 0.0 }
 0x110   : > { %1833 = vadd.xlane.f32.xlu0 %v1832_v2  ;;  %v12437_v10 = vpop.f32.mrb[16].mxu0  ;;  %v11261_v2 = vpack.c.bf16 %v3682_v58, %v3681_v53  ;;  %v1652_v53 = vsel %vm1627_vm1, %v12516_v18, 0.0 }
 0x111   : > { %1836 = vadd.xlane.f32.xlu1 %v1835_v1  ;;  %v12439_v11 = vpop.f32.mrb[16].mxu1  ;;  %v12447_v14 = vpop.f32.mrb[17].mxu0  ;;  %v2147_v1 = vmul.f32 %v12445_v13, %v12445_v13 }
 0x112   : > { %v12449_v15 = vpop.f32.mrb[17].mxu1  ;;  %11262 = vmatprep.subr.bf16.mxu1 %v11261_v2 }
 0x113   : > { %11264 = vmatpush3.bf16.msra.mxu1 %v11261_v2 }
 0x114   : > { %2282 = vadd.xlane.f32.xlu0 %v2281_v21  ;;  %v12459_v23 = vpop.f32.mrb[18].mxu0 }
 0x115   : > { %2285 = vadd.xlane.f32.xlu1 %v2284_v20  ;;  %v12461_v25 = vpop.f32.mrb[18].mxu1  ;;  %v12474_v30 = vpop.f32.mrb[19].mxu0 }
 0x116   : > { %v12476_v32 = vpop.f32.mrb[19].mxu1 }
 0x118   : > { %1647 = vadd.xlane.f32.xlu0 %v1646_v29  ;;  %v12484_v37 = vpop.f32.mrb[20].mxu0  ;;  %v2287_v29 = vsel %vm1627_vm1, %v2147_v1, 0.0 }
 0x119   : > { %1650 = vadd.xlane.f32.xlu1 %v1649_v28  ;;  %v12486_v42 = vpop.f32.mrb[20].mxu1  ;;  %v12492_v45 = vpop.f32.mrb[21].mxu0  ;;  %v3684_v28 = vld [vmem:[%s19166_s5 + $0x38] sm:$0xff] }
 0x11a   : > { %v12494_v52 = vpop.f32.mrb[21].mxu1  ;;  %v11265_v40 = vpack.c.bf16 %v3684_v28, %v3683_v22 }
 0x11c   : > { %1839 = vadd.xlane.f32.xlu0 %v1838_v44  ;;  %v12506_v7 = vpop.f32.mrb[22].mxu0  ;;  %v1655_v44 = vsel %vm1627_vm1, %v12512_v17, 0.0  ;;  %11266 = vmatprep.subr.bf16.mxu1 %v11265_v40 }
 0x11d   : > { %1842 = vadd.xlane.f32.xlu1 %v1841_v43  ;;  %v12508_v9 = vpop.f32.mrb[22].mxu1  ;;  %v12518_v20 = vpop.f32.mrb[23].mxu0  ;;  %v12540_v43 = vadd.f32 %v12316_v63, %v12377_v41  ;;  %11268 = vmatpush3.bf16.msra.mxu1 %v11265_v40  ;;  %v1847_v41 = vsel %vm1627_vm1, %v12536_v34, 0.0 }
 0x11e   : > { %v12520_v21 = vpop.f32.mrb[23].mxu1 }
 0x11f   : > { %19545 = vst [vmem:[#allocation14_spill] sm:$0xff] %v12540_v43  ;;  %v1844_v2 = vsel %vm1627_vm1, %v12540_v43, 0.0  ;;  %v12576_v43 = vadd.f32 %v12316_v63, %v12397_v50  ;;  %v12594_v50 = vadd.f32 %v12316_v63, %v12399_v51 }
 0x120   : > { %2288 = vadd.xlane.f32.xlu0 %v2287_v29  ;;  %v12530_v31 = vpop.f32.mrb[24].mxu0  ;;  %v2149_v29 = vmul.f32 %v12516_v18, %v12516_v18 }
 0x121   : > { %2291 = vadd.xlane.f32.xlu1 %v2290_v38  ;;  %v12532_v33 = vpop.f32.mrb[24].mxu1  ;;  %v12546_v58 = vpop.f32.mrb[25].mxu0  ;;  %v2150_v38 = vmul.f32 %v12512_v17, %v12512_v17  ;;  %19547 = vst [vmem:[#allocation16_spill] sm:$0xff] %v12576_v43  ;;  %19549 = vst [vmem:[#allocation18_spill] sm:$0xff] %v12594_v50  ;;  %v1850_v51 = vsel %vm1627_vm1, %v12594_v50, 0.0  ;;  %v2151_v19 = vmul.f32 %v12576_v43, %v12576_v43 }
 0x122   : > { %v12548_v59 = vpop.f32.mrb[25].mxu1 }
 0x123   : > { %v2296_v26 = vsel %vm1627_vm1, %v2150_v38, 0.0  ;;  %v1658_v38 = vsel %vm1627_vm1, %v12576_v43, 0.0 }
 0x124   : > { %1653 = vadd.xlane.f32.xlu0 %v1652_v53  ;;  %v12550_v39 = vpop.f32.mrb[26].mxu0  ;;  %v12572_v53 = vadd.f32 %v12387_v46, %v12316_v63  ;;  %v12590_v46 = vadd.f32 %v12389_v47, %v12316_v63 }
 0x125   : > { %1656 = vadd.xlane.f32.xlu1 %v1655_v44  ;;  %v12552_v1 = vpop.f32.mrb[26].mxu1  ;;  %v12558_v22 = vpop.f32.mrb[27].mxu0 }
 0x126   : > { %v12560_v28 = vpop.f32.mrb[27].mxu1  ;;  %19546 = vst [vmem:[#allocation15_spill] sm:$0xff] %v12572_v53  ;;  %19548 = vst [vmem:[#allocation17_spill] sm:$0xff] %v12590_v46  ;;  %v1661_v56 = vsel %vm1627_vm1, %v12572_v53, 0.0  ;;  %v1853_v47 = vsel %vm1627_vm1, %v12590_v46, 0.0  ;;  %v2152_v24 = vmul.f32 %v12572_v53, %v12572_v53  ;;  %v12624_v46 = vadd.f32 %v12316_v63, %v12417_v60 }
 0x127   : > { %v2299_v53 = vsel %vm1627_vm1, %v2151_v19, 0.0 }
 0x128   : > { %1845 = vadd.xlane.f32.xlu0 %v1844_v2  ;;  %v12566_v40 = vpop.f32.mrb[28].mxu0  ;;  %19551 = vst [vmem:[#allocation20_spill] sm:$0xff] %v12624_v46  ;;  %v2302_v5 = vsel %vm1627_vm1, %v2152_v24, 0.0 }
 0x129   : > { %1848 = vadd.xlane.f32.xlu1 %v1847_v41  ;;  %v12568_v44 = vpop.f32.mrb[28].mxu1  ;;  %v12578_v34 = vpop.f32.mrb[29].mxu0  ;;  %v2293_v41 = vsel %vm1627_vm1, %v2149_v29, 0.0 }
 0x12a   : > { %v12580_v27 = vpop.f32.mrb[29].mxu1 }
 0x12c   : > { %2294 = vadd.xlane.f32.xlu0 %v2293_v41  ;;  %v12584_v2 = vpop.f32.mrb[30].mxu0 }
 0x12d   : > { %2297 = vadd.xlane.f32.xlu1 %v2296_v26  ;;  %v12586_v57 = vpop.f32.mrb[30].mxu1  ;;  %v12600_v26 = vpop.f32.mrb[31].mxu0 }
 0x12e   : > { %v12602_v29 = vpop.f32.mrb[31].mxu1 }
 0x130   : > { %1659 = vadd.xlane.f32.xlu0 %v1658_v38  ;;  %v12604_v41 = vpop.f32.mrb[32].mxu0  ;;  %v12620_v38 = vadd.f32 %v12403_v54, %v12316_v63  ;;  %v12636_v54 = vadd.f32 %v12316_v63, %v12419_v61 }
 0x131   : > { %1662 = vadd.xlane.f32.xlu1 %v1661_v56  ;;  %v12610_v36 = vpop.f32.mrb[33].mxu0  ;;  %v12616_v56 = vpop.f32.mrb[32].mxu1 }
 0x132   : > { %19550 = vst [vmem:[#allocation19_spill] sm:$0xff] %v12620_v38  ;;  %v12626_v50 = vpop.f32.mrb[33].mxu1  ;;  %19553 = vst [vmem:[#allocation22_spill] sm:$0xff] %v12636_v54  ;;  %v1667_v60 = vsel %vm1627_vm1, %v12620_v38, 0.0  ;;  %v1856_v19 = vsel %vm1627_vm1, %v12636_v54, 0.0  ;;  %v2154_v61 = vmul.f32 %v12620_v38, %v12620_v38 }
 0x134   : > { %1851 = vadd.xlane.f32.xlu0 %v1850_v51  ;;  %v1664_v51 = vsel %vm1627_vm1, %v12624_v46, 0.0  ;;  %v12642_v24 = vpop.f32.mrb[34].mxu0  ;;  %v2308_v43 = vsel %vm1627_vm1, %v2154_v61, 0.0 }
 0x135   : > { %1854 = vadd.xlane.f32.xlu1 %v1853_v47  ;;  %v12632_v47 = vadd.f32 %v12405_v55, %v12316_v63  ;;  %v12648_v55 = vpop.f32.mrb[35].mxu0 }
 0x137   : > { %19552 = vst [vmem:[#allocation21_spill] sm:$0xff] %v12632_v47 }
 0x138   : > { %2300 = vadd.xlane.f32.xlu0 %v2299_v53  ;;  %v2153_v53 = vmul.f32 %v12624_v46, %v12624_v46  ;;  %v12680_v61 = vpop.f32.mrb[36].mxu0 }
 0x139   : > { %2303 = vadd.xlane.f32.xlu1 %v2302_v5  ;;  %v1859_v5 = vsel %vm1627_vm1, %v12632_v47, 0.0  ;;  %v12662_v47 = vadd.f32 %v12316_v63, %v12429_v3 }
 0x13a   : > { %v2305_v38 = vsel %vm1627_vm1, %v2153_v53, 0.0 }
 0x13b   : > { %19555 = vst [vmem:[#allocation24_spill] sm:$0xff] %v12662_v47  ;;  %v2155_v53 = vmul.f32 %v12662_v47, %v12662_v47 }
 0x13c   : > { %1665 = vadd.xlane.f32.xlu0 %v1664_v51  ;;  %v12658_v51 = vadd.f32 %v12421_v62, %v12316_v63  ;;  %v12674_v62 = vadd.f32 %v12316_v63, %v12431_v6 }
 0x13d   : > { %1668 = vadd.xlane.f32.xlu1 %v1667_v60  ;;  %v12654_v60 = vpop.f32.mrb[34].mxu1 }
 0x13e   : > { %19554 = vst [vmem:[#allocation23_spill] sm:$0xff] %v12658_v51  ;;  %v12664_v54 = vpop.f32.mrb[35].mxu1  ;;  %19557 = vst [vmem:[#allocation26_spill] sm:$0xff] %v12674_v62  ;;  %v1673_v3 = vsel %vm1627_vm1, %v12658_v51, 0.0  ;;  %v2156_v6 = vmul.f32 %v12658_v51, %v12658_v51  ;;  %v2311_v51 = vsel %vm1627_vm1, %v2155_v53, 0.0 }
 0x140   : > { %1857 = vadd.xlane.f32.xlu0 %v1856_v19  ;;  %v1670_v19 = vsel %vm1627_vm1, %v12662_v47, 0.0  ;;  %v2314_v46 = vsel %vm1627_vm1, %v2156_v6, 0.0 }
 0x141   : > { %1860 = vadd.xlane.f32.xlu1 %v1859_v5  ;;  %v12670_v5 = vadd.f32 %v12423_v0, %v12316_v63  ;;  %v1862_v0 = vsel %vm1627_vm1, %v12674_v62, 0.0 }
 0x143   : > { %19556 = vst [vmem:[#allocation25_spill] sm:$0xff] %v12670_v5 }
 0x144   : > { %2306 = vadd.xlane.f32.xlu0 %v2305_v38  ;;  %v12686_v38 = vpop.f32.mrb[37].mxu0 }
 0x145   : > { %2309 = vadd.xlane.f32.xlu1 %v2308_v43  ;;  %v1865_v43 = vsel %vm1627_vm1, %v12670_v5, 0.0  ;;  %v12700_v5 = vadd.f32 %v12316_v63, %v12447_v14  ;;  %v12718_v6 = vpop.f32.mrb[38].mxu0 }
 0x147   : > { %19559 = vst [vmem:[#allocation28_spill] sm:$0xff] %v12700_v5  ;;  %v2157_v53 = vmul.f32 %v12700_v5, %v12700_v5 }
 0x148   : > { %1671 = vadd.xlane.f32.xlu0 %v1670_v19  ;;  %v12696_v19 = vadd.f32 %v12437_v10, %v12316_v63  ;;  %v12712_v10 = vadd.f32 %v12316_v63, %v12449_v15 }
 0x149   : > { %1674 = vadd.xlane.f32.xlu1 %v1673_v3  ;;  %v12692_v3 = vpop.f32.mrb[36].mxu1 }
 0x14a   : > { %19558 = vst [vmem:[#allocation27_spill] sm:$0xff] %v12696_v19  ;;  %v12702_v62 = vpop.f32.mrb[37].mxu1  ;;  %19561 = vst [vmem:[#allocation30_spill] sm:$0xff] %v12712_v10  ;;  %v1679_v14 = vsel %vm1627_vm1, %v12696_v19, 0.0  ;;  %v2158_v15 = vmul.f32 %v12696_v19, %v12696_v19  ;;  %v2317_v19 = vsel %vm1627_vm1, %v2157_v53, 0.0 }
 0x14c   : > { %1863 = vadd.xlane.f32.xlu0 %v1862_v0  ;;  %v1676_v0 = vsel %vm1627_vm1, %v12700_v5, 0.0  ;;  %v2320_v47 = vsel %vm1627_vm1, %v2158_v15, 0.0 }
 0x14d   : > { %1866 = vadd.xlane.f32.xlu1 %v1865_v43  ;;  %v12708_v43 = vadd.f32 %v12439_v11, %v12316_v63  ;;  %v1868_v11 = vsel %vm1627_vm1, %v12712_v10, 0.0 }
 0x14f   : > { %19560 = vst [vmem:[#allocation29_spill] sm:$0xff] %v12708_v43 }
 0x150   : > { %2312 = vadd.xlane.f32.xlu0 %v2311_v51  ;;  %v12724_v51 = vpop.f32.mrb[39].mxu0 }
 0x151   : > { %2315 = vadd.xlane.f32.xlu1 %v2314_v46  ;;  %v1871_v46 = vsel %vm1627_vm1, %v12708_v43, 0.0  ;;  %v12738_v43 = vadd.f32 %v12316_v63, %v12474_v30  ;;  %v12756_v15 = vpop.f32.mrb[40].mxu0 }
 0x153   : > { %19563 = vst [vmem:[#allocation32_spill] sm:$0xff] %v12738_v43  ;;  %v2159_v53 = vmul.f32 %v12738_v43, %v12738_v43 }
 0x154   : > { %1677 = vadd.xlane.f32.xlu0 %v1676_v0  ;;  %v12734_v0 = vadd.f32 %v12459_v23, %v12316_v63  ;;  %v12750_v23 = vadd.f32 %v12316_v63, %v12476_v32 }
 0x155   : > { %1680 = vadd.xlane.f32.xlu1 %v1679_v14  ;;  %v12730_v14 = vpop.f32.mrb[38].mxu1 }
 0x156   : > { %19562 = vst [vmem:[#allocation31_spill] sm:$0xff] %v12734_v0  ;;  %v12740_v10 = vpop.f32.mrb[39].mxu1  ;;  %19565 = vst [vmem:[#allocation34_spill] sm:$0xff] %v12750_v23  ;;  %v1685_v30 = vsel %vm1627_vm1, %v12734_v0, 0.0  ;;  %v2160_v32 = vmul.f32 %v12734_v0, %v12734_v0  ;;  %v2323_v0 = vsel %vm1627_vm1, %v2159_v53, 0.0 }
 0x158   : > { %1869 = vadd.xlane.f32.xlu0 %v1868_v11  ;;  %v1682_v11 = vsel %vm1627_vm1, %v12738_v43, 0.0  ;;  %v2326_v5 = vsel %vm1627_vm1, %v2160_v32, 0.0 }
 0x159   : > { %1872 = vadd.xlane.f32.xlu1 %v1871_v46  ;;  %v12746_v46 = vadd.f32 %v12461_v25, %v12316_v63  ;;  %v1874_v25 = vsel %vm1627_vm1, %v12750_v23, 0.0 }
 0x15b   : > { %19564 = vst [vmem:[#allocation33_spill] sm:$0xff] %v12746_v46 }
 0x15c   : > { %2318 = vadd.xlane.f32.xlu0 %v2317_v19  ;;  %v12762_v19 = vpop.f32.mrb[41].mxu0 }
 0x15d   : > { %2321 = vadd.xlane.f32.xlu1 %v2320_v47  ;;  %v1877_v47 = vsel %vm1627_vm1, %v12746_v46, 0.0  ;;  %v12776_v46 = vadd.f32 %v12316_v63, %v12492_v45  ;;  %v12794_v32 = vpop.f32.mrb[42].mxu0 }
 0x15f   : > { %19567 = vst [vmem:[#allocation36_spill] sm:$0xff] %v12776_v46  ;;  %v2161_v53 = vmul.f32 %v12776_v46, %v12776_v46 }
 0x160   : > { %1683 = vadd.xlane.f32.xlu0 %v1682_v11  ;;  %v12772_v11 = vadd.f32 %v12484_v37, %v12316_v63  ;;  %v12788_v37 = vadd.f32 %v12316_v63, %v12494_v52 }
 0x161   : > { %1686 = vadd.xlane.f32.xlu1 %v1685_v30  ;;  %v12768_v30 = vpop.f32.mrb[40].mxu1 }
 0x162   : > { %19566 = vst [vmem:[#allocation35_spill] sm:$0xff] %v12772_v11  ;;  %v12778_v23 = vpop.f32.mrb[41].mxu1  ;;  %19569 = vst [vmem:[#allocation38_spill] sm:$0xff] %v12788_v37  ;;  %v1691_v45 = vsel %vm1627_vm1, %v12772_v11, 0.0  ;;  %v2162_v52 = vmul.f32 %v12772_v11, %v12772_v11  ;;  %v2329_v11 = vsel %vm1627_vm1, %v2161_v53, 0.0 }
 0x164   : > { %1875 = vadd.xlane.f32.xlu0 %v1874_v25  ;;  %v1688_v25 = vsel %vm1627_vm1, %v12776_v46, 0.0  ;;  %v2332_v43 = vsel %vm1627_vm1, %v2162_v52, 0.0 }
 0x165   : > { %1878 = vadd.xlane.f32.xlu1 %v1877_v47  ;;  %v12784_v47 = vadd.f32 %v12486_v42, %v12316_v63  ;;  %v1880_v42 = vsel %vm1627_vm1, %v12788_v37, 0.0 }
 0x167   : > { %19568 = vst [vmem:[#allocation37_spill] sm:$0xff] %v12784_v47 }
 0x168   : > { %2324 = vadd.xlane.f32.xlu0 %v2323_v0  ;;  %v12800_v0 = vpop.f32.mrb[43].mxu0 }
 0x169   : > { %2327 = vadd.xlane.f32.xlu1 %v2326_v5  ;;  %v1883_v5 = vsel %vm1627_vm1, %v12784_v47, 0.0  ;;  %v12814_v47 = vadd.f32 %v12316_v63, %v12518_v20  ;;  %v12832_v52 = vpop.f32.mrb[44].mxu0 }
 0x16a   : > { %19574 = vst [vmem:[#allocation43_spill] sm:$0xff] %v12832_v52 }
 0x16b   : > { %19571 = vst [vmem:[#allocation40_spill] sm:$0xff] %v12814_v47  ;;  %v2163_v53 = vmul.f32 %v12814_v47, %v12814_v47 }
 0x16c   : > { %1689 = vadd.xlane.f32.xlu0 %v1688_v25  ;;  %v12810_v25 = vadd.f32 %v12506_v7, %v12316_v63  ;;  %v12826_v7 = vadd.f32 %v12316_v63, %v12520_v21 }
 0x16d   : > { %1692 = vadd.xlane.f32.xlu1 %v1691_v45  ;;  %v12806_v45 = vpop.f32.mrb[42].mxu1 }
 0x16e   : > { %19570 = vst [vmem:[#allocation39_spill] sm:$0xff] %v12810_v25  ;;  %v12816_v37 = vpop.f32.mrb[43].mxu1  ;;  %19573 = vst [vmem:[#allocation42_spill] sm:$0xff] %v12826_v7  ;;  %v1697_v20 = vsel %vm1627_vm1, %v12810_v25, 0.0  ;;  %v2164_v21 = vmul.f32 %v12810_v25, %v12810_v25  ;;  %v2335_v25 = vsel %vm1627_vm1, %v2163_v53, 0.0 }
 0x170   : > { %1881 = vadd.xlane.f32.xlu0 %v1880_v42  ;;  %v1694_v42 = vsel %vm1627_vm1, %v12814_v47, 0.0  ;;  %v2338_v46 = vsel %vm1627_vm1, %v2164_v21, 0.0  ;;  %v12862_v47 = vadd.f32 %v12532_v33, %v12316_v63 }
 0x171   : > { %1884 = vadd.xlane.f32.xlu1 %v1883_v5  ;;  %v12822_v5 = vadd.f32 %v12508_v9, %v12316_v63  ;;  %v1886_v9 = vsel %vm1627_vm1, %v12826_v7, 0.0  ;;  %v12854_v7 = vadd.f32 %v12316_v63, %v12546_v58  ;;  %v12870_v58 = vadd.f32 %v12316_v63, %v12548_v59 }
 0x172   : > { %19581 = vst [vmem:[#allocation50_spill] sm:$0xff] %v12862_v47  ;;  %v1895_v33 = vsel %vm1627_vm1, %v12862_v47, 0.0 }
 0x173   : > { %19572 = vst [vmem:[#allocation41_spill] sm:$0xff] %v12822_v5  ;;  %19579 = vst [vmem:[#allocation48_spill] sm:$0xff] %v12854_v7  ;;  %v1892_v59 = vsel %vm1627_vm1, %v12870_v58, 0.0 }
 0x174   : > { %2330 = vadd.xlane.f32.xlu0 %v2329_v11  ;;  %v12838_v11 = vpop.f32.mrb[45].mxu0  ;;  %19582 = vst [vmem:[#allocation51_spill] sm:$0xff] %v12870_v58 }
 0x175   : > { %2333 = vadd.xlane.f32.xlu1 %v2332_v43  ;;  %v1889_v43 = vsel %vm1627_vm1, %v12822_v5, 0.0  ;;  %19575 = vst [vmem:[#allocation44_spill] sm:$0xff] %v12838_v11 }
 0x178   : > { %1695 = vadd.xlane.f32.xlu0 %v1694_v42  ;;  %v12848_v42 = vadd.f32 %v12530_v31, %v12316_v63 }
 0x179   : > { %1698 = vadd.xlane.f32.xlu1 %v1697_v20  ;;  %v12844_v20 = vpop.f32.mrb[44].mxu1 }
 0x17a   : > { %19576 = vst [vmem:[#allocation45_spill] sm:$0xff] %v12844_v20  ;;  %19577 = vst [vmem:[#allocation46_spill] sm:$0xff] %v12848_v42  ;;  %v12850_v5 = vpop.f32.mrb[45].mxu1  ;;  %v1703_v31 = vsel %vm1627_vm1, %v12848_v42, 0.0 }
 0x17b   : > { %19578 = vst [vmem:[#allocation47_spill] sm:$0xff] %v12850_v5 }
 0x17c   : > { %1887 = vadd.xlane.f32.xlu0 %v1886_v9 }
 0x17d   : > { %1890 = vadd.xlane.f32.xlu1 %v1889_v43 }
 0x180   : > { %2336 = vadd.xlane.f32.xlu0 %v2335_v25  ;;  %v12874_v25 = vpop.f32.mrb[46].mxu0 }
 0x181   : > { %2339 = vadd.xlane.f32.xlu1 %v2338_v46  ;;  %v1633_v9 = vpop.xlane.xlu0 %1632  ;;  %v1700_v46 = vsel %vm1627_vm1, %v12854_v7, 0.0  ;;  %19583 = vst [vmem:[#allocation52_spill] sm:$0xff] %v12874_v25  ;;  %v12882_v20 = vpop.f32.mrb[47].mxu0 }
 0x182   : > { %v12858_v43 = vpop.xlane.xlu1 %1824  ;;  %v12866_v5 = vmul.f32 0.015625, %v1633_v9  ;;  %19584 = vst [vmem:[#allocation53_spill] sm:$0xff] %v12882_v20  ;;  %v12888_v25 = vpop.f32.mrb[46].mxu1 }
 0x183   : > { %19580 = vst [vmem:[#allocation49_spill] sm:$0xff] %v12858_v43  ;;  %19585 = vst [vmem:[#allocation54_spill] sm:$0xff] %v12888_v25 }
 0x184   : > { %1701 = vadd.xlane.f32.xlu0 %v1700_v46  ;;  %v2782_v9 = vmul.f32 %v12866_v5, %v12866_v5  ;;  %v2165_v46 = vmul.f32 %v12854_v7, %v12854_v7 }
 0x185   : > { %1704 = vadd.xlane.f32.xlu1 %v1703_v31  ;;  %v1630_v53 = vpop.xlane.xlu0 %1629  ;;  %v2166_v31 = vmul.f32 %v12848_v42, %v12848_v42  ;;  %v12900_v42 = vadd.f32 %v12316_v63, %v12558_v22 }
 0x186   : > { %v2274_v21 = vpop.xlane.xlu1 %2273  ;;  %v12896_v58 = vmul.f32 0.015625, %v1630_v53 }
 0x187   : > { %v2654_v43 = vmul.f32 0.015625, %v2274_v21  ;;  %v12894_v21 = vadd.f32 %v12550_v39, %v12316_v63  ;;  %19588 = vst [vmem:[#allocation57_spill] sm:$0xff] %v12900_v42  ;;  %v12910_v39 = vadd.f32 %v12552_v1, %v12316_v63 }
 0x188   : > { %1893 = vadd.xlane.f32.xlu0 %v1892_v59  ;;  %v2341_v59 = vsel %vm1627_vm1, %v2165_v46, 0.0  ;;  %v2781_v53 = vmul.f32 %v12896_v58, %v12896_v58 }
 0x189   : > { %v2910_v11 = vsub.f32 %v2654_v43, %v2782_v9  ;;  %1896 = vadd.xlane.f32.xlu1 %v1895_v33  ;;  %v12890_v52 = vpop.xlane.xlu0 %1821  ;;  %19587 = vst [vmem:[#allocation56_spill] sm:$0xff] %v12894_v21  ;;  %v12902_v43 = vpop.f32.mrb[47].mxu1  ;;  %v2344_v33 = vsel %vm1627_vm1, %v2166_v31, 0.0  ;;  %19591 = vst [vmem:[#allocation60_spill] sm:$0xff] %v12910_v39  ;;  %v1709_v22 = vsel %vm1627_vm1, %v12894_v21, 0.0  ;;  %v1706_v31 = vsel %vm1627_vm1, %v12900_v42, 0.0 }
 0x18a   : > { %v1639_v47 = vpop.xlane.xlu1 %1638  ;;  %19586 = vst [vmem:[#allocation55_spill] sm:$0xff] %v12890_v52  ;;  %19589 = vst [vmem:[#allocation58_spill] sm:$0xff] %v12902_v43 }
 0x18b   : > { %v3166_v9 = vadd.f32 1e-05, %v2910_v11  ;;  %v12918_v11 = vadd.f32 %v12316_v63, %v12560_v28 }
 0x18c   : > { %2342 = vadd.xlane.f32.xlu0 %v2341_v59 }
 0x18d   : > { %2345 = vadd.xlane.f32.xlu1 %v2344_v33  ;;  %v2271_v7 = vpop.xlane.xlu0 %2270  ;;  %19592 = vst [vmem:[#allocation61_spill] sm:$0xff] %v12918_v11  ;;  %11328 = vrsqrt.f32 %v3166_v9  ;;  %v12922_v33 = vpop.f32.mrb[48].mxu0  ;;  %v1898_v20 = vsel %vm1627_vm1, %v12918_v11, 0.0 }
 0x18e   : > { %v12906_v52 = vpop.xlane.xlu1 %1830  ;;  %v2653_v43 = vmul.f32 0.015625, %v2271_v7  ;;  %19593 = vst [vmem:[#allocation62_spill] sm:$0xff] %v12922_v33  ;;  %v12928_v7 = vmul.f32 0.015625, %v1639_v47  ;;  %v12934_v9 = vpop.f32.mrb[49].mxu0  ;;  %v12962_v33 = vadd.f32 %v12568_v44, %v12316_v63 }
 0x18f   : > { %19590 = vst [vmem:[#allocation59_spill] sm:$0xff] %v12906_v52  ;;  %v1901_v52 = vsel %vm1627_vm1, %v12910_v39, 0.0  ;;  %19595 = vst [vmem:[#allocation64_spill] sm:$0xff] %v12934_v9 }
 0x190   : > { %v2909_v46 = vsub.f32 %v2653_v43, %v2781_v53  ;;  %1707 = vadd.xlane.f32.xlu0 %v1706_v31  ;;  %v2168_v43 = vmul.f32 %v12894_v21, %v12894_v21  ;;  %v12940_v53 = vpop.f32.mrb[48].mxu1  ;;  %19600 = vst [vmem:[#allocation69_spill] sm:$0xff] %v12962_v33 }
 0x191   : > { %1710 = vadd.xlane.f32.xlu1 %v1709_v22  ;;  %v12924_v59 = vpop.xlane.xlu0 %1827  ;;  %v2167_v22 = vmul.f32 %v12900_v42, %v12900_v42  ;;  %19596 = vst [vmem:[#allocation65_spill] sm:$0xff] %v12940_v53  ;;  %v12954_v39 = vpop.f32.mrb[49].mxu1 }
 0x192   : > { %v1636_v1 = vpop.xlane.xlu1 %1635  ;;  %19594 = vst [vmem:[#allocation63_spill] sm:$0xff] %v12924_v59  ;;  %v3165_v25 = vadd.f32 1e-05, %v2909_v46  ;;  %v12944_v46 = vadd.f32 %v12566_v40, %v12316_v63  ;;  %19599 = vst [vmem:[#allocation68_spill] sm:$0xff] %v12954_v39  ;;  %v12958_v53 = vpop.f32.mrb[50].mxu0 }
 0x193   : > { %v12930_v28 = vmul.f32 0.015625, %v1636_v1  ;;  %v12948_v1 = vadd.f32 %v12316_v63, %v12578_v34  ;;  %v2347_v40 = vsel %vm1627_vm1, %v2167_v22, 0.0  ;;  %v3038_v22 = vsub.f32 %v12322_v4, %v12866_v5  ;;  %v12976_v44 = vpop.f32.mrb[50].mxu1 }
 0x194   : > { %11330 = vrsqrt.f32 %v3165_v25  ;;  %1899 = vadd.xlane.f32.xlu0 %v1898_v20  ;;  %19597 = vst [vmem:[#allocation66_spill] sm:$0xff] %v12944_v46  ;;  %v2784_v25 = vmul.f32 %v12928_v7, %v12928_v7  ;;  %v2350_v20 = vsel %vm1627_vm1, %v2168_v43, 0.0 }
 0x195   : > { %1902 = vadd.xlane.f32.xlu1 %v1901_v52  ;;  %v2277_v31 = vpop.xlane.xlu0 %2276  ;;  %19598 = vst [vmem:[#allocation67_spill] sm:$0xff] %v12948_v1  ;;  %v2783_v52 = vmul.f32 %v12930_v28, %v12930_v28 }
 0x196   : > { %v2280_v47 = vpop.xlane.xlu1 %2279  ;;  %v2655_v11 = vmul.f32 0.015625, %v2277_v31 }
 0x197   : > { %v2656_v59 = vmul.f32 0.015625, %v2280_v47  ;;  %v1715_v47 = vsel %vm1627_vm1, %v12944_v46, 0.0  ;;  %v11329_v31 = vpop.eup %11328 }
 0x198   : > { %v2911_v21 = vsub.f32 %v2655_v11, %v2783_v52  ;;  %2348 = vadd.xlane.f32.xlu0 %v2347_v40  ;;  %v12968_v11 = vadd.f32 %v12316_v63, %v12580_v27  ;;  %v3422_v52 = vmul.f32 %v11329_v31, %v3038_v22  ;;  %v2169_v31 = vmul.f32 %v12948_v1, %v12948_v1 }
 0x199   : > { %v2912_v42 = vsub.f32 %v2656_v59, %v2784_v25  ;;  %2351 = vadd.xlane.f32.xlu1 %v2350_v20  ;;  %v1642_v9 = vpop.xlane.xlu0 %1641  ;;  %v1712_v59 = vsel %vm1627_vm1, %v12948_v1, 0.0  ;;  %v12974_v25 = vpop.f32.mrb[51].mxu0  ;;  %v1907_v20 = vsel %vm1627_vm1, %v12962_v33, 0.0  ;;  %v13002_v22 = vadd.f32 %v12584_v2, %v12316_v63 }
 0x19a   : > { %v1645_v34 = vpop.xlane.xlu1 %1644  ;;  %v3167_v43 = vadd.f32 1e-05, %v2911_v21  ;;  %19601 = vst [vmem:[#allocation70_spill] sm:$0xff] %v12968_v11  ;;  %v1904_v40 = vsel %vm1627_vm1, %v12968_v11, 0.0  ;;  %v3040_v1 = vsub.f32 %v12341_v16, %v12928_v7 }
 0x19b   : > { %v3168_v39 = vadd.f32 1e-05, %v2912_v42  ;;  %v3037_v42 = vsub.f32 %v12330_v8, %v12896_v58  ;;  %v12986_v5 = vmul.f32 0.015625, %v1645_v34  ;;  %v2170_v58 = vmul.f32 %v12944_v46, %v12944_v46  ;;  %19604 = vst [vmem:[#allocation73_spill] sm:$0xff] %v13002_v22 }
 0x19c   : > { %1713 = vadd.xlane.f32.xlu0 %v1712_v59  ;;  %v3550_v59 = vmax.f32 %v3422_v52, 0.0 }
 0x19d   : > { %11332 = vrsqrt.f32 %v3168_v39  ;;  %1716 = vadd.xlane.f32.xlu1 %v1715_v47  ;;  %v12982_v21 = vpop.xlane.xlu0 %1833  ;;  %v12988_v39 = vmul.f32 0.015625, %v1642_v9  ;;  %v12992_v47 = vpop.f32.mrb[51].mxu1  ;;  %v2356_v2 = vsel %vm1627_vm1, %v2170_v58, 0.0 }
 0x19e   : > { %11334 = vrsqrt.f32 %v3167_v43  ;;  %v12980_v27 = vpop.xlane.xlu1 %1836  ;;  %19603 = vst [vmem:[#allocation72_spill] sm:$0xff] %v12982_v21  ;;  %v11331_v4 = vpop.eup %11330 }
 0x19f   : > { %19602 = vst [vmem:[#allocation71_spill] sm:$0xff] %v12980_v27  ;;  %v3421_v8 = vmul.f32 %v11331_v4, %v3037_v42  ;;  %v12998_v43 = vpop.f32.mrb[52].mxu0  ;;  %v13006_v42 = vadd.f32 %v12316_v63, %v12600_v26  ;;  %v2785_v21 = vmul.f32 %v12988_v39, %v12988_v39  ;;  %v2353_v26 = vsel %vm1627_vm1, %v2169_v31, 0.0 }
 0x1a0   : > { %1905 = vadd.xlane.f32.xlu0 %v1904_v40  ;;  %v13012_v40 = vpop.f32.mrb[53].mxu0 }
 0x1a1   : > { %1908 = vadd.xlane.f32.xlu1 %v1907_v20  ;;  %v2283_v9 = vpop.xlane.xlu0 %2282  ;;  %19605 = vst [vmem:[#allocation74_spill] sm:$0xff] %v13006_v42  ;;  %v3549_v4 = vmax.f32 %v3421_v8, 0.0  ;;  %v2786_v20 = vmul.f32 %v12986_v5, %v12986_v5  ;;  %v13018_v8 = vpop.f32.mrb[52].mxu1  ;;  %v1718_v16 = vsel %vm1627_vm1, %v13006_v42, 0.0 }
 0x1a2   : > { %v2286_v34 = vpop.xlane.xlu1 %2285  ;;  %v2657_v52 = vmul.f32 0.015625, %v2283_v9 }
 0x1a3   : > { %v2658_v27 = vmul.f32 0.015625, %v2286_v34  ;;  %10849 = vmatprep.mubr.msk.f32.mxu1 %vm1627_vm1, %v3549_v4  ;;  %v13024_v4 = vadd.f32 %v12586_v57, %v12316_v63  ;;  %v13036_v57 = vpop.f32.mrb[53].mxu1 }
 0x1a4   : > { %v2913_v33 = vsub.f32 %v2657_v52, %v2785_v21  ;;  %10850 = vmatmul.mubr.msk.f32.vlgmr.msra.gmra.mrb[64].mxu1 %vm1627_vm1, %v3550_v59  ;;  %2354 = vadd.xlane.f32.xlu0 %v2353_v26  ;;  %v13030_v59 = vadd.f32 %v12316_v63, %v12602_v29 }
 0x1a5   : > { %v2914_v11 = vsub.f32 %v2658_v27, %v2786_v20  ;;  %2357 = vadd.xlane.f32.xlu1 %v2356_v2  ;;  %v1648_v9 = vpop.xlane.xlu0 %1647  ;;  %19606 = vst [vmem:[#allocation75_spill] sm:$0xff] %v13024_v4  ;;  %v1721_v27 = vsel %vm1627_vm1, %v13002_v22, 0.0  ;;  %v3039_v20 = vsub.f32 %v12365_v35, %v12930_v28  ;;  %v13038_v2 = vpop.f32.mrb[54].mxu0  ;;  %v1913_v26 = vsel %vm1627_vm1, %v13024_v4, 0.0 }
 0x1a6   : > { %v1651_v34 = vpop.xlane.xlu1 %1650  ;;  %v3169_v31 = vadd.f32 1e-05, %v2913_v33  ;;  %19607 = vst [vmem:[#allocation76_spill] sm:$0xff] %v13030_v59  ;;  %v13048_v35 = vmul.f32 0.015625, %v1648_v9  ;;  %v1910_v28 = vsel %vm1627_vm1, %v13030_v59, 0.0  ;;  %v3042_v59 = vsub.f32 %v12392_v48, %v12986_v5 }
 0x1a7   : > { %v11333_v21 = vpop.eup %11332  ;;  %v3170_v58 = vadd.f32 1e-05, %v2914_v11  ;;  %v13046_v46 = vmul.f32 0.015625, %v1651_v34 }
 0x1a8   : > { %v11335_v7 = vpop.eup %11334  ;;  %v3424_v52 = vmul.f32 %v11333_v21, %v3040_v1  ;;  %1719 = vadd.xlane.f32.xlu0 %v1718_v16  ;;  %v13058_v16 = vpop.f32.mrb[54].mxu1 }
 0x1a9   : > { %11336 = vrsqrt.f32 %v3170_v58  ;;  %1722 = vadd.xlane.f32.xlu1 %v1721_v27  ;;  %v13042_v29 = vpop.xlane.xlu0 %1839  ;;  %v3423_v11 = vmul.f32 %v11335_v7, %v3039_v20  ;;  %v13052_v27 = vpop.f32.mrb[55].mxu0  ;;  %v2172_v58 = vmul.f32 %v13002_v22, %v13002_v22  ;;  %v13063_v7 = vadd.f32 %v12604_v41, %v12316_v63 }
 0x1aa   : > { %11338 = vrsqrt.f32 %v3169_v31  ;;  %v13040_v33 = vpop.xlane.xlu1 %1842  ;;  %19609 = vst [vmem:[#allocation78_spill] sm:$0xff] %v13042_v29  ;;  %v3552_v1 = vmax.f32 %v3424_v52, 0.0  ;;  %v2171_v31 = vmul.f32 %v13006_v42, %v13006_v42  ;;  %v13067_v20 = vadd.f32 %v12316_v63, %v12610_v36  ;;  %v13078_v36 = vpop.f32.mrb[56].mxu0 }
 0x1ab   : > { %19608 = vst [vmem:[#allocation77_spill] sm:$0xff] %v13040_v33  ;;  %v3551_v21 = vmax.f32 %v3423_v11, 0.0  ;;  %19610 = vst [vmem:[#allocation79_spill] sm:$0xff] %v13063_v7  ;;  %v2788_v52 = vmul.f32 %v13046_v46, %v13046_v46  ;;  %v2787_v11 = vmul.f32 %v13048_v35, %v13048_v35  ;;  %v2362_v29 = vsel %vm1627_vm1, %v2172_v58, 0.0 }
 0x1ac   : > { %1911 = vadd.xlane.f32.xlu0 %v1910_v28  ;;  %19611 = vst [vmem:[#allocation80_spill] sm:$0xff] %v13067_v20  ;;  %v2359_v63 = vsel %vm1627_vm1, %v2171_v31, 0.0  ;;  %v1724_v5 = vsel %vm1627_vm1, %v13067_v20, 0.0 }
 0x1ad   : > { %1914 = vadd.xlane.f32.xlu1 %v1913_v26  ;;  %10852 = vmatprep.mubr.msk.f32.mxu1 %vm1627_vm1, %v3551_v21  ;;  %v2289_v9 = vpop.xlane.xlu0 %2288  ;;  %v13074_v21 = vpop.f32.mrb[55].mxu1 }
 0x1ae   : > { %v2292_v34 = vpop.xlane.xlu1 %2291  ;;  %10853 = vmatmul.mubr.msk.f32.gmra.mrb[66].mxu1 %vm1627_vm1, %v3552_v1  ;;  %v2659_v28 = vmul.f32 0.015625, %v2289_v9  ;;  %v13085_v1 = vld [vmem:[%s19165_s4] ss:$0 sm:$0xff] }
 0x1af   : > { %v2660_v26 = vmul.f32 0.015625, %v2292_v34  ;;  %v13089_v58 = vadd.f32 %v13085_v1, %v12616_v56  ;;  %v13095_v48 = vadd.f32 %v13085_v1, %v12626_v50  ;;  %v13101_v56 = vpop.f32.mrb[57].mxu0 }
 0x1b0   : > { %v2915_v33 = vsub.f32 %v2659_v28, %v2787_v11  ;;  %2360 = vadd.xlane.f32.xlu0 %v2359_v63  ;;  %v3041_v11 = vsub.f32 %v12395_v49, %v12988_v39  ;;  %v13103_v28 = vpop.f32.mrb[56].mxu1 }
 0x1b1   : > { %v2916_v41 = vsub.f32 %v2660_v26, %v2788_v52  ;;  %2363 = vadd.xlane.f32.xlu1 %v2362_v29  ;;  %v1654_v42 = vpop.xlane.xlu0 %1653  ;;  %19612 = vst [vmem:[#allocation81_spill] sm:$0xff] %v13089_v58  ;;  %v1727_v29 = vsel %vm1627_vm1, %v13063_v7, 0.0  ;;  %19613 = vst [vmem:[#allocation82_spill] sm:$0xff] %v13095_v48  ;;  %v1919_v63 = vsel %vm1627_vm1, %v13089_v58, 0.0  ;;  %v1916_v39 = vsel %vm1627_vm1, %v13095_v48, 0.0 }
 0x1b2   : > { %v1657_v4 = vpop.xlane.xlu1 %1656  ;;  %v3171_v9 = vadd.f32 1e-05, %v2915_v33  ;;  %v13113_v49 = vmul.f32 0.015625, %v1654_v42  ;;  %v3044_v58 = vsub.f32 %v12442_v12, %v13046_v46 }
 0x1b3   : > { %v11337_v31 = vpop.eup %11336  ;;  %v3172_v34 = vadd.f32 1e-05, %v2916_v41  ;;  %v13111_v22 = vmul.f32 0.015625, %v1657_v4 }
 0x1b4   : > { %v11339_v52 = vpop.eup %11338  ;;  %v3426_v26 = vmul.f32 %v11337_v31, %v3042_v59  ;;  %1725 = vadd.xlane.f32.xlu0 %v1724_v5  ;;  %v13123_v5 = vpop.f32.mrb[58].mxu0 }
 0x1b5   : > { %11340 = vrsqrt.f32 %v3172_v34  ;;  %1728 = vadd.xlane.f32.xlu1 %v1727_v29  ;;  %v13107_v50 = vpop.xlane.xlu0 %1845  ;;  %v3425_v41 = vmul.f32 %v11339_v52, %v3041_v11  ;;  %v13117_v29 = vpop.f32.mrb[57].mxu1  ;;  %v2174_v34 = vmul.f32 %v13063_v7, %v13063_v7  ;;  %v13128_v52 = vadd.f32 %v13085_v1, %v12642_v24 }
 0x1b6   : > { %11342 = vrsqrt.f32 %v3171_v9  ;;  %v13105_v33 = vpop.xlane.xlu1 %1848  ;;  %19615 = vst [vmem:[#allocation84_spill] sm:$0xff] %v13107_v50  ;;  %v3554_v59 = vmax.f32 %v3426_v26, 0.0  ;;  %v2173_v9 = vmul.f32 %v13067_v20, %v13067_v20  ;;  %v13132_v11 = vadd.f32 %v13085_v1, %v12648_v55  ;;  %v13143_v48 = vpop.f32.mrb[58].mxu1 }
 0x1b7   : > { %19614 = vst [vmem:[#allocation83_spill] sm:$0xff] %v13105_v33  ;;  %v3553_v31 = vmax.f32 %v3425_v41, 0.0  ;;  %19616 = vst [vmem:[#allocation85_spill] sm:$0xff] %v13128_v52  ;;  %v2790_v26 = vmul.f32 %v13111_v22, %v13111_v22  ;;  %v2789_v41 = vmul.f32 %v13113_v49, %v13113_v49  ;;  %v2368_v50 = vsel %vm1627_vm1, %v2174_v34, 0.0 }
 0x1b8   : > { %1917 = vadd.xlane.f32.xlu0 %v1916_v39  ;;  %19617 = vst [vmem:[#allocation86_spill] sm:$0xff] %v13132_v11  ;;  %v2365_v55 = vsel %vm1627_vm1, %v2173_v9, 0.0  ;;  %v1733_v34 = vsel %vm1627_vm1, %v13128_v52, 0.0  ;;  %v13155_v9 = vadd.f32 %v13085_v1, %v12664_v54  ;;  %v1730_v12 = vsel %vm1627_vm1, %v13132_v11, 0.0 }
 0x1b9   : > { %1920 = vadd.xlane.f32.xlu1 %v1919_v63  ;;  %10855 = vmatprep.mubr.msk.f32.mxu1 %vm1627_vm1, %v3553_v31  ;;  %v2295_v4 = vpop.xlane.xlu0 %2294  ;;  %v13139_v31 = vpop.f32.mrb[59].mxu0 }
 0x1ba   : > { %v2298_v42 = vpop.xlane.xlu1 %2297  ;;  %10856 = vmatmul.mubr.msk.f32.gmra.mrb[68].mxu1 %vm1627_vm1, %v3554_v59  ;;  %v2661_v39 = vmul.f32 0.015625, %v2295_v4  ;;  %v13149_v59 = vadd.f32 %v13085_v1, %v12654_v60  ;;  %19619 = vst [vmem:[#allocation88_spill] sm:$0xff] %v13155_v9  ;;  %v13161_v60 = vpop.f32.mrb[59].mxu1 }
 0x1bb   : > { %v2662_v63 = vmul.f32 0.015625, %v2298_v42 }
 0x1bc   : > { %v2917_v33 = vsub.f32 %v2661_v39, %v2789_v41  ;;  %2366 = vadd.xlane.f32.xlu0 %v2365_v55  ;;  %19618 = vst [vmem:[#allocation87_spill] sm:$0xff] %v13149_v59 }
 0x1bd   : > { %v2918_v24 = vsub.f32 %v2662_v63, %v2790_v26  ;;  %2369 = vadd.xlane.f32.xlu1 %v2368_v50  ;;  %v1660_v7 = vpop.xlane.xlu0 %1659  ;;  %v3043_v26 = vsub.f32 %v12445_v13, %v13048_v35  ;;  %v13163_v63 = vpop.f32.mrb[60].mxu0  ;;  %v1922_v35 = vsel %vm1627_vm1, %v13155_v9, 0.0 }
 0x1be   : > { %v1663_v20 = vpop.xlane.xlu1 %1662  ;;  %v3173_v50 = vadd.f32 1e-05, %v2917_v33  ;;  %v13173_v13 = vmul.f32 0.015625, %v1660_v7 }
 0x1bf   : > { %v11341_v42 = vpop.eup %11340  ;;  %v3174_v4 = vadd.f32 1e-05, %v2918_v24  ;;  %v1925_v24 = vsel %vm1627_vm1, %v13149_v59, 0.0  ;;  %v13171_v55 = vmul.f32 0.015625, %v1663_v20  ;;  %v3046_v59 = vsub.f32 %v12512_v17, %v13111_v22 }
 0x1c0   : > { %v11343_v46 = vpop.eup %11342  ;;  %v3428_v41 = vmul.f32 %v11341_v42, %v3044_v58  ;;  %1731 = vadd.xlane.f32.xlu0 %v1730_v12  ;;  %v13183_v12 = vpop.f32.mrb[60].mxu1 }
 0x1c1   : > { %11344 = vrsqrt.f32 %v3174_v4  ;;  %1734 = vadd.xlane.f32.xlu1 %v1733_v34  ;;  %v13167_v54 = vpop.xlane.xlu0 %1851  ;;  %v3427_v39 = vmul.f32 %v11343_v46, %v3043_v26  ;;  %v13177_v34 = vpop.f32.mrb[61].mxu0  ;;  %v2176_v4 = vmul.f32 %v13128_v52, %v13128_v52  ;;  %v13188_v46 = vadd.f32 %v13085_v1, %v12680_v61 }
 0x1c2   : > { %11346 = vrsqrt.f32 %v3173_v50  ;;  %v13165_v33 = vpop.xlane.xlu1 %1854  ;;  %19621 = vst [vmem:[#allocation90_spill] sm:$0xff] %v13167_v54  ;;  %v3556_v58 = vmax.f32 %v3428_v41, 0.0  ;;  %v2175_v50 = vmul.f32 %v13132_v11, %v13132_v11  ;;  %v13192_v26 = vadd.f32 %v13085_v1, %v12686_v38  ;;  %v13203_v9 = vpop.f32.mrb[62].mxu0 }
 0x1c3   : > { %19620 = vst [vmem:[#allocation89_spill] sm:$0xff] %v13165_v33  ;;  %v3555_v42 = vmax.f32 %v3427_v39, 0.0  ;;  %v2792_v41 = vmul.f32 %v13171_v55, %v13171_v55  ;;  %v2791_v39 = vmul.f32 %v13173_v13, %v13173_v13  ;;  %v2374_v54 = vsel %vm1627_vm1, %v2176_v4, 0.0 }
 0x1c4   : > { %1923 = vadd.xlane.f32.xlu0 %v1922_v35  ;;  %19622 = vst [vmem:[#allocation91_spill] sm:$0xff] %v13192_v26  ;;  %v2371_v38 = vsel %vm1627_vm1, %v2175_v50, 0.0  ;;  %v1739_v4 = vsel %vm1627_vm1, %v13188_v46, 0.0  ;;  %v13215_v50 = vadd.f32 %v13085_v1, %v12702_v62  ;;  %v1736_v17 = vsel %vm1627_vm1, %v13192_v26, 0.0 }
 0x1c5   : > { %1926 = vadd.xlane.f32.xlu1 %v1925_v24  ;;  %10858 = vmatprep.mubr.msk.f32.mxu1 %vm1627_vm1, %v3555_v42  ;;  %v2301_v20 = vpop.xlane.xlu0 %2300  ;;  %v13199_v42 = vpop.f32.mrb[61].mxu1 }
 0x1c6   : > { %v2304_v7 = vpop.xlane.xlu1 %2303  ;;  %10859 = vmatmul.mubr.msk.f32.gmra.mrb[70].mxu1 %vm1627_vm1, %v3556_v58  ;;  %v2663_v35 = vmul.f32 0.015625, %v2301_v20  ;;  %v13209_v58 = vadd.f32 %v13085_v1, %v12692_v3  ;;  %19624 = vst [vmem:[#allocation93_spill] sm:$0xff] %v13215_v50  ;;  %v13221_v3 = vpop.f32.mrb[63].mxu0 }
 0x1c7   : > { %v2664_v24 = vmul.f32 0.015625, %v2304_v7 }
 0x1c8   : > { %v2919_v33 = vsub.f32 %v2663_v35, %v2791_v39  ;;  %2372 = vadd.xlane.f32.xlu0 %v2371_v38  ;;  %19623 = vst [vmem:[#allocation92_spill] sm:$0xff] %v13209_v58 }
 0x1c9   : > { %v2920_v61 = vsub.f32 %v2664_v24, %v2792_v41  ;;  %2375 = vadd.xlane.f32.xlu1 %v2374_v54  ;;  %v1666_v52 = vpop.xlane.xlu0 %1665  ;;  %v3045_v41 = vsub.f32 %v12516_v18, %v13113_v49  ;;  %v13223_v24 = vpop.f32.mrb[62].mxu1  ;;  %v1928_v49 = vsel %vm1627_vm1, %v13215_v50, 0.0 }
 0x1ca   : > { %v1669_v11 = vpop.xlane.xlu1 %1668  ;;  %v3175_v54 = vadd.f32 1e-05, %v2919_v33  ;;  %v13233_v18 = vmul.f32 0.015625, %v1666_v52 }
 0x1cb   : > { %v11345_v7 = vpop.eup %11344  ;;  %v3176_v20 = vadd.f32 1e-05, %v2920_v61  ;;  %v1931_v61 = vsel %vm1627_vm1, %v13209_v58, 0.0  ;;  %v13231_v38 = vmul.f32 0.015625, %v1669_v11 }
 0x1cc   : > { %v11347_v22 = vpop.eup %11346  ;;  %v3430_v39 = vmul.f32 %v11345_v7, %v3046_v59  ;;  %1737 = vadd.xlane.f32.xlu0 %v1736_v17  ;;  %v13246_v17 = vadd.f32 %v13085_v1, %v12718_v6 }
 0x1cd   : > { %11348 = vrsqrt.f32 %v3176_v20  ;;  %1740 = vadd.xlane.f32.xlu1 %v1739_v4  ;;  %v13227_v62 = vpop.xlane.xlu0 %1857  ;;  %v3429_v35 = vmul.f32 %v11347_v22, %v3045_v41  ;;  %v13237_v4 = vpop.f32.mrb[63].mxu1  ;;  %v2178_v20 = vmul.f32 %v13188_v46, %v13188_v46  ;;  %v13250_v22 = vadd.f32 %v13085_v1, %v12724_v51  ;;  %v19627_v51 = vld [vmem:[#allocation15_spill] sm:$0xff] }
 0x1ce   : > { %11350 = vrsqrt.f32 %v3175_v54  ;;  %v13225_v33 = vpop.xlane.xlu1 %1860  ;;  %19626 = vst [vmem:[#allocation95_spill] sm:$0xff] %v13227_v62  ;;  %v3558_v59 = vmax.f32 %v3430_v39, 0.0  ;;  %v2177_v54 = vmul.f32 %v13192_v26, %v13192_v26  ;;  %v2794_v41 = vmul.f32 %v13231_v38, %v13231_v38 }
 0x1cf   : > { %19625 = vst [vmem:[#allocation94_spill] sm:$0xff] %v13225_v33  ;;  %v3557_v7 = vmax.f32 %v3429_v35, 0.0  ;;  %v2793_v39 = vmul.f32 %v13233_v18, %v13233_v18  ;;  %v3048_v33 = vsub.f32 %v19627_v51, %v13171_v55  ;;  %v13263_v26 = vadd.f32 %v13085_v1, %v12730_v14 }
 0x1d0   : > { %1929 = vadd.xlane.f32.xlu0 %v1928_v49  ;;  %v2380_v49 = vsel %vm1627_vm1, %v2178_v20, 0.0  ;;  %v2377_v6 = vsel %vm1627_vm1, %v2177_v54, 0.0  ;;  %v1742_v55 = vsel %vm1627_vm1, %v13250_v22, 0.0 }
 0x1d1   : > { %1932 = vadd.xlane.f32.xlu1 %v1931_v61  ;;  %10861 = vmatprep.mubr.msk.f32.mxu1 %vm1627_vm1, %v3557_v7  ;;  %v2307_v52 = vpop.xlane.xlu0 %2306  ;;  %19628 = vst [vmem:[#allocation15_spill] sm:$0xff] %v13263_v26 }
 0x1d2   : > { %v2310_v11 = vpop.xlane.xlu1 %2309  ;;  %10862 = vmatmul.mubr.msk.f32.gmra.mrb[72].mxu1 %vm1627_vm1, %v3558_v59  ;;  %v2665_v61 = vmul.f32 0.015625, %v2307_v52  ;;  %v1745_v59 = vsel %vm1627_vm1, %v13246_v17, 0.0 }
 0x1d3   : > { %v2666_v35 = vmul.f32 0.015625, %v2310_v11 }
 0x1d4   : > { %v2921_v62 = vsub.f32 %v2665_v61, %v2793_v39  ;;  %2378 = vadd.xlane.f32.xlu0 %v2377_v6  ;;  %v19630_v39 = vld [vmem:[#allocation16_spill] sm:$0xff] }
 0x1d5   : > { %v2922_v7 = vsub.f32 %v2666_v35, %v2794_v41  ;;  %2381 = vadd.xlane.f32.xlu1 %v2380_v49  ;;  %v1672_v58 = vpop.xlane.xlu0 %1671  ;;  %v13269_v41 = vadd.f32 %v13085_v1, %v12740_v10  ;;  %v3047_v35 = vsub.f32 %v19630_v39, %v13173_v13  ;;  %v1937_v10 = vsel %vm1627_vm1, %v13263_v26, 0.0 }
 0x1d6   : > { %v1675_v50 = vpop.xlane.xlu1 %1674  ;;  %v3177_v52 = vadd.f32 1e-05, %v2921_v62  ;;  %v13283_v6 = vmul.f32 0.015625, %v1672_v58  ;;  %v13294_v58 = vadd.f32 %v13085_v1, %v12756_v15 }
 0x1d7   : > { %v11349_v11 = vpop.eup %11348  ;;  %v3178_v20 = vadd.f32 1e-05, %v2922_v7  ;;  %19629 = vst [vmem:[#allocation96_spill] sm:$0xff] %v13269_v41  ;;  %v13281_v7 = vmul.f32 0.015625, %v1675_v50  ;;  %v1934_v13 = vsel %vm1627_vm1, %v13269_v41, 0.0 }
 0x1d8   : > { %v11351_v54 = vpop.eup %11350  ;;  %v3432_v61 = vmul.f32 %v11349_v11, %v3048_v33  ;;  %1743 = vadd.xlane.f32.xlu0 %v1742_v55  ;;  %v2179_v11 = vmul.f32 %v13250_v22, %v13250_v22 }
 0x1d9   : > { %11352 = vrsqrt.f32 %v3178_v20  ;;  %1746 = vadd.xlane.f32.xlu1 %v1745_v59  ;;  %v13277_v49 = vpop.xlane.xlu0 %1863  ;;  %v3431_v62 = vmul.f32 %v11351_v54, %v3047_v35  ;;  %v2180_v59 = vmul.f32 %v13246_v17, %v13246_v17  ;;  %v2796_v55 = vmul.f32 %v13281_v7, %v13281_v7 }
 0x1da   : > { %11354 = vrsqrt.f32 %v3177_v52  ;;  %v13275_v14 = vpop.xlane.xlu1 %1866  ;;  %19632 = vst [vmem:[#allocation97_spill] sm:$0xff] %v13277_v49  ;;  %v3560_v33 = vmax.f32 %v3432_v61, 0.0  ;;  %v13298_v52 = vadd.f32 %v13085_v1, %v12762_v19  ;;  %v2795_v54 = vmul.f32 %v13283_v6, %v13283_v6  ;;  %v19633_v19 = vld [vmem:[#allocation19_spill] sm:$0xff] }
 0x1db   : > { %19631 = vst [vmem:[#allocation16_spill] sm:$0xff] %v13275_v14  ;;  %v3559_v51 = vmax.f32 %v3431_v62, 0.0  ;;  %v2386_v61 = vsel %vm1627_vm1, %v2180_v59, 0.0  ;;  %v2383_v15 = vsel %vm1627_vm1, %v2179_v11, 0.0  ;;  %v13311_v14 = vadd.f32 %v13085_v1, %v12768_v30 }
 0x1dc   : > { %1935 = vadd.xlane.f32.xlu0 %v1934_v13  ;;  %v3050_v13 = vsub.f32 %v19633_v19, %v13231_v38  ;;  %v1748_v38 = vsel %vm1627_vm1, %v13298_v52, 0.0 }
 0x1dd   : > { %1938 = vadd.xlane.f32.xlu1 %v1937_v10  ;;  %10864 = vmatprep.mubr.msk.f32.mxu1 %vm1627_vm1, %v3559_v51  ;;  %v2313_v50 = vpop.xlane.xlu0 %2312  ;;  %19634 = vst [vmem:[#allocation19_spill] sm:$0xff] %v13311_v14 }
 0x1de   : > { %v2316_v20 = vpop.xlane.xlu1 %2315  ;;  %10865 = vmatmul.mubr.msk.f32.gmra.mrb[74].mxu1 %vm1627_vm1, %v3560_v33  ;;  %v2667_v35 = vmul.f32 0.015625, %v2313_v50  ;;  %v1751_v33 = vsel %vm1627_vm1, %v13294_v58, 0.0 }
 0x1df   : > { %v2668_v39 = vmul.f32 0.015625, %v2316_v20 }
 0x1e0   : > { %v2923_v10 = vsub.f32 %v2667_v35, %v2795_v54  ;;  %2384 = vadd.xlane.f32.xlu0 %v2383_v15  ;;  %v19636_v54 = vld [vmem:[#allocation20_spill] sm:$0xff] }
 0x1e1   : > { %v2924_v62 = vsub.f32 %v2668_v39, %v2796_v55  ;;  %2387 = vadd.xlane.f32.xlu1 %v2386_v61  ;;  %v1678_v49 = vpop.xlane.xlu0 %1677  ;;  %v13317_v55 = vadd.f32 %v13085_v1, %v12778_v23  ;;  %v3049_v39 = vsub.f32 %v19636_v54, %v13233_v18  ;;  %v1943_v23 = vsel %vm1627_vm1, %v13311_v14, 0.0 }
 0x1e2   : > { %v1681_v51 = vpop.xlane.xlu1 %1680  ;;  %v3179_v50 = vadd.f32 1e-05, %v2923_v10  ;;  %v13331_v15 = vmul.f32 0.015625, %v1678_v49  ;;  %v13342_v49 = vadd.f32 %v13085_v1, %v12794_v32 }
 0x1e3   : > { %v11353_v20 = vpop.eup %11352  ;;  %v3180_v59 = vadd.f32 1e-05, %v2924_v62  ;;  %19635 = vst [vmem:[#allocation98_spill] sm:$0xff] %v13317_v55  ;;  %v13329_v10 = vmul.f32 0.015625, %v1681_v51  ;;  %v1940_v18 = vsel %vm1627_vm1, %v13317_v55, 0.0 }
 0x1e4   : > { %v11355_v11 = vpop.eup %11354  ;;  %v3434_v35 = vmul.f32 %v11353_v20, %v3050_v13  ;;  %1749 = vadd.xlane.f32.xlu0 %v1748_v38  ;;  %v2181_v20 = vmul.f32 %v13298_v52, %v13298_v52 }
 0x1e5   : > { %11356 = vrsqrt.f32 %v3180_v59  ;;  %1752 = vadd.xlane.f32.xlu1 %v1751_v33  ;;  %v13325_v61 = vpop.xlane.xlu0 %1869  ;;  %v3433_v62 = vmul.f32 %v11355_v11, %v3049_v39  ;;  %v2182_v33 = vmul.f32 %v13294_v58, %v13294_v58  ;;  %v2798_v38 = vmul.f32 %v13329_v10, %v13329_v10 }
 0x1e6   : > { %11358 = vrsqrt.f32 %v3179_v50  ;;  %v13323_v30 = vpop.xlane.xlu1 %1872  ;;  %19638 = vst [vmem:[#allocation99_spill] sm:$0xff] %v13325_v61  ;;  %v3562_v19 = vmax.f32 %v3434_v35, 0.0  ;;  %v13346_v50 = vadd.f32 %v13085_v1, %v12800_v0  ;;  %v2797_v11 = vmul.f32 %v13331_v15, %v13331_v15  ;;  %v19639_v0 = vld [vmem:[#allocation23_spill] sm:$0xff] }
 0x1e7   : > { %19637 = vst [vmem:[#allocation20_spill] sm:$0xff] %v13323_v30  ;;  %v3561_v13 = vmax.f32 %v3433_v62, 0.0  ;;  %v2392_v35 = vsel %vm1627_vm1, %v2182_v33, 0.0  ;;  %v2389_v32 = vsel %vm1627_vm1, %v2181_v20, 0.0  ;;  %v13359_v30 = vadd.f32 %v13085_v1, %v12806_v45 }
 0x1e8   : > { %1941 = vadd.xlane.f32.xlu0 %v1940_v18  ;;  %v3052_v18 = vsub.f32 %v19639_v0, %v13281_v7  ;;  %v1754_v7 = vsel %vm1627_vm1, %v13346_v50, 0.0 }
 0x1e9   : > { %1944 = vadd.xlane.f32.xlu1 %v1943_v23  ;;  %10867 = vmatprep.mubr.msk.f32.mxu1 %vm1627_vm1, %v3561_v13  ;;  %v2319_v51 = vpop.xlane.xlu0 %2318  ;;  %19640 = vst [vmem:[#allocation23_spill] sm:$0xff] %v13359_v30 }
 0x1ea   : > { %v2322_v59 = vpop.xlane.xlu1 %2321  ;;  %10868 = vmatmul.mubr.msk.f32.gmra.mrb[76].mxu1 %vm1627_vm1, %v3562_v19  ;;  %v2669_v39 = vmul.f32 0.015625, %v2319_v51  ;;  %v1757_v19 = vsel %vm1627_vm1, %v13342_v49, 0.0 }
 0x1eb   : > { %v2670_v54 = vmul.f32 0.015625, %v2322_v59 }
 0x1ec   : > { %v2925_v23 = vsub.f32 %v2669_v39, %v2797_v11  ;;  %2390 = vadd.xlane.f32.xlu0 %v2389_v32  ;;  %v19642_v11 = vld [vmem:[#allocation24_spill] sm:$0xff] }
 0x1ed   : > { %v2926_v62 = vsub.f32 %v2670_v54, %v2798_v38  ;;  %2393 = vadd.xlane.f32.xlu1 %v2392_v35  ;;  %v1684_v61 = vpop.xlane.xlu0 %1683  ;;  %v13365_v38 = vadd.f32 %v13085_v1, %v12816_v37  ;;  %v3051_v54 = vsub.f32 %v19642_v11, %v13283_v6  ;;  %v1949_v37 = vsel %vm1627_vm1, %v13359_v30, 0.0  ;;  %v19650_v30 = vld [vmem:[#allocation45_spill] sm:$0xff] }
 0x1ee   : > { %v1687_v13 = vpop.xlane.xlu1 %1686  ;;  %v3181_v51 = vadd.f32 1e-05, %v2925_v23  ;;  %v13379_v32 = vmul.f32 0.015625, %v1684_v61  ;;  %v13407_v55 = vadd.f32 %v13085_v1, %v19650_v30 }
 0x1ef   : > { %v11357_v59 = vpop.eup %11356  ;;  %v3182_v33 = vadd.f32 1e-05, %v2926_v62  ;;  %19641 = vst [vmem:[#allocation100_spill] sm:$0xff] %v13365_v38  ;;  %v13377_v23 = vmul.f32 0.015625, %v1687_v13  ;;  %v1946_v6 = vsel %vm1627_vm1, %v13365_v38, 0.0 }
 0x1f0   : > { %v11359_v20 = vpop.eup %11358  ;;  %v3436_v39 = vmul.f32 %v11357_v59, %v3052_v18  ;;  %1755 = vadd.xlane.f32.xlu0 %v1754_v7  ;;  %v2183_v59 = vmul.f32 %v13346_v50, %v13346_v50  ;;  %v19647_v7 = vld [vmem:[#allocation44_spill] sm:$0xff] }
 0x1f1   : > { %11360 = vrsqrt.f32 %v3182_v33  ;;  %1758 = vadd.xlane.f32.xlu1 %v1757_v19  ;;  %v13373_v35 = vpop.xlane.xlu0 %1875  ;;  %v3435_v62 = vmul.f32 %v11359_v20, %v3051_v54  ;;  %v2184_v19 = vmul.f32 %v13342_v49, %v13342_v49  ;;  %v13394_v20 = vadd.f32 %v13085_v1, %v19647_v7  ;;  %v19649_v7 = vld [vmem:[#allocation27_spill] sm:$0xff] }
 0x1f2   : > { %11362 = vrsqrt.f32 %v3181_v51  ;;  %v13371_v45 = vpop.xlane.xlu1 %1878  ;;  %19644 = vst [vmem:[#allocation101_spill] sm:$0xff] %v13373_v35  ;;  %v3564_v0 = vmax.f32 %v3436_v39, 0.0  ;;  %v19645_v51 = vld [vmem:[#allocation43_spill] sm:$0xff]  ;;  %v2800_v11 = vmul.f32 %v13377_v23, %v13377_v23  ;;  %v2799_v54 = vmul.f32 %v13379_v32, %v13379_v32  ;;  %19651 = vst [vmem:[#allocation27_spill] sm:$0xff] %v13407_v55 }
 0x1f3   : > { %19643 = vst [vmem:[#allocation24_spill] sm:$0xff] %v13371_v45  ;;  %v3563_v18 = vmax.f32 %v3435_v62, 0.0  ;;  %v13390_v61 = vadd.f32 %v13085_v1, %v19645_v51  ;;  %19648 = vst [vmem:[#allocation44_spill] sm:$0xff] %v13394_v20  ;;  %v2395_v51 = vsel %vm1627_vm1, %v2183_v59, 0.0  ;;  %v3054_v35 = vsub.f32 %v19649_v7, %v13329_v10 }
 0x1f4   : > { %1947 = vadd.xlane.f32.xlu0 %v1946_v6  ;;  %v1760_v10 = vsel %vm1627_vm1, %v13394_v20, 0.0 }
 0x1f5   : > { %1950 = vadd.xlane.f32.xlu1 %v1949_v37  ;;  %10870 = vmatprep.mubr.msk.f32.mxu1 %vm1627_vm1, %v3563_v18  ;;  %v2325_v13 = vpop.xlane.xlu0 %2324  ;;  %19646 = vst [vmem:[#allocation43_spill] sm:$0xff] %v13390_v61  ;;  %v2398_v37 = vsel %vm1627_vm1, %v2184_v19, 0.0 }
 0x1f6   : > { %v2328_v33 = vpop.xlane.xlu1 %2327  ;;  %10871 = vmatmul.mubr.msk.f32.gmra.mrb[78].mxu1 %vm1627_vm1, %v3564_v0  ;;  %v2671_v62 = vmul.f32 0.015625, %v2325_v13  ;;  %v1763_v0 = vsel %vm1627_vm1, %v13390_v61, 0.0 }
 0x1f7   : > { %v2672_v39 = vmul.f32 0.015625, %v2328_v33 }
 0x1f8   : > { %v2927_v18 = vsub.f32 %v2671_v62, %v2799_v54  ;;  %2396 = vadd.xlane.f32.xlu0 %v2395_v51  ;;  %v1955_v51 = vsel %vm1627_vm1, %v13407_v55, 0.0 }
 0x1f9   : > { %v2928_v6 = vsub.f32 %v2672_v39, %v2800_v11  ;;  %2399 = vadd.xlane.f32.xlu1 %v2398_v37  ;;  %v1690_v38 = vpop.xlane.xlu0 %1689  ;;  %v19652_v11 = vld [vmem:[#allocation47_spill] sm:$0xff]  ;;  %v19654_v39 = vld [vmem:[#allocation28_spill] sm:$0xff] }
 0x1fa   : > { %v1693_v45 = vpop.xlane.xlu1 %1692  ;;  %v3183_v13 = vadd.f32 1e-05, %v2927_v18  ;;  %v13413_v54 = vadd.f32 %v13085_v1, %v19652_v11  ;;  %v3053_v62 = vsub.f32 %v19654_v39, %v13331_v15  ;;  %v13427_v11 = vmul.f32 0.015625, %v1690_v38 }
 0x1fb   : > { %v11361_v33 = vpop.eup %11360  ;;  %v3184_v19 = vadd.f32 1e-05, %v2928_v6  ;;  %v13425_v7 = vmul.f32 0.015625, %v1693_v45 }
 0x1fc   : > { %19653 = vst [vmem:[#allocation45_spill] sm:$0xff] %v13413_v54  ;;  %v11363_v59 = vpop.eup %11362  ;;  %v3438_v37 = vmul.f32 %v11361_v33, %v3054_v35  ;;  %1761 = vadd.xlane.f32.xlu0 %v1760_v10  ;;  %v1952_v15 = vsel %vm1627_vm1, %v13413_v54, 0.0  ;;  %v19657_v10 = vld [vmem:[#allocation52_spill] sm:$0xff]  ;;  %v19662_v54 = vld [vmem:[#allocation54_spill] sm:$0xff] }
 0x1fd   : > { %11364 = vrsqrt.f32 %v3184_v19  ;;  %1764 = vadd.xlane.f32.xlu1 %v1763_v0  ;;  %v13421_v6 = vpop.xlane.xlu0 %1881  ;;  %v3437_v18 = vmul.f32 %v11363_v59, %v3053_v62  ;;  %v2186_v0 = vmul.f32 %v13390_v61, %v13390_v61  ;;  %v2185_v19 = vmul.f32 %v13394_v20, %v13394_v20  ;;  %v19659_v59 = vld [vmem:[#allocation53_spill] sm:$0xff] }
 0x1fe   : > { %11366 = vrsqrt.f32 %v3183_v13  ;;  %v13419_v30 = vpop.xlane.xlu1 %1884  ;;  %19656 = vst [vmem:[#allocation28_spill] sm:$0xff] %v13421_v6  ;;  %v3566_v35 = vmax.f32 %v3438_v37, 0.0  ;;  %v13438_v38 = vadd.f32 %v13085_v1, %v19657_v10  ;;  %v13442_v39 = vadd.f32 %v13085_v1, %v19659_v59  ;;  %v19661_v59 = vld [vmem:[#allocation31_spill] sm:$0xff] }
 0x1ff   : > { %19655 = vst [vmem:[#allocation47_spill] sm:$0xff] %v13419_v30  ;;  %v3565_v33 = vmax.f32 %v3437_v18, 0.0  ;;  %v2802_v62 = vmul.f32 %v13425_v7, %v13425_v7  ;;  %v2801_v37 = vmul.f32 %v13427_v11, %v13427_v11  ;;  %v2401_v10 = vsel %vm1627_vm1, %v2185_v19, 0.0 }
 0x200   : > { %1953 = vadd.xlane.f32.xlu0 %v1952_v15  ;;  %19658 = vst [vmem:[#allocation52_spill] sm:$0xff] %v13438_v38  ;;  %19660 = vst [vmem:[#allocation53_spill] sm:$0xff] %v13442_v39  ;;  %v2404_v15 = vsel %vm1627_vm1, %v2186_v0, 0.0  ;;  %v3056_v30 = vsub.f32 %v19661_v59, %v13377_v23  ;;  %v13455_v55 = vadd.f32 %v13085_v1, %v19662_v54  ;;  %v1766_v23 = vsel %vm1627_vm1, %v13442_v39, 0.0 }
 0x201   : > { %1956 = vadd.xlane.f32.xlu1 %v1955_v51  ;;  %10873 = vmatprep.mubr.msk.f32.mxu1 %vm1627_vm1, %v3565_v33  ;;  %v2331_v45 = vpop.xlane.xlu0 %2330 }
 0x202   : > { %v2334_v13 = vpop.xlane.xlu1 %2333  ;;  %10874 = vmatmul.mubr.msk.f32.gmra.mrb[80].mxu1 %vm1627_vm1, %v3566_v35  ;;  %v2673_v51 = vmul.f32 0.015625, %v2331_v45  ;;  %19663 = vst [vmem:[#allocation31_spill] sm:$0xff] %v13455_v55  ;;  %v1769_v35 = vsel %vm1627_vm1, %v13438_v38, 0.0 }
 0x203   : > { %v2674_v18 = vmul.f32 0.015625, %v2334_v13 }
 0x204   : > { %v2929_v6 = vsub.f32 %v2673_v51, %v2801_v37  ;;  %2402 = vadd.xlane.f32.xlu0 %v2401_v10  ;;  %v1961_v10 = vsel %vm1627_vm1, %v13455_v55, 0.0  ;;  %v13519_v55 = vadd.f32 %v13085_v1, %v12958_v53 }
 0x205   : > { %v2930_v33 = vsub.f32 %v2674_v18, %v2802_v62  ;;  %2405 = vadd.xlane.f32.xlu1 %v2404_v15  ;;  %v1696_v61 = vpop.xlane.xlu0 %1695  ;;  %v19664_v62 = vld [vmem:[#allocation58_spill] sm:$0xff]  ;;  %v19666_v18 = vld [vmem:[#allocation32_spill] sm:$0xff] }
 0x206   : > { %v1699_v20 = vpop.xlane.xlu1 %1698  ;;  %v3185_v45 = vadd.f32 1e-05, %v2929_v6  ;;  %v13461_v37 = vadd.f32 %v13085_v1, %v19664_v62  ;;  %v3055_v51 = vsub.f32 %v19666_v18, %v13379_v32  ;;  %v13475_v62 = vmul.f32 0.015625, %v1696_v61 }
 0x207   : > { %v11365_v13 = vpop.eup %11364  ;;  %v3186_v0 = vadd.f32 1e-05, %v2930_v33  ;;  %v13473_v59 = vmul.f32 0.015625, %v1699_v20 }
 0x208   : > { %19665 = vst [vmem:[#allocation54_spill] sm:$0xff] %v13461_v37  ;;  %v11367_v19 = vpop.eup %11366  ;;  %v3440_v15 = vmul.f32 %v11365_v13, %v3056_v30  ;;  %1767 = vadd.xlane.f32.xlu0 %v1766_v23  ;;  %v1958_v32 = vsel %vm1627_vm1, %v13461_v37, 0.0  ;;  %v19669_v23 = vld [vmem:[#allocation62_spill] sm:$0xff] }
 0x209   : > { %11368 = vrsqrt.f32 %v3186_v0  ;;  %1770 = vadd.xlane.f32.xlu1 %v1769_v35  ;;  %v13469_v33 = vpop.xlane.xlu0 %1887  ;;  %v3439_v6 = vmul.f32 %v11367_v19, %v3055_v51  ;;  %v2188_v35 = vmul.f32 %v13438_v38, %v13438_v38  ;;  %v2187_v0 = vmul.f32 %v13442_v39, %v13442_v39  ;;  %v19671_v19 = vld [vmem:[#allocation64_spill] sm:$0xff]  ;;  %v19674_v38 = vld [vmem:[#allocation65_spill] sm:$0xff] }
 0x20a   : > { %11370 = vrsqrt.f32 %v3185_v45  ;;  %v13467_v54 = vpop.xlane.xlu1 %1890  ;;  %19668 = vst [vmem:[#allocation32_spill] sm:$0xff] %v13469_v33  ;;  %v3568_v30 = vmax.f32 %v3440_v15, 0.0  ;;  %v13486_v61 = vadd.f32 %v13085_v1, %v19669_v23  ;;  %v13490_v18 = vadd.f32 %v13085_v1, %v19671_v19  ;;  %v19673_v19 = vld [vmem:[#allocation35_spill] sm:$0xff] }
 0x20b   : > { %19667 = vst [vmem:[#allocation58_spill] sm:$0xff] %v13467_v54  ;;  %v3567_v13 = vmax.f32 %v3439_v6, 0.0  ;;  %v2804_v51 = vmul.f32 %v13473_v59, %v13473_v59  ;;  %v2803_v15 = vmul.f32 %v13475_v62, %v13475_v62  ;;  %v2407_v23 = vsel %vm1627_vm1, %v2187_v0, 0.0 }
 0x20c   : > { %1959 = vadd.xlane.f32.xlu0 %v1958_v32  ;;  %19670 = vst [vmem:[#allocation62_spill] sm:$0xff] %v13486_v61  ;;  %19672 = vst [vmem:[#allocation64_spill] sm:$0xff] %v13490_v18  ;;  %v2410_v32 = vsel %vm1627_vm1, %v2188_v35, 0.0  ;;  %v3058_v54 = vsub.f32 %v19673_v19, %v13425_v7  ;;  %v13503_v37 = vadd.f32 %v13085_v1, %v19674_v38  ;;  %v1772_v35 = vsel %vm1627_vm1, %v13490_v18, 0.0  ;;  %v19677_v7 = vld [vmem:[#allocation68_spill] sm:$0xff] }
 0x20d   : > { %1962 = vadd.xlane.f32.xlu1 %v1961_v10  ;;  %10876 = vmatprep.mubr.msk.f32.mxu1 %vm1627_vm1, %v3567_v13  ;;  %v2337_v20 = vpop.xlane.xlu0 %2336  ;;  %19680 = vst [vmem:[#allocation68_spill] sm:$0xff] %v13519_v55 }
 0x20e   : > { %v2340_v45 = vpop.xlane.xlu1 %2339  ;;  %10877 = vmatmul.mubr.msk.f32.gmra.mrb[82].mxu1 %vm1627_vm1, %v3568_v30  ;;  %v2675_v10 = vmul.f32 0.015625, %v2337_v20  ;;  %19675 = vst [vmem:[#allocation35_spill] sm:$0xff] %v13503_v37  ;;  %v1775_v30 = vsel %vm1627_vm1, %v13486_v61, 0.0  ;;  %v19676_v20 = vld [vmem:[#allocation36_spill] sm:$0xff] }
 0x20f   : > { %v2676_v6 = vmul.f32 0.015625, %v2340_v45 }
 0x210   : > { %v2931_v33 = vsub.f32 %v2675_v10, %v2803_v15  ;;  %2408 = vadd.xlane.f32.xlu0 %v2407_v23  ;;  %v13513_v10 = vadd.f32 %v13085_v1, %v19677_v7 }
 0x211   : > { %v2932_v13 = vsub.f32 %v2676_v6, %v2804_v51  ;;  %2411 = vadd.xlane.f32.xlu1 %v2410_v32  ;;  %v3057_v51 = vsub.f32 %v19676_v20, %v13427_v11  ;;  %v1702_v6 = vpop.xlane.xlu0 %1701  ;;  %v1967_v11 = vsel %vm1627_vm1, %v13503_v37, 0.0 }
 0x212   : > { %v1705_v39 = vpop.xlane.xlu1 %1704  ;;  %v3187_v15 = vadd.f32 1e-05, %v2931_v33  ;;  %19678 = vst [vmem:[#allocation65_spill] sm:$0xff] %v13513_v10 }
 0x213   : > { %v11369_v45 = vpop.eup %11368  ;;  %v3188_v0 = vadd.f32 1e-05, %v2932_v13  ;;  %v13523_v13 = vmul.f32 0.015625, %v1705_v39  ;;  %v13539_v39 = vadd.f32 %v13085_v1, %v12976_v44 }
 0x214   : > { %v11371_v32 = vpop.eup %11370  ;;  %v3442_v38 = vmul.f32 %v11369_v45, %v3058_v54  ;;  %1773 = vadd.xlane.f32.xlu0 %v1772_v35  ;;  %v13529_v54 = vadd.f32 %v13085_v1, %v12974_v25  ;;  %v1964_v35 = vsel %vm1627_vm1, %v13513_v10, 0.0  ;;  %v13533_v45 = vmul.f32 0.015625, %v1702_v6 }
 0x215   : > { %11372 = vrsqrt.f32 %v3188_v0  ;;  %1776 = vadd.xlane.f32.xlu1 %v1775_v30  ;;  %v3441_v23 = vmul.f32 %v11371_v32, %v3057_v51  ;;  %v13525_v20 = vpop.xlane.xlu0 %1893  ;;  %19683 = vst [vmem:[#allocation104_spill] sm:$0xff] %v13539_v39  ;;  %v1781_v25 = vsel %vm1627_vm1, %v13519_v55, 0.0  ;;  %v2806_v51 = vmul.f32 %v13523_v13, %v13523_v13 }
 0x216   : > { %11374 = vrsqrt.f32 %v3187_v15  ;;  %v13515_v19 = vpop.xlane.xlu1 %1896  ;;  %v3570_v33 = vmax.f32 %v3442_v38, 0.0  ;;  %19681 = vst [vmem:[#allocation102_spill] sm:$0xff] %v13525_v20  ;;  %19682 = vst [vmem:[#allocation103_spill] sm:$0xff] %v13529_v54  ;;  %v13547_v6 = vadd.f32 %v13085_v1, %v12992_v47  ;;  %v1778_v7 = vsel %vm1627_vm1, %v13529_v54, 0.0  ;;  %v19687_v20 = vld [vmem:[#allocation40_spill] sm:$0xff] }
 0x217   : > { %19679 = vst [vmem:[#allocation36_spill] sm:$0xff] %v13515_v19  ;;  %v3569_v30 = vmax.f32 %v3441_v23, 0.0  ;;  %v2805_v32 = vmul.f32 %v13533_v45, %v13533_v45  ;;  %v19685_v23 = vld [vmem:[#allocation39_spill] sm:$0xff]  ;;  %v1973_v47 = vsel %vm1627_vm1, %v13539_v39, 0.0  ;;  %v3059_v19 = vsub.f32 %v19687_v20, %v13475_v62 }
 0x218   : > { %1965 = vadd.xlane.f32.xlu0 %v1964_v35  ;;  %19684 = vst [vmem:[#allocation105_spill] sm:$0xff] %v13547_v6  ;;  %v13557_v35 = vadd.f32 %v13085_v1, %v12998_v43  ;;  %v13573_v62 = vadd.f32 %v13085_v1, %v13018_v8 }
 0x219   : > { %10879 = vmatprep.mubr.msk.f32.mxu1 %vm1627_vm1, %v3569_v30  ;;  %1968 = vadd.xlane.f32.xlu1 %v1967_v11  ;;  %v2343_v15 = vpop.xlane.xlu0 %2342  ;;  %v3060_v11 = vsub.f32 %v19685_v23, %v13473_v59  ;;  %v1970_v59 = vsel %vm1627_vm1, %v13547_v6, 0.0 }
 0x21a   : > { %10880 = vmatmul.mubr.msk.f32.gmra.mrb[84].mxu1 %vm1627_vm1, %v3570_v33  ;;  %v2346_v53 = vpop.xlane.xlu1 %2345  ;;  %v2677_v44 = vmul.f32 0.015625, %v2343_v15  ;;  %19686 = vst [vmem:[#allocation39_spill] sm:$0xff] %v13557_v35  ;;  %19690 = vst [vmem:[#allocation107_spill] sm:$0xff] %v13573_v62 }
 0x21b   : > { %v2678_v0 = vmul.f32 0.015625, %v2346_v53 }
 0x21c   : > { %v2933_v33 = vsub.f32 %v2677_v44, %v2805_v32  ;;  %1779 = vadd.xlane.f32.xlu0 %v1778_v7 }
 0x21d   : > { %v2934_v38 = vsub.f32 %v2678_v0, %v2806_v51  ;;  %1782 = vadd.xlane.f32.xlu1 %v1781_v25  ;;  %v1708_v51 = vpop.xlane.xlu0 %1707  ;;  %v13565_v25 = vadd.f32 %v13085_v1, %v13012_v40  ;;  %v1787_v40 = vsel %vm1627_vm1, %v13557_v35, 0.0 }
 0x21e   : > { %v1711_v30 = vpop.xlane.xlu1 %1710  ;;  %v3189_v7 = vadd.f32 1e-05, %v2933_v33 }
 0x21f   : > { %v11373_v53 = vpop.eup %11372  ;;  %v3190_v15 = vadd.f32 1e-05, %v2934_v38  ;;  %19688 = vst [vmem:[#allocation40_spill] sm:$0xff] %v13565_v25  ;;  %v13577_v38 = vmul.f32 0.015625, %v1711_v30  ;;  %v1784_v33 = vsel %vm1627_vm1, %v13565_v25, 0.0  ;;  %v13593_v30 = vadd.f32 %v13085_v1, %v13038_v2 }
 0x220   : > { %v11375_v0 = vpop.eup %11374  ;;  %v3444_v43 = vmul.f32 %v11373_v53, %v3060_v11  ;;  %1971 = vadd.xlane.f32.xlu0 %v1970_v59  ;;  %v13583_v11 = vadd.f32 %v13085_v1, %v13036_v57  ;;  %v1979_v57 = vsel %vm1627_vm1, %v13573_v62, 0.0  ;;  %v13601_v59 = vadd.f32 %v13085_v1, %v13052_v27 }
 0x221   : > { %11376 = vrsqrt.f32 %v3190_v15  ;;  %1974 = vadd.xlane.f32.xlu1 %v1973_v47  ;;  %v3443_v32 = vmul.f32 %v11375_v0, %v3059_v19  ;;  %v13579_v23 = vpop.xlane.xlu0 %1899  ;;  %v13587_v47 = vmul.f32 0.015625, %v1708_v51  ;;  %19693 = vst [vmem:[#allocation110_spill] sm:$0xff] %v13593_v30  ;;  %v2808_v53 = vmul.f32 %v13577_v38, %v13577_v38 }
 0x222   : > { %11378 = vrsqrt.f32 %v3189_v7  ;;  %v13569_v44 = vpop.xlane.xlu1 %1902  ;;  %v3572_v20 = vmax.f32 %v3444_v43, 0.0  ;;  %19691 = vst [vmem:[#allocation108_spill] sm:$0xff] %v13579_v23  ;;  %19692 = vst [vmem:[#allocation109_spill] sm:$0xff] %v13583_v11  ;;  %v1976_v0 = vsel %vm1627_vm1, %v13583_v11, 0.0  ;;  %v1793_v27 = vsel %vm1627_vm1, %v13593_v30, 0.0  ;;  %v19697_v23 = vld [vmem:[#allocation48_spill] sm:$0xff] }
 0x223   : > { %19689 = vst [vmem:[#allocation106_spill] sm:$0xff] %v13569_v44  ;;  %v3571_v19 = vmax.f32 %v3443_v32, 0.0  ;;  %19694 = vst [vmem:[#allocation111_spill] sm:$0xff] %v13601_v59  ;;  %v2807_v7 = vmul.f32 %v13587_v47, %v13587_v47  ;;  %v19695_v32 = vld [vmem:[#allocation46_spill] sm:$0xff]  ;;  %v3061_v44 = vsub.f32 %v19697_v23, %v13533_v45  ;;  %v13627_v45 = vadd.f32 %v13085_v1, %v13078_v36 }
 0x224   : > { %1785 = vadd.xlane.f32.xlu0 %v1784_v33  ;;  %v13611_v33 = vadd.f32 %v13085_v1, %v13058_v16 }
 0x225   : > { %10882 = vmatprep.mubr.msk.f32.mxu1 %vm1627_vm1, %v3571_v19  ;;  %1788 = vadd.xlane.f32.xlu1 %v1787_v40  ;;  %v2349_v51 = vpop.xlane.xlu0 %2348  ;;  %v3062_v40 = vsub.f32 %v19695_v32, %v13523_v13  ;;  %v1790_v13 = vsel %vm1627_vm1, %v13601_v59, 0.0  ;;  %19700 = vst [vmem:[#allocation113_spill] sm:$0xff] %v13627_v45 }
 0x226   : > { %10883 = vmatmul.mubr.msk.f32.gmra.mrb[86].mxu1 %vm1627_vm1, %v3572_v20  ;;  %v2352_v8 = vpop.xlane.xlu1 %2351  ;;  %v2679_v2 = vmul.f32 0.015625, %v2349_v51  ;;  %19696 = vst [vmem:[#allocation46_spill] sm:$0xff] %v13611_v33 }
 0x227   : > { %v2680_v15 = vmul.f32 0.015625, %v2352_v8 }
 0x228   : > { %v2935_v20 = vsub.f32 %v2679_v2, %v2807_v7  ;;  %1977 = vadd.xlane.f32.xlu0 %v1976_v0 }
 0x229   : > { %v2936_v43 = vsub.f32 %v2680_v15, %v2808_v53  ;;  %1980 = vadd.xlane.f32.xlu1 %v1979_v57  ;;  %v1714_v53 = vpop.xlane.xlu0 %1713  ;;  %v13619_v57 = vadd.f32 %v13085_v1, %v13074_v21  ;;  %v1985_v21 = vsel %vm1627_vm1, %v13611_v33, 0.0 }
 0x22a   : > { %v1717_v19 = vpop.xlane.xlu1 %1716  ;;  %v3191_v0 = vadd.f32 1e-05, %v2935_v20 }
 0x22b   : > { %v11377_v8 = vpop.eup %11376  ;;  %v3192_v51 = vadd.f32 1e-05, %v2936_v43  ;;  %19698 = vst [vmem:[#allocation48_spill] sm:$0xff] %v13619_v57  ;;  %v13631_v43 = vmul.f32 0.015625, %v1717_v19  ;;  %v1982_v20 = vsel %vm1627_vm1, %v13619_v57, 0.0  ;;  %v13647_v19 = vadd.f32 %v13085_v1, %v13103_v28 }
 0x22c   : > { %v11379_v15 = vpop.eup %11378  ;;  %v3446_v16 = vmul.f32 %v11377_v8, %v3062_v40  ;;  %1791 = vadd.xlane.f32.xlu0 %v1790_v13  ;;  %v13637_v40 = vadd.f32 %v13085_v1, %v13101_v56  ;;  %v1799_v56 = vsel %vm1627_vm1, %v13627_v45, 0.0  ;;  %v13655_v13 = vadd.f32 %v13085_v1, %v13117_v29  ;;  %v13666_v1 = vld [vmem:[%s19165_s4] ss:$0 sm:$0xff] }
 0x22d   : > { %11380 = vrsqrt.f32 %v3192_v51  ;;  %1794 = vadd.xlane.f32.xlu1 %v1793_v27  ;;  %v3445_v7 = vmul.f32 %v11379_v15, %v3061_v44  ;;  %v13633_v32 = vpop.xlane.xlu0 %1905  ;;  %v13641_v27 = vmul.f32 0.015625, %v1714_v53  ;;  %19703 = vst [vmem:[#allocation116_spill] sm:$0xff] %v13647_v19  ;;  %v2810_v8 = vmul.f32 %v13631_v43, %v13631_v43 }
 0x22e   : > { %11382 = vrsqrt.f32 %v3191_v0  ;;  %v13623_v2 = vpop.xlane.xlu1 %1908  ;;  %v3574_v23 = vmax.f32 %v3446_v16, 0.0  ;;  %19701 = vst [vmem:[#allocation114_spill] sm:$0xff] %v13633_v32  ;;  %19702 = vst [vmem:[#allocation115_spill] sm:$0xff] %v13637_v40  ;;  %v1796_v15 = vsel %vm1627_vm1, %v13637_v40, 0.0  ;;  %v13670_v29 = vadd.f32 %v13666_v1, %v13123_v5 }
 0x22f   : > { %19699 = vst [vmem:[#allocation112_spill] sm:$0xff] %v13623_v2  ;;  %v3573_v44 = vmax.f32 %v3445_v7, 0.0  ;;  %19704 = vst [vmem:[#allocation117_spill] sm:$0xff] %v13655_v13  ;;  %v2809_v0 = vmul.f32 %v13641_v27, %v13641_v27  ;;  %v19705_v7 = vld [vmem:[#allocation56_spill] sm:$0xff] }
 0x230   : > { %1983 = vadd.xlane.f32.xlu0 %v1982_v20  ;;  %19706 = vst [vmem:[#allocation56_spill] sm:$0xff] %v13670_v29  ;;  %v1991_v20 = vsel %vm1627_vm1, %v13647_v19, 0.0 }
 0x231   : > { %10885 = vmatprep.mubr.msk.f32.mxu1 %vm1627_vm1, %v3573_v44  ;;  %1986 = vadd.xlane.f32.xlu1 %v1985_v21  ;;  %v2355_v53 = vpop.xlane.xlu0 %2354  ;;  %v3064_v21 = vsub.f32 %v19705_v7, %v13577_v38 }
 0x232   : > { %10886 = vmatmul.mubr.msk.f32.gmra.mrb[88].mxu1 %vm1627_vm1, %v3574_v23  ;;  %v2358_v36 = vpop.xlane.xlu1 %2357  ;;  %v2681_v28 = vmul.f32 0.015625, %v2355_v53  ;;  %v13678_v53 = vadd.f32 %v13666_v1, %v13139_v31  ;;  %v1805_v31 = vsel %vm1627_vm1, %v13670_v29, 0.0 }
 0x233   : > { %v2682_v51 = vmul.f32 0.015625, %v2358_v36 }
 0x234   : > { %v2937_v23 = vsub.f32 %v2681_v28, %v2809_v0  ;;  %1797 = vadd.xlane.f32.xlu0 %v1796_v15  ;;  %v1988_v15 = vsel %vm1627_vm1, %v13655_v13, 0.0 }
 0x235   : > { %v2938_v16 = vsub.f32 %v2682_v51, %v2810_v8  ;;  %1800 = vadd.xlane.f32.xlu1 %v1799_v56  ;;  %v19707_v56 = vld [vmem:[#allocation57_spill] sm:$0xff]  ;;  %v1720_v51 = vpop.xlane.xlu0 %1719 }
 0x236   : > { %v1723_v44 = vpop.xlane.xlu1 %1722  ;;  %v3063_v8 = vsub.f32 %v19707_v56, %v13587_v47  ;;  %19708 = vst [vmem:[#allocation57_spill] sm:$0xff] %v13678_v53  ;;  %v3193_v28 = vadd.f32 1e-05, %v2937_v23  ;;  %v13686_v47 = vadd.f32 %v13666_v1, %v13143_v48 }
 0x237   : > { %v11381_v36 = vpop.eup %11380  ;;  %v3194_v38 = vadd.f32 1e-05, %v2938_v16  ;;  %v13690_v56 = vmul.f32 0.015625, %v1723_v44  ;;  %v13706_v44 = vadd.f32 %v13666_v1, %v13163_v63 }
 0x238   : > { %v11383_v0 = vpop.eup %11382  ;;  %v3448_v5 = vmul.f32 %v11381_v36, %v3064_v21  ;;  %1989 = vadd.xlane.f32.xlu0 %v1988_v15  ;;  %19710 = vst [vmem:[#allocation119_spill] sm:$0xff] %v13686_v47  ;;  %v13696_v21 = vadd.f32 %v13666_v1, %v13161_v60  ;;  %v13700_v36 = vmul.f32 0.015625, %v1720_v51  ;;  %v1997_v60 = vsel %vm1627_vm1, %v13686_v47, 0.0 }
 0x239   : > { %11384 = vrsqrt.f32 %v3194_v38  ;;  %1992 = vadd.xlane.f32.xlu1 %v1991_v20  ;;  %v3447_v7 = vmul.f32 %v11383_v0, %v3063_v8  ;;  %v13692_v2 = vpop.xlane.xlu0 %1911  ;;  %v1802_v20 = vsel %vm1627_vm1, %v13678_v53, 0.0  ;;  %19713 = vst [vmem:[#allocation122_spill] sm:$0xff] %v13706_v44  ;;  %v2812_v8 = vmul.f32 %v13690_v56, %v13690_v56 }
 0x23a   : > { %11386 = vrsqrt.f32 %v3193_v28  ;;  %v13682_v32 = vpop.xlane.xlu1 %1914  ;;  %v3576_v16 = vmax.f32 %v3448_v5, 0.0  ;;  %19711 = vst [vmem:[#allocation120_spill] sm:$0xff] %v13692_v2  ;;  %19712 = vst [vmem:[#allocation121_spill] sm:$0xff] %v13696_v21  ;;  %v13714_v15 = vadd.f32 %v13666_v1, %v13177_v34  ;;  %v1994_v0 = vsel %vm1627_vm1, %v13696_v21, 0.0  ;;  %v19717_v2 = vld [vmem:[#allocation67_spill] sm:$0xff] }
 0x23b   : > { %19709 = vst [vmem:[#allocation118_spill] sm:$0xff] %v13682_v32  ;;  %v3575_v23 = vmax.f32 %v3447_v7, 0.0  ;;  %v2811_v28 = vmul.f32 %v13700_v36, %v13700_v36  ;;  %v19715_v7 = vld [vmem:[#allocation66_spill] sm:$0xff]  ;;  %v1811_v34 = vsel %vm1627_vm1, %v13706_v44, 0.0  ;;  %v3065_v32 = vsub.f32 %v19717_v2, %v13641_v27 }
 0x23c   : > { %1803 = vadd.xlane.f32.xlu0 %v1802_v20  ;;  %19714 = vst [vmem:[#allocation123_spill] sm:$0xff] %v13714_v15  ;;  %v13724_v20 = vadd.f32 %v13666_v1, %v13183_v12  ;;  %v13740_v2 = vadd.f32 %v13666_v1, %v13203_v9 }
 0x23d   : > { %10888 = vmatprep.mubr.msk.f32.mxu1 %vm1627_vm1, %v3575_v23  ;;  %1806 = vadd.xlane.f32.xlu1 %v1805_v31  ;;  %v2361_v51 = vpop.xlane.xlu0 %2360  ;;  %v3066_v31 = vsub.f32 %v19715_v7, %v13631_v43  ;;  %v1808_v43 = vsel %vm1627_vm1, %v13714_v15, 0.0 }
 0x23e   : > { %10889 = vmatmul.mubr.msk.f32.gmra.mrb[90].mxu1 %vm1627_vm1, %v3576_v16  ;;  %v2364_v48 = vpop.xlane.xlu1 %2363  ;;  %v2683_v63 = vmul.f32 0.015625, %v2361_v51  ;;  %19716 = vst [vmem:[#allocation66_spill] sm:$0xff] %v13724_v20  ;;  %19720 = vst [vmem:[#allocation125_spill] sm:$0xff] %v13740_v2 }
 0x23f   : > { %v2684_v38 = vmul.f32 0.015625, %v2364_v48 }
 0x240   : > { %v2939_v16 = vsub.f32 %v2683_v63, %v2811_v28  ;;  %1995 = vadd.xlane.f32.xlu0 %v1994_v0 }
 0x241   : > { %v2940_v5 = vsub.f32 %v2684_v38, %v2812_v8  ;;  %1998 = vadd.xlane.f32.xlu1 %v1997_v60  ;;  %v1726_v8 = vpop.xlane.xlu0 %1725  ;;  %v13732_v60 = vadd.f32 %v13666_v1, %v13199_v42  ;;  %v2003_v42 = vsel %vm1627_vm1, %v13724_v20, 0.0 }
 0x242   : > { %v1729_v23 = vpop.xlane.xlu1 %1728  ;;  %v3195_v0 = vadd.f32 1e-05, %v2939_v16 }
 0x243   : > { %v11385_v48 = vpop.eup %11384  ;;  %v3196_v51 = vadd.f32 1e-05, %v2940_v5  ;;  %19718 = vst [vmem:[#allocation67_spill] sm:$0xff] %v13732_v60  ;;  %v13744_v5 = vmul.f32 0.015625, %v1729_v23  ;;  %v2000_v16 = vsel %vm1627_vm1, %v13732_v60, 0.0  ;;  %v13760_v23 = vadd.f32 %v13666_v1, %v13223_v24 }
 0x244   : > { %v11387_v38 = vpop.eup %11386  ;;  %v3450_v12 = vmul.f32 %v11385_v48, %v3066_v31  ;;  %1809 = vadd.xlane.f32.xlu0 %v1808_v43  ;;  %v13750_v31 = vadd.f32 %v13666_v1, %v13221_v3  ;;  %v1817_v3 = vsel %vm1627_vm1, %v13740_v2, 0.0  ;;  %v13768_v43 = vadd.f32 %v13666_v1, %v13237_v4  ;;  %v19726_v1 = vld [vmem:[#allocation74_spill] sm:$0xff] }
 0x245   : > { %11388 = vrsqrt.f32 %v3196_v51  ;;  %1812 = vadd.xlane.f32.xlu1 %v1811_v34  ;;  %v3449_v28 = vmul.f32 %v11387_v38, %v3065_v32  ;;  %v13746_v7 = vpop.xlane.xlu0 %1917  ;;  %v13754_v34 = vmul.f32 0.015625, %v1726_v8  ;;  %19723 = vst [vmem:[#allocation128_spill] sm:$0xff] %v13760_v23  ;;  %v2814_v48 = vmul.f32 %v13744_v5, %v13744_v5 }
 0x246   : > { %11390 = vrsqrt.f32 %v3195_v0  ;;  %v13736_v63 = vpop.xlane.xlu1 %1920  ;;  %v3578_v27 = vmax.f32 %v3450_v12, 0.0  ;;  %19721 = vst [vmem:[#allocation126_spill] sm:$0xff] %v13746_v7  ;;  %19722 = vst [vmem:[#allocation127_spill] sm:$0xff] %v13750_v31  ;;  %v1814_v38 = vsel %vm1627_vm1, %v13750_v31, 0.0 }
 0x247   : > { %19719 = vst [vmem:[#allocation124_spill] sm:$0xff] %v13736_v63  ;;  %v3577_v32 = vmax.f32 %v3449_v28, 0.0  ;;  %19724 = vst [vmem:[#allocation129_spill] sm:$0xff] %v13768_v43  ;;  %v2813_v0 = vmul.f32 %v13754_v34, %v13754_v34  ;;  %v19725_v28 = vld [vmem:[#allocation73_spill] sm:$0xff] }
 0x248   : > { %2001 = vadd.xlane.f32.xlu0 %v2000_v16  ;;  %v2009_v16 = vsel %vm1627_vm1, %v13760_v23, 0.0  ;;  %v19783_v23 = vld [vmem:[#allocation82_spill] sm:$0xff] }
 0x249   : > { %10891 = vmatprep.mubr.msk.f32.mxu1 %vm1627_vm1, %v3577_v32  ;;  %2004 = vadd.xlane.f32.xlu1 %v2003_v42  ;;  %v2367_v8 = vpop.xlane.xlu0 %2366  ;;  %v3068_v42 = vsub.f32 %v19725_v28, %v13690_v56  ;;  %v2190_v56 = vmul.f32 %v13486_v61, %v13486_v61 }
 0x24a   : > { %10892 = vmatmul.mubr.msk.f32.gmra.mrb[92].mxu1 %vm1627_vm1, %v3578_v27  ;;  %v2370_v9 = vpop.xlane.xlu1 %2369  ;;  %v2685_v24 = vmul.f32 0.015625, %v2367_v8  ;;  %v2006_v8 = vsel %vm1627_vm1, %v13768_v43, 0.0 }
 0x24b   : > { %v2686_v51 = vmul.f32 0.015625, %v2370_v9  ;;  %v3067_v9 = vsub.f32 %v19726_v1, %v13700_v36 }
 0x24c   : > { %v2941_v27 = vsub.f32 %v2685_v24, %v2813_v0  ;;  %1815 = vadd.xlane.f32.xlu0 %v1814_v38  ;;  %v2189_v0 = vmul.f32 %v13490_v18, %v13490_v18 }
 0x24d   : > { %v2942_v12 = vsub.f32 %v2686_v51, %v2814_v48  ;;  %1818 = vadd.xlane.f32.xlu1 %v1817_v3  ;;  %v1732_v63 = vpop.xlane.xlu0 %1731 }
 0x24e   : > { %v1735_v32 = vpop.xlane.xlu1 %1734  ;;  %v3197_v3 = vadd.f32 1e-05, %v2941_v27  ;;  %v13792_v1 = vmul.f32 0.015625, %v1732_v63 }
 0x24f   : > { %v11389_v4 = vpop.eup %11388  ;;  %v3198_v7 = vadd.f32 1e-05, %v2942_v12  ;;  %v13788_v12 = vmul.f32 0.015625, %v1735_v32 }
 0x250   : > { %v11391_v48 = vpop.eup %11390  ;;  %v3452_v51 = vmul.f32 %v11389_v4, %v3068_v42  ;;  %2007 = vadd.xlane.f32.xlu0 %v2006_v8  ;;  %v2416_v42 = vsel %vm1627_vm1, %v2190_v56, 0.0  ;;  %v2191_v4 = vmul.f32 %v13529_v54, %v13529_v54 }
 0x251   : > { %11392 = vrsqrt.f32 %v3198_v7  ;;  %2010 = vadd.xlane.f32.xlu1 %v2009_v16  ;;  %v3451_v38 = vmul.f32 %v11391_v48, %v3067_v9  ;;  %v13790_v28 = vpop.xlane.xlu0 %1923  ;;  %v2192_v7 = vmul.f32 %v13519_v55, %v13519_v55  ;;  %v2413_v16 = vsel %vm1627_vm1, %v2189_v0, 0.0 }
 0x252   : > { %11394 = vrsqrt.f32 %v3197_v3  ;;  %v13786_v36 = vpop.xlane.xlu1 %1926  ;;  %v3580_v24 = vmax.f32 %v3452_v51, 0.0  ;;  %19728 = vst [vmem:[#allocation74_spill] sm:$0xff] %v13790_v28  ;;  %v2816_v63 = vmul.f32 %v13788_v12, %v13788_v12  ;;  %v2815_v48 = vmul.f32 %v13792_v1, %v13792_v1 }
 0x253   : > { %19727 = vst [vmem:[#allocation73_spill] sm:$0xff] %v13786_v36  ;;  %v3579_v27 = vmax.f32 %v3451_v38, 0.0  ;;  %v2422_v56 = vsel %vm1627_vm1, %v2192_v7, 0.0  ;;  %v2194_v51 = vmul.f32 %v13557_v35, %v13557_v35  ;;  %v2419_v0 = vsel %vm1627_vm1, %v2191_v4, 0.0 }
 0x254   : > { %2414 = vadd.xlane.f32.xlu0 %v2413_v16  ;;  %v2196_v4 = vmul.f32 %v13593_v30, %v13593_v30 }
 0x255   : > { %10894 = vmatprep.mubr.msk.f32.mxu1 %vm1627_vm1, %v3579_v27  ;;  %2417 = vadd.xlane.f32.xlu1 %v2416_v42  ;;  %v2373_v8 = vpop.xlane.xlu0 %2372  ;;  %v19729_v27 = vld [vmem:[#allocation79_spill] sm:$0xff] }
 0x256   : > { %10895 = vmatmul.mubr.msk.f32.gmra.mrb[94].mxu1 %vm1627_vm1, %v3580_v24  ;;  %v2376_v32 = vpop.xlane.xlu1 %2375  ;;  %v2687_v3 = vmul.f32 0.015625, %v2373_v8  ;;  %v2193_v24 = vmul.f32 %v13565_v25, %v13565_v25  ;;  %v3070_v42 = vsub.f32 %v19729_v27, %v13744_v5  ;;  %v19730_v8 = vld [vmem:[#allocation80_spill] sm:$0xff] }
 0x257   : > { %v2688_v9 = vmul.f32 0.015625, %v2376_v32  ;;  %v3069_v7 = vsub.f32 %v19730_v8, %v13754_v34 }
 0x258   : > { %v2943_v16 = vsub.f32 %v2687_v3, %v2815_v48  ;;  %2420 = vadd.xlane.f32.xlu0 %v2419_v0  ;;  %v2425_v5 = vsel %vm1627_vm1, %v2193_v24, 0.0  ;;  %v2195_v3 = vmul.f32 %v13601_v59, %v13601_v59  ;;  %v2197_v24 = vmul.f32 %v13637_v40, %v13637_v40 }
 0x259   : > { %v2944_v38 = vsub.f32 %v2688_v9, %v2816_v63  ;;  %2423 = vadd.xlane.f32.xlu1 %v2422_v56  ;;  %v1738_v18 = vpop.xlane.xlu0 %1737  ;;  %v2428_v9 = vsel %vm1627_vm1, %v2194_v51, 0.0 }
 0x25a   : > { %v1741_v32 = vpop.xlane.xlu1 %1740  ;;  %v3199_v63 = vadd.f32 1e-05, %v2943_v16  ;;  %v13828_v16 = vmul.f32 0.015625, %v1738_v18 }
 0x25b   : > { %v11393_v54 = vpop.eup %11392  ;;  %v3200_v55 = vadd.f32 1e-05, %v2944_v38  ;;  %v13824_v0 = vmul.f32 0.015625, %v1741_v32 }
 0x25c   : > { %v11395_v35 = vpop.eup %11394  ;;  %v3454_v56 = vmul.f32 %v11393_v54, %v3070_v42  ;;  %2426 = vadd.xlane.f32.xlu0 %v2425_v5  ;;  %v2198_v54 = vmul.f32 %v13627_v45, %v13627_v45  ;;  %v2437_v5 = vsel %vm1627_vm1, %v2197_v24, 0.0  ;;  %v2202_v24 = vmul.f32 %v13706_v44, %v13706_v44 }
 0x25d   : > { %11396 = vrsqrt.f32 %v3200_v55  ;;  %2429 = vadd.xlane.f32.xlu1 %v2428_v9  ;;  %v3453_v48 = vmul.f32 %v11395_v35, %v3069_v7  ;;  %v13826_v51 = vpop.xlane.xlu0 %1929  ;;  %v2434_v55 = vsel %vm1627_vm1, %v2196_v4, 0.0  ;;  %v2431_v35 = vsel %vm1627_vm1, %v2195_v3, 0.0  ;;  %v19733_v3 = vld [vmem:[#allocation85_spill] sm:$0xff] }
 0x25e   : > { %11398 = vrsqrt.f32 %v3199_v63  ;;  %v13822_v34 = vpop.xlane.xlu1 %1932  ;;  %v3582_v38 = vmax.f32 %v3454_v56, 0.0  ;;  %19732 = vst [vmem:[#allocation80_spill] sm:$0xff] %v13826_v51  ;;  %v2818_v18 = vmul.f32 %v13824_v0, %v13824_v0  ;;  %v2817_v7 = vmul.f32 %v13828_v16, %v13828_v16 }
 0x25f   : > { %19731 = vst [vmem:[#allocation79_spill] sm:$0xff] %v13822_v34  ;;  %v3581_v27 = vmax.f32 %v3453_v48, 0.0  ;;  %v2440_v9 = vsel %vm1627_vm1, %v2198_v54, 0.0  ;;  %v2200_v4 = vmul.f32 %v13670_v29, %v13670_v29  ;;  %v2199_v48 = vmul.f32 %v13678_v53, %v13678_v53 }
 0x260   : > { %2432 = vadd.xlane.f32.xlu0 %v2431_v35 }
 0x261   : > { %10897 = vmatprep.mubr.msk.f32.mxu1 %vm1627_vm1, %v3581_v27  ;;  %2435 = vadd.xlane.f32.xlu1 %v2434_v55  ;;  %v2379_v8 = vpop.xlane.xlu0 %2378 }
 0x262   : > { %10898 = vmatmul.mubr.msk.f32.gmra.mrb[96].mxu1 %vm1627_vm1, %v3582_v38  ;;  %v2382_v42 = vpop.xlane.xlu1 %2381  ;;  %v2689_v63 = vmul.f32 0.015625, %v2379_v8  ;;  %v3072_v38 = vsub.f32 %v19733_v3, %v13788_v12  ;;  %v2443_v12 = vsel %vm1627_vm1, %v2199_v48, 0.0 }
 0x263   : > { %v2690_v32 = vmul.f32 0.015625, %v2382_v42  ;;  %v19734_v42 = vld [vmem:[#allocation86_spill] sm:$0xff] }
 0x264   : > { %v2945_v27 = vsub.f32 %v2689_v63, %v2817_v7  ;;  %2438 = vadd.xlane.f32.xlu0 %v2437_v5  ;;  %v3071_v54 = vsub.f32 %v19734_v42, %v13792_v1  ;;  %v2201_v63 = vmul.f32 %v13714_v15, %v13714_v15 }
 0x265   : > { %v2946_v56 = vsub.f32 %v2690_v32, %v2818_v18  ;;  %2441 = vadd.xlane.f32.xlu1 %v2440_v9  ;;  %v1744_v40 = vpop.xlane.xlu0 %1743  ;;  %v2446_v32 = vsel %vm1627_vm1, %v2200_v4, 0.0 }
 0x266   : > { %v1747_v55 = vpop.xlane.xlu1 %1746  ;;  %v3201_v18 = vadd.f32 1e-05, %v2945_v27  ;;  %v13864_v27 = vmul.f32 0.015625, %v1744_v40  ;;  %v2449_v48 = vsel %vm1627_vm1, %v2201_v63, 0.0  ;;  %v19738_v63 = vld [vmem:[#allocation6_spill] sm:$0xff] }
 0x267   : > { %v11397_v35 = vpop.eup %11396  ;;  %v3202_v8 = vadd.f32 1e-05, %v2946_v56  ;;  %v13860_v5 = vmul.f32 0.015625, %v1747_v55 }
 0x268   : > { %v11399_v29 = vpop.eup %11398  ;;  %v3456_v9 = vmul.f32 %v11397_v35, %v3072_v38  ;;  %2444 = vadd.xlane.f32.xlu0 %v2443_v12  ;;  %v2452_v38 = vsel %vm1627_vm1, %v2202_v24, 0.0  ;;  %v2203_v35 = vmul.f32 %v13750_v31, %v13750_v31  ;;  %v19737_v24 = vld [vmem:[#allocation5_spill] sm:$0xff] }
 0x269   : > { %11400 = vrsqrt.f32 %v3202_v8  ;;  %2447 = vadd.xlane.f32.xlu1 %v2446_v32  ;;  %v3455_v7 = vmul.f32 %v11399_v29, %v3071_v54  ;;  %v13862_v4 = vpop.xlane.xlu0 %1935  ;;  %v2204_v29 = vmul.f32 %v13740_v2, %v13740_v2  ;;  %v2820_v40 = vmul.f32 %v13860_v5, %v13860_v5 }
 0x26a   : > { %11402 = vrsqrt.f32 %v3201_v18  ;;  %v13858_v1 = vpop.xlane.xlu1 %1938  ;;  %v3584_v56 = vmax.f32 %v3456_v9, 0.0  ;;  %19736 = vst [vmem:[#allocation86_spill] sm:$0xff] %v13862_v4  ;;  %v2819_v8 = vmul.f32 %v13864_v27, %v13864_v27  ;;  %v2206_v9 = vmul.f32 %v19737_v24, %v19737_v24 }
 0x26b   : > { %19735 = vst [vmem:[#allocation85_spill] sm:$0xff] %v13858_v1  ;;  %v3583_v3 = vmax.f32 %v3455_v7, 0.0  ;;  %v2458_v32 = vsel %vm1627_vm1, %v2204_v29, 0.0  ;;  %v2455_v7 = vsel %vm1627_vm1, %v2203_v35, 0.0  ;;  %v19740_v35 = vld [vmem:[#allocation7_spill] sm:$0xff]  ;;  %v2254_v24 = vmul.f32 %v13503_v37, %v13503_v37 }
 0x26c   : > { %2450 = vadd.xlane.f32.xlu0 %v2449_v48 }
 0x26d   : > { %10900 = vmatprep.mubr.msk.f32.mxu1 %vm1627_vm1, %v3583_v3  ;;  %2453 = vadd.xlane.f32.xlu1 %v2452_v38  ;;  %v2385_v54 = vpop.xlane.xlu0 %2384  ;;  %v3074_v3 = vsub.f32 %v13188_v46, %v13824_v0 }
 0x26e   : > { %10901 = vmatmul.mubr.msk.f32.gmra.mrb[98].mxu1 %vm1627_vm1, %v3584_v56  ;;  %v2388_v55 = vpop.xlane.xlu1 %2387  ;;  %v2691_v18 = vmul.f32 0.015625, %v2385_v54  ;;  %v2205_v56 = vmul.f32 %v19738_v63, %v19738_v63  ;;  %v19739_v54 = vld [vmem:[#allocation91_spill] sm:$0xff]  ;;  %v19823_v63 = vld [vmem:[#allocation77_spill] sm:$0xff] }
 0x26f   : > { %v2692_v42 = vmul.f32 0.015625, %v2388_v55  ;;  %v3073_v29 = vsub.f32 %v19739_v54, %v13828_v16 }
 0x270   : > { %v2947_v38 = vsub.f32 %v2691_v18, %v2819_v8  ;;  %2456 = vadd.xlane.f32.xlu0 %v2455_v7  ;;  %v2461_v46 = vsel %vm1627_vm1, %v2205_v56, 0.0  ;;  %v19741_v8 = vld [vmem:[#allocation8_spill] sm:$0xff] }
 0x271   : > { %v2948_v12 = vsub.f32 %v2692_v42, %v2820_v40  ;;  %2459 = vadd.xlane.f32.xlu1 %v2458_v32  ;;  %v1750_v2 = vpop.xlane.xlu0 %1749  ;;  %v2464_v42 = vsel %vm1627_vm1, %v2206_v9, 0.0  ;;  %v2208_v32 = vmul.f32 %v19740_v35, %v19740_v35  ;;  %v2207_v18 = vmul.f32 %v19741_v8, %v19741_v8  ;;  %v19829_v8 = vld [vmem:[#allocation83_spill] sm:$0xff] }
 0x272   : > { %v1753_v48 = vpop.xlane.xlu1 %1752  ;;  %v3203_v40 = vadd.f32 1e-05, %v2947_v38  ;;  %v13900_v54 = vmul.f32 0.015625, %v1750_v2 }
 0x273   : > { %v11401_v55 = vpop.eup %11400  ;;  %v3204_v31 = vadd.f32 1e-05, %v2948_v12  ;;  %v13896_v7 = vmul.f32 0.015625, %v1753_v48  ;;  %v2470_v56 = vsel %vm1627_vm1, %v2208_v32, 0.0  ;;  %v19747_v48 = vld [vmem:[#allocation10_spill] sm:$0xff] }
 0x274   : > { %v11403_v15 = vpop.eup %11402  ;;  %v3458_v44 = vmul.f32 %v11401_v55, %v3074_v3  ;;  %2462 = vadd.xlane.f32.xlu0 %v2461_v46  ;;  %v2821_v46 = vmul.f32 %v13900_v54, %v13900_v54  ;;  %v3077_v28 = vsub.f32 %v13298_v52, %v13900_v54  ;;  %v19765_v52 = vld [vmem:[#allocation34_spill] sm:$0xff] }
 0x275   : > { %11404 = vrsqrt.f32 %v3204_v31  ;;  %2465 = vadd.xlane.f32.xlu1 %v2464_v42  ;;  %v3457_v0 = vmul.f32 %v11403_v15, %v3073_v29  ;;  %v13898_v9 = vpop.xlane.xlu0 %1941  ;;  %v19745_v15 = vld [vmem:[#allocation9_spill] sm:$0xff]  ;;  %v2209_v29 = vmul.f32 %v19747_v48, %v19747_v48  ;;  %v3078_v1 = vsub.f32 %v13294_v58, %v13896_v7 }
 0x276   : > { %11406 = vrsqrt.f32 %v3203_v40  ;;  %v13894_v16 = vpop.xlane.xlu1 %1944  ;;  %v3586_v12 = vmax.f32 %v3458_v44, 0.0  ;;  %19743 = vst [vmem:[#allocation130_spill] sm:$0xff] %v13898_v9  ;;  %v2210_v3 = vmul.f32 %v19745_v15, %v19745_v15  ;;  %v2467_v44 = vsel %vm1627_vm1, %v2207_v18, 0.0 }
 0x277   : > { %19742 = vst [vmem:[#allocation91_spill] sm:$0xff] %v13894_v16  ;;  %v3585_v38 = vmax.f32 %v3457_v0, 0.0  ;;  %v13902_v31 = vpop.f32.mrb[64].mxu1  ;;  %v2822_v40 = vmul.f32 %v13896_v7, %v13896_v7  ;;  %v2223_v54 = vmul.f32 %v19765_v52, %v19765_v52  ;;  %v19774_v52 = vld [vmem:[#allocation50_spill] sm:$0xff] }
 0x278   : > { %19744 = vst [vmem:[#allocation131_spill] sm:$0xff] %v13902_v31  ;;  %v13908_v55 = vpop.f32.mrb[65].mxu1  ;;  %2468 = vadd.xlane.f32.xlu0 %v2467_v44  ;;  %v2473_v44 = vsel %vm1627_vm1, %v2209_v29, 0.0  ;;  %v19750_v29 = vld [vmem:[#allocation13_spill] sm:$0xff] }
 0x279   : > { %10903 = vmatprep.mubr.msk.f32.mxu1 %vm1627_vm1, %v3585_v38  ;;  %2471 = vadd.xlane.f32.xlu1 %v2470_v56  ;;  %19746 = vst [vmem:[#allocation132_spill] sm:$0xff] %v13908_v55  ;;  %v2391_v32 = vpop.xlane.xlu0 %2390  ;;  %v2476_v38 = vsel %vm1627_vm1, %v2210_v3, 0.0  ;;  %v19748_v56 = vld [vmem:[#allocation11_spill] sm:$0xff]  ;;  %v3075_v3 = vsub.f32 %v13250_v22, %v13864_v27 }
 0x27a   : > { %10904 = vmatmul.mubr.msk.f32.gmra.mrb[100].mxu1 %vm1627_vm1, %v3586_v12  ;;  %v2394_v2 = vpop.xlane.xlu1 %2393  ;;  %v2693_v0 = vmul.f32 0.015625, %v2391_v32  ;;  %v2212_v18 = vmul.f32 %v19748_v56, %v19748_v56  ;;  %v19749_v12 = vld [vmem:[#allocation12_spill] sm:$0xff] }
 0x27b   : > { %v2694_v42 = vmul.f32 0.015625, %v2394_v2  ;;  %v2211_v45 = vmul.f32 %v19749_v12, %v19749_v12  ;;  %v3076_v2 = vsub.f32 %v13246_v17, %v13860_v5 }
 0x27c   : > { %v2949_v59 = vsub.f32 %v2693_v0, %v2821_v46  ;;  %2474 = vadd.xlane.f32.xlu0 %v2473_v44  ;;  %v19751_v46 = vld [vmem:[#allocation14_spill] sm:$0xff] }
 0x27d   : > { %v2950_v53 = vsub.f32 %v2694_v42, %v2822_v40  ;;  %2477 = vadd.xlane.f32.xlu1 %v2476_v38  ;;  %v1756_v61 = vpop.xlane.xlu0 %1755  ;;  %v2482_v42 = vsel %vm1627_vm1, %v2212_v18, 0.0  ;;  %v2214_v38 = vmul.f32 %v19750_v29, %v19750_v29  ;;  %v2479_v17 = vsel %vm1627_vm1, %v2211_v45, 0.0 }
 0x27e   : > { %v1759_v30 = vpop.xlane.xlu1 %1758  ;;  %v3205_v40 = vadd.f32 1e-05, %v2949_v59  ;;  %v2213_v0 = vmul.f32 %v19751_v46, %v19751_v46  ;;  %v2264_v29 = vmul.f32 %v13686_v47, %v13686_v47  ;;  %v19844_v46 = vld [vmem:[#allocation94_spill] sm:$0xff] }
 0x27f   : > { %v11405_v25 = vpop.eup %11404  ;;  %v3206_v32 = vadd.f32 1e-05, %v2950_v53  ;;  %v13938_v27 = vmul.f32 0.015625, %v1759_v30  ;;  %v2488_v45 = vsel %vm1627_vm1, %v2214_v38, 0.0 }
 0x280   : > { %v11407_v9 = vpop.eup %11406  ;;  %v3460_v16 = vmul.f32 %v11405_v25, %v3076_v2  ;;  %2480 = vadd.xlane.f32.xlu0 %v2479_v17  ;;  %v13944_v2 = vmul.f32 0.015625, %v1756_v61  ;;  %v19759_v17 = vld [vmem:[#allocation22_spill] sm:$0xff] }
 0x281   : > { %11408 = vrsqrt.f32 %v3206_v32  ;;  %2483 = vadd.xlane.f32.xlu1 %v2482_v42  ;;  %v3459_v5 = vmul.f32 %v11407_v9, %v3075_v3  ;;  %v13934_v22 = vpop.f32.mrb[66].mxu1  ;;  %v13942_v25 = vpop.xlane.xlu0 %1947  ;;  %v19756_v9 = vld [vmem:[#allocation17_spill] sm:$0xff]  ;;  %v2485_v32 = vsel %vm1627_vm1, %v2213_v0, 0.0  ;;  %v2217_v38 = vmul.f32 %v19759_v17, %v19759_v17 }
 0x282   : > { %11410 = vrsqrt.f32 %v3205_v40  ;;  %19752 = vst [vmem:[#allocation133_spill] sm:$0xff] %v13934_v22  ;;  %v13936_v53 = vpop.xlane.xlu1 %1950  ;;  %v3588_v59 = vmax.f32 %v3460_v16, 0.0  ;;  %v13940_v18 = vpop.f32.mrb[67].mxu1  ;;  %19755 = vst [vmem:[#allocation136_spill] sm:$0xff] %v13942_v25  ;;  %v2216_v3 = vmul.f32 %v19756_v9, %v19756_v9  ;;  %v19757_v16 = vld [vmem:[#allocation18_spill] sm:$0xff]  ;;  %v19758_v40 = vld [vmem:[#allocation21_spill] sm:$0xff] }
 0x283   : > { %19753 = vst [vmem:[#allocation134_spill] sm:$0xff] %v13936_v53  ;;  %19754 = vst [vmem:[#allocation135_spill] sm:$0xff] %v13940_v18  ;;  %v3587_v44 = vmax.f32 %v3459_v5, 0.0  ;;  %v2215_v30 = vmul.f32 %v19757_v16, %v19757_v16  ;;  %v2218_v42 = vmul.f32 %v19758_v40, %v19758_v40  ;;  %v19760_v5 = vld [vmem:[#allocation25_spill] sm:$0xff]  ;;  %v2823_v53 = vmul.f32 %v13944_v2, %v13944_v2  ;;  %v19761_v22 = vld [vmem:[#allocation26_spill] sm:$0xff] }
 0x284   : > { %2486 = vadd.xlane.f32.xlu0 %v2485_v32  ;;  %v2220_v25 = vmul.f32 %v19760_v5, %v19760_v5  ;;  %v2494_v32 = vsel %vm1627_vm1, %v2216_v3, 0.0  ;;  %v2497_v34 = vsel %vm1627_vm1, %v2217_v38, 0.0  ;;  %v19851_v9 = vld [vmem:[#allocation129_spill] sm:$0xff] }
 0x285   : > { %10906 = vmatprep.mubr.msk.f32.mxu1 %vm1627_vm1, %v3587_v44  ;;  %2489 = vadd.xlane.f32.xlu1 %v2488_v45  ;;  %v2824_v44 = vmul.f32 %v13938_v27, %v13938_v27  ;;  %v2397_v45 = vpop.xlane.xlu0 %2396  ;;  %v2491_v31 = vsel %vm1627_vm1, %v2215_v30, 0.0  ;;  %v2500_v4 = vsel %vm1627_vm1, %v2218_v42, 0.0  ;;  %v19763_v42 = vld [vmem:[#allocation30_spill] sm:$0xff] }
 0x286   : > { %10907 = vmatmul.mubr.msk.f32.gmra.mrb[102].mxu1 %vm1627_vm1, %v3588_v59  ;;  %v2400_v61 = vpop.xlane.xlu1 %2399  ;;  %v2695_v18 = vmul.f32 0.015625, %v2397_v45  ;;  %v2219_v59 = vmul.f32 %v19761_v22, %v19761_v22  ;;  %v2506_v45 = vsel %vm1627_vm1, %v2220_v25, 0.0  ;;  %v2221_v36 = vmul.f32 %v19763_v42, %v19763_v42 }
 0x287   : > { %v2696_v0 = vmul.f32 0.015625, %v2400_v61 }
 0x288   : > { %v2951_v61 = vsub.f32 %v2695_v18, %v2823_v53  ;;  %2492 = vadd.xlane.f32.xlu0 %v2491_v31  ;;  %v2503_v31 = vsel %vm1627_vm1, %v2219_v59, 0.0  ;;  %v19764_v18 = vld [vmem:[#allocation33_spill] sm:$0xff] }
 0x289   : > { %v2952_v55 = vsub.f32 %v2696_v0, %v2824_v44  ;;  %2495 = vadd.xlane.f32.xlu1 %v2494_v32  ;;  %v1762_v0 = vpop.xlane.xlu0 %1761  ;;  %v19762_v32 = vld [vmem:[#allocation29_spill] sm:$0xff]  ;;  %v2224_v25 = vmul.f32 %v19764_v18, %v19764_v18 }
 0x28a   : > { %v1765_v51 = vpop.xlane.xlu1 %1764  ;;  %v2222_v30 = vmul.f32 %v19762_v32, %v19762_v32  ;;  %v3207_v7 = vadd.f32 1e-05, %v2951_v61  ;;  %v19770_v18 = vld [vmem:[#allocation41_spill] sm:$0xff] }
 0x28b   : > { %v11409_v3 = vpop.eup %11408  ;;  %v3208_v44 = vadd.f32 1e-05, %v2952_v55  ;;  %v19766_v55 = vld [vmem:[#allocation37_spill] sm:$0xff] }
 0x28c   : > { %v11411_v58 = vpop.eup %11410  ;;  %v3462_v53 = vmul.f32 %v11409_v3, %v3078_v1  ;;  %v2226_v32 = vmul.f32 %v19766_v55, %v19766_v55  ;;  %2498 = vadd.xlane.f32.xlu0 %v2497_v34  ;;  %v19769_v1 = vld [vmem:[#allocation38_spill] sm:$0xff]  ;;  %v2509_v34 = vsel %vm1627_vm1, %v2221_v36, 0.0 }
 0x28d   : > { %11412 = vrsqrt.f32 %v3208_v44  ;;  %2501 = vadd.xlane.f32.xlu1 %v2500_v4  ;;  %v3461_v38 = vmul.f32 %v11411_v58, %v3077_v28  ;;  %v13986_v22 = vpop.f32.mrb[68].mxu1  ;;  %v2225_v3 = vmul.f32 %v19769_v1, %v19769_v1  ;;  %v2228_v4 = vmul.f32 %v19770_v18, %v19770_v18  ;;  %v13998_v58 = vpop.xlane.xlu0 %1953 }
 0x28e   : > { %11414 = vrsqrt.f32 %v3207_v7  ;;  %19767 = vst [vmem:[#allocation137_spill] sm:$0xff] %v13986_v22  ;;  %v13988_v61 = vpop.xlane.xlu1 %1956  ;;  %v3590_v59 = vmax.f32 %v3462_v53, 0.0  ;;  %v13994_v28 = vmul.f32 0.015625, %v1765_v51  ;;  %v13996_v44 = vpop.f32.mrb[69].mxu1  ;;  %19772 = vst [vmem:[#allocation140_spill] sm:$0xff] %v13998_v58  ;;  %v2512_v7 = vsel %vm1627_vm1, %v2222_v30, 0.0 }
 0x28f   : > { %19768 = vst [vmem:[#allocation138_spill] sm:$0xff] %v13988_v61  ;;  %19771 = vst [vmem:[#allocation139_spill] sm:$0xff] %v13996_v44  ;;  %v3589_v55 = vmax.f32 %v3461_v38, 0.0  ;;  %v14002_v22 = vmul.f32 0.015625, %v1762_v0  ;;  %v2518_v53 = vsel %vm1627_vm1, %v2224_v25, 0.0  ;;  %v19773_v61 = vld [vmem:[#allocation42_spill] sm:$0xff]  ;;  %v2230_v51 = vmul.f32 %v19774_v52, %v19774_v52 }
 0x290   : > { %v2227_v1 = vmul.f32 %v19773_v61, %v19773_v61  ;;  %v2515_v58 = vsel %vm1627_vm1, %v2223_v54, 0.0  ;;  %v19775_v38 = vld [vmem:[#allocation51_spill] sm:$0xff]  ;;  %v19776_v44 = vld [vmem:[#allocation60_spill] sm:$0xff]  ;;  %v19777_v0 = vld [vmem:[#allocation61_spill] sm:$0xff]  ;;  %2504 = vadd.xlane.f32.xlu0 %v2503_v31  ;;  %v2524_v52 = vsel %vm1627_vm1, %v2226_v32, 0.0 }
 0x291   : > { %10909 = vmatprep.mubr.msk.f32.mxu1 %vm1627_vm1, %v3589_v55  ;;  %2507 = vadd.xlane.f32.xlu1 %v2506_v45  ;;  %v2229_v30 = vmul.f32 %v19775_v38, %v19775_v38  ;;  %v2232_v36 = vmul.f32 %v19776_v44, %v19776_v44  ;;  %v2231_v25 = vmul.f32 %v19777_v0, %v19777_v0  ;;  %v2521_v55 = vsel %vm1627_vm1, %v2225_v3, 0.0  ;;  %v19778_v54 = vld [vmem:[#allocation69_spill] sm:$0xff]  ;;  %v2403_v42 = vpop.xlane.xlu0 %2402  ;;  %v19779_v0 = vld [vmem:[#allocation70_spill] sm:$0xff] }
 0x292   : > { %10910 = vmatmul.mubr.msk.f32.gmra.mrb[104].mxu1 %vm1627_vm1, %v3590_v59  ;;  %v2406_v61 = vpop.xlane.xlu1 %2405  ;;  %v14021_v45 = vsel %vm1627_vm1, %v2228_v4, 0.0  ;;  %v2234_v38 = vmul.f32 %v19778_v54, %v19778_v54  ;;  %v2826_v44 = vmul.f32 %v13994_v28, %v13994_v28  ;;  %v2233_v31 = vmul.f32 %v19779_v0, %v19779_v0  ;;  %v19780_v59 = vld [vmem:[#allocation75_spill] sm:$0xff] }
 0x293   : > { %v2698_v18 = vmul.f32 0.015625, %v2406_v61  ;;  %v2236_v5 = vmul.f32 %v19780_v59, %v19780_v59  ;;  %v2825_v32 = vmul.f32 %v14002_v22, %v14002_v22  ;;  %v2697_v3 = vmul.f32 0.015625, %v2403_v42 }
 0x294   : > { %v14034_v4 = vsel %vm1627_vm1, %v2227_v1, 0.0  ;;  %v14037_v54 = vsel %vm1627_vm1, %v2230_v51, 0.0  ;;  %v14040_v61 = vsel %vm1627_vm1, %v2229_v30, 0.0  ;;  %v14043_v0 = vsel %vm1627_vm1, %v2232_v36, 0.0  ;;  %2510 = vadd.xlane.f32.xlu0 %v2509_v34 }
 0x295   : > { %v2954_v17 = vsub.f32 %v2698_v18, %v2826_v44  ;;  %2513 = vadd.xlane.f32.xlu1 %v2512_v7  ;;  %v14046_v59 = vsel %vm1627_vm1, %v2231_v25, 0.0  ;;  %v3080_v42 = vsub.f32 %v13342_v49, %v13938_v27  ;;  %v2953_v40 = vsub.f32 %v2697_v3, %v2825_v32  ;;  %v19781_v18 = vld [vmem:[#allocation76_spill] sm:$0xff]  ;;  %v1768_v43 = vpop.xlane.xlu0 %1767 }
 0x296   : > { %v1771_v1 = vpop.xlane.xlu1 %1770  ;;  %v14051_v51 = vsel %vm1627_vm1, %v2234_v38, 0.0  ;;  %v2235_v44 = vmul.f32 %v19781_v18, %v19781_v18  ;;  %v3079_v30 = vsub.f32 %v13346_v50, %v13944_v2  ;;  %v14058_v25 = vsel %vm1627_vm1, %v2233_v31, 0.0  ;;  %v19782_v38 = vld [vmem:[#allocation81_spill] sm:$0xff]  ;;  %v19784_v2 = vld [vmem:[#allocation87_spill] sm:$0xff]  ;;  %v19785_v31 = vld [vmem:[#allocation88_spill] sm:$0xff] }
 0x297   : > { %v11413_v7 = vpop.eup %11412  ;;  %v3210_v36 = vadd.f32 1e-05, %v2954_v17  ;;  %v14061_v49 = vsel %vm1627_vm1, %v2236_v5, 0.0  ;;  %v3209_v34 = vadd.f32 1e-05, %v2953_v40  ;;  %v2238_v3 = vmul.f32 %v19782_v38, %v19782_v38 }
 0x298   : > { %v11415_v27 = vpop.eup %11414  ;;  %v3464_v32 = vmul.f32 %v11413_v7, %v3080_v42  ;;  %v2237_v18 = vmul.f32 %v19783_v23, %v19783_v23  ;;  %v2240_v17 = vmul.f32 %v19784_v2, %v19784_v2  ;;  %v2239_v16 = vmul.f32 %v19785_v31, %v19785_v31  ;;  %2516 = vadd.xlane.f32.xlu0 %v2515_v58  ;;  %v19788_v7 = vld [vmem:[#allocation92_spill] sm:$0xff]  ;;  %v19789_v23 = vld [vmem:[#allocation93_spill] sm:$0xff] }
 0x299   : > { %11416 = vrsqrt.f32 %v3210_v36  ;;  %2519 = vadd.xlane.f32.xlu1 %v2518_v53  ;;  %v3463_v50 = vmul.f32 %v11415_v27, %v3079_v30  ;;  %v14071_v5 = vpop.f32.mrb[70].mxu1  ;;  %v2242_v38 = vmul.f32 %v19788_v7, %v19788_v7  ;;  %v2241_v53 = vmul.f32 %v19789_v23, %v19789_v23  ;;  %v14083_v27 = vpop.xlane.xlu0 %1959  ;;  %v19799_v7 = vld [vmem:[#allocation45_spill] sm:$0xff] }
 0x29a   : > { %11418 = vrsqrt.f32 %v3209_v34  ;;  %19786 = vst [vmem:[#allocation141_spill] sm:$0xff] %v14071_v5  ;;  %v14073_v40 = vpop.xlane.xlu1 %1962  ;;  %v3592_v42 = vmax.f32 %v3464_v32, 0.0  ;;  %v14079_v30 = vmul.f32 0.015625, %v1771_v1  ;;  %v14081_v36 = vpop.f32.mrb[71].mxu1  ;;  %19791 = vst [vmem:[#allocation144_spill] sm:$0xff] %v14083_v27  ;;  %v14086_v34 = vsel %vm1627_vm1, %v2235_v44, 0.0 }
 0x29b   : > { %19787 = vst [vmem:[#allocation142_spill] sm:$0xff] %v14073_v40  ;;  %19790 = vst [vmem:[#allocation143_spill] sm:$0xff] %v14081_v36  ;;  %v3591_v31 = vmax.f32 %v3463_v50, 0.0  ;;  %v2244_v58 = vmul.f32 %v13263_v26, %v13263_v26  ;;  %v14090_v32 = vmul.f32 0.015625, %v1768_v43  ;;  %v14093_v40 = vsel %vm1627_vm1, %v2238_v3, 0.0  ;;  %v19792_v3 = vld [vmem:[#allocation98_spill] sm:$0xff] }
 0x29c   : > { %v14096_v5 = vsel %vm1627_vm1, %v2237_v18, 0.0  ;;  %v2243_v1 = vmul.f32 %v13269_v41, %v13269_v41  ;;  %v14102_v44 = vsel %vm1627_vm1, %v2240_v17, 0.0  ;;  %v14105_v50 = vsel %vm1627_vm1, %v2239_v16, 0.0  ;;  %2522 = vadd.xlane.f32.xlu0 %v2521_v55  ;;  %v19794_v17 = vld [vmem:[#allocation23_spill] sm:$0xff]  ;;  %v19800_v2 = vld [vmem:[#allocation49_spill] sm:$0xff] }
 0x29d   : > { %10912 = vmatprep.mubr.msk.f32.mxu1 %vm1627_vm1, %v3591_v31  ;;  %2525 = vadd.xlane.f32.xlu1 %v2524_v52  ;;  %v2246_v43 = vmul.f32 %v13311_v14, %v13311_v14  ;;  %v2245_v27 = vmul.f32 %v19792_v3, %v19792_v3  ;;  %v14113_v36 = vsel %vm1627_vm1, %v2242_v38, 0.0  ;;  %v14116_v52 = vsel %vm1627_vm1, %v2241_v53, 0.0  ;;  %v19795_v31 = vld [vmem:[#allocation100_spill] sm:$0xff]  ;;  %v2409_v55 = vpop.xlane.xlu0 %2408  ;;  %v19797_v26 = vld [vmem:[#allocation27_spill] sm:$0xff] }
 0x29e   : > { %10913 = vmatmul.mubr.msk.f32.gmra.mrb[106].mxu1 %vm1627_vm1, %v3592_v42  ;;  %v2412_v18 = vpop.xlane.xlu1 %2411  ;;  %19793 = vst [vmem:[#allocation145_spill] sm:$0xff] %v14116_v52  ;;  %v2248_v16 = vmul.f32 %v19794_v17, %v19794_v17  ;;  %v2247_v41 = vmul.f32 %v19795_v31, %v19795_v31  ;;  %v2828_v14 = vmul.f32 %v14079_v30, %v14079_v30  ;;  %v14125_v42 = vsel %vm1627_vm1, %v2244_v58, 0.0 }
 0x29f   : > { %v2700_v3 = vmul.f32 0.015625, %v2412_v18  ;;  %19796 = vst [vmem:[#allocation146_spill] sm:$0xff] %v14125_v42  ;;  %v2250_v38 = vmul.f32 %v19797_v26, %v19797_v26  ;;  %v2827_v53 = vmul.f32 %v14090_v32, %v14090_v32  ;;  %v2699_v23 = vmul.f32 0.015625, %v2409_v55  ;;  %v19803_v55 = vld [vmem:[#allocation43_spill] sm:$0xff] }
 0x2a0   : > { %v14132_v17 = vsel %vm1627_vm1, %v2243_v1, 0.0  ;;  %v2249_v31 = vmul.f32 %v19799_v7, %v19799_v7  ;;  %v14137_v52 = vmul.f32 0.015625, %v19800_v2  ;;  %v14141_v58 = vsel %vm1627_vm1, %v2246_v43, 0.0  ;;  %2528 = vadd.xlane.f32.xlu0 %v14034_v4  ;;  %v19805_v43 = vld [vmem:[#allocation55_spill] sm:$0xff] }
 0x2a1   : > { %19798 = vst [vmem:[#allocation147_spill] sm:$0xff] %v14132_v17  ;;  %v2956_v18 = vsub.f32 %v2700_v3, %v2828_v14  ;;  %2531 = vadd.xlane.f32.xlu1 %v14021_v45  ;;  %v14144_v26 = vsel %vm1627_vm1, %v2245_v27, 0.0  ;;  %v3082_v42 = vsub.f32 %v19803_v55, %v13994_v28  ;;  %v2955_v1 = vsub.f32 %v2699_v23, %v2827_v53  ;;  %v19807_v27 = vld [vmem:[#allocation44_spill] sm:$0xff]  ;;  %v14162_v28 = vpop.xlane.xlu0 %1773  ;;  %v19809_v53 = vld [vmem:[#allocation59_spill] sm:$0xff] }
 0x2a2   : > { %19801 = vst [vmem:[#allocation49_spill] sm:$0xff] %v14137_v52  ;;  %19802 = vst [vmem:[#allocation148_spill] sm:$0xff] %v14144_v26  ;;  %v14149_v17 = vpop.xlane.xlu1 %1776  ;;  %v14152_v2 = vsel %vm1627_vm1, %v2248_v16, 0.0  ;;  %v14155_v14 = vsel %vm1627_vm1, %v2247_v41, 0.0  ;;  %v14158_v3 = vmul.f32 0.015625, %v19805_v43  ;;  %v3081_v7 = vsub.f32 %v19807_v27, %v14002_v22  ;;  %v19813_v27 = vld [vmem:[#allocation63_spill] sm:$0xff] }
 0x2a3   : > { %19804 = vst [vmem:[#allocation43_spill] sm:$0xff] %v14149_v17  ;;  %v11417_v45 = vpop.eup %11416  ;;  %v3212_v26 = vadd.f32 1e-05, %v2956_v18  ;;  %19808 = vst [vmem:[#allocation44_spill] sm:$0xff] %v14162_v28  ;;  %v14165_v23 = vsel %vm1627_vm1, %v2250_v38, 0.0  ;;  %v14168_v16 = vmul.f32 0.015625, %v19809_v53  ;;  %v14175_v43 = vmul.f32 %v14137_v52, %v14137_v52 }
 0x2a4   : > { %19806 = vst [vmem:[#allocation55_spill] sm:$0xff] %v14158_v3  ;;  %v11419_v4 = vpop.eup %11418  ;;  %v3211_v55 = vadd.f32 1e-05, %v2955_v1  ;;  %v3466_v41 = vmul.f32 %v11417_v45, %v3082_v42  ;;  %v14171_v17 = vsel %vm1627_vm1, %v2249_v31, 0.0  ;;  %v19812_v18 = vld [vmem:[#allocation31_spill] sm:$0xff]  ;;  %v14181_v28 = vmul.f32 0.015625, %v19813_v27  ;;  %2534 = vadd.xlane.f32.xlu0 %v14040_v61 }
 0x2a5   : > { %19810 = vst [vmem:[#allocation59_spill] sm:$0xff] %v14168_v16  ;;  %19811 = vst [vmem:[#allocation149_spill] sm:$0xff] %v14175_v43  ;;  %11420 = vrsqrt.f32 %v3212_v26  ;;  %2537 = vadd.xlane.f32.xlu1 %v14037_v54  ;;  %v3465_v22 = vmul.f32 %v11419_v4, %v3081_v7  ;;  %v2252_v38 = vmul.f32 %v19812_v18, %v19812_v18  ;;  %v14183_v1 = vpop.f32.mrb[72].mxu1  ;;  %v19815_v45 = vld [vmem:[#allocation54_spill] sm:$0xff]  ;;  %v19817_v4 = vld [vmem:[#allocation71_spill] sm:$0xff]  ;;  %v14201_v27 = vpop.xlane.xlu0 %1965 }
 0x2a6   : > { %19814 = vst [vmem:[#allocation63_spill] sm:$0xff] %v14181_v28  ;;  %11422 = vrsqrt.f32 %v3211_v55  ;;  %v14186_v31 = vpop.xlane.xlu1 %1968  ;;  %v3594_v42 = vmax.f32 %v3466_v41, 0.0  ;;  %v2251_v26 = vmul.f32 %v19815_v45, %v19815_v45  ;;  %v14194_v7 = vmul.f32 %v14158_v3, %v14158_v3  ;;  %v14199_v55 = vpop.f32.mrb[73].mxu1  ;;  %v19820_v54 = vld [vmem:[#allocation72_spill] sm:$0xff] }
 0x2a7   : > { %v14197_v53 = vmul.f32 0.015625, %v19817_v4  ;;  %v3593_v61 = vmax.f32 %v3465_v22, 0.0  ;;  %v14207_v43 = vmul.f32 %v14168_v16, %v14168_v16  ;;  %v14210_v52 = vmul.f32 0.015625, %v19820_v54 }
 0x2a8   : > { %19816 = vst [vmem:[#allocation150_spill] sm:$0xff] %v14194_v7  ;;  %v14219_v22 = vsel %vm1627_vm1, %v2252_v38, 0.0  ;;  %v2253_v41 = vmul.f32 %v13513_v10, %v13513_v10  ;;  %v2256_v54 = vmul.f32 %v13539_v39, %v13539_v39  ;;  %v14227_v3 = vmul.f32 %v14181_v28, %v14181_v28  ;;  %2540 = vadd.xlane.f32.xlu0 %v14046_v59  ;;  %v19826_v59 = vld [vmem:[#allocation78_spill] sm:$0xff]  ;;  %v20050_v10 = vld [vmem:[#allocation103_spill] sm:$0xff] }
 0x2a9   : > { %19818 = vst [vmem:[#allocation71_spill] sm:$0xff] %v14197_v53  ;;  %19819 = vst [vmem:[#allocation151_spill] sm:$0xff] %v14207_v43  ;;  %10915 = vmatprep.mubr.msk.f32.mxu1 %vm1627_vm1, %v3593_v61  ;;  %2543 = vadd.xlane.f32.xlu1 %v14043_v0  ;;  %v14230_v43 = vmul.f32 0.015625, %v19823_v63  ;;  %v14237_v38 = vsel %vm1627_vm1, %v2251_v26, 0.0  ;;  %v2255_v61 = vmul.f32 %v13547_v6, %v13547_v6  ;;  %v14252_v35 = vpop.xlane.xlu0 %1779  ;;  %v14261_v4 = vsel %vm1627_vm1, %v2254_v24, 0.0  ;;  %v19882_v7 = vld [vmem:[#allocation58_spill] sm:$0xff] }
 0x2aa   : > { %19821 = vst [vmem:[#allocation72_spill] sm:$0xff] %v14210_v52  ;;  %19822 = vst [vmem:[#allocation152_spill] sm:$0xff] %v14227_v3  ;;  %10916 = vmatmul.mubr.msk.f32.gmra.mrb[108].mxu1 %vm1627_vm1, %v3594_v42  ;;  %v14234_v0 = vpop.xlane.xlu1 %1782  ;;  %v14245_v16 = vmul.f32 %v14197_v53, %v14197_v53  ;;  %v14250_v42 = vmul.f32 0.015625, %v19826_v59  ;;  %v14256_v26 = vmul.f32 %v14210_v52, %v14210_v52  ;;  %v14266_v63 = vmul.f32 0.015625, %v19829_v8  ;;  %v19832_v8 = vld [vmem:[#allocation52_spill] sm:$0xff] }
 0x2ab   : > { %19824 = vst [vmem:[#allocation77_spill] sm:$0xff] %v14230_v43  ;;  %v2258_v28 = vmul.f32 %v13573_v62, %v13573_v62  ;;  %v14270_v59 = vsel %vm1627_vm1, %v2253_v41, 0.0  ;;  %v14273_v53 = vsel %vm1627_vm1, %v2256_v54, 0.0  ;;  %v2257_v3 = vmul.f32 %v13583_v11, %v13583_v11 }
 0x2ac   : > { %19825 = vst [vmem:[#allocation153_spill] sm:$0xff] %v14245_v16  ;;  %19827 = vst [vmem:[#allocation78_spill] sm:$0xff] %v14250_v42  ;;  %v14279_v24 = vmul.f32 %v14230_v43, %v14230_v43  ;;  %v3084_v48 = vsub.f32 %v19832_v8, %v14079_v30  ;;  %2546 = vadd.xlane.f32.xlu0 %v14058_v25  ;;  %v14289_v41 = vsel %vm1627_vm1, %v2255_v61, 0.0  ;;  %v19836_v30 = vld [vmem:[#allocation53_spill] sm:$0xff]  ;;  %v14937_v45 = vmul.f32 0.015625, %v14234_v0 }
 0x2ad   : > { %19828 = vst [vmem:[#allocation154_spill] sm:$0xff] %v14256_v26  ;;  %19830 = vst [vmem:[#allocation83_spill] sm:$0xff] %v14266_v63  ;;  %2549 = vadd.xlane.f32.xlu1 %v14051_v51  ;;  %v14293_v15 = vmul.f32 %v14250_v42, %v14250_v42  ;;  %v19834_v26 = vld [vmem:[#allocation84_spill] sm:$0xff]  ;;  %v3083_v8 = vsub.f32 %v19836_v30, %v14090_v32  ;;  %v14302_v25 = vpop.xlane.xlu0 %1971  ;;  %v14305_v61 = vsel %vm1627_vm1, %v2258_v28, 0.0  ;;  %v14953_v0 = vmul.f32 0.015625, %v14252_v35 }
 0x2ae   : > { %19831 = vst [vmem:[#allocation155_spill] sm:$0xff] %v14279_v24  ;;  %v14286_v51 = vpop.xlane.xlu1 %1974  ;;  %v14298_v52 = vmul.f32 0.015625, %v19834_v26  ;;  %v2260_v16 = vmul.f32 %v13611_v33, %v13611_v33  ;;  %v14313_v26 = vmul.f32 %v14266_v63, %v14266_v63  ;;  %v19838_v24 = vld [vmem:[#allocation89_spill] sm:$0xff] }
 0x2af   : > { %v11421_v54 = vpop.eup %11420  ;;  %19833 = vst [vmem:[#allocation52_spill] sm:$0xff] %v14293_v15  ;;  %v2259_v15 = vmul.f32 %v13619_v57, %v13619_v57  ;;  %v14316_v42 = vmul.f32 0.015625, %v19838_v24  ;;  %v14964_v18 = vmul.f32 0.015625, %v14286_v51  ;;  %v2832_v51 = vmul.f32 %v14937_v45, %v14937_v45 }
 0x2b0   : > { %19835 = vst [vmem:[#allocation84_spill] sm:$0xff] %v14298_v52  ;;  %v11423_v43 = vpop.eup %11422  ;;  %v3468_v56 = vmul.f32 %v11421_v54, %v3084_v48  ;;  %19837 = vst [vmem:[#allocation53_spill] sm:$0xff] %v14313_v26  ;;  %v14320_v48 = vsel %vm1627_vm1, %v2257_v3, 0.0  ;;  %v19840_v54 = vld [vmem:[#allocation90_spill] sm:$0xff]  ;;  %2552 = vadd.xlane.f32.xlu0 %v14086_v34  ;;  %v14336_v3 = vmul.f32 %v14298_v52, %v14298_v52 }
 0x2b1   : > { %19839 = vst [vmem:[#allocation89_spill] sm:$0xff] %v14316_v42  ;;  %2555 = vadd.xlane.f32.xlu1 %v14061_v49  ;;  %v3467_v32 = vmul.f32 %v11423_v43, %v3083_v8  ;;  %v14325_v30 = vmul.f32 0.015625, %v19840_v54  ;;  %v14327_v12 = vpop.f32.mrb[74].mxu1  ;;  %v2262_v49 = vmul.f32 %v13647_v19, %v13647_v19  ;;  %v14342_v54 = vpop.xlane.xlu0 %1785  ;;  %v2261_v34 = vmul.f32 %v13655_v13, %v13655_v13 }
 0x2b2   : > { %v14330_v26 = vpop.xlane.xlu1 %1788  ;;  %v3596_v24 = vmax.f32 %v3468_v56, 0.0  ;;  %19842 = vst [vmem:[#allocation156_spill] sm:$0xff] %v14336_v3  ;;  %v14340_v8 = vpop.f32.mrb[75].mxu1  ;;  %v14347_v56 = vsel %vm1627_vm1, %v2260_v16, 0.0  ;;  %v14350_v63 = vsel %vm1627_vm1, %v2259_v15, 0.0  ;;  %v2263_v43 = vmul.f32 %v13696_v21, %v13696_v21  ;;  %v19846_v16 = vld [vmem:[#allocation95_spill] sm:$0xff] }
 0x2b3   : > { %19841 = vst [vmem:[#allocation90_spill] sm:$0xff] %v14325_v30  ;;  %v3595_v28 = vmax.f32 %v3467_v32, 0.0  ;;  %v14358_v52 = vmul.f32 %v14316_v42, %v14316_v42  ;;  %v14363_v13 = vmul.f32 0.015625, %v19844_v46  ;;  %v14366_v3 = vmul.f32 0.015625, %v19846_v16  ;;  %20044 = vst [vmem:[#allocation217_spill] sm:$0xff] %v14964_v18 }
 0x2b4   : > { %v14372_v15 = vmul.f32 %v14325_v30, %v14325_v30  ;;  %2558 = vadd.xlane.f32.xlu0 %v14096_v5  ;;  %v14379_v46 = vsel %vm1627_vm1, %v2262_v49, 0.0  ;;  %v2266_v16 = vmul.f32 %v13724_v20, %v13724_v20  ;;  %v14390_v5 = vsel %vm1627_vm1, %v2261_v34, 0.0  ;;  %v19854_v20 = vld [vmem:[#allocation97_spill] sm:$0xff] }
 0x2b5   : > { %19843 = vst [vmem:[#allocation157_spill] sm:$0xff] %v14358_v52  ;;  %19845 = vst [vmem:[#allocation94_spill] sm:$0xff] %v14363_v13  ;;  %10918 = vmatprep.mubr.msk.f32.mxu1 %vm1627_vm1, %v3595_v28  ;;  %2561 = vadd.xlane.f32.xlu1 %v14093_v40  ;;  %v2265_v28 = vmul.f32 %v13732_v60, %v13732_v60  ;;  %v14387_v47 = vpop.xlane.xlu0 %1977  ;;  %v2267_v49 = vmul.f32 %v19851_v9, %v19851_v9  ;;  %v14400_v19 = vmul.f32 0.015625, %v19854_v20  ;;  %v19859_v9 = vld [vmem:[#allocation20_spill] sm:$0xff]  ;;  %v19862_v40 = vld [vmem:[#allocation99_spill] sm:$0xff] }
 0x2b6   : > { %19847 = vst [vmem:[#allocation95_spill] sm:$0xff] %v14366_v3  ;;  %19848 = vst [vmem:[#allocation158_spill] sm:$0xff] %v14372_v15  ;;  %10919 = vmatmul.mubr.msk.f32.gmra.mrb[110].mxu1 %vm1627_vm1, %v3596_v24  ;;  %v14376_v21 = vpop.xlane.xlu1 %1980  ;;  %v19850_v24 = vld [vmem:[#allocation128_spill] sm:$0xff]  ;;  %v14403_v60 = vsel %vm1627_vm1, %v2264_v29, 0.0  ;;  %v14406_v32 = vsel %vm1627_vm1, %v2263_v43, 0.0  ;;  %v14410_v34 = vmul.f32 %v14363_v13, %v14363_v13  ;;  %v14419_v20 = vmul.f32 0.015625, %v19859_v9 }
 0x2b7   : > { %v2268_v42 = vmul.f32 %v19850_v24, %v19850_v24  ;;  %v19852_v15 = vld [vmem:[#allocation16_spill] sm:$0xff]  ;;  %19855 = vst [vmem:[#allocation97_spill] sm:$0xff] %v14400_v19  ;;  %v14425_v57 = vmul.f32 0.015625, %v19862_v40  ;;  %v14431_v30 = vsel %vm1627_vm1, %v2266_v16, 0.0  ;;  %v14434_v13 = vsel %vm1627_vm1, %v2265_v28, 0.0 }
 0x2b8   : > { %v14397_v52 = vmul.f32 0.015625, %v19852_v15  ;;  %19856 = vst [vmem:[#allocation159_spill] sm:$0xff] %v14410_v34  ;;  %v14416_v15 = vmul.f32 %v14366_v3, %v14366_v3  ;;  %19860 = vst [vmem:[#allocation20_spill] sm:$0xff] %v14419_v20  ;;  %2564 = vadd.xlane.f32.xlu0 %v14105_v50  ;;  %v19864_v9 = vld [vmem:[#allocation24_spill] sm:$0xff]  ;;  %v14448_v50 = vsel %vm1627_vm1, %v2267_v49, 0.0  ;;  %v14467_v49 = vmul.f32 %v14419_v20, %v14419_v20  ;;  %v19899_v20 = vld [vmem:[#allocation102_spill] sm:$0xff] }
 0x2b9   : > { %2567 = vadd.xlane.f32.xlu1 %v14102_v44  ;;  %19863 = vst [vmem:[#allocation99_spill] sm:$0xff] %v14425_v57  ;;  %v14437_v24 = vmul.f32 0.015625, %v19864_v9  ;;  %v19866_v44 = vld [vmem:[#allocation101_spill] sm:$0xff]  ;;  %v14442_v43 = vpop.xlane.xlu0 %1791  ;;  %v14445_v40 = vsel %vm1627_vm1, %v2268_v42, 0.0  ;;  %19869 = vst [vmem:[#allocation162_spill] sm:$0xff] %v14448_v50  ;;  %v14458_v9 = vmul.f32 %v14400_v19, %v14400_v19  ;;  %v19878_v50 = vld [vmem:[#allocation28_spill] sm:$0xff]  ;;  %v14477_v3 = vmul.f32 %v14425_v57, %v14425_v57 }
 0x2ba   : > { %19853 = vst [vmem:[#allocation16_spill] sm:$0xff] %v14397_v52  ;;  %19858 = vst [vmem:[#allocation160_spill] sm:$0xff] %v14416_v15  ;;  %v14428_v34 = vpop.xlane.xlu1 %1794  ;;  %v14440_v15 = vmul.f32 0.015625, %v19866_v44  ;;  %v14452_v16 = vmul.f32 %v14397_v52, %v14397_v52  ;;  %v19873_v44 = vld [vmem:[#allocation47_spill] sm:$0xff]  ;;  %v14482_v19 = vmul.f32 0.015625, %v19882_v7  ;;  %v19884_v42 = vld [vmem:[#allocation32_spill] sm:$0xff] }
 0x2bb   : > { %19865 = vst [vmem:[#allocation24_spill] sm:$0xff] %v14437_v24  ;;  %19868 = vst [vmem:[#allocation161_spill] sm:$0xff] %v14445_v40  ;;  %v14461_v29 = vmul.f32 0.015625, %v19873_v44  ;;  %v14472_v40 = vmul.f32 0.015625, %v19878_v50  ;;  %v14485_v28 = vmul.f32 0.015625, %v19884_v42  ;;  %v19892_v52 = vld [vmem:[#allocation36_spill] sm:$0xff] }
 0x2bc   : > { %19867 = vst [vmem:[#allocation101_spill] sm:$0xff] %v14440_v15  ;;  %19870 = vst [vmem:[#allocation163_spill] sm:$0xff] %v14452_v16  ;;  %v19887_v16 = vld [vmem:[#allocation145_spill] sm:$0xff]  ;;  %v14500_v7 = vmul.f32 %v14440_v15, %v14440_v15  ;;  %v14503_v42 = vmul.f32 0.015625, %v19892_v52  ;;  %v14974_v35 = vmul.f32 0.015625, %v14330_v26 }
 0x2bd   : > { %19872 = vst [vmem:[#allocation164_spill] sm:$0xff] %v14458_v9  ;;  %19874 = vst [vmem:[#allocation47_spill] sm:$0xff] %v14461_v29  ;;  %2573 = vadd.xlane.f32.xlu1 %v14113_v36  ;;  %2570 = vadd.xlane.f32.xlu0 %v19887_v16  ;;  %v14494_v36 = vmul.f32 %v14437_v24, %v14437_v24  ;;  %v14507_v44 = vpop.xlane.xlu0 %1983  ;;  %v14518_v9 = vmul.f32 0.015625, %v19899_v20  ;;  %v14522_v52 = vmul.f32 %v14472_v40, %v14472_v40  ;;  %v19907_v16 = vld [vmem:[#allocation146_spill] sm:$0xff] }
 0x2be   : > { %19876 = vst [vmem:[#allocation165_spill] sm:$0xff] %v14467_v49  ;;  %19879 = vst [vmem:[#allocation28_spill] sm:$0xff] %v14472_v40  ;;  %v14487_v49 = vpop.f32.mrb[76].mxu1  ;;  %v14490_v50 = vpop.xlane.xlu1 %1986  ;;  %v14535_v24 = vmul.f32 %v14482_v19, %v14482_v19  ;;  %v14541_v33 = vmul.f32 %v14485_v28, %v14485_v28 }
 0x2bf   : > { %19880 = vst [vmem:[#allocation166_spill] sm:$0xff] %v14477_v3  ;;  %19883 = vst [vmem:[#allocation58_spill] sm:$0xff] %v14482_v19  ;;  %v14505_v57 = vpop.f32.mrb[77].mxu1  ;;  %v19905_v3 = vld [vmem:[#allocation108_spill] sm:$0xff]  ;;  %v19918_v19 = vld [vmem:[#allocation118_spill] sm:$0xff] }
 0x2c0   : > { %19885 = vst [vmem:[#allocation32_spill] sm:$0xff] %v14485_v28  ;;  %19886 = vst [vmem:[#allocation167_spill] sm:$0xff] %v14487_v49  ;;  %v14530_v15 = vmul.f32 0.015625, %v19905_v3  ;;  %v14559_v20 = vmul.f32 0.015625, %v19918_v19  ;;  %v19934_v49 = vld [vmem:[#allocation73_spill] sm:$0xff]  ;;  %v19936_v19 = vld [vmem:[#allocation148_spill] sm:$0xff] }
 0x2c1   : > { %19888 = vst [vmem:[#allocation145_spill] sm:$0xff] %v14490_v50  ;;  %19889 = vst [vmem:[#allocation168_spill] sm:$0xff] %v14494_v36  ;;  %v14513_v36 = vmul.f32 %v14461_v29, %v14461_v29  ;;  %2579 = vadd.xlane.f32.xlu1 %v19907_v16  ;;  %v19923_v16 = vld [vmem:[#allocation120_spill] sm:$0xff]  ;;  %v14632_v28 = vld [vmem:[%s19167_s6] ss:$0 sm:$0xff] }
 0x2c2   : > { %19891 = vst [vmem:[#allocation169_spill] sm:$0xff] %v14500_v7  ;;  %19893 = vst [vmem:[#allocation36_spill] sm:$0xff] %v14503_v42  ;;  %v14547_v3 = vpop.xlane.xlu1 %1800  ;;  %v19932_v7 = vld [vmem:[#allocation126_spill] sm:$0xff] }
 0x2c3   : > { %19894 = vst [vmem:[#allocation170_spill] sm:$0xff] %v14505_v57  ;;  %19895 = vst [vmem:[#allocation171_spill] sm:$0xff] %v14507_v44  ;;  %v19903_v57 = vld [vmem:[#allocation106_spill] sm:$0xff]  ;;  %v19911_v44 = vld [vmem:[#allocation112_spill] sm:$0xff] }
 0x2c4   : > { %19897 = vst [vmem:[#allocation172_spill] sm:$0xff] %v14513_v36  ;;  %19900 = vst [vmem:[#allocation102_spill] sm:$0xff] %v14518_v9  ;;  %v14527_v50 = vmul.f32 0.015625, %v19903_v57  ;;  %v14544_v40 = vmul.f32 0.015625, %v19911_v44  ;;  %v19913_v57 = vld [vmem:[#allocation147_spill] sm:$0xff]  ;;  %v14567_v36 = vmul.f32 %v14518_v9, %v14518_v9 }
 0x2c5   : > { %19901 = vst [vmem:[#allocation173_spill] sm:$0xff] %v14522_v52  ;;  %19906 = vst [vmem:[#allocation108_spill] sm:$0xff] %v14530_v15  ;;  %2576 = vadd.xlane.f32.xlu0 %v19913_v57  ;;  %v19916_v52 = vld [vmem:[#allocation114_spill] sm:$0xff]  ;;  %v14582_v57 = vmul.f32 %v14530_v15, %v14530_v15  ;;  %2585 = vadd.xlane.f32.xlu1 %v14141_v58 }
 0x2c6   : > { %19904 = vst [vmem:[#allocation106_spill] sm:$0xff] %v14527_v50  ;;  %19908 = vst [vmem:[#allocation146_spill] sm:$0xff] %v14535_v24  ;;  %v14553_v24 = vmul.f32 %v14503_v42, %v14503_v42  ;;  %v14556_v29 = vmul.f32 0.015625, %v19916_v52  ;;  %v14576_v52 = vmul.f32 %v14527_v50, %v14527_v50  ;;  %v19928_v42 = vld [vmem:[#allocation124_spill] sm:$0xff]  ;;  %v14592_v9 = vmul.f32 %v14544_v40, %v14544_v40  ;;  %v19945_v58 = vld [vmem:[#allocation74_spill] sm:$0xff] }
 0x2c7   : > { %19910 = vst [vmem:[#allocation174_spill] sm:$0xff] %v14541_v33  ;;  %19912 = vst [vmem:[#allocation112_spill] sm:$0xff] %v14544_v40  ;;  %v14561_v33 = vpop.xlane.xlu0 %1797  ;;  %v14585_v44 = vmul.f32 0.015625, %v19928_v42  ;;  %v14598_v50 = vmul.f32 0.015625, %v19934_v49  ;;  %v14624_v40 = vmul.f32 0.015625, %v19945_v58  ;;  %v19947_v42 = vld [vmem:[#allocation79_spill] sm:$0xff] }
 0x2c8   : > { %19915 = vst [vmem:[#allocation147_spill] sm:$0xff] %v14553_v24  ;;  %19917 = vst [vmem:[#allocation114_spill] sm:$0xff] %v14556_v29  ;;  %v14572_v24 = vmul.f32 0.015625, %v19923_v16  ;;  %v14607_v16 = vmul.f32 %v14556_v29, %v14556_v29  ;;  %v19952_v58 = vld [vmem:[#allocation80_spill] sm:$0xff]  ;;  %v20068_v11 = vld [vmem:[#allocation145_spill] sm:$0xff] }
 0x2c9   : > { %19919 = vst [vmem:[#allocation118_spill] sm:$0xff] %v14559_v20  ;;  %19921 = vst [vmem:[#allocation175_spill] sm:$0xff] %v14567_v36  ;;  %2582 = vadd.xlane.f32.xlu0 %v19936_v19  ;;  %2591 = vadd.xlane.f32.xlu1 %v14152_v2  ;;  %v14654_v15 = vmul.f32 %v14598_v50, %v14598_v50  ;;  %v14659_v19 = vpop.f32.mrb[78].mxu1 }
 0x2ca   : > { %19924 = vst [vmem:[#allocation120_spill] sm:$0xff] %v14572_v24  ;;  %19925 = vst [vmem:[#allocation176_spill] sm:$0xff] %v14576_v52  ;;  %v14595_v52 = vmul.f32 0.015625, %v19932_v7  ;;  %v14613_v7 = vmul.f32 %v14559_v20, %v14559_v20  ;;  %v14621_v36 = vmul.f32 %v14572_v24, %v14572_v24  ;;  %v19957_v24 = vld [vmem:[#allocation85_spill] sm:$0xff]  ;;  %v19962_v20 = vld [vmem:[#allocation86_spill] sm:$0xff] }
 0x2cb   : > { %19927 = vst [vmem:[#allocation177_spill] sm:$0xff] %v14582_v57  ;;  %19929 = vst [vmem:[#allocation124_spill] sm:$0xff] %v14585_v44  ;;  %v14601_v57 = vpop.xlane.xlu1 %1992  ;;  %v14615_v49 = vpop.xlane.xlu0 %1989  ;;  %v14657_v29 = vmul.f32 0.015625, %v19957_v24 }
 0x2cc   : > { %19931 = vst [vmem:[#allocation178_spill] sm:$0xff] %v14592_v9  ;;  %19933 = vst [vmem:[#allocation126_spill] sm:$0xff] %v14595_v52  ;;  %v14638_v9 = vmul.f32 %v14585_v44, %v14585_v44 }
 0x2cd   : > { %19935 = vst [vmem:[#allocation73_spill] sm:$0xff] %v14598_v50  ;;  %19937 = vst [vmem:[#allocation148_spill] sm:$0xff] %v14601_v57  ;;  %2588 = vadd.xlane.f32.xlu0 %v14155_v14  ;;  %v14683_v14 = vmul.f32 %v14624_v40, %v14624_v40  ;;  %2597 = vadd.xlane.f32.xlu1 %v14165_v23 }
 0x2ce   : > { %19939 = vst [vmem:[#allocation179_spill] sm:$0xff] %v14607_v16  ;;  %19941 = vst [vmem:[#allocation180_spill] sm:$0xff] %v14613_v7  ;;  %v14627_v16 = vmul.f32 0.015625, %v19947_v42  ;;  %v14648_v42 = vmul.f32 %v14595_v52, %v14595_v52  ;;  %v19966_v7 = vld [vmem:[#allocation132_spill] sm:$0xff] }
 0x2cf   : > { %19942 = vst [vmem:[#allocation181_spill] sm:$0xff] %v14615_v49  ;;  %19944 = vst [vmem:[#allocation182_spill] sm:$0xff] %v14621_v36  ;;  %v14643_v36 = vmul.f32 0.015625, %v19952_v58  ;;  %v14662_v58 = vpop.xlane.xlu1 %1806  ;;  %v19964_v49 = vld [vmem:[#allocation131_spill] sm:$0xff]  ;;  %v14675_v24 = vadd.f32 %v14632_v28, %v19966_v7 }
 0x2d0   : > { %19946 = vst [vmem:[#allocation74_spill] sm:$0xff] %v14624_v40  ;;  %19948 = vst [vmem:[#allocation79_spill] sm:$0xff] %v14627_v16  ;;  %v14671_v52 = vadd.f32 %v19964_v49, %v14632_v28  ;;  %v14689_v50 = vmul.f32 %v14627_v16, %v14627_v16  ;;  %v19973_v49 = vld [vmem:[#allocation91_spill] sm:$0xff] }
 0x2d1   : > { %19950 = vst [vmem:[#allocation183_spill] sm:$0xff] %v14638_v9  ;;  %19953 = vst [vmem:[#allocation80_spill] sm:$0xff] %v14643_v36  ;;  %v14679_v9 = vpop.xlane.xlu0 %1803  ;;  %v14692_v2 = vmul.f32 0.015625, %v19973_v49  ;;  %v19984_v7 = vld [vmem:[#allocation135_spill] sm:$0xff]  ;;  %2594 = vadd.xlane.f32.xlu0 %v14171_v17  ;;  %2603 = vadd.xlane.f32.xlu1 %v14219_v22 }
 0x2d2   : > { %19954 = vst [vmem:[#allocation184_spill] sm:$0xff] %v14648_v42  ;;  %19956 = vst [vmem:[#allocation185_spill] sm:$0xff] %v14654_v15  ;;  %v14667_v42 = vmul.f32 0.015625, %v19962_v20  ;;  %v14677_v15 = vpop.f32.mrb[79].mxu1  ;;  %v14708_v20 = vmul.f32 %v14657_v29, %v14657_v29  ;;  %v14718_v44 = vadd.f32 %v14632_v28, %v19984_v7  ;;  %v5294_v7 = vmul.f32 %v14671_v52, %v14671_v52 }
 0x2d3   : > { %19958 = vst [vmem:[#allocation85_spill] sm:$0xff] %v14657_v29  ;;  %19959 = vst [vmem:[#allocation186_spill] sm:$0xff] %v14659_v19  ;;  %v19982_v19 = vld [vmem:[#allocation133_spill] sm:$0xff]  ;;  %v14740_v49 = vmul.f32 %v14692_v2, %v14692_v2  ;;  %v14756_v17 = vsel %vm1627_vm1, %v14671_v52, 0.0 }
 0x2d4   : > { %19960 = vst [vmem:[#allocation187_spill] sm:$0xff] %v14662_v58  ;;  %19963 = vst [vmem:[#allocation86_spill] sm:$0xff] %v14667_v42  ;;  %v14714_v16 = vadd.f32 %v19982_v19, %v14632_v28  ;;  %v14725_v23 = vmul.f32 %v14667_v42, %v14667_v42  ;;  %v5293_v19 = vmul.f32 %v14675_v24, %v14675_v24  ;;  %v14760_v42 = vsel %vm1627_vm1, %v14675_v24, 0.0 }
 0x2d5   : > { %19965 = vst [vmem:[#allocation131_spill] sm:$0xff] %v14671_v52  ;;  %19967 = vst [vmem:[#allocation132_spill] sm:$0xff] %v14675_v24  ;;  %v14730_v40 = vpop.xlane.xlu0 %1995  ;;  %2600 = vadd.xlane.f32.xlu0 %v14237_v38  ;;  %v5295_v22 = vmul.f32 %v14718_v44, %v14718_v44  ;;  %v14790_v38 = vsel %vm1627_vm1, %v5294_v7, 0.0  ;;  %v20013_v7 = vld [vmem:[#allocation141_spill] sm:$0xff]  ;;  %2609 = vadd.xlane.f32.xlu1 %v14261_v4 }
 0x2d6   : > { %19968 = vst [vmem:[#allocation188_spill] sm:$0xff] %v14677_v15  ;;  %19969 = vst [vmem:[#allocation189_spill] sm:$0xff] %v14679_v9  ;;  %v14698_v15 = vmul.f32 %v14643_v36, %v14643_v36  ;;  %v19978_v9 = vld [vmem:[#allocation130_spill] sm:$0xff]  ;;  %v5296_v52 = vmul.f32 %v14714_v16, %v14714_v16 }
 0x2d7   : > { %19970 = vst [vmem:[#allocation190_spill] sm:$0xff] %v14683_v14  ;;  %19972 = vst [vmem:[#allocation191_spill] sm:$0xff] %v14689_v50  ;;  %v14703_v58 = vmul.f32 0.015625, %v19978_v9  ;;  %v14721_v9 = vpop.xlane.xlu1 %1998  ;;  %v19988_v14 = vld [vmem:[#allocation134_spill] sm:$0xff] }
 0x2d8   : > { %19974 = vst [vmem:[#allocation91_spill] sm:$0xff] %v14692_v2  ;;  %19976 = vst [vmem:[#allocation192_spill] sm:$0xff] %v14698_v15  ;;  %v14728_v36 = vmul.f32 0.015625, %v19988_v14  ;;  %v19994_v14 = vld [vmem:[#allocation136_spill] sm:$0xff]  ;;  %v20001_v2 = vld [vmem:[#allocation139_spill] sm:$0xff] }
 0x2d9   : > { %19979 = vst [vmem:[#allocation130_spill] sm:$0xff] %v14703_v58  ;;  %19980 = vst [vmem:[#allocation193_spill] sm:$0xff] %v14708_v20  ;;  %v14745_v20 = vmul.f32 0.015625, %v19994_v14  ;;  %v14749_v15 = vmul.f32 %v14703_v58, %v14703_v58  ;;  %v19999_v14 = vld [vmem:[#allocation137_spill] sm:$0xff]  ;;  %v14768_v57 = vadd.f32 %v14632_v28, %v20001_v2  ;;  %v14784_v50 = vpop.xlane.xlu0 %1809  ;;  %v14787_v2 = vsel %vm1627_vm1, %v5293_v19, 0.0  ;;  %2606 = vadd.xlane.f32.xlu0 %v14270_v59  ;;  %v20022_v19 = vld [vmem:[#allocation142_spill] sm:$0xff] }
 0x2da   : > { %19983 = vst [vmem:[#allocation133_spill] sm:$0xff] %v14714_v16  ;;  %19985 = vst [vmem:[#allocation135_spill] sm:$0xff] %v14718_v44  ;;  %v14779_v24 = vmul.f32 %v14728_v36, %v14728_v36  ;;  %v14842_v29 = vmul.f32 0.015625, %v20022_v19  ;;  %2615 = vadd.xlane.f32.xlu1 %v14273_v53 }
 0x2db   : > { %19986 = vst [vmem:[#allocation194_spill] sm:$0xff] %v14721_v9  ;;  %19987 = vst [vmem:[#allocation195_spill] sm:$0xff] %v14725_v23  ;;  %v14764_v23 = vadd.f32 %v19999_v14, %v14632_v28  ;;  %v20004_v14 = vld [vmem:[#allocation138_spill] sm:$0xff]  ;;  %v20010_v9 = vld [vmem:[#allocation140_spill] sm:$0xff]  ;;  %v14863_v19 = vsel %vm1627_vm1, %v14768_v57, 0.0 }
 0x2dc   : > { %19989 = vst [vmem:[#allocation134_spill] sm:$0xff] %v14728_v36  ;;  %19990 = vst [vmem:[#allocation196_spill] sm:$0xff] %v14730_v40  ;;  %v14771_v40 = vpop.xlane.xlu1 %1812  ;;  %v14782_v58 = vmul.f32 0.015625, %v20004_v14  ;;  %v14803_v14 = vsel %vm1627_vm1, %v14714_v16, 0.0  ;;  %v14820_v36 = vpop.f32.mrb[80].mxu1 }
 0x2dd   : > { %19992 = vst [vmem:[#allocation197_spill] sm:$0xff] %v14740_v49  ;;  %19995 = vst [vmem:[#allocation136_spill] sm:$0xff] %v14745_v20  ;;  %v14796_v49 = vmul.f32 %v14745_v20, %v14745_v20  ;;  %v5298_v4 = vmul.f32 %v14764_v23, %v14764_v23  ;;  %2612 = vadd.xlane.f32.xlu0 %v14289_v41 }
 0x2de   : > { %19996 = vst [vmem:[#allocation198_spill] sm:$0xff] %v14749_v15  ;;  %19998 = vst [vmem:[#allocation199_spill] sm:$0xff] %v14760_v42  ;;  %v20015_v42 = vld [vmem:[#allocation143_spill] sm:$0xff]  ;;  %2621 = vadd.xlane.f32.xlu1 %v14305_v61 }
 0x2df   : > { %20000 = vst [vmem:[#allocation137_spill] sm:$0xff] %v14764_v23  ;;  %20002 = vst [vmem:[#allocation139_spill] sm:$0xff] %v14768_v57  ;;  %v14813_v15 = vadd.f32 %v14632_v28, %v20015_v42  ;;  %v5297_v42 = vmul.f32 %v14768_v57, %v14768_v57  ;;  %v14882_v57 = vadd.f32 %v14632_v28, %v14199_v55  ;;  %v14891_v53 = vsel %vm1627_vm1, %v5298_v4, 0.0 }
 0x2e0   : > { %20003 = vst [vmem:[#allocation200_spill] sm:$0xff] %v14779_v24  ;;  %20005 = vst [vmem:[#allocation138_spill] sm:$0xff] %v14782_v58  ;;  %v14799_v24 = vmul.f32 0.015625, %v20010_v9  ;;  %v14818_v9 = vsel %vm1627_vm1, %v14718_v44, 0.0  ;;  %v14823_v16 = vpop.xlane.xlu1 %2004  ;;  %v14837_v44 = vmul.f32 %v14782_v58, %v14782_v58  ;;  %v20030_v58 = vld [vmem:[#allocation43_spill] sm:$0xff]  ;;  %v14900_v55 = vmul.f32 0.015625, %v14186_v31 }
 0x2e1   : > { %20006 = vst [vmem:[#allocation201_spill] sm:$0xff] %v14787_v2  ;;  %20007 = vst [vmem:[#allocation202_spill] sm:$0xff] %v14790_v38  ;;  %v14809_v38 = vadd.f32 %v20013_v7, %v14632_v28  ;;  %v14826_v2 = vsel %vm1627_vm1, %v5295_v22, 0.0  ;;  %v14829_v7 = vsel %vm1627_vm1, %v5296_v52, 0.0  ;;  %v14844_v22 = vpop.f32.mrb[81].mxu1  ;;  %v14846_v52 = vpop.xlane.xlu0 %2001  ;;  %v14866_v59 = vmul.f32 0.015625, %v20030_v58  ;;  %2618 = vadd.xlane.f32.xlu0 %v14320_v48 }
 0x2e2   : > { %20009 = vst [vmem:[#allocation203_spill] sm:$0xff] %v14796_v49  ;;  %20011 = vst [vmem:[#allocation140_spill] sm:$0xff] %v14799_v24  ;;  %v14850_v49 = vsel %vm1627_vm1, %v14764_v23, 0.0  ;;  %v14870_v23 = vadd.f32 %v14183_v1, %v14632_v28  ;;  %v14888_v1 = vsel %vm1627_vm1, %v5297_v42, 0.0  ;;  %v14919_v31 = vsel %vm1627_vm1, %v14813_v15, 0.0  ;;  %2627 = vadd.xlane.f32.xlu1 %v14347_v56  ;;  %v14992_v26 = vpop.f32.mrb[82].mxu1 }
 0x2e3   : > { %20014 = vst [vmem:[#allocation141_spill] sm:$0xff] %v14809_v38  ;;  %20016 = vst [vmem:[#allocation143_spill] sm:$0xff] %v14813_v15  ;;  %v14906_v41 = vsel %vm1627_vm1, %v14809_v38, 0.0 }
 0x2e4   : > { %20017 = vst [vmem:[#allocation204_spill] sm:$0xff] %v14820_v36  ;;  %20018 = vst [vmem:[#allocation205_spill] sm:$0xff] %v14823_v16  ;;  %v14854_v36 = vmul.f32 %v14799_v24, %v14799_v24  ;;  %v20032_v16 = vld [vmem:[#allocation44_spill] sm:$0xff]  ;;  %v14885_v58 = vpop.xlane.xlu1 %1818  ;;  %v5302_v4 = vmul.f32 %v14870_v23, %v14870_v23 }
 0x2e5   : > { %20019 = vst [vmem:[#allocation206_spill] sm:$0xff] %v14829_v7  ;;  %20020 = vst [vmem:[#allocation207_spill] sm:$0xff] %v14837_v44  ;;  %v20028_v7 = vld [vmem:[#allocation144_spill] sm:$0xff]  ;;  %v14878_v24 = vmul.f32 0.015625, %v20032_v16  ;;  %v14895_v44 = vmul.f32 %v14842_v29, %v14842_v29  ;;  %v2830_v16 = vmul.f32 %v14866_v59, %v14866_v59  ;;  %2624 = vadd.xlane.f32.xlu0 %v14350_v63 }
 0x2e6   : > { %20023 = vst [vmem:[#allocation142_spill] sm:$0xff] %v14842_v29  ;;  %20024 = vst [vmem:[#allocation208_spill] sm:$0xff] %v14844_v22  ;;  %v14859_v20 = vmul.f32 0.015625, %v20028_v7  ;;  %v5300_v7 = vmul.f32 %v14809_v38, %v14809_v38  ;;  %v15010_v63 = vmul.f32 %v14964_v18, %v14964_v18  ;;  %2633 = vadd.xlane.f32.xlu1 %v14379_v46 }
 0x2e7   : > { %20025 = vst [vmem:[#allocation209_spill] sm:$0xff] %v14846_v52  ;;  %20026 = vst [vmem:[#allocation210_spill] sm:$0xff] %v14854_v36  ;;  %v5299_v36 = vmul.f32 %v14813_v15, %v14813_v15  ;;  %v14902_v52 = vpop.xlane.xlu0 %1815  ;;  %v2829_v15 = vmul.f32 %v14878_v24, %v14878_v24 }
 0x2e8   : > { %20029 = vst [vmem:[#allocation144_spill] sm:$0xff] %v14859_v20  ;;  %20031 = vst [vmem:[#allocation43_spill] sm:$0xff] %v14870_v23  ;;  %v14910_v42 = vmul.f32 %v14859_v20, %v14859_v20  ;;  %v14928_v29 = vsel %vm1627_vm1, %v5300_v7, 0.0  ;;  %v14940_v61 = vpop.xlane.xlu1 %2010  ;;  %v20040_v7 = vld [vmem:[#allocation64_spill] sm:$0xff]  ;;  %v14971_v20 = vmul.f32 0.015625, %v14302_v25  ;;  %v14990_v25 = vadd.f32 %v14327_v12, %v14632_v28  ;;  %v15006_v12 = vpop.f32.mrb[83].mxu1 }
 0x2e9   : > { %20033 = vst [vmem:[#allocation44_spill] sm:$0xff] %v14882_v57  ;;  %20034 = vst [vmem:[#allocation211_spill] sm:$0xff] %v14895_v44  ;;  %v14915_v44 = vmul.f32 0.015625, %v14201_v27  ;;  %v14925_v38 = vsel %vm1627_vm1, %v5299_v36, 0.0  ;;  %v20038_v27 = vld [vmem:[#allocation62_spill] sm:$0xff]  ;;  %v5301_v36 = vmul.f32 %v14882_v57, %v14882_v57  ;;  %2630 = vadd.xlane.f32.xlu0 %v14390_v5 }
 0x2ea   : > { %20035 = vst [vmem:[#allocation212_spill] sm:$0xff] %v14900_v55  ;;  %20036 = vst [vmem:[#allocation213_spill] sm:$0xff] %v14910_v42  ;;  %v14948_v42 = vmul.f32 %v14900_v55, %v14900_v55  ;;  %v14979_v55 = vsel %vm1627_vm1, %v14882_v57, 0.0  ;;  %v15019_v37 = vmul.f32 %v14971_v20, %v14971_v20  ;;  %2639 = vadd.xlane.f32.xlu1 %v14403_v60 }
 0x2eb   : > { %20037 = vst [vmem:[#allocation214_spill] sm:$0xff] %v14915_v44  ;;  %20039 = vst [vmem:[#allocation62_spill] sm:$0xff] %v14940_v61  ;;  %v14955_v22 = vpop.xlane.xlu0 %2007  ;;  %v14959_v48 = vmul.f32 %v14915_v44, %v14915_v44  ;;  %v14982_v61 = vsel %vm1627_vm1, %v5302_v4, 0.0  ;;  %v14996_v57 = vsel %vm1627_vm1, %v5301_v36, 0.0  ;;  %v2831_v4 = vmul.f32 %v14953_v0, %v14953_v0 }
 0x2ec   : > { %20041 = vst [vmem:[#allocation64_spill] sm:$0xff] %v14948_v42  ;;  %20042 = vst [vmem:[#allocation215_spill] sm:$0xff] %v14955_v22  ;;  %v14968_v42 = vsel %vm1627_vm1, %v14870_v23, 0.0  ;;  %v20047_v23 = vld [vmem:[#allocation68_spill] sm:$0xff]  ;;  %v2418_v56 = vpop.xlane.xlu1 %2417  ;;  %v15004_v44 = vadd.f32 %v14632_v28, %v14340_v8  ;;  %v15015_v22 = vmul.f32 0.015625, %v14342_v54  ;;  %v5304_v8 = vmul.f32 %v14990_v25, %v14990_v25 }
 0x2ed   : > { %20043 = vst [vmem:[#allocation216_spill] sm:$0xff] %v14959_v48  ;;  %20045 = vst [vmem:[#allocation218_spill] sm:$0xff] %v14971_v20  ;;  %v2702_v48 = vmul.f32 0.015625, %v2418_v56  ;;  %v2834_v56 = vmul.f32 %v14974_v35, %v14974_v35  ;;  %v15036_v20 = vmul.f32 0.015625, %v14376_v21  ;;  %2636 = vadd.xlane.f32.xlu0 %v14406_v32 }
 0x2ee   : > { %20046 = vst [vmem:[#allocation219_spill] sm:$0xff] %v14982_v61  ;;  %20048 = vst [vmem:[#allocation68_spill] sm:$0xff] %v14990_v25  ;;  %v5303_v36 = vmul.f32 %v15004_v44, %v15004_v44  ;;  %v2833_v5 = vmul.f32 %v15015_v22, %v15015_v22  ;;  %2645 = vadd.xlane.f32.xlu1 %v14431_v30 }
 0x2ef   : > { %20049 = vst [vmem:[#allocation220_spill] sm:$0xff] %v14992_v26  ;;  %20051 = vst [vmem:[#allocation103_spill] sm:$0xff] %v15004_v44  ;;  %v2415_v26 = vpop.xlane.xlu0 %2414 }
 0x2f0   : > { %20052 = vst [vmem:[#allocation221_spill] sm:$0xff] %v15006_v12  ;;  %20053 = vst [vmem:[#allocation222_spill] sm:$0xff] %v15010_v63  ;;  %v2701_v61 = vmul.f32 0.015625, %v2415_v26  ;;  %v2958_v12 = vsub.f32 %v2702_v48, %v2830_v16  ;;  %v20055_v63 = vld [vmem:[#allocation39_spill] sm:$0xff]  ;;  %v2424_v54 = vpop.xlane.xlu1 %2423  ;;  %v15031_v26 = vsel %vm1627_vm1, %v14990_v25, 0.0 }
 0x2f1   : > { %20054 = vst [vmem:[#allocation223_spill] sm:$0xff] %v15019_v37  ;;  %20056 = vst [vmem:[#allocation39_spill] sm:$0xff] %v15036_v20  ;;  %v2704_v48 = vmul.f32 0.015625, %v2424_v54  ;;  %v15045_v37 = vmul.f32 0.015625, %v14387_v47  ;;  %v15053_v54 = vmul.f32 0.015625, %v14428_v34  ;;  %v15061_v47 = vmul.f32 %v15036_v20, %v15036_v20  ;;  %2642 = vadd.xlane.f32.xlu0 %v14434_v13  ;;  %v20066_v13 = vld [vmem:[#allocation167_spill] sm:$0xff] }
 0x2f2   : > { %v2957_v18 = vsub.f32 %v2701_v61, %v2829_v15  ;;  %v3214_v16 = vadd.f32 1e-05, %v2958_v12  ;;  %v20057_v15 = vld [vmem:[#allocation40_spill] sm:$0xff]  ;;  %v15050_v12 = vsel %vm1627_vm1, %v15004_v44, 0.0 }
 0x2f3   : > { %v2421_v46 = vpop.xlane.xlu0 %2420  ;;  %20058 = vst [vmem:[#allocation40_spill] sm:$0xff] %v15045_v37  ;;  %v2960_v21 = vsub.f32 %v2704_v48, %v2832_v51  ;;  %20060 = vst [vmem:[#allocation225_spill] sm:$0xff] %v15061_v47  ;;  %v15064_v48 = vsel %vm1627_vm1, %v5303_v36, 0.0  ;;  %v2836_v36 = vmul.f32 %v15053_v54, %v15053_v54  ;;  %v20074_v47 = vld [vmem:[#allocation189_spill] sm:$0xff] }
 0x2f4   : > { %v3213_v6 = vadd.f32 1e-05, %v2957_v18  ;;  %v2703_v39 = vmul.f32 0.015625, %v2421_v46  ;;  %11424 = vrsqrt.f32 %v3214_v16  ;;  %v2430_v18 = vpop.xlane.xlu1 %2429  ;;  %v15057_v46 = vsel %vm1627_vm1, %v5304_v8, 0.0 }
 0x2f5   : > { %20059 = vst [vmem:[#allocation224_spill] sm:$0xff] %v15057_v46  ;;  %v3216_v60 = vadd.f32 1e-05, %v2960_v21  ;;  %v2706_v51 = vmul.f32 0.015625, %v2430_v18  ;;  %v15077_v18 = vpop.f32.mrb[84].mxu1 }
 0x2f6   : > { %11426 = vrsqrt.f32 %v3213_v6  ;;  %v2959_v25 = vsub.f32 %v2703_v39, %v2831_v4  ;;  %v15069_v39 = vmul.f32 0.015625, %v14442_v43  ;;  %v15073_v4 = vmul.f32 %v15045_v37, %v15045_v37  ;;  %20062 = vst [vmem:[#allocation227_spill] sm:$0xff] %v15077_v18 }
 0x2f7   : > { %v2427_v16 = vpop.xlane.xlu0 %2426  ;;  %11428 = vrsqrt.f32 %v3216_v60  ;;  %v2962_v21 = vsub.f32 %v2706_v51, %v2834_v56  ;;  %v15083_v43 = vmul.f32 0.015625, %v14547_v3  ;;  %v20064_v60 = vld [vmem:[#allocation110_spill] sm:$0xff]  ;;  %v15091_v51 = vmul.f32 0.015625, %v14561_v33 }
 0x2f8   : > { %v3215_v32 = vadd.f32 1e-05, %v2959_v25  ;;  %v2705_v34 = vmul.f32 0.015625, %v2427_v16  ;;  %20061 = vst [vmem:[#allocation226_spill] sm:$0xff] %v15073_v4  ;;  %v15085_v16 = vpop.f32.mrb[85].mxu1  ;;  %v2436_v6 = vpop.xlane.xlu1 %2435  ;;  %v2835_v3 = vmul.f32 %v15069_v39, %v15069_v39  ;;  %v15099_v37 = vadd.f32 %v20066_v13, %v14632_v28 }
 0x2f9   : > { %20063 = vst [vmem:[#allocation228_spill] sm:$0xff] %v15085_v16  ;;  %v3218_v30 = vadd.f32 1e-05, %v2962_v21  ;;  %v2708_v8 = vmul.f32 0.015625, %v2436_v6  ;;  %v15102_v56 = vmul.f32 0.015625, %v20068_v11  ;;  %v20069_v21 = vld [vmem:[#allocation161_spill] sm:$0xff]  ;;  %v2837_v11 = vmul.f32 %v15091_v51, %v15091_v51 }
 0x2fa   : > { %11430 = vrsqrt.f32 %v3215_v32  ;;  %v2961_v25 = vsub.f32 %v2705_v34, %v2833_v5  ;;  %v20065_v32 = vld [vmem:[#allocation111_spill] sm:$0xff]  ;;  %20067 = vst [vmem:[#allocation110_spill] sm:$0xff] %v15099_v37  ;;  %2651 = vadd.xlane.f32.xlu1 %v20069_v21  ;;  %v20070_v6 = vld [vmem:[#allocation170_spill] sm:$0xff]  ;;  %v2838_v5 = vmul.f32 %v15083_v43, %v15083_v43  ;;  %v15118_v16 = vmul.f32 0.015625, %v20074_v47 }
 0x2fb   : > { %v2433_v61 = vpop.xlane.xlu0 %2432  ;;  %11432 = vrsqrt.f32 %v3218_v30  ;;  %v2964_v33 = vsub.f32 %v2708_v8, %v2836_v36  ;;  %v15107_v20 = vadd.f32 %v14632_v28, %v20070_v6  ;;  %v20073_v30 = vld [vmem:[#allocation187_spill] sm:$0xff]  ;;  %v15131_v47 = vmul.f32 0.015625, %v14784_v50 }
 0x2fc   : > { %v3217_v34 = vadd.f32 1e-05, %v2961_v25  ;;  %v2707_v44 = vmul.f32 0.015625, %v2433_v61  ;;  %v20072_v25 = vld [vmem:[#allocation162_spill] sm:$0xff]  ;;  %v2442_v13 = vpop.xlane.xlu1 %2441  ;;  %v15115_v8 = vmul.f32 0.015625, %v20073_v30 }
 0x2fd   : > { %20071 = vst [vmem:[#allocation111_spill] sm:$0xff] %v15107_v20  ;;  %2648 = vadd.xlane.f32.xlu0 %v20072_v25  ;;  %v3220_v36 = vadd.f32 1e-05, %v2964_v33  ;;  %v2710_v21 = vmul.f32 0.015625, %v2442_v13  ;;  %v15124_v25 = vmul.f32 0.015625, %v14771_v40  ;;  %v20076_v33 = vsub.f32 %v20040_v7, %v14878_v24 }
 0x2fe   : > { %11434 = vrsqrt.f32 %v3217_v34  ;;  %v2963_v61 = vsub.f32 %v2707_v44, %v2835_v3  ;;  %v11425_v62 = vpop.eup %11424  ;;  %v20075_v44 = vsub.f32 %v20038_v27, %v14866_v59  ;;  %4785 = vadd.xlane.f32.xlu1 %v14756_v17  ;;  %v2840_v40 = vmul.f32 %v15115_v8, %v15115_v8 }
 0x2ff   : > { %v2439_v4 = vpop.xlane.xlu0 %2438  ;;  %11436 = vrsqrt.f32 %v3220_v36  ;;  %v2966_v46 = vsub.f32 %v2710_v21, %v2838_v5  ;;  %v2839_v24 = vmul.f32 %v15118_v16, %v15118_v16 }
 0x300   : > { %v11427_v6 = vpop.eup %11426  ;;  %v3219_v18 = vadd.f32 1e-05, %v2963_v61  ;;  %v2709_v34 = vmul.f32 0.015625, %v2439_v4  ;;  %v3470_v3 = vmul.f32 %v11425_v62, %v20075_v44  ;;  %v20077_v61 = vld [vmem:[#allocation199_spill] sm:$0xff]  ;;  %v2448_v59 = vpop.xlane.xlu1 %2447 }
 0x301   : > { %v3469_v13 = vmul.f32 %v11427_v6, %v20076_v33  ;;  %4782 = vadd.xlane.f32.xlu0 %v20077_v61  ;;  %v11429_v27 = vpop.eup %11428  ;;  %v3222_v5 = vadd.f32 1e-05, %v2966_v46  ;;  %v2712_v30 = vmul.f32 0.015625, %v2448_v59  ;;  %v2842_v6 = vmul.f32 %v15124_v25, %v15124_v25  ;;  %v15143_v44 = vpop.f32.mrb[86].mxu1  ;;  %v20079_v46 = vld [vmem:[#allocation201_spill] sm:$0xff] }
 0x302   : > { %11438 = vrsqrt.f32 %v3219_v18  ;;  %v2965_v4 = vsub.f32 %v2709_v34, %v2837_v11  ;;  %v3598_v62 = vmax.f32 %v3470_v3, 0.0  ;;  %v20078_v18 = vsub.f32 %v20047_v23, %v14937_v45  ;;  %5422 = vadd.xlane.f32.xlu1 %v20079_v46  ;;  %v15152_v23 = vpop.f32.mrb[87].mxu1 }
 0x303   : > { %v2445_v17 = vpop.xlane.xlu0 %2444  ;;  %v3597_v36 = vmax.f32 %v3469_v13, 0.0  ;;  %11440 = vrsqrt.f32 %v3222_v5  ;;  %v2968_v34 = vsub.f32 %v2712_v30, %v2840_v40  ;;  %v20080_v3 = vsub.f32 %v20050_v10, %v14953_v0 }
 0x304   : > { %v11431_v21 = vpop.eup %11430  ;;  %v3221_v50 = vadd.f32 1e-05, %v2965_v4  ;;  %v2711_v7 = vmul.f32 0.015625, %v2445_v17  ;;  %v3472_v11 = vmul.f32 %v11429_v27, %v20078_v18  ;;  %v2841_v13 = vmul.f32 %v15131_v47, %v15131_v47  ;;  %v20081_v4 = vld [vmem:[#allocation202_spill] sm:$0xff]  ;;  %v2454_v61 = vpop.xlane.xlu1 %2453 }
 0x305   : > { %10921 = vmatprep.mubr.msk.f32.mxu1 %vm1627_vm1, %v3597_v36  ;;  %v3471_v33 = vmul.f32 %v11431_v21, %v20080_v3  ;;  %5425 = vadd.xlane.f32.xlu0 %v20081_v4  ;;  %v11433_v27 = vpop.eup %11432  ;;  %v15157_v40 = vmul.f32 0.015625, %v14885_v58  ;;  %v3224_v5 = vadd.f32 1e-05, %v2968_v34  ;;  %v2714_v10 = vmul.f32 0.015625, %v2454_v61 }
 0x306   : > { %11442 = vrsqrt.f32 %v3221_v50  ;;  %v2967_v45 = vsub.f32 %v2711_v7, %v2839_v24  ;;  %10922 = vmatmul.mubr.msk.f32.gmra.mrb[112].mxu1 %vm1627_vm1, %v3598_v62  ;;  %v3600_v59 = vmax.f32 %v3472_v11, 0.0  ;;  %v15160_v36 = vmul.f32 0.015625, %v14902_v52  ;;  %v20083_v7 = vld [vmem:[#allocation171_spill] sm:$0xff]  ;;  %4791 = vadd.xlane.f32.xlu1 %v14803_v14 }
 0x307   : > { %v2451_v0 = vpop.xlane.xlu0 %2450  ;;  %v3599_v30 = vmax.f32 %v3471_v33, 0.0  ;;  %v20082_v50 = vsub.f32 %v20055_v63, %v14974_v35  ;;  %v15166_v18 = vmul.f32 0.015625, %v20083_v7  ;;  %11444 = vrsqrt.f32 %v3224_v5  ;;  %v20090_v7 = vld [vmem:[#allocation115_spill] sm:$0xff] }
 0x308   : > { %v11435_v17 = vpop.eup %11434  ;;  %v3223_v21 = vadd.f32 1e-05, %v2967_v45  ;;  %v2713_v24 = vmul.f32 0.015625, %v2451_v0  ;;  %v2970_v58 = vsub.f32 %v2714_v10, %v2842_v6  ;;  %v20084_v11 = vsub.f32 %v20057_v15, %v15015_v22  ;;  %v2460_v63 = vpop.xlane.xlu1 %2459 }
 0x309   : > { %v3474_v62 = vmul.f32 %v11433_v27, %v20082_v50  ;;  %10924 = vmatprep.mubr.msk.f32.mxu1 %vm1627_vm1, %v3599_v30  ;;  %v15175_v34 = vmul.f32 %v15102_v56, %v15102_v56  ;;  %4788 = vadd.xlane.f32.xlu0 %v14818_v9  ;;  %v11437_v46 = vpop.eup %11436  ;;  %v2844_v14 = vmul.f32 %v15157_v40, %v15157_v40  ;;  %v2716_v33 = vmul.f32 0.015625, %v2460_v63  ;;  %v20086_v27 = vld [vmem:[#allocation46_spill] sm:$0xff] }
 0x30a   : > { %v3473_v52 = vmul.f32 %v11435_v17, %v20084_v11  ;;  %11446 = vrsqrt.f32 %v3223_v21  ;;  %v2969_v35 = vsub.f32 %v2713_v24, %v2841_v13  ;;  %10925 = vmatmul.mubr.msk.f32.gmra.mrb[114].mxu1 %vm1627_vm1, %v3600_v59  ;;  %v3226_v3 = vadd.f32 1e-05, %v2970_v58  ;;  %5428 = vadd.xlane.f32.xlu1 %v14826_v2  ;;  %v20088_v17 = vld [vmem:[#allocation113_spill] sm:$0xff] }
 0x30b   : > { %v3602_v6 = vmax.f32 %v3474_v62, 0.0  ;;  %v2457_v22 = vpop.xlane.xlu0 %2456  ;;  %v2843_v4 = vmul.f32 %v15160_v36, %v15160_v36  ;;  %v20085_v9 = vsub.f32 %v20064_v60, %v15053_v54  ;;  %v2972_v10 = vsub.f32 %v2716_v33, %v2844_v14  ;;  %v20089_v54 = vld [vmem:[#allocation206_spill] sm:$0xff] }
 0x30c   : > { %v3601_v15 = vmax.f32 %v3473_v52, 0.0  ;;  %v11439_v45 = vpop.eup %11438  ;;  %v3225_v61 = vadd.f32 1e-05, %v2969_v35  ;;  %v2715_v13 = vmul.f32 0.015625, %v2457_v22  ;;  %11448 = vrsqrt.f32 %v3226_v3  ;;  %v2466_v60 = vpop.xlane.xlu1 %2465  ;;  %v20092_v22 = vld [vmem:[#allocation56_spill] sm:$0xff] }
 0x30d   : > { %v3476_v59 = vmul.f32 %v11437_v46, %v20085_v9  ;;  %v20087_v0 = vsub.f32 %v20065_v32, %v15069_v39  ;;  %v3094_v21 = vsub.f32 %v20088_v17, %v15083_v43  ;;  %5431 = vadd.xlane.f32.xlu0 %v20089_v54  ;;  %v11441_v62 = vpop.eup %11440  ;;  %v3093_v58 = vsub.f32 %v20090_v7, %v15091_v51  ;;  %v15204_v3 = vpop.f32.mrb[88].mxu1  ;;  %v20096_v7 = vld [vmem:[#allocation151_spill] sm:$0xff] }
 0x30e   : > { %10927 = vmatprep.mubr.msk.f32.mxu1 %vm1627_vm1, %v3601_v15  ;;  %11450 = vrsqrt.f32 %v3225_v61  ;;  %v2971_v24 = vsub.f32 %v2715_v13, %v2843_v4  ;;  %v3228_v2 = vadd.f32 1e-05, %v2972_v10  ;;  %v2718_v11 = vmul.f32 0.015625, %v2466_v60  ;;  %4797 = vadd.xlane.f32.xlu1 %v14850_v49  ;;  %v15215_v61 = vpop.f32.mrb[89].mxu1 }
 0x30f   : > { %v3475_v30 = vmul.f32 %v11439_v45, %v20087_v0  ;;  %10928 = vmatmul.mubr.msk.f32.gmra.mrb[116].mxu1 %vm1627_vm1, %v3602_v6  ;;  %v3604_v50 = vmax.f32 %v3476_v59, 0.0  ;;  %v2463_v52 = vpop.xlane.xlu0 %2462  ;;  %v3478_v43 = vmul.f32 %v11441_v62, %v3094_v21  ;;  %v15201_v46 = vsel %vm1627_vm1, %v15099_v37, 0.0  ;;  %v20091_v6 = vld [vmem:[#allocation149_spill] sm:$0xff]  ;;  %v20093_v45 = vld [vmem:[#allocation150_spill] sm:$0xff] }
 0x310   : > { %v11443_v32 = vpop.eup %11442  ;;  %v3227_v35 = vadd.f32 1e-05, %v2971_v24  ;;  %v2717_v63 = vmul.f32 0.015625, %v2463_v52  ;;  %11452 = vrsqrt.f32 %v3228_v2  ;;  %v2974_v14 = vsub.f32 %v2718_v11, %v20091_v6  ;;  %v2472_v13 = vpop.xlane.xlu1 %2471  ;;  %v20094_v59 = vld [vmem:[#allocation57_spill] sm:$0xff]  ;;  %v20097_v2 = vld [vmem:[#allocation122_spill] sm:$0xff]  ;;  %v20098_v52 = vld [vmem:[#allocation152_spill] sm:$0xff] }
 0x311   : > { %v3603_v39 = vmax.f32 %v3475_v30, 0.0  ;;  %v3477_v51 = vmul.f32 %v11443_v32, %v3093_v58  ;;  %v15210_v33 = vmul.f32 %v15099_v37, %v15099_v37  ;;  %v3096_v15 = vsub.f32 %v20092_v22, %v15115_v8  ;;  %4794 = vadd.xlane.f32.xlu0 %v14863_v19  ;;  %v11445_v49 = vpop.eup %11444 }
 0x312   : > { %11454 = vrsqrt.f32 %v3227_v35  ;;  %v2973_v4 = vsub.f32 %v2717_v63, %v20093_v45  ;;  %v3606_v9 = vmax.f32 %v3478_v43, 0.0  ;;  %v3095_v10 = vsub.f32 %v20094_v59, %v15118_v16  ;;  %5434 = vadd.xlane.f32.xlu1 %v14888_v1  ;;  %v20099_v43 = vld [vmem:[#allocation123_spill] sm:$0xff] }
 0x313   : > { %10930 = vmatprep.mubr.msk.f32.mxu1 %vm1627_vm1, %v3603_v39  ;;  %v3230_v0 = vadd.f32 1e-05, %v2974_v14  ;;  %v2720_v30 = vmul.f32 0.015625, %v2472_v13  ;;  %v2469_v17 = vpop.xlane.xlu0 %2468  ;;  %v3605_v21 = vmax.f32 %v3477_v51, 0.0  ;;  %v15223_v24 = vmul.f32 %v15166_v18, %v15166_v18 }
 0x314   : > { %10931 = vmatmul.mubr.msk.f32.gmra.mrb[118].mxu1 %vm1627_vm1, %v3604_v50  ;;  %v11447_v8 = vpop.eup %11446  ;;  %v3229_v54 = vadd.f32 1e-05, %v2973_v4  ;;  %v2719_v60 = vmul.f32 0.015625, %v2469_v17  ;;  %v3480_v19 = vmul.f32 %v11445_v49, %v3096_v15  ;;  %v20095_v50 = vld [vmem:[#allocation48_spill] sm:$0xff]  ;;  %v3098_v11 = vsub.f32 %v20097_v2, %v15124_v25  ;;  %v2478_v32 = vpop.xlane.xlu1 %2477  ;;  %v20101_v49 = vld [vmem:[#allocation153_spill] sm:$0xff] }
 0x315   : > { %11456 = vrsqrt.f32 %v3230_v0  ;;  %v2976_v58 = vsub.f32 %v2720_v30, %v20096_v7  ;;  %10933 = vmatprep.mubr.msk.f32.mxu1 %vm1627_vm1, %v3605_v21  ;;  %v3479_v16 = vmul.f32 %v11447_v8, %v3095_v10  ;;  %5437 = vadd.xlane.f32.xlu0 %v14891_v53  ;;  %v3097_v6 = vsub.f32 %v20099_v43, %v15131_v47  ;;  %v20100_v53 = vld [vmem:[#allocation125_spill] sm:$0xff]  ;;  %v20102_v10 = vld [vmem:[#allocation127_spill] sm:$0xff]  ;;  %v20103_v30 = vld [vmem:[#allocation154_spill] sm:$0xff]  ;;  %v15263_v43 = vpop.f32.mrb[90].mxu1 }
 0x316   : > { %11458 = vrsqrt.f32 %v3229_v54  ;;  %v2975_v39 = vsub.f32 %v2719_v60, %v20098_v52  ;;  %v3608_v35 = vmax.f32 %v3480_v19, 0.0  ;;  %v11449_v63 = vpop.eup %11448  ;;  %v2722_v51 = vmul.f32 0.015625, %v2478_v32  ;;  %4803 = vadd.xlane.f32.xlu1 %v14906_v41  ;;  %v6829_v8 = vld [vmem:[%s19168_s7] sm:$0xff]  ;;  %v6830_v41 = vld [vmem:[%s19168_s7 + $0x8] sm:$0xff] }
 0x317   : > { %v3232_v14 = vadd.f32 1e-05, %v2976_v58  ;;  %v2475_v1 = vpop.xlane.xlu0 %2474  ;;  %v3607_v22 = vmax.f32 %v3479_v16, 0.0  ;;  %v3482_v4 = vmul.f32 %v11449_v63, %v3098_v11  ;;  %v15239_v13 = vsel %vm1627_vm1, %v15107_v20, 0.0 }
 0x318   : > { %10934 = vmatmul.mubr.msk.f32.gmra.mrb[120].mxu1 %vm1627_vm1, %v3606_v9  ;;  %v11451_v15 = vpop.eup %11450  ;;  %v3231_v45 = vadd.f32 1e-05, %v2975_v39  ;;  %v2721_v25 = vmul.f32 0.015625, %v2475_v1  ;;  %v3100_v9 = vsub.f32 %v20100_v53, %v15157_v40  ;;  %v2978_v59 = vsub.f32 %v2722_v51, %v20101_v49  ;;  %v2484_v21 = vpop.xlane.xlu1 %2483  ;;  %v20104_v39 = vld [vmem:[#allocation148_spill] sm:$0xff] }
 0x319   : > { %11460 = vrsqrt.f32 %v3232_v14  ;;  %10936 = vmatprep.mubr.msk.f32.mxu1 %vm1627_vm1, %v3607_v22  ;;  %v3481_v47 = vmul.f32 %v11451_v15, %v3097_v6  ;;  %v3099_v0 = vsub.f32 %v20102_v10, %v15160_v36  ;;  %4800 = vadd.xlane.f32.xlu0 %v14919_v31  ;;  %v3610_v40 = vmax.f32 %v3482_v4, 0.0  ;;  %v20106_v14 = vld [vmem:[#allocation52_spill] sm:$0xff]  ;;  %v15268_v1 = vpop.f32.mrb[91].mxu1  ;;  %v20107_v4 = vld [vmem:[#allocation181_spill] sm:$0xff] }
 0x31a   : > { %11462 = vrsqrt.f32 %v3231_v45  ;;  %v2977_v17 = vsub.f32 %v2721_v25, %v20103_v30  ;;  %v11453_v54 = vpop.eup %11452  ;;  %v3234_v60 = vadd.f32 1e-05, %v2978_v59  ;;  %v2724_v36 = vmul.f32 0.015625, %v2484_v21  ;;  %5440 = vadd.xlane.f32.xlu1 %v14925_v38  ;;  %v20109_v30 = vld [vmem:[#allocation49_spill] sm:$0xff] }
 0x31b   : > { %v2481_v19 = vpop.xlane.xlu0 %2480  ;;  %v3609_v7 = vmax.f32 %v3481_v47, 0.0  ;;  %v11269_v58 = vpack.c.bf16 %v6830_v41, %v6829_v8  ;;  %v3484_v11 = vmul.f32 %v11453_v54, %v3100_v9  ;;  %v5305_v52 = vmul.f32 %v15107_v20, %v15107_v20  ;;  %v20111_v8 = vld [vmem:[#allocation53_spill] sm:$0xff]  ;;  %v20112_v54 = vld [vmem:[#allocation6_spill] sm:$0xff] }
 0x31c   : > { %10937 = vmatmul.mubr.msk.f32.gmra.mrb[122].mxu1 %vm1627_vm1, %v3608_v35  ;;  %v11455_v16 = vpop.eup %11454  ;;  %v3233_v31 = vadd.f32 1e-05, %v2977_v17  ;;  %v2723_v2 = vmul.f32 0.015625, %v2481_v19  ;;  %v15260_v32 = vmul.f32 0.015625, %v20104_v39  ;;  %11464 = vrsqrt.f32 %v3234_v60  ;;  %v20105_v35 = vld [vmem:[#allocation155_spill] sm:$0xff]  ;;  %v2490_v22 = vpop.xlane.xlu1 %2489 }
 0x31d   : > { %v2980_v63 = vsub.f32 %v2724_v36, %v20105_v35  ;;  %10939 = vmatprep.mubr.msk.f32.mxu1 %vm1627_vm1, %v3609_v7  ;;  %v3483_v6 = vmul.f32 %v11455_v16, %v3099_v0  ;;  %5443 = vadd.xlane.f32.xlu0 %v14928_v29  ;;  %v3612_v15 = vmax.f32 %v3484_v11, 0.0  ;;  %v15274_v45 = vsel %vm1627_vm1, %v15210_v33, 0.0  ;;  %v20108_v0 = vld [vmem:[#allocation5_spill] sm:$0xff]  ;;  %v20113_v60 = vld [vmem:[#allocation55_spill] sm:$0xff]  ;;  %v20115_v7 = vld [vmem:[#allocation116_spill] sm:$0xff] }
 0x31e   : > { %11466 = vrsqrt.f32 %v3233_v31  ;;  %v2979_v51 = vsub.f32 %v2723_v2, %v20106_v14  ;;  %v15277_v53 = vmul.f32 0.015625, %v20107_v4  ;;  %v2726_v9 = vmul.f32 0.015625, %v2490_v22  ;;  %11270 = vmatprep.subr.bf16.mxu0 %v11269_v58  ;;  %4809 = vadd.xlane.f32.xlu1 %v14968_v42  ;;  %v6831_v14 = vld [vmem:[%s19168_s7 + $0x10] sm:$0xff]  ;;  %v20117_v22 = vld [vmem:[#allocation117_spill] sm:$0xff] }
 0x31f   : > { %v11457_v25 = vpop.eup %11456  ;;  %v3236_v38 = vadd.f32 1e-05, %v2980_v63  ;;  %v2487_v49 = vpop.xlane.xlu0 %2486  ;;  %v3611_v59 = vmax.f32 %v3483_v6, 0.0  ;;  %v20110_v17 = vsub.f32 %v20108_v0, %v20109_v30  ;;  %11272 = vmatpush3.bf16.msra.mxu0 %v11269_v58  ;;  %v15287_v33 = vmul.f32 %v15260_v32, %v15260_v32  ;;  %v20116_v58 = vld [vmem:[#allocation156_spill] sm:$0xff] }
 0x320   : > { %10940 = vmatmul.mubr.msk.f32.gmra.mrb[124].mxu1 %vm1627_vm1, %v3610_v40  ;;  %v11459_v47 = vpop.eup %11458  ;;  %v3235_v10 = vadd.f32 1e-05, %v2979_v51  ;;  %v2725_v29 = vmul.f32 0.015625, %v2487_v49  ;;  %v15283_v40 = vsel %vm1627_vm1, %v5305_v52, 0.0  ;;  %v2982_v41 = vsub.f32 %v2726_v9, %v20111_v8  ;;  %v2496_v2 = vpop.xlane.xlu1 %2495  ;;  %v20119_v9 = vld [vmem:[#allocation59_spill] sm:$0xff]  ;;  %v20124_v30 = vld [vmem:[#allocation8_spill] sm:$0xff] }
 0x321   : > { %v3486_v21 = vmul.f32 %v11457_v25, %v20110_v17  ;;  %11468 = vrsqrt.f32 %v3236_v38  ;;  %10942 = vmatprep.mubr.msk.f32.mxu1 %vm1627_vm1, %v3611_v59  ;;  %v20114_v36 = vsub.f32 %v20112_v54, %v20113_v60  ;;  %4806 = vadd.xlane.f32.xlu0 %v14979_v55  ;;  %v15302_v42 = vmul.f32 %v15277_v53, %v15277_v53  ;;  %v6832_v55 = vld [vmem:[%s19168_s7 + $0x18] sm:$0xff]  ;;  %v20118_v38 = vld [vmem:[#allocation7_spill] sm:$0xff]  ;;  %v6834_v54 = vld [vmem:[%s19168_s7 + $0x28] sm:$0xff] }
 0x322   : > { %11470 = vrsqrt.f32 %v3235_v10  ;;  %v2981_v31 = vsub.f32 %v2725_v29, %v20116_v58  ;;  %v3238_v39 = vadd.f32 1e-05, %v2982_v41  ;;  %v2728_v35 = vmul.f32 0.015625, %v2496_v2  ;;  %v20123_v29 = vld [vmem:[#allocation157_spill] sm:$0xff]  ;;  %5446 = vadd.xlane.f32.xlu1 %v14996_v57  ;;  %v20125_v17 = vld [vmem:[#allocation63_spill] sm:$0xff]  ;;  %v20127_v60 = vld [vmem:[#allocation158_spill] sm:$0xff] }
 0x323   : > { %v3485_v19 = vmul.f32 %v11459_v47, %v20114_v36  ;;  %v3614_v11 = vmax.f32 %v3486_v21, 0.0  ;;  %v11461_v52 = vpop.eup %11460  ;;  %v2493_v63 = vpop.xlane.xlu0 %2492  ;;  %v20120_v49 = vsub.f32 %v20118_v38, %v20119_v9  ;;  %v20121_v47 = vld [vmem:[#allocation186_spill] sm:$0xff]  ;;  %v20126_v21 = vsub.f32 %v20124_v30, %v20125_v17  ;;  %v6833_v41 = vld [vmem:[%s19168_s7 + $0x20] sm:$0xff] }
 0x324   : > { %10943 = vmatmul.mubr.msk.f32.gmra.mrb[126].mxu1 %vm1627_vm1, %v3612_v15  ;;  %v11463_v51 = vpop.eup %11462  ;;  %v3237_v25 = vadd.f32 1e-05, %v2981_v31  ;;  %v2727_v4 = vmul.f32 0.015625, %v2493_v63  ;;  %v15317_v10 = vadd.f32 %v20121_v47, %v14632_v28  ;;  %11472 = vrsqrt.f32 %v3238_v39  ;;  %v2502_v57 = vpop.xlane.xlu1 %2501 }
 0x325   : > { %v3613_v6 = vmax.f32 %v3485_v19, 0.0  ;;  %v3488_v59 = vmul.f32 %v11461_v52, %v20120_v49  ;;  %v2984_v0 = vsub.f32 %v2728_v35, %v20123_v29  ;;  %v3487_v8 = vmul.f32 %v11463_v51, %v20126_v21  ;;  %v20128_v19 = vld [vmem:[#allocation219_spill] sm:$0xff]  ;;  %v20129_v52 = vld [vmem:[#allocation188_spill] sm:$0xff] }
 0x326   : > { %20122 = vst [vmem:[#allocation167_spill] sm:$0xff] %v15317_v10  ;;  %11474 = vrsqrt.f32 %v3237_v25  ;;  %v2983_v36 = vsub.f32 %v2727_v4, %v20127_v60  ;;  %5449 = vadd.xlane.f32.xlu0 %v20128_v19  ;;  %v11273_v31 = vpack.c.bf16 %v6832_v55, %v6831_v14  ;;  %v11465_v2 = vpop.eup %11464  ;;  %v15336_v39 = vadd.f32 %v14632_v28, %v20129_v52  ;;  %v20131_v4 = vld [vmem:[#allocation9_spill] sm:$0xff]  ;;  %v20132_v49 = vld [vmem:[#allocation71_spill] sm:$0xff]  ;;  %v20135_v28 = vld [vmem:[#allocation10_spill] sm:$0xff] }
 0x327   : > { %10945 = vmatprep.mubr.msk.f32.mxu1 %vm1627_vm1, %v3613_v6  ;;  %v3616_v58 = vmax.f32 %v3488_v59, 0.0  ;;  %v3240_v35 = vadd.f32 1e-05, %v2984_v0  ;;  %v2730_v63 = vmul.f32 0.015625, %v2502_v57  ;;  %v2499_v6 = vpop.xlane.xlu0 %2498  ;;  %v3615_v51 = vmax.f32 %v3487_v8, 0.0  ;;  %v20134_v14 = vld [vmem:[#allocation159_spill] sm:$0xff]  ;;  %4815 = vadd.xlane.f32.xlu1 %v15031_v26 }
 0x328   : > { %10946 = vmatmul.mubr.msk.f32.gmra.mrb[128].mxu1 %vm1627_vm1, %v3614_v11  ;;  %20130 = vst [vmem:[#allocation145_spill] sm:$0xff] %v15336_v39  ;;  %v11467_v38 = vpop.eup %11466  ;;  %v3239_v25 = vadd.f32 1e-05, %v2983_v36  ;;  %v2729_v9 = vmul.f32 0.015625, %v2499_v6  ;;  %v20133_v47 = vsub.f32 %v20131_v4, %v20132_v49  ;;  %11274 = vmatprep.subr.bf16.mxu0 %v11273_v31  ;;  %v11277_v11 = vpack.c.bf16 %v6834_v54, %v6833_v41  ;;  %v15342_v59 = vpop.f32.mrb[92].mxu1  ;;  %v20136_v0 = vld [vmem:[#allocation72_spill] sm:$0xff] }
 0x329   : > { %11476 = vrsqrt.f32 %v3240_v35  ;;  %v2986_v55 = vsub.f32 %v2730_v63, %v20134_v14  ;;  %10948 = vmatprep.mubr.msk.f32.mxu1 %vm1627_vm1, %v3615_v51  ;;  %v20137_v30 = vsub.f32 %v20135_v28, %v20136_v0  ;;  %v15351_v21 = vsel %vm1627_vm1, %v15317_v10, 0.0  ;;  %v6835_v8 = vld [vmem:[%s19168_s7 + $0x30] sm:$0xff]  ;;  %v6836_v41 = vld [vmem:[%s19168_s7 + $0x38] sm:$0xff]  ;;  %v15360_v26 = vpop.f32.mrb[93].mxu1  ;;  %v2508_v36 = vpop.xlane.xlu1 %2507  ;;  %11276 = vmatpush3.bf16.msra.mxu0 %v11273_v31  ;;  %v20144_v28 = vld [vmem:[#allocation78_spill] sm:$0xff] }
 0x32a   : > { %v3490_v29 = vmul.f32 %v11465_v2, %v20133_v47  ;;  %11478 = vrsqrt.f32 %v3239_v25  ;;  %v20138_v54 = vld [vmem:[#allocation160_spill] sm:$0xff]  ;;  %4812 = vadd.xlane.f32.xlu0 %v15050_v12  ;;  %v5308_v57 = vmul.f32 %v15317_v10, %v15317_v10  ;;  %v2732_v35 = vmul.f32 0.015625, %v2508_v36  ;;  %11278 = vmatprep.subr.bf16.mxu0 %v11277_v11 }
 0x32b   : > { %v3489_v17 = vmul.f32 %v11467_v38, %v20137_v30  ;;  %v2985_v60 = vsub.f32 %v2729_v9, %v20138_v54  ;;  %v11469_v2 = vpop.eup %11468  ;;  %v3242_v52 = vadd.f32 1e-05, %v2986_v55  ;;  %v2505_v63 = vpop.xlane.xlu0 %2504  ;;  %v15368_v51 = vsel %vm1627_vm1, %v15336_v39, 0.0  ;;  %v20139_v9 = vld [vmem:[#allocation11_spill] sm:$0xff]  ;;  %5452 = vadd.xlane.f32.xlu1 %v15064_v48  ;;  %v20143_v55 = vld [vmem:[#allocation12_spill] sm:$0xff] }
 0x32c   : > { %10949 = vmatmul.mubr.msk.f32.gmra.mrb[130].mxu1 %vm1627_vm1, %v3616_v58  ;;  %v3618_v19 = vmax.f32 %v3490_v29, 0.0  ;;  %v11471_v38 = vpop.eup %11470  ;;  %v2731_v12 = vmul.f32 0.015625, %v2505_v63  ;;  %v20140_v58 = vld [vmem:[#allocation77_spill] sm:$0xff]  ;;  %v11281_v47 = vpack.c.bf16 %v6836_v41, %v6835_v8  ;;  %v20142_v29 = vld [vmem:[#allocation163_spill] sm:$0xff]  ;;  %v20145_v0 = vsub.f32 %v20143_v55, %v20144_v28  ;;  %v20148_v41 = vld [vmem:[#allocation224_spill] sm:$0xff] }
 0x32d   : > { %v3617_v6 = vmax.f32 %v3489_v17, 0.0  ;;  %v3241_v25 = vadd.f32 1e-05, %v2985_v60  ;;  %v20141_v4 = vsub.f32 %v20139_v9, %v20140_v58  ;;  %11480 = vrsqrt.f32 %v3242_v52  ;;  %v20146_v17 = vld [vmem:[#allocation194_spill] sm:$0xff]  ;;  %v20147_v60 = vld [vmem:[#allocation164_spill] sm:$0xff]  ;;  %v2514_v36 = vpop.xlane.xlu1 %2513  ;;  %11280 = vmatpush3.bf16.msra.mxu0 %v11277_v11 }
 0x32e   : > { %v2988_v14 = vsub.f32 %v2732_v35, %v20142_v29  ;;  %v3491_v31 = vmul.f32 %v11471_v38, %v20145_v0  ;;  %v5307_v30 = vmul.f32 %v15336_v39, %v15336_v39  ;;  %v15382_v54 = vmul.f32 0.015625, %v20146_v17  ;;  %5455 = vadd.xlane.f32.xlu0 %v20148_v41  ;;  %v11473_v48 = vpop.eup %11472  ;;  %v20149_v52 = vld [vmem:[#allocation196_spill] sm:$0xff]  ;;  %v20150_v29 = vld [vmem:[#allocation13_spill] sm:$0xff]  ;;  %11282 = vmatprep.subr.bf16.mxu0 %v11281_v47  ;;  %v20217_v39 = vld [vmem:[#allocation227_spill] sm:$0xff] }
 0x32f   : > { %v3492_v49 = vmul.f32 %v11469_v2, %v20141_v4  ;;  %10951 = vmatprep.mubr.msk.f32.mxu1 %vm1627_vm1, %v3617_v6  ;;  %11482 = vrsqrt.f32 %v3241_v25  ;;  %v2987_v8 = vsub.f32 %v2731_v12, %v20147_v60  ;;  %v15388_v35 = vmul.f32 0.015625, %v20149_v52  ;;  %v2511_v38 = vpop.xlane.xlu0 %2510  ;;  %v20151_v12 = vld [vmem:[#allocation83_spill] sm:$0xff]  ;;  %4821 = vadd.xlane.f32.xlu1 %v15201_v46  ;;  %v20155_v11 = vld [vmem:[#allocation84_spill] sm:$0xff] }
 0x330   : > { %10952 = vmatmul.mubr.msk.f32.gmra.mrb[132].mxu1 %vm1627_vm1, %v3618_v19  ;;  %v3244_v63 = vadd.f32 1e-05, %v2988_v14  ;;  %v2734_v6 = vmul.f32 0.015625, %v2514_v36  ;;  %v3619_v9 = vmax.f32 %v3491_v31, 0.0  ;;  %v11475_v58 = vpop.eup %11474  ;;  %v2733_v25 = vmul.f32 0.015625, %v2511_v38  ;;  %v20154_v14 = vld [vmem:[#allocation14_spill] sm:$0xff] }
 0x331   : > { %v3620_v2 = vmax.f32 %v3492_v49, 0.0  ;;  %v3243_v4 = vadd.f32 1e-05, %v2987_v8  ;;  %v20152_v55 = vsub.f32 %v20150_v29, %v20151_v12  ;;  %v15394_v19 = vsel %vm1627_vm1, %v5308_v57, 0.0  ;;  %v20153_v49 = vld [vmem:[#allocation165_spill] sm:$0xff]  ;;  %v20157_v57 = vld [vmem:[#allocation166_spill] sm:$0xff]  ;;  %v2520_v36 = vpop.xlane.xlu1 %2519  ;;  %11284 = vmatpush3.bf16.msra.mxu0 %v11281_v47 }
 0x332   : > { %11484 = vrsqrt.f32 %v3244_v63  ;;  %v2990_v0 = vsub.f32 %v2734_v6, %v20153_v49  ;;  %10954 = vmatprep.mubr.msk.f32.mxu1 %vm1627_vm1, %v3619_v9  ;;  %v20156_v31 = vsub.f32 %v20154_v14, %v20155_v11  ;;  %v15403_v60 = vsel %vm1627_vm1, %v5307_v30, 0.0  ;;  %4818 = vadd.xlane.f32.xlu0 %v15239_v13  ;;  %v20159_v29 = vld [vmem:[#allocation17_spill] sm:$0xff]  ;;  %v20162_v49 = vld [vmem:[#allocation204_spill] sm:$0xff]  ;;  %v15432_v11 = vpop.f32.mrb[94].mxu1 }
 0x333   : > { %v3494_v28 = vmul.f32 %v11473_v48, %v20152_v55  ;;  %v15407_v8 = vmul.f32 %v15382_v54, %v15382_v54  ;;  %11486 = vrsqrt.f32 %v3243_v4  ;;  %v2989_v41 = vsub.f32 %v2733_v25, %v20157_v57  ;;  %v11477_v48 = vpop.eup %11476  ;;  %v2517_v6 = vpop.xlane.xlu0 %2516  ;;  %v20164_v47 = vld [vmem:[#allocation168_spill] sm:$0xff]  ;;  %5458 = vadd.xlane.f32.xlu1 %v15283_v40 }
 0x334   : > { %v3493_v17 = vmul.f32 %v11475_v58, %v20156_v31  ;;  %10955 = vmatmul.mubr.msk.f32.gmra.mrb[134].mxu1 %vm1627_vm1, %v3620_v2  ;;  %v15414_v52 = vmul.f32 %v15388_v35, %v15388_v35  ;;  %v3246_v30 = vadd.f32 1e-05, %v2990_v0  ;;  %v2736_v63 = vmul.f32 0.015625, %v2520_v36  ;;  %v11479_v9 = vpop.eup %11478  ;;  %v20158_v58 = vld [vmem:[#allocation205_spill] sm:$0xff]  ;;  %v20165_v31 = vld [vmem:[#allocation18_spill] sm:$0xff]  ;;  %v20168_v36 = vld [vmem:[#allocation208_spill] sm:$0xff] }
 0x335   : > { %v3622_v46 = vmax.f32 %v3494_v28, 0.0  ;;  %v15417_v4 = vmul.f32 0.015625, %v20158_v58  ;;  %v3245_v25 = vadd.f32 1e-05, %v2989_v41  ;;  %v2735_v13 = vmul.f32 0.015625, %v2517_v6  ;;  %v20160_v2 = vld [vmem:[#allocation89_spill] sm:$0xff] }
 0x336   : > { %v3621_v38 = vmax.f32 %v3493_v17, 0.0  ;;  %v20161_v12 = vsub.f32 %v20159_v29, %v20160_v2  ;;  %v15425_v28 = vld [vmem:[%s19167_s6] ss:$0 sm:$0xff]  ;;  %11488 = vrsqrt.f32 %v3246_v30  ;;  %v2992_v14 = vsub.f32 %v2736_v63, %v20164_v47  ;;  %v20166_v17 = vld [vmem:[#allocation90_spill] sm:$0xff]  ;;  %v15444_v30 = vpop.f32.mrb[95].mxu1  ;;  %5461 = vadd.xlane.f32.xlu0 %v15274_v45  ;;  %v2526_v63 = vpop.xlane.xlu1 %2525 }
 0x337   : > { %v15429_v0 = vadd.f32 %v15425_v28, %v20162_v49  ;;  %v20167_v57 = vsub.f32 %v20165_v31, %v20166_v17  ;;  %11490 = vrsqrt.f32 %v3245_v25  ;;  %v20170_v6 = vld [vmem:[#allocation169_spill] sm:$0xff]  ;;  %v11481_v40 = vpop.eup %11480  ;;  %v2523_v49 = vpop.xlane.xlu0 %2522  ;;  %v15453_v25 = vmul.f32 %v15417_v4, %v15417_v4  ;;  %4827 = vadd.xlane.f32.xlu1 %v15351_v21 }
 0x338   : > { %v3496_v55 = vmul.f32 %v11477_v48, %v20161_v12  ;;  %10957 = vmatprep.mubr.msk.f32.mxu1 %vm1627_vm1, %v3621_v38  ;;  %v15441_v48 = vadd.f32 %v15425_v28, %v20168_v36  ;;  %v2991_v58 = vsub.f32 %v2735_v13, %v20170_v6  ;;  %v20171_v29 = vld [vmem:[#allocation209_spill] sm:$0xff]  ;;  %v2738_v12 = vmul.f32 0.015625, %v2526_v63 }
 0x339   : > { %20163 = vst [vmem:[#allocation161_spill] sm:$0xff] %v15429_v0  ;;  %v3495_v41 = vmul.f32 %v11479_v9, %v20167_v57  ;;  %10958 = vmatmul.mubr.msk.f32.gmra.mrb[136].mxu1 %vm1627_vm1, %v3622_v46  ;;  %v15449_v2 = vmul.f32 0.015625, %v20171_v29  ;;  %v3248_v9 = vadd.f32 1e-05, %v2992_v14  ;;  %v11483_v31 = vpop.eup %11482  ;;  %v2737_v17 = vmul.f32 0.015625, %v2523_v49  ;;  %v20172_v45 = vld [vmem:[#allocation21_spill] sm:$0xff] }
 0x33a   : > { %20169 = vst [vmem:[#allocation170_spill] sm:$0xff] %v15441_v48  ;;  %v3624_v38 = vmax.f32 %v3496_v55, 0.0  ;;  %v3247_v13 = vadd.f32 1e-05, %v2991_v58  ;;  %v20173_v57 = vld [vmem:[#allocation94_spill] sm:$0xff]  ;;  %v20175_v55 = vld [vmem:[#allocation172_spill] sm:$0xff]  ;;  %4824 = vadd.xlane.f32.xlu0 %v15368_v51 }
 0x33b   : > { %v3623_v47 = vmax.f32 %v3495_v41, 0.0  ;;  %v20174_v46 = vsub.f32 %v20172_v45, %v20173_v57  ;;  %11492 = vrsqrt.f32 %v3248_v9  ;;  %v2994_v6 = vsub.f32 %v2738_v12, %v20175_v55  ;;  %v20176_v14 = vld [vmem:[#allocation22_spill] sm:$0xff]  ;;  %v20177_v41 = vld [vmem:[#allocation95_spill] sm:$0xff]  ;;  %v20179_v58 = vld [vmem:[#allocation173_spill] sm:$0xff]  ;;  %v2529_v57 = vpop.xlane.xlu0 %2528  ;;  %5464 = vadd.xlane.f32.xlu1 %v15403_v60 }
 0x33c   : > { %v20178_v63 = vsub.f32 %v20176_v14, %v20177_v41  ;;  %v4832_v15 = vsel %vm1627_vm1, %v15429_v0, 0.0  ;;  %11494 = vrsqrt.f32 %v3247_v13  ;;  %v2993_v49 = vsub.f32 %v2737_v17, %v20179_v58  ;;  %v11485_v21 = vpop.eup %11484  ;;  %v20180_v55 = vld [vmem:[#allocation25_spill] sm:$0xff] }
 0x33d   : > { %v3498_v36 = vmul.f32 %v11481_v40, %v20174_v46  ;;  %10960 = vmatprep.mubr.msk.f32.mxu1 %vm1627_vm1, %v3623_v47  ;;  %v2532_v40 = vpop.xlane.xlu1 %2531  ;;  %v5310_v12 = vmul.f32 %v15429_v0, %v15429_v0  ;;  %v3250_v47 = vadd.f32 1e-05, %v2994_v6  ;;  %v5309_v46 = vmul.f32 %v15441_v48, %v15441_v48  ;;  %v11487_v13 = vpop.eup %11486  ;;  %v20185_v58 = vld [vmem:[#allocation97_spill] sm:$0xff] }
 0x33e   : > { %v3497_v29 = vmul.f32 %v11483_v31, %v20178_v63  ;;  %10961 = vmatmul.mubr.msk.f32.gmra.mrb[138].mxu1 %vm1627_vm1, %v3624_v38  ;;  %v2740_v45 = vmul.f32 0.015625, %v2532_v40  ;;  %v15475_v17 = vmul.f32 %v15449_v2, %v15449_v2  ;;  %v3249_v51 = vadd.f32 1e-05, %v2993_v49  ;;  %v20183_v63 = vld [vmem:[#allocation146_spill] sm:$0xff]  ;;  %5467 = vadd.xlane.f32.xlu0 %v15394_v19  ;;  %v20189_v19 = vld [vmem:[#allocation29_spill] sm:$0xff] }
 0x33f   : > { %v3626_v9 = vmax.f32 %v3498_v36, 0.0  ;;  %v2739_v38 = vmul.f32 0.015625, %v2529_v57  ;;  %v20181_v36 = vld [vmem:[#allocation16_spill] sm:$0xff]  ;;  %11496 = vrsqrt.f32 %v3250_v47  ;;  %v4829_v62 = vsel %vm1627_vm1, %v15441_v48, 0.0  ;;  %v20187_v49 = vld [vmem:[#allocation174_spill] sm:$0xff]  ;;  %4833 = vadd.xlane.f32.xlu1 %v4832_v15  ;;  %v20200_v15 = vld [vmem:[#allocation221_spill] sm:$0xff] }
 0x340   : > { %v3625_v31 = vmax.f32 %v3497_v29, 0.0  ;;  %v20182_v14 = vsub.f32 %v20180_v55, %v20181_v36  ;;  %v2996_v6 = vsub.f32 %v2740_v45, %v20183_v63  ;;  %v20184_v29 = vld [vmem:[#allocation26_spill] sm:$0xff]  ;;  %11498 = vrsqrt.f32 %v3249_v51  ;;  %v2535_v36 = vpop.xlane.xlu0 %2534 }
 0x341   : > { %v20186_v40 = vsub.f32 %v20184_v29, %v20185_v58  ;;  %v2995_v57 = vsub.f32 %v2739_v38, %v20187_v49  ;;  %v5472_v45 = vsel %vm1627_vm1, %v5310_v12, 0.0  ;;  %v20188_v29 = vld [vmem:[#allocation62_spill] sm:$0xff]  ;;  %v2741_v58 = vmul.f32 0.015625, %v2535_v36  ;;  %v20193_v12 = vld [vmem:[#allocation147_spill] sm:$0xff]  ;;  %v20197_v36 = vld [vmem:[#allocation220_spill] sm:$0xff] }
 0x342   : > { %v3500_v41 = vmul.f32 %v11485_v21, %v20182_v14  ;;  %10963 = vmatprep.mubr.msk.f32.mxu1 %vm1627_vm1, %v3625_v31  ;;  %v2538_v21 = vpop.xlane.xlu1 %2537  ;;  %v11489_v31 = vpop.eup %11488  ;;  %v3252_v60 = vadd.f32 1e-05, %v2996_v6  ;;  %v15494_v51 = vmul.f32 0.015625, %v20188_v29  ;;  %v15511_v0 = vadd.f32 %v15425_v28, %v20197_v36  ;;  %4830 = vadd.xlane.f32.xlu0 %v4829_v62 }
 0x343   : > { %v3499_v16 = vmul.f32 %v11487_v13, %v20186_v40  ;;  %10964 = vmatmul.mubr.msk.f32.gmra.mrb[140].mxu1 %vm1627_vm1, %v3626_v9  ;;  %v2742_v55 = vmul.f32 0.015625, %v2538_v21  ;;  %v5469_v13 = vsel %vm1627_vm1, %v5309_v46, 0.0  ;;  %v11491_v63 = vpop.eup %11490  ;;  %v3251_v38 = vadd.f32 1e-05, %v2995_v57  ;;  %v20190_v40 = vld [vmem:[#allocation20_spill] sm:$0xff]  ;;  %v15503_v21 = vpop.f32.mrb[96].mxu1 }
 0x344   : > { %v3628_v47 = vmax.f32 %v3500_v41, 0.0  ;;  %v20191_v9 = vsub.f32 %v20189_v19, %v20190_v40  ;;  %v20192_v41 = vld [vmem:[#allocation215_spill] sm:$0xff]  ;;  %11500 = vrsqrt.f32 %v3252_v60  ;;  %20198 = vst [vmem:[#allocation162_spill] sm:$0xff] %v15511_v0  ;;  %v15514_v40 = vpop.f32.mrb[97].mxu1  ;;  %5470 = vadd.xlane.f32.xlu1 %v5469_v13 }
 0x345   : > { %v3627_v14 = vmax.f32 %v3499_v16, 0.0  ;;  %v15500_v5 = vmul.f32 0.015625, %v20192_v41  ;;  %v2998_v6 = vsub.f32 %v2742_v55, %v20193_v12  ;;  %v20194_v16 = vld [vmem:[#allocation30_spill] sm:$0xff]  ;;  %v20195_v46 = vld [vmem:[#allocation99_spill] sm:$0xff]  ;;  %11502 = vrsqrt.f32 %v3251_v38  ;;  %v2541_v12 = vpop.xlane.xlu0 %2540 }
 0x346   : > { %v3502_v49 = vmul.f32 %v11489_v31, %v20191_v9  ;;  %v20196_v29 = vsub.f32 %v20194_v16, %v20195_v46  ;;  %v20199_v31 = vld [vmem:[#allocation175_spill] sm:$0xff]  ;;  %v2544_v60 = vpop.xlane.xlu1 %2543  ;;  %v15519_v9 = vadd.f32 %v15425_v28, %v20200_v15  ;;  %v15523_v38 = vmul.f32 %v15494_v51, %v15494_v51  ;;  %v20207_v15 = vld [vmem:[#allocation101_spill] sm:$0xff]  ;;  %5473 = vadd.xlane.f32.xlu0 %v5472_v45 }
 0x347   : > { %10966 = vmatprep.mubr.msk.f32.mxu1 %vm1627_vm1, %v3627_v14  ;;  %v2997_v19 = vsub.f32 %v2741_v58, %v20199_v31  ;;  %v11493_v14 = vpop.eup %11492  ;;  %v2744_v41 = vmul.f32 0.015625, %v2544_v60  ;;  %v2743_v62 = vmul.f32 0.015625, %v2541_v12  ;;  %v15530_v31 = vmul.f32 %v15500_v5, %v15500_v5 }
 0x348   : > { %v3501_v57 = vmul.f32 %v11491_v63, %v20196_v29  ;;  %10967 = vmatmul.mubr.msk.f32.gmra.mrb[142].mxu1 %vm1627_vm1, %v3628_v47  ;;  %v3630_v55 = vmax.f32 %v3502_v49, 0.0  ;;  %20201 = vst [vmem:[#allocation187_spill] sm:$0xff] %v15519_v9  ;;  %v3254_v63 = vadd.f32 1e-05, %v2998_v6  ;;  %v11495_v46 = vpop.eup %11494  ;;  %v20202_v29 = vld [vmem:[#allocation33_spill] sm:$0xff]  ;;  %v20203_v47 = vld [vmem:[#allocation24_spill] sm:$0xff]  ;;  %v5312_v45 = vmul.f32 %v15511_v0, %v15511_v0 }
 0x349   : > { %v3253_v58 = vadd.f32 1e-05, %v2997_v19  ;;  %v20204_v36 = vsub.f32 %v20202_v29, %v20203_v47  ;;  %v20205_v6 = vld [vmem:[#allocation176_spill] sm:$0xff]  ;;  %v20209_v19 = vld [vmem:[#allocation177_spill] sm:$0xff]  ;;  %v4838_v29 = vsel %vm1627_vm1, %v15511_v0, 0.0  ;;  %v11497_v47 = vpop.eup %11496  ;;  %v15557_v0 = vadd.f32 %v15425_v28, %v20217_v39 }
 0x34a   : > { %v3629_v16 = vmax.f32 %v3501_v57, 0.0  ;;  %11504 = vrsqrt.f32 %v3254_v63  ;;  %v3000_v60 = vsub.f32 %v2744_v41, %v20205_v6  ;;  %v20206_v57 = vld [vmem:[#allocation34_spill] sm:$0xff]  ;;  %v2999_v12 = vsub.f32 %v2743_v62, %v20209_v19  ;;  %v20211_v62 = vld [vmem:[#allocation47_spill] sm:$0xff]  ;;  %4839 = vadd.xlane.f32.xlu1 %v4838_v29 }
 0x34b   : > { %v3504_v49 = vmul.f32 %v11493_v14, %v20204_v36  ;;  %v20208_v48 = vsub.f32 %v20206_v57, %v20207_v15  ;;  %11506 = vrsqrt.f32 %v3253_v58  ;;  %v2550_v14 = vpop.xlane.xlu1 %2549  ;;  %v5311_v6 = vmul.f32 %v15519_v9, %v15519_v9  ;;  %20218 = vst [vmem:[#allocation189_spill] sm:$0xff] %v15557_v0 }
 0x34c   : > { %10969 = vmatprep.mubr.msk.f32.mxu1 %vm1627_vm1, %v3629_v16  ;;  %v3256_v41 = vadd.f32 1e-05, %v3000_v60  ;;  %v2746_v36 = vmul.f32 0.015625, %v2550_v14  ;;  %v2547_v16 = vpop.xlane.xlu0 %2546  ;;  %v20214_v60 = vld [vmem:[#allocation38_spill] sm:$0xff]  ;;  %v20215_v14 = vld [vmem:[#allocation28_spill] sm:$0xff] }
 0x34d   : > { %v3503_v10 = vmul.f32 %v11495_v46, %v20208_v48  ;;  %10970 = vmatmul.mubr.msk.f32.gmra.mrb[144].mxu1 %vm1627_vm1, %v3630_v55  ;;  %v3632_v63 = vmax.f32 %v3504_v49, 0.0  ;;  %v11499_v48 = vpop.eup %11498  ;;  %v3255_v46 = vadd.f32 1e-05, %v2999_v12  ;;  %v2745_v58 = vmul.f32 0.015625, %v2547_v16  ;;  %v20210_v55 = vld [vmem:[#allocation37_spill] sm:$0xff]  ;;  %v20213_v49 = vld [vmem:[#allocation178_spill] sm:$0xff] }
 0x34e   : > { %v20212_v57 = vsub.f32 %v20210_v55, %v20211_v62  ;;  %11508 = vrsqrt.f32 %v3256_v41  ;;  %v3002_v19 = vsub.f32 %v2746_v36, %v20213_v49  ;;  %v20216_v12 = vsub.f32 %v20214_v60, %v20215_v14  ;;  %v20219_v55 = vld [vmem:[#allocation179_spill] sm:$0xff]  ;;  %v11501_v29 = vpop.eup %11500  ;;  %v20220_v14 = vld [vmem:[#allocation228_spill] sm:$0xff] }
 0x34f   : > { %v3631_v13 = vmax.f32 %v3503_v10, 0.0  ;;  %v4835_v10 = vsel %vm1627_vm1, %v15519_v9, 0.0  ;;  %11510 = vrsqrt.f32 %v3255_v46  ;;  %v2556_v41 = vpop.xlane.xlu1 %2555  ;;  %v5475_v60 = vsel %vm1627_vm1, %v5311_v6, 0.0 }
 0x350   : > { %v3506_v15 = vmul.f32 %v11497_v47, %v20212_v57  ;;  %v3505_v16 = vmul.f32 %v11499_v48, %v20216_v12  ;;  %v3001_v47 = vsub.f32 %v2745_v58, %v20219_v55  ;;  %4836 = vadd.xlane.f32.xlu0 %v4835_v10  ;;  %v2748_v62 = vmul.f32 0.015625, %v2556_v41  ;;  %v2553_v57 = vpop.xlane.xlu0 %2552  ;;  %v11503_v48 = vpop.eup %11502  ;;  %v20221_v58 = vld [vmem:[#allocation41_spill] sm:$0xff]  ;;  %v20222_v10 = vld [vmem:[#allocation58_spill] sm:$0xff]  ;;  %5476 = vadd.xlane.f32.xlu1 %v5475_v60  ;;  %v20226_v41 = vld [vmem:[#allocation32_spill] sm:$0xff] }
 0x351   : > { %10972 = vmatprep.mubr.msk.f32.mxu1 %vm1627_vm1, %v3631_v13  ;;  %v3258_v13 = vadd.f32 1e-05, %v3002_v19  ;;  %v15564_v39 = vadd.f32 %v15425_v28, %v20220_v14  ;;  %v2747_v12 = vmul.f32 0.015625, %v2553_v57  ;;  %v20223_v55 = vsub.f32 %v20221_v58, %v20222_v10  ;;  %v15570_v19 = vpop.f32.mrb[98].mxu1 }
 0x352   : > { %10973 = vmatmul.mubr.msk.f32.gmra.mrb[146].mxu1 %vm1627_vm1, %v3632_v63  ;;  %v3634_v36 = vmax.f32 %v3506_v15, 0.0  ;;  %v3633_v49 = vmax.f32 %v3505_v16, 0.0  ;;  %v3257_v46 = vadd.f32 1e-05, %v3001_v47  ;;  %v20224_v15 = vld [vmem:[#allocation180_spill] sm:$0xff]  ;;  %v5478_v6 = vsel %vm1627_vm1, %v5312_v45, 0.0 }
 0x353   : > { %v3508_v63 = vmul.f32 %v11501_v29, %v20223_v55  ;;  %11512 = vrsqrt.f32 %v3258_v13  ;;  %v3004_v9 = vsub.f32 %v2748_v62, %v20224_v15  ;;  %v20225_v16 = vld [vmem:[#allocation42_spill] sm:$0xff]  ;;  %v15578_v20 = vpop.f32.mrb[99].mxu1  ;;  %v2562_v29 = vpop.xlane.xlu1 %2561  ;;  %v4844_v13 = vsel %vm1627_vm1, %v15557_v0, 0.0 }
 0x354   : > { %10975 = vmatprep.mubr.msk.f32.mxu1 %vm1627_vm1, %v3633_v49  ;;  %v20227_v14 = vsub.f32 %v20225_v16, %v20226_v41  ;;  %11514 = vrsqrt.f32 %v3257_v46  ;;  %v20228_v47 = vld [vmem:[#allocation182_spill] sm:$0xff]  ;;  %5479 = vadd.xlane.f32.xlu0 %v5478_v6  ;;  %v11505_v49 = vpop.eup %11504  ;;  %v2750_v45 = vmul.f32 0.015625, %v2562_v29  ;;  %v2559_v58 = vpop.xlane.xlu0 %2558  ;;  %v5313_v15 = vmul.f32 %v15564_v39, %v15564_v39  ;;  %v20230_v6 = vld [vmem:[#allocation36_spill] sm:$0xff] }
 0x355   : > { %v3003_v57 = vsub.f32 %v2747_v12, %v20228_v47  ;;  %v3636_v62 = vmax.f32 %v3508_v63, 0.0  ;;  %v3260_v60 = vadd.f32 1e-05, %v3004_v9  ;;  %v11507_v46 = vpop.eup %11506  ;;  %v2749_v55 = vmul.f32 0.015625, %v2559_v58  ;;  %v20232_v63 = vld [vmem:[#allocation183_spill] sm:$0xff]  ;;  %4845 = vadd.xlane.f32.xlu1 %v4844_v13  ;;  %v20234_v47 = vld [vmem:[#allocation102_spill] sm:$0xff] }
 0x356   : > { %v3507_v37 = vmul.f32 %v11503_v48, %v20227_v14  ;;  %10976 = vmatmul.mubr.msk.f32.gmra.mrb[148].mxu1 %vm1627_vm1, %v3634_v36  ;;  %v5314_v48 = vmul.f32 %v15557_v0, %v15557_v0  ;;  %v20229_v36 = vld [vmem:[#allocation50_spill] sm:$0xff]  ;;  %v3006_v14 = vsub.f32 %v2750_v45, %v20232_v63  ;;  %v20233_v9 = vld [vmem:[#allocation51_spill] sm:$0xff]  ;;  %v15599_v58 = vadd.f32 %v15425_v28, %v15143_v44 }
 0x357   : > { %v3259_v12 = vadd.f32 1e-05, %v3003_v57  ;;  %v20231_v16 = vsub.f32 %v20229_v36, %v20230_v6  ;;  %11516 = vrsqrt.f32 %v3260_v60  ;;  %v20235_v57 = vsub.f32 %v20233_v9, %v20234_v47  ;;  %v20237_v36 = vld [vmem:[#allocation184_spill] sm:$0xff]  ;;  %v2568_v60 = vpop.xlane.xlu1 %2567 }
 0x358   : > { %v3635_v10 = vmax.f32 %v3507_v37, 0.0  ;;  %v4841_v37 = vsel %vm1627_vm1, %v15564_v39, 0.0  ;;  %20236 = vst [vmem:[#allocation199_spill] sm:$0xff] %v15599_v58  ;;  %v11509_v13 = vpop.eup %11508  ;;  %v3262_v6 = vadd.f32 1e-05, %v3006_v14  ;;  %v20243_v14 = vld [vmem:[#allocation61_spill] sm:$0xff] }
 0x359   : > { %v3510_v41 = vmul.f32 %v11505_v49, %v20231_v16  ;;  %v3509_v29 = vmul.f32 %v11507_v46, %v20235_v57  ;;  %11518 = vrsqrt.f32 %v3259_v12  ;;  %v3005_v49 = vsub.f32 %v2749_v55, %v20237_v36  ;;  %4842 = vadd.xlane.f32.xlu0 %v4841_v37  ;;  %v2565_v46 = vpop.xlane.xlu0 %2564  ;;  %v11511_v9 = vpop.eup %11510  ;;  %v20239_v55 = vld [vmem:[#allocation60_spill] sm:$0xff]  ;;  %v20240_v37 = vld [vmem:[#allocation106_spill] sm:$0xff] }
 0x35a   : > { %10978 = vmatprep.mubr.msk.f32.mxu1 %vm1627_vm1, %v3635_v10  ;;  %v15605_v10 = vadd.f32 %v15425_v28, %v15152_v23  ;;  %v2752_v16 = vmul.f32 0.015625, %v2568_v60  ;;  %v2751_v47 = vmul.f32 0.015625, %v2565_v46  ;;  %v5481_v12 = vsel %vm1627_vm1, %v5313_v15, 0.0  ;;  %v20244_v60 = vld [vmem:[#allocation108_spill] sm:$0xff] }
 0x35b   : > { %10979 = vmatmul.mubr.msk.f32.gmra.mrb[150].mxu1 %vm1627_vm1, %v3636_v62  ;;  %v3638_v45 = vmax.f32 %v3510_v41, 0.0  ;;  %v3637_v63 = vmax.f32 %v3509_v29, 0.0  ;;  %v3261_v44 = vadd.f32 1e-05, %v3005_v49  ;;  %v20241_v57 = vsub.f32 %v20239_v55, %v20240_v37  ;;  %v20242_v41 = vld [vmem:[#allocation185_spill] sm:$0xff]  ;;  %5482 = vadd.xlane.f32.xlu1 %v5481_v12  ;;  %v20246_v49 = vld [vmem:[#allocation190_spill] sm:$0xff]  ;;  %v2574_v15 = vpop.xlane.xlu1 %2573 }
 0x35c   : > { %20238 = vst [vmem:[#allocation201_spill] sm:$0xff] %v15605_v10  ;;  %11520 = vrsqrt.f32 %v3262_v6  ;;  %v3008_v36 = vsub.f32 %v2752_v16, %v20242_v41  ;;  %v5484_v23 = vsel %vm1627_vm1, %v5314_v48, 0.0  ;;  %v20245_v29 = vsub.f32 %v20243_v14, %v20244_v60  ;;  %v20248_v41 = vld [vmem:[#allocation112_spill] sm:$0xff] }
 0x35d   : > { %v3512_v62 = vmul.f32 %v11509_v13, %v20241_v57  ;;  %10981 = vmatprep.mubr.msk.f32.mxu1 %vm1627_vm1, %v3637_v63  ;;  %11522 = vrsqrt.f32 %v3261_v44  ;;  %v3007_v46 = vsub.f32 %v2751_v47, %v20246_v49  ;;  %5485 = vadd.xlane.f32.xlu0 %v5484_v23  ;;  %v4850_v13 = vsel %vm1627_vm1, %v15599_v58, 0.0  ;;  %v11513_v16 = vpop.eup %11512  ;;  %v2571_v55 = vpop.xlane.xlu0 %2570 }
 0x35e   : > { %v3511_v0 = vmul.f32 %v11511_v9, %v20245_v29  ;;  %v3264_v63 = vadd.f32 1e-05, %v3008_v36  ;;  %v2754_v12 = vmul.f32 0.015625, %v2574_v15  ;;  %v4847_v37 = vsel %vm1627_vm1, %v15605_v10, 0.0  ;;  %v11515_v9 = vpop.eup %11514  ;;  %v15629_v36 = vpop.f32.mrb[100].mxu1  ;;  %v20252_v29 = vld [vmem:[#allocation114_spill] sm:$0xff] }
 0x35f   : > { %10982 = vmatmul.mubr.msk.f32.gmra.mrb[152].mxu1 %vm1627_vm1, %v3638_v45  ;;  %v3640_v6 = vmax.f32 %v3512_v62, 0.0  ;;  %v3263_v44 = vadd.f32 1e-05, %v3007_v46  ;;  %v2753_v57 = vmul.f32 0.015625, %v2571_v55  ;;  %v5315_v47 = vmul.f32 %v15605_v10, %v15605_v10  ;;  %v20247_v45 = vld [vmem:[#allocation69_spill] sm:$0xff]  ;;  %v20250_v62 = vld [vmem:[#allocation191_spill] sm:$0xff]  ;;  %4851 = vadd.xlane.f32.xlu1 %v4850_v13  ;;  %v2580_v13 = vpop.xlane.xlu1 %2579 }
 0x360   : > { %v3639_v48 = vmax.f32 %v3511_v0, 0.0  ;;  %v20249_v23 = vsub.f32 %v20247_v45, %v20248_v41  ;;  %11524 = vrsqrt.f32 %v3264_v63  ;;  %v3010_v60 = vsub.f32 %v2754_v12, %v20250_v62  ;;  %v20251_v0 = vld [vmem:[#allocation70_spill] sm:$0xff]  ;;  %v15642_v12 = vpop.f32.mrb[101].mxu1 }
 0x361   : > { %v20253_v49 = vsub.f32 %v20251_v0, %v20252_v29  ;;  %v5316_v15 = vmul.f32 %v15599_v58, %v15599_v58  ;;  %v15639_v55 = vadd.f32 %v15425_v28, %v15204_v3  ;;  %11526 = vrsqrt.f32 %v3263_v44  ;;  %4848 = vadd.xlane.f32.xlu0 %v4847_v37  ;;  %v11517_v45 = vpop.eup %11516  ;;  %v2577_v62 = vpop.xlane.xlu0 %2576  ;;  %v20257_v37 = vld [vmem:[#allocation118_spill] sm:$0xff] }
 0x362   : > { %v3514_v14 = vmul.f32 %v11513_v16, %v20249_v23  ;;  %10984 = vmatprep.mubr.msk.f32.mxu1 %vm1627_vm1, %v3639_v48  ;;  %v20255_v16 = vld [vmem:[#allocation192_spill] sm:$0xff]  ;;  %v3266_v41 = vadd.f32 1e-05, %v3010_v60  ;;  %v2756_v23 = vmul.f32 0.015625, %v2580_v13  ;;  %v2755_v29 = vmul.f32 0.015625, %v2577_v62 }
 0x363   : > { %v3513_v46 = vmul.f32 %v11515_v9, %v20253_v49  ;;  %20254 = vst [vmem:[#allocation202_spill] sm:$0xff] %v15639_v55  ;;  %v3009_v63 = vsub.f32 %v2753_v57, %v20255_v16  ;;  %10985 = vmatmul.mubr.msk.f32.gmra.mrb[154].mxu1 %vm1627_vm1, %v3640_v6  ;;  %v15647_v9 = vadd.f32 %v15425_v28, %v15215_v61  ;;  %v11519_v0 = vpop.eup %11518  ;;  %v5487_v57 = vsel %vm1627_vm1, %v5315_v47, 0.0  ;;  %v20256_v49 = vld [vmem:[#allocation75_spill] sm:$0xff]  ;;  %v20260_v60 = vld [vmem:[#allocation76_spill] sm:$0xff]  ;;  %v2586_v47 = vpop.xlane.xlu1 %2585 }
 0x364   : > { %v3642_v48 = vmax.f32 %v3514_v14, 0.0  ;;  %v20258_v16 = vsub.f32 %v20256_v49, %v20257_v37  ;;  %11528 = vrsqrt.f32 %v3266_v41  ;;  %v20259_v14 = vld [vmem:[#allocation193_spill] sm:$0xff]  ;;  %5488 = vadd.xlane.f32.xlu1 %v5487_v57  ;;  %v5490_v61 = vsel %vm1627_vm1, %v5316_v15, 0.0  ;;  %v20261_v13 = vld [vmem:[#allocation120_spill] sm:$0xff] }
 0x365   : > { %v3641_v3 = vmax.f32 %v3513_v46, 0.0  ;;  %v3265_v44 = vadd.f32 1e-05, %v3009_v63  ;;  %v3012_v58 = vsub.f32 %v2756_v23, %v20259_v14  ;;  %v20262_v46 = vsub.f32 %v20260_v60, %v20261_v13  ;;  %v20263_v63 = vld [vmem:[#allocation195_spill] sm:$0xff]  ;;  %5491 = vadd.xlane.f32.xlu0 %v5490_v61  ;;  %v2583_v49 = vpop.xlane.xlu0 %2582  ;;  %v20265_v14 = vld [vmem:[#allocation124_spill] sm:$0xff] }
 0x366   : > { %v3516_v6 = vmul.f32 %v11517_v45, %v20258_v16  ;;  %v3011_v62 = vsub.f32 %v2755_v29, %v20263_v63  ;;  %v4856_v45 = vsel %vm1627_vm1, %v15639_v55, 0.0  ;;  %v11521_v23 = vpop.eup %11520  ;;  %v2758_v57 = vmul.f32 0.015625, %v2586_v47 }
 0x367   : > { %10987 = vmatprep.mubr.msk.f32.mxu1 %vm1627_vm1, %v3641_v3  ;;  %v3515_v10 = vmul.f32 %v11519_v0, %v20262_v46  ;;  %11530 = vrsqrt.f32 %v3265_v44  ;;  %v3268_v3 = vadd.f32 1e-05, %v3012_v58  ;;  %v4853_v37 = vsel %vm1627_vm1, %v15647_v9, 0.0  ;;  %v11523_v0 = vpop.eup %11522  ;;  %v20268_v58 = vld [vmem:[#allocation82_spill] sm:$0xff] }
 0x368   : > { %10988 = vmatmul.mubr.msk.f32.gmra.mrb[156].mxu1 %vm1627_vm1, %v3642_v48  ;;  %v3644_v41 = vmax.f32 %v3516_v6, 0.0  ;;  %v3267_v44 = vadd.f32 1e-05, %v3011_v62  ;;  %v2757_v16 = vmul.f32 0.015625, %v2583_v49  ;;  %v5317_v29 = vmul.f32 %v15647_v9, %v15647_v9  ;;  %v20264_v48 = vld [vmem:[#allocation81_spill] sm:$0xff]  ;;  %4857 = vadd.xlane.f32.xlu1 %v4856_v45  ;;  %v20272_v49 = vld [vmem:[#allocation198_spill] sm:$0xff] }
 0x369   : > { %v3643_v15 = vmax.f32 %v3515_v10, 0.0  ;;  %v20266_v61 = vsub.f32 %v20264_v48, %v20265_v14  ;;  %11532 = vrsqrt.f32 %v3268_v3  ;;  %v20267_v6 = vld [vmem:[#allocation197_spill] sm:$0xff]  ;;  %v20269_v10 = vld [vmem:[#allocation126_spill] sm:$0xff]  ;;  %v5318_v62 = vmul.f32 %v15639_v55, %v15639_v55  ;;  %4854 = vadd.xlane.f32.xlu0 %v4853_v37  ;;  %v2592_v3 = vpop.xlane.xlu1 %2591  ;;  %v2589_v14 = vpop.xlane.xlu0 %2588 }
 0x36a   : > { %v3014_v13 = vsub.f32 %v2758_v57, %v20267_v6  ;;  %v20270_v46 = vsub.f32 %v20268_v58, %v20269_v10  ;;  %v15679_v47 = vadd.f32 %v15425_v28, %v15263_v43  ;;  %11534 = vrsqrt.f32 %v3267_v44  ;;  %v11525_v45 = vpop.eup %11524  ;;  %v20274_v37 = vld [vmem:[#allocation73_spill] sm:$0xff] }
 0x36b   : > { %v3518_v60 = vmul.f32 %v11521_v23, %v20266_v61  ;;  %10990 = vmatprep.mubr.msk.f32.mxu1 %vm1627_vm1, %v3643_v15  ;;  %v3013_v23 = vsub.f32 %v2757_v16, %v20272_v49  ;;  %v15685_v15 = vadd.f32 %v15425_v28, %v15268_v1  ;;  %v2760_v48 = vmul.f32 0.015625, %v2592_v3  ;;  %v11527_v6 = vpop.eup %11526  ;;  %v20273_v16 = vld [vmem:[#allocation87_spill] sm:$0xff]  ;;  %v15692_v49 = vpop.f32.mrb[102].mxu1 }
 0x36c   : > { %v3517_v63 = vmul.f32 %v11523_v0, %v20270_v46  ;;  %20271 = vst [vmem:[#allocation171_spill] sm:$0xff] %v15679_v47  ;;  %10991 = vmatmul.mubr.msk.f32.gmra.mrb[158].mxu1 %vm1627_vm1, %v3644_v41  ;;  %v3270_v0 = vadd.f32 1e-05, %v3014_v13  ;;  %v2759_v58 = vmul.f32 0.015625, %v2589_v14  ;;  %v5493_v44 = vsel %vm1627_vm1, %v5317_v29, 0.0  ;;  %v20277_v13 = vld [vmem:[#allocation88_spill] sm:$0xff] }
 0x36d   : > { %v3646_v57 = vmax.f32 %v3518_v60, 0.0  ;;  %v3269_v43 = vadd.f32 1e-05, %v3013_v23  ;;  %v20275_v10 = vsub.f32 %v20273_v16, %v20274_v37  ;;  %v20276_v60 = vld [vmem:[#allocation200_spill] sm:$0xff]  ;;  %5494 = vadd.xlane.f32.xlu1 %v5493_v44  ;;  %v5496_v1 = vsel %vm1627_vm1, %v5318_v62, 0.0  ;;  %v20280_v29 = vld [vmem:[#allocation203_spill] sm:$0xff]  ;;  %v2595_v16 = vpop.xlane.xlu0 %2594 }
 0x36e   : > { %v3645_v61 = vmax.f32 %v3517_v63, 0.0  ;;  %11536 = vrsqrt.f32 %v3270_v0  ;;  %v3016_v46 = vsub.f32 %v2760_v48, %v20276_v60  ;;  %v20278_v63 = vld [vmem:[#allocation74_spill] sm:$0xff]  ;;  %v3015_v14 = vsub.f32 %v2759_v58, %v20280_v29  ;;  %v15700_v55 = vpop.f32.mrb[103].mxu1  ;;  %5497 = vadd.xlane.f32.xlu0 %v5496_v1  ;;  %v20282_v1 = vld [vmem:[#allocation79_spill] sm:$0xff] }
 0x36f   : > { %v3520_v41 = vmul.f32 %v11525_v45, %v20275_v10  ;;  %v20279_v23 = vsub.f32 %v20277_v13, %v20278_v63  ;;  %11538 = vrsqrt.f32 %v3269_v43  ;;  %v2598_v45 = vpop.xlane.xlu1 %2597  ;;  %v4862_v0 = vsel %vm1627_vm1, %v15679_v47, 0.0 }
 0x370   : > { %10993 = vmatprep.mubr.msk.f32.mxu1 %vm1627_vm1, %v3645_v61  ;;  %v11529_v61 = vpop.eup %11528  ;;  %v3272_v44 = vadd.f32 1e-05, %v3016_v46  ;;  %v2762_v62 = vmul.f32 0.015625, %v2598_v45  ;;  %v3271_v58 = vadd.f32 1e-05, %v3015_v14  ;;  %v2761_v10 = vmul.f32 0.015625, %v2595_v16 }
 0x371   : > { %v3519_v3 = vmul.f32 %v11527_v6, %v20279_v23  ;;  %10994 = vmatmul.mubr.msk.f32.gmra.mrb[160].mxu1 %vm1627_vm1, %v3646_v57  ;;  %v3648_v48 = vmax.f32 %v3520_v41, 0.0  ;;  %v4859_v6 = vsel %vm1627_vm1, %v15685_v15, 0.0  ;;  %v11531_v43 = vpop.eup %11530  ;;  %v5319_v60 = vmul.f32 %v15685_v15, %v15685_v15  ;;  %v20281_v57 = vld [vmem:[#allocation92_spill] sm:$0xff]  ;;  %v20284_v41 = vld [vmem:[#allocation207_spill] sm:$0xff]  ;;  %4863 = vadd.xlane.f32.xlu1 %v4862_v0  ;;  %v20285_v46 = vld [vmem:[#allocation93_spill] sm:$0xff] }
 0x372   : > { %v20283_v13 = vsub.f32 %v20281_v57, %v20282_v1  ;;  %11540 = vrsqrt.f32 %v3272_v44  ;;  %v3018_v23 = vsub.f32 %v2762_v62, %v20284_v41  ;;  %v5320_v14 = vmul.f32 %v15679_v47, %v15679_v47  ;;  %v20289_v57 = vld [vmem:[#allocation210_spill] sm:$0xff]  ;;  %4860 = vadd.xlane.f32.xlu0 %v4859_v6  ;;  %v20292_v6 = vld [vmem:[#allocation85_spill] sm:$0xff] }
 0x373   : > { %v3647_v37 = vmax.f32 %v3519_v3, 0.0  ;;  %v20286_v3 = vld [vmem:[#allocation80_spill] sm:$0xff]  ;;  %v15721_v16 = vadd.f32 %v15425_v28, %v15342_v59  ;;  %11542 = vrsqrt.f32 %v3271_v58  ;;  %v2604_v44 = vpop.xlane.xlu1 %2603  ;;  %v11533_v0 = vpop.eup %11532  ;;  %v5499_v58 = vsel %vm1627_vm1, %v5319_v60, 0.0 }
 0x374   : > { %v3522_v63 = vmul.f32 %v11529_v61, %v20283_v13  ;;  %v20287_v29 = vsub.f32 %v20285_v46, %v20286_v3  ;;  %v3017_v61 = vsub.f32 %v2761_v10, %v20289_v57  ;;  %v2764_v1 = vmul.f32 0.015625, %v2604_v44  ;;  %v2601_v13 = vpop.xlane.xlu0 %2600  ;;  %v11535_v46 = vpop.eup %11534  ;;  %v20291_v10 = vld [vmem:[#allocation15_spill] sm:$0xff]  ;;  %v20296_v44 = vld [vmem:[#allocation86_spill] sm:$0xff] }
 0x375   : > { %10996 = vmatprep.mubr.msk.f32.mxu1 %vm1627_vm1, %v3647_v37  ;;  %20288 = vst [vmem:[#allocation46_spill] sm:$0xff] %v15721_v16  ;;  %v15727_v37 = vadd.f32 %v15425_v28, %v15360_v26  ;;  %v2763_v3 = vmul.f32 0.015625, %v2601_v13  ;;  %5500 = vadd.xlane.f32.xlu1 %v5499_v58  ;;  %v5502_v26 = vsel %vm1627_vm1, %v5320_v14, 0.0 }
 0x376   : > { %v3521_v45 = vmul.f32 %v11531_v43, %v20287_v29  ;;  %10997 = vmatmul.mubr.msk.f32.gmra.mrb[162].mxu1 %vm1627_vm1, %v3648_v48  ;;  %v3650_v62 = vmax.f32 %v3522_v63, 0.0  ;;  %v3274_v43 = vadd.f32 1e-05, %v3018_v23  ;;  %v3273_v59 = vadd.f32 1e-05, %v3017_v61  ;;  %v20294_v63 = vld [vmem:[#allocation211_spill] sm:$0xff]  ;;  %5503 = vadd.xlane.f32.xlu0 %v5502_v26 }
 0x377   : > { %20290 = vst [vmem:[#allocation113_spill] sm:$0xff] %v15727_v37  ;;  %v20293_v29 = vsub.f32 %v20291_v10, %v20292_v6  ;;  %v3020_v57 = vsub.f32 %v2764_v1, %v20294_v63  ;;  %v20295_v23 = vld [vmem:[#allocation96_spill] sm:$0xff]  ;;  %v20298_v61 = vld [vmem:[#allocation213_spill] sm:$0xff]  ;;  %v2610_v60 = vpop.xlane.xlu1 %2609  ;;  %v4865_v6 = vsel %vm1627_vm1, %v15727_v37, 0.0  ;;  %v20300_v63 = vld [vmem:[#allocation91_spill] sm:$0xff] }
 0x378   : > { %v3649_v41 = vmax.f32 %v3521_v45, 0.0  ;;  %11544 = vrsqrt.f32 %v3274_v43  ;;  %v20297_v45 = vsub.f32 %v20295_v23, %v20296_v44  ;;  %v3019_v13 = vsub.f32 %v2763_v3, %v20298_v61  ;;  %v11537_v1 = vpop.eup %11536  ;;  %v2607_v10 = vpop.xlane.xlu0 %2606 }
 0x379   : > { %v3524_v48 = vmul.f32 %v11533_v0, %v20293_v29  ;;  %11546 = vrsqrt.f32 %v3273_v59  ;;  %v4868_v0 = vsel %vm1627_vm1, %v15721_v16, 0.0  ;;  %v2766_v58 = vmul.f32 0.015625, %v2610_v60 }
 0x37a   : > { %10999 = vmatprep.mubr.msk.f32.mxu1 %vm1627_vm1, %v3649_v41  ;;  %v3523_v47 = vmul.f32 %v11535_v46, %v20297_v45  ;;  %v3276_v41 = vadd.f32 1e-05, %v3020_v57  ;;  %v11539_v46 = vpop.eup %11538  ;;  %v3275_v59 = vadd.f32 1e-05, %v3019_v13  ;;  %v2765_v29 = vmul.f32 0.015625, %v2607_v10  ;;  %v15751_v57 = vpop.f32.mrb[104].mxu1  ;;  %4869 = vadd.xlane.f32.xlu1 %v4868_v0 }
 0x37b   : > { %11000 = vmatmul.mubr.msk.f32.gmra.mrb[164].mxu1 %vm1627_vm1, %v3650_v62  ;;  %v3652_v43 = vmax.f32 %v3524_v48, 0.0  ;;  %v5321_v3 = vmul.f32 %v15727_v37, %v15727_v37  ;;  %v20299_v62 = vld [vmem:[#allocation19_spill] sm:$0xff]  ;;  %v20302_v48 = vld [vmem:[#allocation64_spill] sm:$0xff]  ;;  %v20304_v45 = vld [vmem:[#allocation130_spill] sm:$0xff]  ;;  %v5322_v60 = vmul.f32 %v15721_v16, %v15721_v16  ;;  %v15761_v10 = vadd.f32 %v15425_v28, %v15432_v11  ;;  %4866 = vadd.xlane.f32.xlu0 %v4865_v6  ;;  %v2616_v0 = vpop.xlane.xlu1 %2615 }
 0x37c   : > { %v3651_v14 = vmax.f32 %v3523_v47, 0.0  ;;  %v20301_v26 = vsub.f32 %v20299_v62, %v20300_v63  ;;  %11548 = vrsqrt.f32 %v3276_v41  ;;  %v3022_v44 = vsub.f32 %v2766_v58, %v20302_v48  ;;  %v20303_v47 = vld [vmem:[#allocation98_spill] sm:$0xff]  ;;  %v15764_v58 = vpop.f32.mrb[105].mxu1  ;;  %v11541_v62 = vpop.eup %11540 }
 0x37d   : > { %v20305_v61 = vsub.f32 %v20303_v47, %v20304_v45  ;;  %11550 = vrsqrt.f32 %v3275_v59  ;;  %v2613_v48 = vpop.xlane.xlu0 %2612  ;;  %v11543_v47 = vpop.eup %11542  ;;  %v20308_v6 = vld [vmem:[#allocation134_spill] sm:$0xff] }
 0x37e   : > { %v3526_v23 = vmul.f32 %v11537_v1, %v20301_v26  ;;  %11002 = vmatprep.mubr.msk.f32.mxu1 %vm1627_vm1, %v3651_v14  ;;  %v20306_v1 = vld [vmem:[#allocation216_spill] sm:$0xff]  ;;  %v3278_v63 = vadd.f32 1e-05, %v3022_v44  ;;  %v2768_v26 = vmul.f32 0.015625, %v2616_v0  ;;  %v2767_v45 = vmul.f32 0.015625, %v2613_v48 }
 0x37f   : > { %v3525_v13 = vmul.f32 %v11539_v46, %v20305_v61  ;;  %v3021_v41 = vsub.f32 %v2765_v29, %v20306_v1  ;;  %11003 = vmatmul.mubr.msk.f32.gmra.mrb[166].mxu1 %vm1627_vm1, %v3652_v43  ;;  %v15769_v46 = vadd.f32 %v15425_v28, %v15444_v30  ;;  %v5505_v29 = vsel %vm1627_vm1, %v5321_v3, 0.0  ;;  %v20307_v61 = vld [vmem:[#allocation23_spill] sm:$0xff]  ;;  %v20311_v44 = vld [vmem:[#allocation100_spill] sm:$0xff]  ;;  %v2622_v3 = vpop.xlane.xlu1 %2621 }
 0x380   : > { %v3654_v14 = vmax.f32 %v3526_v23, 0.0  ;;  %v20309_v1 = vsub.f32 %v20307_v61, %v20308_v6  ;;  %11552 = vrsqrt.f32 %v3278_v63  ;;  %v20310_v23 = vld [vmem:[#allocation222_spill] sm:$0xff]  ;;  %5506 = vadd.xlane.f32.xlu1 %v5505_v29  ;;  %v5508_v30 = vsel %vm1627_vm1, %v5322_v60, 0.0  ;;  %v20312_v0 = vld [vmem:[#allocation136_spill] sm:$0xff] }
 0x381   : > { %v3653_v11 = vmax.f32 %v3525_v13, 0.0  ;;  %v3277_v59 = vadd.f32 1e-05, %v3021_v41  ;;  %v3024_v16 = vsub.f32 %v2768_v26, %v20310_v23  ;;  %v20313_v13 = vsub.f32 %v20311_v44, %v20312_v0  ;;  %v20314_v41 = vld [vmem:[#allocation223_spill] sm:$0xff]  ;;  %5509 = vadd.xlane.f32.xlu0 %v5508_v30  ;;  %v2619_v61 = vpop.xlane.xlu0 %2618  ;;  %v20316_v23 = vld [vmem:[#allocation138_spill] sm:$0xff] }
 0x382   : > { %v3528_v43 = vmul.f32 %v11541_v62, %v20309_v1  ;;  %v3023_v48 = vsub.f32 %v2767_v45, %v20314_v41  ;;  %v4874_v62 = vsel %vm1627_vm1, %v15761_v10, 0.0  ;;  %v11545_v26 = vpop.eup %11544  ;;  %v2770_v29 = vmul.f32 0.015625, %v2622_v3 }
 0x383   : > { %11005 = vmatprep.mubr.msk.f32.mxu1 %vm1627_vm1, %v3653_v11  ;;  %v3527_v37 = vmul.f32 %v11543_v47, %v20313_v13  ;;  %11554 = vrsqrt.f32 %v3277_v59  ;;  %v3280_v11 = vadd.f32 1e-05, %v3024_v16  ;;  %v4871_v6 = vsel %vm1627_vm1, %v15769_v46, 0.0  ;;  %v11547_v47 = vpop.eup %11546  ;;  %v20319_v16 = vld [vmem:[#allocation45_spill] sm:$0xff] }
 0x384   : > { %11006 = vmatmul.mubr.msk.f32.gmra.mrb[168].mxu1 %vm1627_vm1, %v3654_v14  ;;  %v3656_v63 = vmax.f32 %v3528_v43, 0.0  ;;  %v3279_v59 = vadd.f32 1e-05, %v3023_v48  ;;  %v2769_v1 = vmul.f32 0.015625, %v2619_v61  ;;  %v5323_v45 = vmul.f32 %v15769_v46, %v15769_v46  ;;  %v20315_v14 = vld [vmem:[#allocation27_spill] sm:$0xff]  ;;  %v20318_v43 = vld [vmem:[#allocation225_spill] sm:$0xff]  ;;  %4875 = vadd.xlane.f32.xlu1 %v4874_v62 }
 0x385   : > { %v3655_v60 = vmax.f32 %v3527_v37, 0.0  ;;  %v20317_v30 = vsub.f32 %v20315_v14, %v20316_v23  ;;  %11556 = vrsqrt.f32 %v3280_v11  ;;  %v3026_v0 = vsub.f32 %v2770_v29, %v20318_v43  ;;  %v20320_v37 = vld [vmem:[#allocation140_spill] sm:$0xff]  ;;  %v20322_v61 = vld [vmem:[#allocation226_spill] sm:$0xff]  ;;  %4872 = vadd.xlane.f32.xlu0 %v4871_v6  ;;  %v2628_v11 = vpop.xlane.xlu1 %2627  ;;  %v2625_v23 = vpop.xlane.xlu0 %2624 }
 0x386   : > { %v20321_v13 = vsub.f32 %v20319_v16, %v20320_v37  ;;  %v5324_v48 = vmul.f32 %v15761_v10, %v15761_v10  ;;  %v15801_v3 = vadd.f32 %v15425_v28, %v15503_v21  ;;  %11558 = vrsqrt.f32 %v3279_v59  ;;  %v11549_v62 = vpop.eup %11548  ;;  %v20324_v6 = vld [vmem:[#allocation142_spill] sm:$0xff] }
 0x387   : > { %v3530_v44 = vmul.f32 %v11545_v26, %v20317_v30  ;;  %11008 = vmatprep.mubr.msk.f32.mxu1 %vm1627_vm1, %v3655_v60  ;;  %v3025_v26 = vsub.f32 %v2769_v1, %v20322_v61  ;;  %v15807_v60 = vadd.f32 %v15425_v28, %v15514_v40  ;;  %v2772_v14 = vmul.f32 0.015625, %v2628_v11  ;;  %v11551_v43 = vpop.eup %11550  ;;  %v20323_v1 = vld [vmem:[#allocation31_spill] sm:$0xff] }
 0x388   : > { %v3529_v41 = vmul.f32 %v11547_v47, %v20321_v13  ;;  %11009 = vmatmul.mubr.msk.f32.gmra.mrb[170].mxu1 %vm1627_vm1, %v3656_v63  ;;  %v3282_v47 = vadd.f32 1e-05, %v3026_v0  ;;  %v2771_v16 = vmul.f32 0.015625, %v2625_v23  ;;  %v5511_v59 = vsel %vm1627_vm1, %v5323_v45, 0.0  ;;  %v15814_v13 = vpop.f32.mrb[106].mxu1  ;;  %v20326_v0 = vld [vmem:[#allocation54_spill] sm:$0xff] }
 0x389   : > { %v3658_v29 = vmax.f32 %v3530_v44, 0.0  ;;  %v3281_v21 = vadd.f32 1e-05, %v3025_v26  ;;  %v20325_v37 = vsub.f32 %v20323_v1, %v20324_v6  ;;  %v3028_v44 = vsub.f32 %v2772_v14, %v15175_v34  ;;  %5512 = vadd.xlane.f32.xlu1 %v5511_v59  ;;  %v15822_v11 = vpop.f32.mrb[107].mxu1  ;;  %v2634_v34 = vpop.xlane.xlu1 %2633  ;;  %v20330_v6 = vld [vmem:[#allocation212_spill] sm:$0xff] }
 0x38a   : > { %v3657_v30 = vmax.f32 %v3529_v41, 0.0  ;;  %11560 = vrsqrt.f32 %v3282_v47  ;;  %v5514_v40 = vsel %vm1627_vm1, %v5324_v48, 0.0  ;;  %v20327_v41 = vld [vmem:[#allocation144_spill] sm:$0xff]  ;;  %v3027_v45 = vsub.f32 %v2771_v16, %v15223_v24  ;;  %v11553_v14 = vpop.eup %11552 }
 0x38b   : > { %v3532_v63 = vmul.f32 %v11549_v62, %v20325_v37  ;;  %v20328_v61 = vsub.f32 %v20326_v0, %v20327_v41  ;;  %11562 = vrsqrt.f32 %v3281_v21  ;;  %5515 = vadd.xlane.f32.xlu0 %v5514_v40  ;;  %v4880_v62 = vsel %vm1627_vm1, %v15801_v3, 0.0  ;;  %v20333_v0 = vld [vmem:[#allocation214_spill] sm:$0xff] }
 0x38c   : > { %11011 = vmatprep.mubr.msk.f32.mxu1 %vm1627_vm1, %v3657_v30  ;;  %v3284_v23 = vadd.f32 1e-05, %v3028_v44  ;;  %v2774_v48 = vmul.f32 0.015625, %v2634_v34  ;;  %v2631_v30 = vpop.xlane.xlu0 %2630  ;;  %v3283_v24 = vadd.f32 1e-05, %v3027_v45  ;;  %v5325_v1 = vmul.f32 %v15807_v60, %v15807_v60  ;;  %v20332_v44 = vld [vmem:[#allocation65_spill] sm:$0xff] }
 0x38d   : > { %v3531_v26 = vmul.f32 %v11551_v43, %v20328_v61  ;;  %11012 = vmatmul.mubr.msk.f32.gmra.mrb[172].mxu1 %vm1627_vm1, %v3658_v29  ;;  %v3660_v47 = vmax.f32 %v3532_v63, 0.0  ;;  %v4877_v43 = vsel %vm1627_vm1, %v15807_v60, 0.0  ;;  %v11555_v21 = vpop.eup %11554  ;;  %v2773_v16 = vmul.f32 0.015625, %v2631_v30  ;;  %v20329_v29 = vld [vmem:[#allocation35_spill] sm:$0xff]  ;;  %4881 = vadd.xlane.f32.xlu1 %v4880_v62 }
 0x38e   : > { %v20331_v37 = vsub.f32 %v20329_v29, %v20330_v6  ;;  %11564 = vrsqrt.f32 %v3284_v23  ;;  %v3030_v63 = vsub.f32 %v2774_v48, %v15287_v33  ;;  %v20334_v41 = vsub.f32 %v20332_v44, %v20333_v0  ;;  %v2640_v33 = vpop.xlane.xlu1 %2639 }
 0x38f   : > { %v3659_v59 = vmax.f32 %v3531_v26, 0.0  ;;  %v5326_v26 = vmul.f32 %v15801_v3, %v15801_v3  ;;  %v15843_v45 = vadd.f32 %v15425_v28, %v15570_v19  ;;  %11566 = vrsqrt.f32 %v3283_v24  ;;  %4878 = vadd.xlane.f32.xlu0 %v4877_v43  ;;  %v11557_v62 = vpop.eup %11556  ;;  %v20336_v43 = vld [vmem:[#allocation217_spill] sm:$0xff] }
 0x390   : > { %v3534_v40 = vmul.f32 %v11553_v14, %v20331_v37  ;;  %v3533_v61 = vmul.f32 %v11555_v21, %v20334_v41  ;;  %v3029_v34 = vsub.f32 %v2773_v16, %v15302_v42  ;;  %v15849_v23 = vadd.f32 %v15425_v28, %v15578_v20  ;;  %v11559_v29 = vpop.eup %11558  ;;  %v20335_v42 = vld [vmem:[#allocation104_spill] sm:$0xff]  ;;  %v20338_v28 = vld [vmem:[#allocation105_spill] sm:$0xff] }
 0x391   : > { %11014 = vmatprep.mubr.msk.f32.mxu1 %vm1627_vm1, %v3659_v59  ;;  %v3286_v48 = vadd.f32 1e-05, %v3030_v63  ;;  %v2776_v30 = vmul.f32 0.015625, %v2640_v33  ;;  %v2637_v59 = vpop.xlane.xlu0 %2636  ;;  %v5517_v24 = vsel %vm1627_vm1, %v5325_v1, 0.0  ;;  %v20337_v16 = vsub.f32 %v20335_v42, %v20336_v43  ;;  %v15873_v42 = vpop.f32.mrb[108].mxu1  ;;  %v20344_v43 = vld [vmem:[#allocation109_spill] sm:$0xff] }
 0x392   : > { %11015 = vmatmul.mubr.msk.f32.gmra.mrb[174].mxu1 %vm1627_vm1, %v3660_v47  ;;  %v3662_v14 = vmax.f32 %v3534_v40, 0.0  ;;  %v3661_v21 = vmax.f32 %v3533_v61, 0.0  ;;  %v3285_v19 = vadd.f32 1e-05, %v3029_v34  ;;  %v2775_v6 = vmul.f32 0.015625, %v2637_v59  ;;  %5518 = vadd.xlane.f32.xlu1 %v5517_v24  ;;  %v20339_v40 = vld [vmem:[#allocation218_spill] sm:$0xff]  ;;  %v2646_v1 = vpop.xlane.xlu1 %2645 }
 0x393   : > { %v3536_v47 = vmul.f32 %v11557_v62, %v20337_v16  ;;  %11568 = vrsqrt.f32 %v3286_v48  ;;  %v3032_v37 = vsub.f32 %v2776_v30, %v15407_v8  ;;  %v5520_v20 = vsel %vm1627_vm1, %v5326_v26, 0.0  ;;  %v20345_v16 = vld [vmem:[#allocation40_spill] sm:$0xff] }
 0x394   : > { %11017 = vmatprep.mubr.msk.f32.mxu1 %vm1627_vm1, %v3661_v21  ;;  %v20340_v63 = vsub.f32 %v20338_v28, %v20339_v40  ;;  %11570 = vrsqrt.f32 %v3285_v19  ;;  %v3031_v0 = vsub.f32 %v2775_v6, %v15414_v52  ;;  %5521 = vadd.xlane.f32.xlu0 %v5520_v20  ;;  %v4886_v41 = vsel %vm1627_vm1, %v15843_v45, 0.0  ;;  %v11561_v61 = vpop.eup %11560  ;;  %v15884_v28 = vld [vmem:[%s19167_s6] ss:$0 sm:$0xff] }
 0x395   : > { %v3664_v8 = vmax.f32 %v3536_v47, 0.0  ;;  %v3288_v34 = vadd.f32 1e-05, %v3032_v37  ;;  %v2778_v33 = vmul.f32 0.015625, %v2646_v1  ;;  %v2643_v62 = vpop.xlane.xlu0 %2642  ;;  %v4883_v48 = vsel %vm1627_vm1, %v15849_v23, 0.0  ;;  %v11563_v30 = vpop.eup %11562 }
 0x396   : > { %v3535_v44 = vmul.f32 %v11559_v29, %v20340_v63  ;;  %11018 = vmatmul.mubr.msk.f32.gmra.mrb[176].mxu1 %vm1627_vm1, %v3662_v14  ;;  %v3287_v59 = vadd.f32 1e-05, %v3031_v0  ;;  %v2777_v21 = vmul.f32 0.015625, %v2643_v62  ;;  %v5327_v52 = vmul.f32 %v15849_v23, %v15849_v23  ;;  %v20341_v14 = vld [vmem:[#allocation107_spill] sm:$0xff]  ;;  %4887 = vadd.xlane.f32.xlu1 %v4886_v41  ;;  %v15891_v63 = vpop.f32.mrb[109].mxu1 }
 0x397   : > { %v20342_v29 = vld [vmem:[#allocation39_spill] sm:$0xff]  ;;  %11572 = vrsqrt.f32 %v3288_v34  ;;  %v3034_v24 = vsub.f32 %v2778_v33, %v15453_v25  ;;  %v20346_v47 = vsub.f32 %v20344_v43, %v20345_v16  ;;  %v5328_v20 = vmul.f32 %v15843_v45, %v15843_v45 }
 0x398   : > { %v3663_v26 = vmax.f32 %v3535_v44, 0.0  ;;  %v20343_v19 = vsub.f32 %v20341_v14, %v20342_v29  ;;  %v15888_v25 = vadd.f32 %v15884_v28, %v15629_v36  ;;  %11574 = vrsqrt.f32 %v3287_v59  ;;  %4884 = vadd.xlane.f32.xlu0 %v4883_v48  ;;  %v2652_v44 = vpop.xlane.xlu1 %2651  ;;  %v11565_v1 = vpop.eup %11564  ;;  %v20349_v29 = vld [vmem:[#allocation119_spill] sm:$0xff] }
 0x399   : > { %v3537_v37 = vmul.f32 %v11563_v30, %v20346_v47  ;;  %v3033_v40 = vsub.f32 %v2777_v21, %v15475_v17  ;;  %v15896_v41 = vadd.f32 %v15884_v28, %v15642_v12  ;;  %v2780_v34 = vmul.f32 0.015625, %v2652_v44  ;;  %v2649_v33 = vpop.xlane.xlu0 %2648  ;;  %v11567_v62 = vpop.eup %11566 }
 0x39a   : > { %v3538_v6 = vmul.f32 %v11561_v61, %v20343_v19  ;;  %11020 = vmatprep.mubr.msk.f32.mxu1 %vm1627_vm1, %v3663_v26  ;;  %v3290_v61 = vadd.f32 1e-05, %v3034_v24  ;;  %v2779_v30 = vmul.f32 0.015625, %v2649_v33  ;;  %v5523_v17 = vsel %vm1627_vm1, %v5327_v52, 0.0 }
 0x39b   : > { %11021 = vmatmul.mubr.msk.f32.gmra.mrb[178].mxu1 %vm1627_vm1, %v3664_v8  ;;  %v3665_v36 = vmax.f32 %v3537_v37, 0.0  ;;  %v3289_v26 = vadd.f32 1e-05, %v3033_v40  ;;  %v20347_v48 = vsub.f32 %v20086_v27, %v15102_v56  ;;  %v3036_v59 = vsub.f32 %v2780_v34, %v15523_v38  ;;  %5524 = vadd.xlane.f32.xlu1 %v5523_v17 }
 0x39c   : > { %v3666_v0 = vmax.f32 %v3538_v6, 0.0  ;;  %11576 = vrsqrt.f32 %v3290_v61  ;;  %v5526_v12 = vsel %vm1627_vm1, %v5328_v20, 0.0  ;;  %v20348_v21 = vsub.f32 %v20095_v50, %v15166_v18  ;;  %v4786_v56 = vpop.xlane.xlu1 %4785  ;;  %v20352_v61 = vld [vmem:[#allocation121_spill] sm:$0xff] }
 0x39d   : > { %v3540_v8 = vmul.f32 %v11565_v1, %v20347_v48  ;;  %11023 = vmatprep.mubr.msk.f32.mxu1 %vm1627_vm1, %v3665_v36  ;;  %v3160_v19 = vsub.f32 %v20349_v29, %v15382_v54  ;;  %11578 = vrsqrt.f32 %v3289_v26  ;;  %v3035_v52 = vsub.f32 %v2779_v30, %v15530_v31  ;;  %5527 = vadd.xlane.f32.xlu0 %v5526_v12  ;;  %v11569_v38 = vpop.eup %11568  ;;  %v4783_v24 = vpop.xlane.xlu0 %4782 }
 0x39e   : > { %v3539_v14 = vmul.f32 %v11567_v62, %v20348_v21  ;;  %v3292_v6 = vadd.f32 1e-05, %v3036_v59  ;;  %v4892_v16 = vsel %vm1627_vm1, %v15888_v25, 0.0  ;;  %v5329_v18 = vmul.f32 %v15896_v41, %v15896_v41  ;;  %v11571_v50 = vpop.eup %11570  ;;  %v20353_v59 = vld [vmem:[#allocation66_spill] sm:$0xff] }
 0x39f   : > { %11024 = vmatmul.mubr.msk.f32.gmra.mrb[180].mxu1 %vm1627_vm1, %v3666_v0  ;;  %v3668_v27 = vmax.f32 %v3540_v8, 0.0  ;;  %v3291_v54 = vadd.f32 1e-05, %v3035_v52  ;;  %v15916_v47 = vmul.f32 0.015625, %v4786_v56  ;;  %v15918_v31 = vmul.f32 0.015625, %v4783_v24  ;;  %4893 = vadd.xlane.f32.xlu1 %v4892_v16  ;;  %v20354_v52 = vld [vmem:[#allocation67_spill] sm:$0xff] }
 0x3a0   : > { %v3667_v43 = vmax.f32 %v3539_v14, 0.0  ;;  %v20350_v37 = vsub.f32 %v20115_v7, %v15260_v32  ;;  %11580 = vrsqrt.f32 %v3292_v6  ;;  %v4889_v40 = vsel %vm1627_vm1, %v15896_v41, 0.0  ;;  %v5423_v7 = vpop.xlane.xlu1 %5422 }
 0x3a1   : > { %v20351_v44 = vsub.f32 %v20117_v22, %v15277_v53  ;;  %v5330_v1 = vmul.f32 %v15888_v25, %v15888_v25  ;;  %v3159_v34 = vsub.f32 %v20352_v61, %v15388_v35  ;;  %v15935_v32 = vadd.f32 %v15884_v28, %v15700_v55  ;;  %4890 = vadd.xlane.f32.xlu0 %v4889_v40  ;;  %v11573_v36 = vpop.eup %11572  ;;  %v5426_v35 = vpop.xlane.xlu0 %5425 }
 0x3a2   : > { %v3542_v20 = vmul.f32 %v11569_v38, %v20350_v37  ;;  %11026 = vmatprep.mubr.msk.f32.mxu1 %vm1627_vm1, %v3667_v43  ;;  %11582 = vrsqrt.f32 %v3291_v54  ;;  %v15940_v53 = vadd.f32 %v15884_v28, %v15692_v49  ;;  %v5933_v22 = vmul.f32 %v15918_v31, %v15918_v31  ;;  %v11575_v30 = vpop.eup %11574  ;;  %v15949_v49 = vpop.f32.mrb[110].mxu1  ;;  %v20355_v43 = vld [vmem:[#allocation128_spill] sm:$0xff] }
 0x3a3   : > { %v3541_v0 = vmul.f32 %v11571_v50, %v20351_v44  ;;  %11027 = vmatmul.mubr.msk.f32.gmra.mrb[182].mxu1 %vm1627_vm1, %v3668_v27  ;;  %v5805_v62 = vmul.f32 0.015625, %v5423_v7  ;;  %v5934_v55 = vmul.f32 %v15916_v47, %v15916_v47  ;;  %v5806_v17 = vmul.f32 0.015625, %v5426_v35  ;;  %v15955_v38 = vpop.f32.mrb[111].mxu1 }
 0x3a4   : > { %v3670_v33 = vmax.f32 %v3542_v20, 0.0  ;;  %v5529_v48 = vsel %vm1627_vm1, %v5329_v18, 0.0  ;;  %v3544_v8 = vmul.f32 %v11573_v36, %v3160_v19  ;;  %v3162_v12 = vsub.f32 %v20353_v59, %v15417_v4  ;;  %v4792_v19 = vpop.xlane.xlu1 %4791 }
 0x3a5   : > { %v3669_v26 = vmax.f32 %v3541_v0, 0.0  ;;  %v6061_v21 = vsub.f32 %v5805_v62, %v5933_v22  ;;  %5530 = vadd.xlane.f32.xlu1 %v5529_v48  ;;  %v5532_v14 = vsel %vm1627_vm1, %v5330_v1, 0.0  ;;  %v3543_v29 = vmul.f32 %v11575_v30, %v3159_v34  ;;  %v4789_v50 = vpop.xlane.xlu0 %4788  ;;  %v20356_v34 = vld [vmem:[#allocation129_spill] sm:$0xff] }
 0x3a6   : > { %v3161_v56 = vsub.f32 %v20354_v52, %v15449_v2  ;;  %v6062_v27 = vsub.f32 %v5806_v17, %v5934_v55  ;;  %5533 = vadd.xlane.f32.xlu0 %v5532_v14  ;;  %v3672_v4 = vmax.f32 %v3544_v8, 0.0  ;;  %v5331_v6 = vmul.f32 %v15935_v32, %v15935_v32  ;;  %v11577_v24 = vpop.eup %11576 }
 0x3a7   : > { %11029 = vmatprep.mubr.msk.f32.mxu1 %vm1627_vm1, %v3669_v26  ;;  %v3164_v16 = vsub.f32 %v20355_v43, %v15494_v51  ;;  %v6317_v18 = vadd.f32 1e-05, %v6061_v21  ;;  %v3671_v54 = vmax.f32 %v3543_v29, 0.0  ;;  %v4898_v2 = vsel %vm1627_vm1, %v15940_v53, 0.0  ;;  %v11579_v37 = vpop.eup %11578 }
 0x3a8   : > { %11030 = vmatmul.mubr.msk.f32.gmra.mrb[184].mxu1 %vm1627_vm1, %v3670_v33  ;;  %v6318_v20 = vadd.f32 1e-05, %v6062_v27  ;;  %v15964_v40 = vmul.f32 0.015625, %v4792_v19  ;;  %v15966_v44 = vmul.f32 0.015625, %v4789_v50  ;;  %v3546_v0 = vmul.f32 %v11577_v24, %v3162_v12  ;;  %v5429_v33 = vpop.xlane.xlu1 %5428 }
 0x3a9   : > { %11584 = vrsqrt.f32 %v6317_v18  ;;  %11032 = vmatprep.mubr.msk.f32.mxu1 %vm1627_vm1, %v3671_v54  ;;  %4899 = vadd.xlane.f32.xlu1 %v4898_v2  ;;  %v4895_v51 = vsel %vm1627_vm1, %v15935_v32, 0.0  ;;  %v3545_v1 = vmul.f32 %v11579_v37, %v3161_v56  ;;  %v5332_v61 = vmul.f32 %v15940_v53, %v15940_v53  ;;  %v5432_v55 = vpop.xlane.xlu0 %5431  ;;  %v20358_v2 = vld [vmem:[#allocation132_spill] sm:$0xff] }
 0x3aa   : > { %v3163_v7 = vsub.f32 %v20356_v34, %v15500_v5  ;;  %11586 = vrsqrt.f32 %v6318_v20  ;;  %4896 = vadd.xlane.f32.xlu0 %v4895_v51  ;;  %v5535_v36 = vsel %vm1627_vm1, %v5331_v6, 0.0  ;;  %v3674_v22 = vmax.f32 %v3546_v0, 0.0  ;;  %v11581_v62 = vpop.eup %11580  ;;  %v20359_v51 = vld [vmem:[#allocation131_spill] sm:$0xff] }
 0x3ab   : > { %v15979_v35 = vadd.f32 %v15884_v28, %v15764_v58  ;;  %v5935_v26 = vmul.f32 %v15966_v44, %v15966_v44  ;;  %v5807_v30 = vmul.f32 0.015625, %v5429_v33  ;;  %v3673_v17 = vmax.f32 %v3545_v1, 0.0 }
 0x3ac   : > { %11033 = vmatmul.mubr.msk.f32.gmra.mrb[186].mxu1 %vm1627_vm1, %v3672_v4  ;;  %v11583_v5 = vpop.eup %11582  ;;  %v15985_v48 = vadd.f32 %v15884_v28, %v15751_v57  ;;  %v5936_v8 = vmul.f32 %v15964_v40, %v15964_v40  ;;  %v5808_v59 = vmul.f32 0.015625, %v5432_v55  ;;  %v3548_v12 = vmul.f32 %v11581_v62, %v3164_v16  ;;  %v4798_v52 = vpop.xlane.xlu1 %4797 }
 0x3ad   : > { %v6063_v21 = vsub.f32 %v5807_v30, %v5935_v26  ;;  %11035 = vmatprep.mubr.msk.f32.mxu1 %vm1627_vm1, %v3673_v17  ;;  %5536 = vadd.xlane.f32.xlu1 %v5535_v36  ;;  %v5538_v58 = vsel %vm1627_vm1, %v5332_v61, 0.0  ;;  %v3547_v14 = vmul.f32 %v11583_v5, %v3163_v7  ;;  %v4795_v27 = vpop.xlane.xlu0 %4794  ;;  %v5333_v4 = vmul.f32 %v15979_v35, %v15979_v35 }
 0x3ae   : > { %v6064_v29 = vsub.f32 %v5808_v59, %v5936_v8  ;;  %5539 = vadd.xlane.f32.xlu0 %v5538_v58  ;;  %v3676_v56 = vmax.f32 %v3548_v12, 0.0  ;;  %v15994_v24 = vmul.f32 0.015625, %v4798_v52  ;;  %v15996_v43 = vmul.f32 0.015625, %v4795_v27 }
 0x3af   : > { %v6319_v57 = vadd.f32 1e-05, %v6063_v21  ;;  %v3675_v19 = vmax.f32 %v3547_v14, 0.0  ;;  %v4904_v16 = vsel %vm1627_vm1, %v15985_v48, 0.0  ;;  %v4901_v18 = vsel %vm1627_vm1, %v15979_v35, 0.0 }
 0x3b0   : > { %11036 = vmatmul.mubr.msk.f32.gmra.mrb[188].mxu1 %vm1627_vm1, %v3674_v22  ;;  %v6320_v6 = vadd.f32 1e-05, %v6064_v29  ;;  %v5334_v50 = vmul.f32 %v15985_v48, %v15985_v48  ;;  %v16007_v54 = vadd.f32 %v15884_v28, %v15822_v11  ;;  %v6189_v37 = vsub.f32 %v20358_v2, %v15918_v31  ;;  %v5435_v20 = vpop.xlane.xlu1 %5434 }
 0x3b1   : > { %11588 = vrsqrt.f32 %v6319_v57  ;;  %11038 = vmatprep.mubr.msk.f32.mxu1 %vm1627_vm1, %v3675_v19  ;;  %4905 = vadd.xlane.f32.xlu1 %v4904_v16  ;;  %v6190_v1 = vsub.f32 %v20359_v51, %v15916_v47  ;;  %v5937_v61 = vmul.f32 %v15996_v43, %v15996_v43  ;;  %v5809_v34 = vmul.f32 0.015625, %v5435_v20  ;;  %v5438_v7 = vpop.xlane.xlu0 %5437  ;;  %v20361_v57 = vld [vmem:[#allocation135_spill] sm:$0xff] }
 0x3b2   : > { %20357 = vst [vmem:[#allocation206_spill] sm:$0xff] %v16007_v54  ;;  %11590 = vrsqrt.f32 %v6320_v6  ;;  %4902 = vadd.xlane.f32.xlu0 %v4901_v18  ;;  %v5541_v11 = vsel %vm1627_vm1, %v5333_v4, 0.0  ;;  %v16019_v31 = vadd.f32 %v15884_v28, %v15814_v13  ;;  %v5938_v36 = vmul.f32 %v15994_v24, %v15994_v24  ;;  %v20363_v18 = vld [vmem:[#allocation133_spill] sm:$0xff] }
 0x3b3   : > { %v11585_v0 = vpop.eup %11584  ;;  %v5810_v22 = vmul.f32 0.015625, %v5438_v7  ;;  %v6065_v30 = vsub.f32 %v5809_v34, %v5937_v61  ;;  %v5544_v47 = vsel %vm1627_vm1, %v5334_v50, 0.0  ;;  %v5335_v8 = vmul.f32 %v16007_v54, %v16007_v54 }
 0x3b4   : > { %11039 = vmatmul.mubr.msk.f32.gmra.mrb[190].mxu1 %vm1627_vm1, %v3676_v56  ;;  %v11587_v33 = vpop.eup %11586  ;;  %20360 = vst [vmem:[#allocation115_spill] sm:$0xff] %v16019_v31  ;;  %v6573_v62 = vmul.f32 %v11585_v0, %v6189_v37  ;;  %v4804_v17 = vpop.xlane.xlu1 %4803  ;;  %v4910_v29 = vsel %vm1627_vm1, %v16019_v31, 0.0  ;;  %v4907_v52 = vsel %vm1627_vm1, %v16007_v54, 0.0  ;;  %v5336_v56 = vmul.f32 %v16019_v31, %v16019_v31 }
 0x3b5   : > { %v6574_v26 = vmul.f32 %v11587_v33, %v6190_v1  ;;  %5542 = vadd.xlane.f32.xlu1 %v5541_v11  ;;  %v6066_v55 = vsub.f32 %v5810_v22, %v5938_v36  ;;  %v6321_v13 = vadd.f32 1e-05, %v6065_v30  ;;  %v4801_v12 = vpop.xlane.xlu0 %4800  ;;  %v16026_v58 = vmul.f32 0.015625, %v4804_v17 }
 0x3b6   : > { %5545 = vadd.xlane.f32.xlu0 %v5544_v47  ;;  %v6701_v5 = vmax.f32 %v6573_v62, 0.0  ;;  %v16028_v14 = vmul.f32 0.015625, %v4801_v12  ;;  %v6191_v27 = vsub.f32 %v20361_v57, %v15966_v44  ;;  %v5547_v4 = vsel %vm1627_vm1, %v5335_v8, 0.0  ;;  %v20365_v8 = vld [vmem:[#allocation139_spill] sm:$0xff] }
 0x3b7   : > { %v6702_v59 = vmax.f32 %v6574_v26, 0.0  ;;  %v6322_v21 = vadd.f32 1e-05, %v6066_v55  ;;  %11592 = vrsqrt.f32 %v6321_v13  ;;  %v16043_v16 = vadd.f32 %v15884_v28, %v15891_v63 }
 0x3b8   : > { %11057 = vmatprep.mubr.msk.f32.mxu0 %vm1627_vm1, %v6701_v5  ;;  %v5441_v19 = vpop.xlane.xlu1 %5440  ;;  %v6192_v50 = vsub.f32 %v20363_v18, %v15964_v40  ;;  %v5939_v2 = vmul.f32 %v16028_v14, %v16028_v14  ;;  %v16051_v44 = vadd.f32 %v15884_v28, %v15873_v42  ;;  %v5940_v51 = vmul.f32 %v16026_v58, %v16026_v58 }
 0x3b9   : > { %4911 = vadd.xlane.f32.xlu1 %v4910_v29  ;;  %11058 = vmatmul.mubr.msk.f32.vlgmr.msra.gmra.mrb[64].mxu0 %vm1627_vm1, %v6702_v59  ;;  %11594 = vrsqrt.f32 %v6322_v21  ;;  %20362 = vst [vmem:[#allocation149_spill] sm:$0xff] %v16043_v16  ;;  %v5811_v37 = vmul.f32 0.015625, %v5441_v19  ;;  %v5444_v20 = vpop.xlane.xlu0 %5443  ;;  %v5550_v34 = vsel %vm1627_vm1, %v5336_v56, 0.0  ;;  %v5337_v42 = vmul.f32 %v16043_v16, %v16043_v16  ;;  %v20366_v21 = vld [vmem:[#allocation137_spill] sm:$0xff] }
 0x3ba   : > { %4908 = vadd.xlane.f32.xlu0 %v4907_v52  ;;  %20364 = vst [vmem:[#allocation56_spill] sm:$0xff] %v16051_v44  ;;  %v5812_v1 = vmul.f32 0.015625, %v5444_v20  ;;  %v4916_v55 = vsel %vm1627_vm1, %v16051_v44, 0.0  ;;  %v4913_v17 = vsel %vm1627_vm1, %v16043_v16, 0.0  ;;  %v5338_v5 = vmul.f32 %v16051_v44, %v16051_v44 }
 0x3bb   : > { %v11589_v6 = vpop.eup %11588  ;;  %v6067_v63 = vsub.f32 %v5811_v37, %v5939_v2  ;;  %v6193_v59 = vsub.f32 %v20365_v8, %v15996_v43  ;;  %v6194_v29 = vsub.f32 %v20366_v21, %v15994_v24  ;;  %v16085_v24 = vadd.f32 %v15884_v28, %v15955_v38 }
 0x3bc   : > { %v11591_v0 = vpop.eup %11590  ;;  %v6575_v61 = vmul.f32 %v11589_v6, %v6191_v27  ;;  %v6068_v7 = vsub.f32 %v5812_v1, %v5940_v51  ;;  %v4810_v11 = vpop.xlane.xlu1 %4809  ;;  %v5553_v27 = vsel %vm1627_vm1, %v5337_v42, 0.0  ;;  %v5556_v2 = vsel %vm1627_vm1, %v5338_v5, 0.0 }
 0x3bd   : > { %5548 = vadd.xlane.f32.xlu1 %v5547_v4  ;;  %v6576_v40 = vmul.f32 %v11591_v0, %v6192_v50  ;;  %v6323_v36 = vadd.f32 1e-05, %v6067_v63  ;;  %v4807_v22 = vpop.xlane.xlu0 %4806  ;;  %v16058_v30 = vmul.f32 0.015625, %v4810_v11  ;;  %v16079_v4 = vadd.f32 %v15884_v28, %v15949_v49  ;;  %20368 = vst [vmem:[#allocation57_spill] sm:$0xff] %v16085_v24  ;;  %v20369_v11 = vld [vmem:[#allocation143_spill] sm:$0xff] }
 0x3be   : > { %5551 = vadd.xlane.f32.xlu0 %v5550_v34  ;;  %v6703_v33 = vmax.f32 %v6575_v61, 0.0  ;;  %v6324_v26 = vadd.f32 1e-05, %v6068_v7  ;;  %v16060_v47 = vmul.f32 0.015625, %v4807_v22  ;;  %v4919_v7 = vsel %vm1627_vm1, %v16085_v24, 0.0 }
 0x3bf   : > { %v6704_v62 = vmax.f32 %v6576_v40, 0.0  ;;  %11596 = vrsqrt.f32 %v6323_v36  ;;  %20367 = vst [vmem:[#allocation150_spill] sm:$0xff] %v16079_v4  ;;  %v5942_v43 = vmul.f32 %v16058_v30, %v16058_v30  ;;  %v4922_v38 = vsel %vm1627_vm1, %v16079_v4, 0.0 }
 0x3c0   : > { %11060 = vmatprep.mubr.msk.f32.mxu0 %vm1627_vm1, %v6703_v33  ;;  %11598 = vrsqrt.f32 %v6324_v26  ;;  %v5447_v13 = vpop.xlane.xlu1 %5446  ;;  %v5941_v52 = vmul.f32 %v16060_v47, %v16060_v47  ;;  %v6195_v33 = vsub.f32 %v20369_v11, %v16028_v14 }
 0x3c1   : > { %4917 = vadd.xlane.f32.xlu1 %v4916_v55  ;;  %11061 = vmatmul.mubr.msk.f32.gmra.mrb[66].mxu0 %vm1627_vm1, %v6704_v62  ;;  %v11593_v12 = vpop.eup %11592  ;;  %v5813_v56 = vmul.f32 0.015625, %v5447_v13  ;;  %v5450_v57 = vpop.xlane.xlu0 %5449  ;;  %v20370_v62 = vld [vmem:[#allocation141_spill] sm:$0xff] }
 0x3c2   : > { %4914 = vadd.xlane.f32.xlu0 %v4913_v17  ;;  %v5814_v6 = vmul.f32 0.015625, %v5450_v57  ;;  %v6577_v18 = vmul.f32 %v11593_v12, %v6193_v59  ;;  %v6196_v42 = vsub.f32 %v20370_v62, %v16026_v58 }
 0x3c3   : > { %v11595_v19 = vpop.eup %11594  ;;  %v6069_v50 = vsub.f32 %v5813_v56, %v5941_v52 }
 0x3c4   : > { %v6578_v37 = vmul.f32 %v11595_v19, %v6194_v29  ;;  %v6070_v20 = vsub.f32 %v5814_v6, %v5942_v43  ;;  %v4816_v0 = vpop.xlane.xlu1 %4815  ;;  %v6705_v51 = vmax.f32 %v6577_v18, 0.0  ;;  %v20371_v6 = vld [vmem:[#allocation44_spill] sm:$0xff] }
 0x3c5   : > { %5554 = vadd.xlane.f32.xlu1 %v5553_v27  ;;  %v6325_v49 = vadd.f32 1e-05, %v6069_v50  ;;  %v4813_v1 = vpop.xlane.xlu0 %4812  ;;  %v16088_v34 = vmul.f32 0.015625, %v4816_v0  ;;  %v6197_v18 = vsub.f32 %v20371_v6, %v16060_v47 }
 0x3c6   : > { %5557 = vadd.xlane.f32.xlu0 %v5556_v2  ;;  %v6706_v61 = vmax.f32 %v6578_v37, 0.0  ;;  %v6326_v63 = vadd.f32 1e-05, %v6070_v20  ;;  %v16090_v40 = vmul.f32 0.015625, %v4813_v1  ;;  %11063 = vmatprep.mubr.msk.f32.mxu0 %vm1627_vm1, %v6705_v51  ;;  %v20372_v37 = vld [vmem:[#allocation43_spill] sm:$0xff] }
 0x3c7   : > { %11600 = vrsqrt.f32 %v6325_v49  ;;  %v5944_v8 = vmul.f32 %v16088_v34, %v16088_v34  ;;  %v6198_v20 = vsub.f32 %v20372_v37, %v16058_v30 }
 0x3c8   : > { %11064 = vmatmul.mubr.msk.f32.gmra.mrb[68].mxu0 %vm1627_vm1, %v6706_v61  ;;  %11602 = vrsqrt.f32 %v6326_v63  ;;  %v5453_v36 = vpop.xlane.xlu1 %5452  ;;  %v5943_v26 = vmul.f32 %v16090_v40, %v16090_v40 }
 0x3c9   : > { %4923 = vadd.xlane.f32.xlu1 %v4922_v38  ;;  %v11597_v22 = vpop.eup %11596  ;;  %v5815_v55 = vmul.f32 0.015625, %v5453_v36  ;;  %v5456_v17 = vpop.xlane.xlu0 %5455 }
 0x3ca   : > { %4920 = vadd.xlane.f32.xlu0 %v4919_v7  ;;  %v11599_v5 = vpop.eup %11598  ;;  %v5816_v59 = vmul.f32 0.015625, %v5456_v17  ;;  %v6579_v13 = vmul.f32 %v11597_v22, %v6195_v33  ;;  %v20373_v17 = vld [vmem:[#allocation103_spill] sm:$0xff] }
 0x3cb   : > { %v6071_v12 = vsub.f32 %v5815_v55, %v5943_v26  ;;  %v6580_v14 = vmul.f32 %v11599_v5, %v6196_v42  ;;  %v6199_v5 = vsub.f32 %v20373_v17, %v16090_v40 }
 0x3cc   : > { %v6072_v21 = vsub.f32 %v5816_v59, %v5944_v8  ;;  %v4822_v29 = vpop.xlane.xlu1 %4821  ;;  %v6707_v52 = vmax.f32 %v6579_v13, 0.0  ;;  %v20374_v13 = vld [vmem:[#allocation68_spill] sm:$0xff] }
 0x3cd   : > { %v6327_v56 = vadd.f32 1e-05, %v6071_v12  ;;  %v4819_v57 = vpop.xlane.xlu0 %4818  ;;  %v6708_v27 = vmax.f32 %v6580_v14, 0.0  ;;  %v16106_v19 = vmul.f32 0.015625, %v4822_v29  ;;  %v6200_v12 = vsub.f32 %v20374_v13, %v16088_v34 }
 0x3ce   : > { %v6328_v58 = vadd.f32 1e-05, %v6072_v21  ;;  %v16108_v43 = vmul.f32 0.015625, %v4819_v57  ;;  %11066 = vmatprep.mubr.msk.f32.mxu0 %vm1627_vm1, %v6707_v52 }
 0x3cf   : > { %11604 = vrsqrt.f32 %v6327_v56  ;;  %11067 = vmatmul.mubr.msk.f32.gmra.mrb[70].mxu0 %vm1627_vm1, %v6708_v27  ;;  %v5946_v61 = vmul.f32 %v16106_v19, %v16106_v19 }
 0x3d0   : > { %11606 = vrsqrt.f32 %v6328_v58  ;;  %v5459_v50 = vpop.xlane.xlu1 %5458  ;;  %v5945_v0 = vmul.f32 %v16108_v43, %v16108_v43 }
 0x3d1   : > { %v11601_v2 = vpop.eup %11600  ;;  %v5817_v51 = vmul.f32 0.015625, %v5459_v50  ;;  %v5462_v49 = vpop.xlane.xlu0 %5461 }
 0x3d2   : > { %v11603_v1 = vpop.eup %11602  ;;  %v5818_v63 = vmul.f32 0.015625, %v5462_v49  ;;  %v6581_v38 = vmul.f32 %v11601_v2, %v6197_v18  ;;  %v20375_v49 = vld [vmem:[#allocation111_spill] sm:$0xff] }
 0x3d3   : > { %v6073_v7 = vsub.f32 %v5817_v51, %v5945_v0  ;;  %v6582_v11 = vmul.f32 %v11603_v1, %v6198_v20  ;;  %v6201_v1 = vsub.f32 %v20375_v49, %v16108_v43 }
 0x3d4   : > { %v6074_v47 = vsub.f32 %v5818_v63, %v5946_v61  ;;  %v4828_v33 = vpop.xlane.xlu1 %4827  ;;  %v6709_v36 = vmax.f32 %v6581_v38, 0.0  ;;  %v20376_v38 = vld [vmem:[#allocation110_spill] sm:$0xff] }
 0x3d5   : > { %v6329_v22 = vadd.f32 1e-05, %v6073_v7  ;;  %v4825_v62 = vpop.xlane.xlu0 %4824  ;;  %v6710_v42 = vmax.f32 %v6582_v11, 0.0  ;;  %v16120_v26 = vmul.f32 0.015625, %v4828_v33  ;;  %v6202_v7 = vsub.f32 %v20376_v38, %v16106_v19 }
 0x3d6   : > { %v6330_v30 = vadd.f32 1e-05, %v6074_v47  ;;  %v16122_v55 = vmul.f32 0.015625, %v4825_v62  ;;  %11069 = vmatprep.mubr.msk.f32.mxu0 %vm1627_vm1, %v6709_v36 }
 0x3d7   : > { %11608 = vrsqrt.f32 %v6329_v22  ;;  %11070 = vmatmul.mubr.msk.f32.gmra.mrb[72].mxu0 %vm1627_vm1, %v6710_v42  ;;  %v5948_v56 = vmul.f32 %v16120_v26, %v16120_v26 }
 0x3d8   : > { %11610 = vrsqrt.f32 %v6330_v30  ;;  %v5465_v8 = vpop.xlane.xlu1 %5464  ;;  %v5947_v14 = vmul.f32 %v16122_v55, %v16122_v55 }
 0x3d9   : > { %v11605_v59 = vpop.eup %11604  ;;  %v5819_v21 = vmul.f32 0.015625, %v5465_v8  ;;  %v5468_v29 = vpop.xlane.xlu0 %5467 }
 0x3da   : > { %v11607_v52 = vpop.eup %11606  ;;  %v5820_v57 = vmul.f32 0.015625, %v5468_v29  ;;  %v6583_v27 = vmul.f32 %v11605_v59, %v6199_v5  ;;  %v10923_v29 = vpop.f32.mrb[112].mxu1 }
 0x3db   : > { %v6075_v58 = vsub.f32 %v5819_v21, %v5947_v14  ;;  %v6584_v6 = vmul.f32 %v11607_v52, %v6200_v12  ;;  %v20377_v52 = vld [vmem:[#allocation145_spill] sm:$0xff] }
 0x3dc   : > { %v6076_v40 = vsub.f32 %v5820_v57, %v5948_v56  ;;  %v4834_v18 = vpop.xlane.xlu1 %4833  ;;  %v6711_v50 = vmax.f32 %v6583_v27, 0.0  ;;  %v6203_v56 = vsub.f32 %v20377_v52, %v16122_v55  ;;  %v16157_v57 = vadd.f32 %v15884_v28, %v10923_v29  ;;  %v4382_v27 = vpop.f32.mrb[113].mxu1 }
 0x3dd   : > { %v6331_v2 = vadd.f32 1e-05, %v6075_v58  ;;  %v4831_v37 = vpop.xlane.xlu0 %4830  ;;  %v6712_v20 = vmax.f32 %v6584_v6, 0.0  ;;  %v16134_v0 = vmul.f32 0.015625, %v4834_v18 }
 0x3de   : > { %v6332_v34 = vadd.f32 1e-05, %v6076_v40  ;;  %v16136_v51 = vmul.f32 0.015625, %v4831_v37  ;;  %11072 = vmatprep.mubr.msk.f32.mxu0 %vm1627_vm1, %v6711_v50  ;;  %v20378_v40 = vld [vmem:[#allocation167_spill] sm:$0xff] }
 0x3df   : > { %11612 = vrsqrt.f32 %v6331_v2  ;;  %11073 = vmatmul.mubr.msk.f32.gmra.mrb[74].mxu0 %vm1627_vm1, %v6712_v20  ;;  %v5950_v22 = vmul.f32 %v16134_v0, %v16134_v0  ;;  %v6204_v18 = vsub.f32 %v20378_v40, %v16120_v26  ;;  %v16164_v2 = vadd.f32 %v15884_v28, %v4382_v27  ;;  %v10926_v26 = vpop.f32.mrb[114].mxu1 }
 0x3e0   : > { %11614 = vrsqrt.f32 %v6332_v34  ;;  %v5471_v61 = vpop.xlane.xlu1 %5470  ;;  %v5949_v11 = vmul.f32 %v16136_v51, %v16136_v51 }
 0x3e1   : > { %v11609_v63 = vpop.eup %11608  ;;  %v5821_v47 = vmul.f32 0.015625, %v5471_v61  ;;  %v5474_v33 = vpop.xlane.xlu0 %5473  ;;  %20379 = vst [vmem:[#allocation48_spill] sm:$0xff] %v16164_v2  ;;  %v4925_v38 = vsel %vm1627_vm1, %v16164_v2, 0.0 }
 0x3e2   : > { %v11611_v36 = vpop.eup %11610  ;;  %v5822_v62 = vmul.f32 0.015625, %v5474_v33  ;;  %v6585_v42 = vmul.f32 %v11609_v63, %v6201_v1  ;;  %v4928_v1 = vsel %vm1627_vm1, %v16157_v57, 0.0  ;;  %v4392_v33 = vpop.f32.mrb[115].mxu1  ;;  %4926 = vadd.xlane.f32.xlu0 %v4925_v38 }
 0x3e3   : > { %v6077_v30 = vsub.f32 %v5821_v47, %v5949_v11  ;;  %v6586_v17 = vmul.f32 %v11611_v36, %v6202_v7  ;;  %4929 = vadd.xlane.f32.xlu1 %v4928_v1  ;;  %v16173_v47 = vadd.f32 %v15884_v28, %v10926_v26 }
 0x3e4   : > { %v6078_v43 = vsub.f32 %v5822_v62, %v5950_v22  ;;  %v4840_v5 = vpop.xlane.xlu1 %4839  ;;  %v6713_v8 = vmax.f32 %v6585_v42, 0.0  ;;  %v16176_v42 = vadd.f32 %v15884_v28, %v4392_v33 }
 0x3e5   : > { %v6333_v59 = vadd.f32 1e-05, %v6077_v30  ;;  %v4837_v13 = vpop.xlane.xlu0 %4836  ;;  %v6714_v12 = vmax.f32 %v6586_v17, 0.0  ;;  %v16148_v14 = vmul.f32 0.015625, %v4840_v5 }
 0x3e6   : > { %v6334_v19 = vadd.f32 1e-05, %v6078_v43  ;;  %v16150_v21 = vmul.f32 0.015625, %v4837_v13  ;;  %11075 = vmatprep.mubr.msk.f32.mxu0 %vm1627_vm1, %v6713_v8  ;;  %20380 = vst [vmem:[#allocation151_spill] sm:$0xff] %v16176_v42  ;;  %v10929_v13 = vpop.f32.mrb[116].mxu1 }
 0x3e7   : > { %11616 = vrsqrt.f32 %v6333_v59  ;;  %11076 = vmatmul.mubr.msk.f32.gmra.mrb[76].mxu0 %vm1627_vm1, %v6714_v12  ;;  %v5952_v55 = vmul.f32 %v16148_v14, %v16148_v14  ;;  %v4934_v59 = vsel %vm1627_vm1, %v16173_v47, 0.0  ;;  %v4931_v12 = vsel %vm1627_vm1, %v16176_v42, 0.0 }
 0x3e8   : > { %11618 = vrsqrt.f32 %v6334_v19  ;;  %v5477_v58 = vpop.xlane.xlu1 %5476  ;;  %v5951_v50 = vmul.f32 %v16150_v21, %v16150_v21  ;;  %4935 = vadd.xlane.f32.xlu1 %v4934_v59  ;;  %v20381_v19 = vld [vmem:[#allocation170_spill] sm:$0xff]  ;;  %v16191_v52 = vadd.f32 %v15884_v28, %v10929_v13  ;;  %4932 = vadd.xlane.f32.xlu0 %v4931_v12 }
 0x3e9   : > { %v11613_v6 = vpop.eup %11612  ;;  %v5823_v37 = vmul.f32 0.015625, %v5477_v58  ;;  %v5480_v20 = vpop.xlane.xlu0 %5479  ;;  %v6205_v29 = vsub.f32 %v20381_v19, %v16136_v51 }
 0x3ea   : > { %v11615_v34 = vpop.eup %11614  ;;  %v5824_v49 = vmul.f32 0.015625, %v5480_v20  ;;  %v6587_v61 = vmul.f32 %v11613_v6, %v6203_v56  ;;  %v4402_v56 = vpop.f32.mrb[117].mxu1  ;;  %v20382_v6 = vld [vmem:[#allocation161_spill] sm:$0xff] }
 0x3eb   : > { %v6079_v63 = vsub.f32 %v5823_v37, %v5951_v50  ;;  %v6588_v7 = vmul.f32 %v11615_v34, %v6204_v18  ;;  %v6206_v40 = vsub.f32 %v20382_v6, %v16134_v0  ;;  %v16198_v50 = vadd.f32 %v15884_v28, %v4402_v56  ;;  %v10932_v0 = vpop.f32.mrb[118].mxu1  ;;  %v20385_v56 = vld [vmem:[#allocation187_spill] sm:$0xff] }
 0x3ec   : > { %v6080_v11 = vsub.f32 %v5824_v49, %v5952_v55  ;;  %v4846_v36 = vpop.xlane.xlu1 %4845  ;;  %v6715_v22 = vmax.f32 %v6587_v61, 0.0  ;;  %v4940_v49 = vsel %vm1627_vm1, %v16191_v52, 0.0 }
 0x3ed   : > { %v6335_v62 = vadd.f32 1e-05, %v6079_v63  ;;  %v4843_v30 = vpop.xlane.xlu0 %4842  ;;  %v6716_v17 = vmax.f32 %v6588_v7, 0.0  ;;  %v16178_v5 = vmul.f32 0.015625, %v4846_v36  ;;  %20383 = vst [vmem:[#allocation122_spill] sm:$0xff] %v16198_v50  ;;  %4941 = vadd.xlane.f32.xlu1 %v4940_v49  ;;  %v4937_v63 = vsel %vm1627_vm1, %v16198_v50, 0.0 }
 0x3ee   : > { %v6336_v43 = vadd.f32 1e-05, %v6080_v11  ;;  %v16180_v8 = vmul.f32 0.015625, %v4843_v30  ;;  %11078 = vmatprep.mubr.msk.f32.mxu0 %vm1627_vm1, %v6715_v22  ;;  %v16207_v7 = vadd.f32 %v15884_v28, %v10932_v0  ;;  %v4412_v11 = vpop.f32.mrb[119].mxu1  ;;  %4938 = vadd.xlane.f32.xlu0 %v4937_v63 }
 0x3ef   : > { %11620 = vrsqrt.f32 %v6335_v62  ;;  %11079 = vmatmul.mubr.msk.f32.gmra.mrb[78].mxu0 %vm1627_vm1, %v6716_v17  ;;  %v5954_v34 = vmul.f32 %v16178_v5, %v16178_v5  ;;  %v16210_v62 = vadd.f32 %v15884_v28, %v4412_v11  ;;  %v10935_v19 = vpop.f32.mrb[120].mxu1 }
 0x3f0   : > { %11622 = vrsqrt.f32 %v6336_v43  ;;  %v5483_v27 = vpop.xlane.xlu1 %5482  ;;  %v5953_v18 = vmul.f32 %v16180_v8, %v16180_v8  ;;  %v4946_v12 = vsel %vm1627_vm1, %v16207_v7, 0.0  ;;  %v4422_v6 = vpop.f32.mrb[121].mxu1 }
 0x3f1   : > { %v11617_v58 = vpop.eup %11616  ;;  %v5825_v37 = vmul.f32 0.015625, %v5483_v27  ;;  %v5486_v20 = vpop.xlane.xlu0 %5485  ;;  %20384 = vst [vmem:[#allocation152_spill] sm:$0xff] %v16210_v62  ;;  %4947 = vadd.xlane.f32.xlu1 %v4946_v12  ;;  %v6207_v27 = vsub.f32 %v20385_v56, %v16150_v21 }
 0x3f2   : > { %v11619_v51 = vpop.eup %11618  ;;  %v5826_v55 = vmul.f32 0.015625, %v5486_v20  ;;  %v6589_v1 = vmul.f32 %v11617_v58, %v6205_v29  ;;  %v4943_v29 = vsel %vm1627_vm1, %v16210_v62, 0.0  ;;  %v16225_v58 = vadd.f32 %v15884_v28, %v10935_v19 }
 0x3f3   : > { %v6081_v61 = vsub.f32 %v5825_v37, %v5953_v18  ;;  %v6590_v26 = vmul.f32 %v11619_v51, %v6206_v40  ;;  %4944 = vadd.xlane.f32.xlu0 %v4943_v29  ;;  %v20386_v37 = vld [vmem:[#allocation162_spill] sm:$0xff] }
 0x3f4   : > { %v6082_v38 = vsub.f32 %v5826_v55, %v5954_v34  ;;  %v4852_v33 = vpop.xlane.xlu1 %4851  ;;  %v6717_v36 = vmax.f32 %v6589_v1, 0.0  ;;  %v6208_v20 = vsub.f32 %v20386_v37, %v16148_v14  ;;  %v16232_v34 = vadd.f32 %v15884_v28, %v4422_v6  ;;  %v10938_v14 = vpop.f32.mrb[122].mxu1 }
 0x3f5   : > { %v6337_v22 = vadd.f32 1e-05, %v6081_v61  ;;  %v4849_v30 = vpop.xlane.xlu0 %4848  ;;  %v6718_v17 = vmax.f32 %v6590_v26, 0.0  ;;  %v16212_v59 = vmul.f32 0.015625, %v4852_v33  ;;  %v4952_v0 = vsel %vm1627_vm1, %v16225_v58, 0.0 }
 0x3f6   : > { %v6338_v43 = vadd.f32 1e-05, %v6082_v38  ;;  %v16214_v13 = vmul.f32 0.015625, %v4849_v30  ;;  %11081 = vmatprep.mubr.msk.f32.mxu0 %vm1627_vm1, %v6717_v36  ;;  %20387 = vst [vmem:[#allocation123_spill] sm:$0xff] %v16232_v34  ;;  %4953 = vadd.xlane.f32.xlu1 %v4952_v0  ;;  %v4949_v38 = vsel %vm1627_vm1, %v16232_v34, 0.0  ;;  %v16241_v36 = vadd.f32 %v15884_v28, %v10938_v14 }
 0x3f7   : > { %11624 = vrsqrt.f32 %v6337_v22  ;;  %11082 = vmatmul.mubr.msk.f32.gmra.mrb[80].mxu0 %vm1627_vm1, %v6718_v17  ;;  %v5956_v1 = vmul.f32 %v16212_v59, %v16212_v59  ;;  %v4432_v22 = vpop.f32.mrb[123].mxu1  ;;  %4950 = vadd.xlane.f32.xlu0 %v4949_v38 }
 0x3f8   : > { %11626 = vrsqrt.f32 %v6338_v43  ;;  %v5489_v40 = vpop.xlane.xlu1 %5488  ;;  %v5955_v51 = vmul.f32 %v16214_v13, %v16214_v13  ;;  %v16244_v12 = vadd.f32 %v15884_v28, %v4432_v22 }
 0x3f9   : > { %v11621_v18 = vpop.eup %11620  ;;  %v5827_v55 = vmul.f32 0.015625, %v5489_v40  ;;  %v5492_v49 = vpop.xlane.xlu0 %5491  ;;  %v4958_v40 = vsel %vm1627_vm1, %v16241_v36, 0.0 }
 0x3fa   : > { %v11623_v21 = vpop.eup %11622  ;;  %v5828_v61 = vmul.f32 0.015625, %v5492_v49  ;;  %v6591_v63 = vmul.f32 %v11621_v18, %v6207_v27  ;;  %20388 = vst [vmem:[#allocation125_spill] sm:$0xff] %v16244_v12  ;;  %4959 = vadd.xlane.f32.xlu1 %v4958_v40  ;;  %v10941_v18 = vpop.f32.mrb[124].mxu1  ;;  %v4955_v37 = vsel %vm1627_vm1, %v16244_v12, 0.0 }
 0x3fb   : > { %v6083_v26 = vsub.f32 %v5827_v55, %v5955_v51  ;;  %v6592_v11 = vmul.f32 %v11623_v21, %v6208_v20  ;;  %v6209_v20 = vsub.f32 %v15564_v39, %v16180_v8  ;;  %v16259_v51 = vadd.f32 %v15884_v28, %v10941_v18  ;;  %v4442_v55 = vpop.f32.mrb[125].mxu1  ;;  %4956 = vadd.xlane.f32.xlu0 %v4955_v37  ;;  %v16280_v37 = vld [vmem:[%s19167_s6] ss:$0 sm:$0xff] }
 0x3fc   : > { %v6084_v33 = vsub.f32 %v5828_v61, %v5956_v1  ;;  %v4858_v30 = vpop.xlane.xlu1 %4857  ;;  %v6719_v17 = vmax.f32 %v6591_v63, 0.0  ;;  %v20389_v1 = vld [vmem:[#allocation189_spill] sm:$0xff]  ;;  %v16266_v63 = vadd.f32 %v15884_v28, %v4442_v55 }
 0x3fd   : > { %v6339_v43 = vadd.f32 1e-05, %v6083_v26  ;;  %v4855_v19 = vpop.xlane.xlu0 %4854  ;;  %v6720_v29 = vmax.f32 %v6592_v11, 0.0  ;;  %v16246_v27 = vmul.f32 0.015625, %v4858_v30  ;;  %v6210_v61 = vsub.f32 %v20389_v1, %v16178_v5  ;;  %v10944_v5 = vpop.f32.mrb[126].mxu1 }
 0x3fe   : > { %v6340_v56 = vadd.f32 1e-05, %v6084_v33  ;;  %v16248_v6 = vmul.f32 0.015625, %v4855_v19  ;;  %11084 = vmatprep.mubr.msk.f32.mxu0 %vm1627_vm1, %v6719_v17  ;;  %20390 = vst [vmem:[#allocation153_spill] sm:$0xff] %v16266_v63  ;;  %v4964_v11 = vsel %vm1627_vm1, %v16259_v51, 0.0  ;;  %v4961_v30 = vsel %vm1627_vm1, %v16266_v63, 0.0 }
 0x3ff   : > { %11628 = vrsqrt.f32 %v6339_v43  ;;  %11085 = vmatmul.mubr.msk.f32.gmra.mrb[82].mxu0 %vm1627_vm1, %v6720_v29  ;;  %v5958_v8 = vmul.f32 %v16246_v27, %v16246_v27  ;;  %4965 = vadd.xlane.f32.xlu1 %v4964_v11  ;;  %v16275_v19 = vadd.f32 %v15884_v28, %v10944_v5  ;;  %v4452_v29 = vpop.f32.mrb[127].mxu1 }
 0x400   : > { %11630 = vrsqrt.f32 %v6340_v56  ;;  %v5495_v49 = vpop.xlane.xlu1 %5494  ;;  %v5957_v0 = vmul.f32 %v16248_v6, %v16248_v6  ;;  %4962 = vadd.xlane.f32.xlu0 %v4961_v30 }
 0x401   : > { %v11625_v21 = vpop.eup %11624  ;;  %v5829_v26 = vmul.f32 0.015625, %v5495_v49  ;;  %v5498_v14 = vpop.xlane.xlu0 %5497  ;;  %20391 = vst [vmem:[#allocation127_spill] sm:$0xff] %v16275_v19 }
 0x402   : > { %v11627_v39 = vpop.eup %11626  ;;  %v5830_v38 = vmul.f32 0.015625, %v5498_v14  ;;  %v6593_v33 = vmul.f32 %v11625_v21, %v6209_v20  ;;  %v16283_v20 = vadd.f32 %v16280_v37, %v4452_v29  ;;  %v20393_v14 = vld [vmem:[#allocation201_spill] sm:$0xff] }
 0x403   : > { %v6085_v22 = vsub.f32 %v5829_v26, %v5957_v0  ;;  %v6594_v17 = vmul.f32 %v11627_v39, %v6210_v61  ;;  %v4970_v61 = vsel %vm1627_vm1, %v16275_v19, 0.0  ;;  %v10947_v0 = vpop.f32.mrb[128].mxu1  ;;  %v6211_v39 = vsub.f32 %v20393_v14, %v16214_v13 }
 0x404   : > { %v6086_v43 = vsub.f32 %v5830_v38, %v5958_v8  ;;  %v4864_v56 = vpop.xlane.xlu1 %4863  ;;  %v6721_v40 = vmax.f32 %v6593_v33, 0.0  ;;  %20392 = vst [vmem:[#allocation154_spill] sm:$0xff] %v16283_v20  ;;  %4971 = vadd.xlane.f32.xlu1 %v4970_v61  ;;  %v4967_v26 = vsel %vm1627_vm1, %v16283_v20, 0.0  ;;  %v16298_v8 = vadd.f32 %v16280_v37, %v10947_v0  ;;  %v4462_v38 = vpop.f32.mrb[129].mxu1 }
 0x405   : > { %v6341_v18 = vadd.f32 1e-05, %v6085_v22  ;;  %v4861_v55 = vpop.xlane.xlu0 %4860  ;;  %v6722_v49 = vmax.f32 %v6594_v17, 0.0  ;;  %v16285_v1 = vmul.f32 0.015625, %v4864_v56  ;;  %4968 = vadd.xlane.f32.xlu0 %v4967_v26  ;;  %v20395_v22 = vld [vmem:[#allocation199_spill] sm:$0xff]  ;;  %v16305_v17 = vadd.f32 %v16280_v37, %v4462_v38 }
 0x406   : > { %v6342_v21 = vadd.f32 1e-05, %v6086_v43  ;;  %v16287_v28 = vmul.f32 0.015625, %v4861_v55  ;;  %11087 = vmatprep.mubr.msk.f32.mxu0 %vm1627_vm1, %v6721_v40  ;;  %20394 = vst [vmem:[#allocation148_spill] sm:$0xff] %v16298_v8  ;;  %v6212_v5 = vsub.f32 %v20395_v22, %v16212_v59  ;;  %v10950_v59 = vpop.f32.mrb[130].mxu1 }
 0x407   : > { %11632 = vrsqrt.f32 %v6341_v18  ;;  %11088 = vmatmul.mubr.msk.f32.gmra.mrb[84].mxu0 %vm1627_vm1, %v6722_v49  ;;  %20396 = vst [vmem:[#allocation155_spill] sm:$0xff] %v16305_v17  ;;  %v5960_v56 = vmul.f32 %v16285_v1, %v16285_v1  ;;  %v4976_v18 = vsel %vm1627_vm1, %v16298_v8, 0.0  ;;  %v16314_v26 = vadd.f32 %v16280_v37, %v10950_v59  ;;  %v4472_v14 = vpop.f32.mrb[131].mxu1 }
 0x408   : > { %11634 = vrsqrt.f32 %v6342_v21  ;;  %v5501_v11 = vpop.xlane.xlu1 %5500  ;;  %v5959_v30 = vmul.f32 %v16287_v28, %v16287_v28  ;;  %4977 = vadd.xlane.f32.xlu1 %v4976_v18  ;;  %v4973_v21 = vsel %vm1627_vm1, %v16305_v17, 0.0 }
 0x409   : > { %v11629_v33 = vpop.eup %11628  ;;  %v5831_v43 = vmul.f32 0.015625, %v5501_v11  ;;  %v5504_v29 = vpop.xlane.xlu0 %5503  ;;  %20397 = vst [vmem:[#allocation52_spill] sm:$0xff] %v16314_v26  ;;  %4974 = vadd.xlane.f32.xlu0 %v4973_v21 }
 0x40a   : > { %v11631_v13 = vpop.eup %11630  ;;  %v5832_v40 = vmul.f32 0.015625, %v5504_v29  ;;  %v6595_v55 = vmul.f32 %v11629_v33, %v6211_v39  ;;  %v16317_v29 = vadd.f32 %v16280_v37, %v4472_v14 }
 0x40b   : > { %v6087_v49 = vsub.f32 %v5831_v43, %v5959_v30  ;;  %v6596_v61 = vmul.f32 %v11631_v13, %v6212_v5  ;;  %v4982_v5 = vsel %vm1627_vm1, %v16314_v26, 0.0  ;;  %v10953_v13 = vpop.f32.mrb[132].mxu1 }
 0x40c   : > { %v6088_v0 = vsub.f32 %v5832_v40, %v5960_v56  ;;  %v4870_v38 = vpop.xlane.xlu1 %4869  ;;  %v6723_v11 = vmax.f32 %v6595_v55, 0.0  ;;  %20398 = vst [vmem:[#allocation181_spill] sm:$0xff] %v16317_v29  ;;  %4983 = vadd.xlane.f32.xlu1 %v4982_v5  ;;  %v4979_v56 = vsel %vm1627_vm1, %v16317_v29, 0.0  ;;  %v6213_v40 = vsub.f32 %v15647_v9, %v16248_v6 }
 0x40d   : > { %v6343_v22 = vadd.f32 1e-05, %v6087_v49  ;;  %v4867_v39 = vpop.xlane.xlu0 %4866  ;;  %v6724_v33 = vmax.f32 %v6596_v61, 0.0  ;;  %v16319_v43 = vmul.f32 0.015625, %v4870_v38  ;;  %v16332_v55 = vadd.f32 %v16280_v37, %v10953_v13  ;;  %v4482_v49 = vpop.f32.mrb[133].mxu1  ;;  %4980 = vadd.xlane.f32.xlu0 %v4979_v56  ;;  %v20400_v61 = vld [vmem:[#allocation202_spill] sm:$0xff] }
 0x40e   : > { %v6344_v30 = vadd.f32 1e-05, %v6088_v0  ;;  %v16321_v18 = vmul.f32 0.015625, %v4867_v39  ;;  %11090 = vmatprep.mubr.msk.f32.mxu0 %vm1627_vm1, %v6723_v11  ;;  %v6214_v0 = vsub.f32 %v20400_v61, %v16246_v27  ;;  %v16339_v38 = vadd.f32 %v16280_v37, %v4482_v49  ;;  %v10956_v27 = vpop.f32.mrb[134].mxu1 }
 0x40f   : > { %11636 = vrsqrt.f32 %v6343_v22  ;;  %11091 = vmatmul.mubr.msk.f32.gmra.mrb[86].mxu0 %vm1627_vm1, %v6724_v33  ;;  %20399 = vst [vmem:[#allocation5_spill] sm:$0xff] %v16332_v55  ;;  %v5962_v6 = vmul.f32 %v16319_v43, %v16319_v43  ;;  %v4988_v33 = vsel %vm1627_vm1, %v16332_v55, 0.0  ;;  %v4492_v61 = vpop.f32.mrb[135].mxu1 }
 0x410   : > { %11638 = vrsqrt.f32 %v6344_v30  ;;  %v5507_v59 = vpop.xlane.xlu1 %5506  ;;  %v5961_v14 = vmul.f32 %v16321_v18, %v16321_v18  ;;  %20401 = vst [vmem:[#allocation49_spill] sm:$0xff] %v16339_v38  ;;  %4989 = vadd.xlane.f32.xlu1 %v4988_v33  ;;  %v4985_v13 = vsel %vm1627_vm1, %v16339_v38, 0.0  ;;  %v16351_v31 = vadd.f32 %v16280_v37, %v4492_v61 }
 0x411   : > { %v11633_v21 = vpop.eup %11632  ;;  %v5833_v11 = vmul.f32 0.015625, %v5507_v59  ;;  %v5510_v22 = vpop.xlane.xlu0 %5509  ;;  %v16348_v59 = vadd.f32 %v16280_v37, %v10956_v27  ;;  %4986 = vadd.xlane.f32.xlu0 %v4985_v13 }
 0x412   : > { %v11635_v9 = vpop.eup %11634  ;;  %v5834_v39 = vmul.f32 0.015625, %v5510_v22  ;;  %v6597_v30 = vmul.f32 %v11633_v21, %v6213_v40  ;;  %20403 = vst [vmem:[#allocation6_spill] sm:$0xff] %v16351_v31 }
 0x413   : > { %v6089_v5 = vsub.f32 %v5833_v11, %v5961_v14  ;;  %v6598_v56 = vmul.f32 %v11635_v9, %v6214_v0  ;;  %20402 = vst [vmem:[#allocation53_spill] sm:$0xff] %v16348_v59  ;;  %v4994_v0 = vsel %vm1627_vm1, %v16348_v59, 0.0  ;;  %v10959_v9 = vpop.f32.mrb[136].mxu1 }
 0x414   : > { %v6090_v49 = vsub.f32 %v5834_v39, %v5962_v6  ;;  %v4876_v44 = vpop.xlane.xlu1 %4875  ;;  %v6725_v16 = vmax.f32 %v6597_v30, 0.0  ;;  %4995 = vadd.xlane.f32.xlu1 %v4994_v0  ;;  %v4991_v6 = vsel %vm1627_vm1, %v16351_v31, 0.0  ;;  %v6215_v39 = vsub.f32 %v15685_v15, %v16287_v28  ;;  %v4502_v30 = vpop.f32.mrb[137].mxu1 }
 0x415   : > { %v6345_v22 = vadd.f32 1e-05, %v6089_v5  ;;  %v4873_v40 = vpop.xlane.xlu0 %4872  ;;  %v6726_v21 = vmax.f32 %v6598_v56, 0.0  ;;  %v16353_v11 = vmul.f32 0.015625, %v4876_v44  ;;  %v16366_v44 = vadd.f32 %v16280_v37, %v10959_v9  ;;  %4992 = vadd.xlane.f32.xlu0 %v4991_v6 }
 0x416   : > { %v6346_v14 = vadd.f32 1e-05, %v6090_v49  ;;  %v16355_v33 = vmul.f32 0.015625, %v4873_v40  ;;  %11093 = vmatprep.mubr.msk.f32.mxu0 %vm1627_vm1, %v6725_v16  ;;  %v20405_v16 = vld [vmem:[#allocation171_spill] sm:$0xff]  ;;  %v16373_v49 = vadd.f32 %v16280_v37, %v4502_v30 }
 0x417   : > { %11640 = vrsqrt.f32 %v6345_v22  ;;  %11094 = vmatmul.mubr.msk.f32.gmra.mrb[88].mxu0 %vm1627_vm1, %v6726_v21  ;;  %20404 = vst [vmem:[#allocation55_spill] sm:$0xff] %v16366_v44  ;;  %v6216_v13 = vsub.f32 %v20405_v16, %v16285_v1  ;;  %v5964_v28 = vmul.f32 %v16353_v11, %v16353_v11  ;;  %v5000_v21 = vsel %vm1627_vm1, %v16366_v44, 0.0  ;;  %v10962_v1 = vpop.f32.mrb[138].mxu1 }
 0x418   : > { %11642 = vrsqrt.f32 %v6346_v14  ;;  %v5513_v5 = vpop.xlane.xlu1 %5512  ;;  %v5963_v56 = vmul.f32 %v16355_v33, %v16355_v33  ;;  %20406 = vst [vmem:[#allocation116_spill] sm:$0xff] %v16373_v49  ;;  %5001 = vadd.xlane.f32.xlu1 %v5000_v21  ;;  %v4997_v9 = vsel %vm1627_vm1, %v16373_v49, 0.0  ;;  %v4512_v16 = vpop.f32.mrb[139].mxu1 }
 0x419   : > { %v11637_v27 = vpop.eup %11636  ;;  %v5835_v61 = vmul.f32 0.015625, %v5513_v5  ;;  %v5516_v22 = vpop.xlane.xlu0 %5515  ;;  %v16382_v5 = vadd.f32 %v16280_v37, %v10962_v1  ;;  %4998 = vadd.xlane.f32.xlu0 %v4997_v9  ;;  %v16385_v55 = vadd.f32 %v16280_v37, %v4512_v16 }
 0x41a   : > { %v11639_v15 = vpop.eup %11638  ;;  %v5836_v40 = vmul.f32 0.015625, %v5516_v22  ;;  %v6599_v14 = vmul.f32 %v11637_v27, %v6215_v39 }
 0x41b   : > { %v6091_v0 = vsub.f32 %v5835_v61, %v5963_v56  ;;  %v6600_v6 = vmul.f32 %v11639_v15, %v6216_v13  ;;  %20407 = vst [vmem:[#allocation156_spill] sm:$0xff] %v16382_v5  ;;  %20408 = vst [vmem:[#allocation117_spill] sm:$0xff] %v16385_v55  ;;  %v5006_v13 = vsel %vm1627_vm1, %v16382_v5, 0.0  ;;  %v10965_v15 = vpop.f32.mrb[140].mxu1 }
 0x41c   : > { %v6092_v30 = vsub.f32 %v5836_v40, %v5964_v28  ;;  %v4882_v54 = vpop.xlane.xlu1 %4881  ;;  %v6727_v59 = vmax.f32 %v6599_v14, 0.0  ;;  %5007 = vadd.xlane.f32.xlu1 %v5006_v13  ;;  %v5003_v28 = vsel %vm1627_vm1, %v16385_v55, 0.0  ;;  %v20409_v40 = vld [vmem:[#allocation113_spill] sm:$0xff] }
 0x41d   : > { %v6347_v22 = vadd.f32 1e-05, %v6091_v0  ;;  %v4879_v39 = vpop.xlane.xlu0 %4878  ;;  %v6728_v27 = vmax.f32 %v6600_v6, 0.0  ;;  %v16387_v61 = vmul.f32 0.015625, %v4882_v54  ;;  %v6217_v14 = vsub.f32 %v20409_v40, %v16321_v18  ;;  %v4522_v0 = vpop.f32.mrb[141].mxu1  ;;  %5004 = vadd.xlane.f32.xlu0 %v5003_v28  ;;  %v20411_v6 = vld [vmem:[#allocation46_spill] sm:$0xff] }
 0x41e   : > { %v6348_v56 = vadd.f32 1e-05, %v6092_v30  ;;  %v16389_v21 = vmul.f32 0.015625, %v4879_v39  ;;  %11096 = vmatprep.mubr.msk.f32.mxu0 %vm1627_vm1, %v6727_v59  ;;  %v16400_v54 = vadd.f32 %v16280_v37, %v10965_v15  ;;  %v5339_v59 = vmul.f32 %v16085_v24, %v16085_v24 }
 0x41f   : > { %11644 = vrsqrt.f32 %v6347_v22  ;;  %11097 = vmatmul.mubr.msk.f32.gmra.mrb[90].mxu0 %vm1627_vm1, %v6728_v27  ;;  %v6218_v30 = vsub.f32 %v20411_v6, %v16319_v43  ;;  %v16409_v22 = vadd.f32 %v16280_v37, %v4522_v0  ;;  %v16415_v43 = vpop.f32.mrb[142].mxu1 }
 0x420   : > { %11646 = vrsqrt.f32 %v6348_v56  ;;  %20410 = vst [vmem:[#allocation7_spill] sm:$0xff] %v16400_v54  ;;  %v5519_v1 = vpop.xlane.xlu1 %5518  ;;  %v5965_v16 = vmul.f32 %v16389_v21, %v16389_v21  ;;  %v5966_v56 = vmul.f32 %v16387_v61, %v16387_v61  ;;  %v5012_v15 = vsel %vm1627_vm1, %v16400_v54, 0.0 }
 0x421   : > { %v11641_v9 = vpop.eup %11640  ;;  %20412 = vst [vmem:[#allocation59_spill] sm:$0xff] %v16409_v22  ;;  %v5837_v18 = vmul.f32 0.015625, %v5519_v1  ;;  %v5522_v39 = vpop.xlane.xlu0 %5521  ;;  %5013 = vadd.xlane.f32.xlu1 %v5012_v15  ;;  %v5009_v6 = vsel %vm1627_vm1, %v16409_v22, 0.0 }
 0x422   : > { %v11643_v27 = vpop.eup %11642  ;;  %v5838_v13 = vmul.f32 0.015625, %v5522_v39  ;;  %v6601_v28 = vmul.f32 %v11641_v9, %v6217_v14  ;;  %v4532_v1 = vpop.f32.mrb[143].mxu1  ;;  %5010 = vadd.xlane.f32.xlu0 %v5009_v6  ;;  %v5559_v14 = vsel %vm1627_vm1, %v5339_v59, 0.0  ;;  %v6220_v59 = vsub.f32 %v15761_v10, %v16353_v11 }
 0x423   : > { %v6093_v40 = vsub.f32 %v5837_v18, %v5965_v16  ;;  %v6602_v0 = vmul.f32 %v11643_v27, %v6218_v30  ;;  %v16420_v39 = vadd.f32 %v16280_v37, %v4532_v1  ;;  %v5341_v30 = vmul.f32 %v16164_v2, %v16164_v2  ;;  %v16430_v27 = vpop.f32.mrb[144].mxu1 }
 0x424   : > { %v6094_v24 = vsub.f32 %v5838_v13, %v5966_v56  ;;  %v4888_v5 = vpop.xlane.xlu1 %4887  ;;  %v6729_v44 = vmax.f32 %v6601_v28, 0.0  ;;  %v5343_v6 = vmul.f32 %v16176_v42, %v16176_v42  ;;  %v5342_v11 = vmul.f32 %v16157_v57, %v16157_v57 }
 0x425   : > { %v6349_v55 = vadd.f32 1e-05, %v6093_v40  ;;  %20413 = vst [vmem:[#allocation186_spill] sm:$0xff] %v16420_v39  ;;  %v4885_v49 = vpop.xlane.xlu0 %4884  ;;  %v6730_v9 = vmax.f32 %v6602_v0, 0.0  ;;  %v16423_v18 = vmul.f32 0.015625, %v4888_v5  ;;  %5560 = vadd.xlane.f32.xlu1 %v5559_v14  ;;  %v5015_v56 = vsel %vm1627_vm1, %v16420_v39, 0.0 }
 0x426   : > { %v6350_v16 = vadd.f32 1e-05, %v6094_v24  ;;  %v16425_v15 = vmul.f32 0.015625, %v4885_v49  ;;  %11099 = vmatprep.mubr.msk.f32.mxu0 %vm1627_vm1, %v6729_v44  ;;  %v5340_v24 = vmul.f32 %v16079_v4, %v16079_v4  ;;  %v6219_v49 = vsub.f32 %v15769_v46, %v16355_v33  ;;  %v16439_v44 = vpop.f32.mrb[145].mxu1  ;;  %5016 = vadd.xlane.f32.xlu0 %v5015_v56 }
 0x427   : > { %11648 = vrsqrt.f32 %v6349_v55  ;;  %11100 = vmatmul.mubr.msk.f32.gmra.mrb[92].mxu0 %vm1627_vm1, %v6730_v9  ;;  %20414 = vst [vmem:[#allocation157_spill] sm:$0xff] %v16439_v44  ;;  %v5968_v46 = vmul.f32 %v16423_v18, %v16423_v18  ;;  %v5565_v1 = vsel %vm1627_vm1, %v5341_v30, 0.0  ;;  %v5571_v30 = vsel %vm1627_vm1, %v5343_v6, 0.0 }
 0x428   : > { %11650 = vrsqrt.f32 %v6350_v16  ;;  %v5525_v5 = vpop.xlane.xlu1 %5524  ;;  %v5967_v13 = vmul.f32 %v16425_v15, %v16425_v15  ;;  %v16450_v16 = vpop.f32.mrb[146].mxu1  ;;  %v5562_v10 = vsel %vm1627_vm1, %v5340_v24, 0.0  ;;  %v5345_v24 = vmul.f32 %v16198_v50, %v16198_v50 }
 0x429   : > { %v11645_v55 = vpop.eup %11644  ;;  %v5839_v28 = vmul.f32 0.015625, %v5525_v5  ;;  %5566 = vadd.xlane.f32.xlu1 %v5565_v1  ;;  %v16455_v42 = vpop.f32.mrb[147].mxu1  ;;  %v5344_v6 = vmul.f32 %v16173_v47, %v16173_v47 }
 0x42a   : > { %v5528_v40 = vpop.xlane.xlu0 %5527  ;;  %v11647_v0 = vpop.eup %11646  ;;  %v6603_v14 = vmul.f32 %v11645_v55, %v6219_v49  ;;  %5563 = vadd.xlane.f32.xlu0 %v5562_v10  ;;  %v5347_v10 = vmul.f32 %v16210_v62, %v16210_v62 }
 0x42b   : > { %v5840_v33 = vmul.f32 0.015625, %v5528_v40  ;;  %v6095_v9 = vsub.f32 %v5839_v28, %v5967_v13  ;;  %v6604_v56 = vmul.f32 %v11647_v0, %v6220_v59  ;;  %v16465_v59 = vpop.f32.mrb[148].mxu1  ;;  %v5568_v0 = vsel %vm1627_vm1, %v5342_v11, 0.0 }
 0x42c   : > { %v4894_v2 = vpop.xlane.xlu1 %4893  ;;  %v6731_v4 = vmax.f32 %v6603_v14, 0.0 }
 0x42d   : > { %v6096_v5 = vsub.f32 %v5840_v33, %v5968_v46  ;;  %v6351_v40 = vadd.f32 1e-05, %v6095_v9  ;;  %v6732_v49 = vmax.f32 %v6604_v56, 0.0  ;;  %v16458_v13 = vmul.f32 0.015625, %v4894_v2  ;;  %5572 = vadd.xlane.f32.xlu1 %v5571_v30 }
 0x42e   : > { %v4891_v44 = vpop.xlane.xlu0 %4890  ;;  %11102 = vmatprep.mubr.msk.f32.mxu0 %vm1627_vm1, %v6731_v4  ;;  %v6221_v2 = vsub.f32 %v15807_v60, %v16389_v21  ;;  %5569 = vadd.xlane.f32.xlu0 %v5568_v0  ;;  %v6222_v33 = vsub.f32 %v15801_v3, %v16387_v61  ;;  %v5577_v56 = vsel %vm1627_vm1, %v5345_v24, 0.0  ;;  %v5574_v3 = vsel %vm1627_vm1, %v5344_v6, 0.0 }
 0x42f   : > { %v6352_v55 = vadd.f32 1e-05, %v6096_v5  ;;  %v16460_v28 = vmul.f32 0.015625, %v4891_v44  ;;  %11652 = vrsqrt.f32 %v6351_v40  ;;  %11103 = vmatmul.mubr.msk.f32.gmra.mrb[94].mxu0 %vm1627_vm1, %v6732_v49  ;;  %v16473_v44 = vpop.f32.mrb[149].mxu1  ;;  %v5970_v60 = vmul.f32 %v16458_v13, %v16458_v13 }
 0x430   : > { %v16484_v30 = vpop.f32.mrb[150].mxu1  ;;  %v5346_v61 = vmul.f32 %v16191_v52, %v16191_v52  ;;  %v5583_v24 = vsel %vm1627_vm1, %v5347_v10, 0.0  ;;  %v5349_v6 = vmul.f32 %v16232_v34, %v16232_v34  ;;  %v5348_v10 = vmul.f32 %v16207_v7, %v16207_v7 }
 0x431   : > { %11654 = vrsqrt.f32 %v6352_v55  ;;  %v11649_v46 = vpop.eup %11648  ;;  %v5969_v1 = vmul.f32 %v16460_v28, %v16460_v28  ;;  %5578 = vadd.xlane.f32.xlu1 %v5577_v56  ;;  %v16489_v0 = vpop.f32.mrb[151].mxu1  ;;  %v6224_v56 = vsub.f32 %v15843_v45, %v16423_v18  ;;  %v5350_v18 = vmul.f32 %v16225_v58, %v16225_v58 }
 0x432   : > { %v5531_v4 = vpop.xlane.xlu1 %5530  ;;  %v11651_v11 = vpop.eup %11650  ;;  %v6605_v5 = vmul.f32 %v11649_v46, %v6221_v2  ;;  %5575 = vadd.xlane.f32.xlu0 %v5574_v3  ;;  %v5586_v45 = vsel %vm1627_vm1, %v5348_v10, 0.0  ;;  %v5353_v10 = vmul.f32 %v16266_v63, %v16266_v63 }
 0x433   : > { %v5841_v14 = vmul.f32 0.015625, %v5531_v4  ;;  %v5534_v9 = vpop.xlane.xlu0 %5533  ;;  %v6606_v49 = vmul.f32 %v11651_v11, %v6222_v33  ;;  %v16499_v33 = vpop.f32.mrb[152].mxu1  ;;  %v5580_v11 = vsel %vm1627_vm1, %v5346_v61, 0.0  ;;  %v5351_v61 = vmul.f32 %v16244_v12, %v16244_v12 }
 0x434   : > { %v5842_v21 = vmul.f32 0.015625, %v5534_v9  ;;  %v6733_v62 = vmax.f32 %v6605_v5, 0.0 }
 0x435   : > { %v6097_v40 = vsub.f32 %v5841_v14, %v5969_v1  ;;  %v6734_v2 = vmax.f32 %v6606_v49, 0.0  ;;  %5584 = vadd.xlane.f32.xlu1 %v5583_v24 }
 0x436   : > { %v6098_v55 = vsub.f32 %v5842_v21, %v5970_v60  ;;  %v4900_v4 = vpop.xlane.xlu1 %4899  ;;  %11105 = vmatprep.mubr.msk.f32.mxu0 %vm1627_vm1, %v6733_v62  ;;  %v16507_v60 = vpop.f32.mrb[153].mxu1  ;;  %5581 = vadd.xlane.f32.xlu0 %v5580_v11 }
 0x437   : > { %v6353_v9 = vadd.f32 1e-05, %v6097_v40  ;;  %v4897_v50 = vpop.xlane.xlu0 %4896  ;;  %v16492_v1 = vmul.f32 0.015625, %v4900_v4  ;;  %11106 = vmatmul.mubr.msk.f32.gmra.mrb[96].mxu0 %vm1627_vm1, %v6734_v2  ;;  %v16518_v24 = vpop.f32.mrb[154].mxu1 }
 0x438   : > { %v6354_v46 = vadd.f32 1e-05, %v6098_v55  ;;  %v16494_v14 = vmul.f32 0.015625, %v4897_v50  ;;  %v6223_v50 = vsub.f32 %v15849_v23, %v16425_v15  ;;  %v5589_v55 = vsel %vm1627_vm1, %v5349_v6, 0.0  ;;  %v16523_v11 = vpop.f32.mrb[155].mxu1 }
 0x439   : > { %11656 = vrsqrt.f32 %v6353_v9  ;;  %v11653_v21 = vpop.eup %11652  ;;  %v5972_v23 = vmul.f32 %v16492_v1, %v16492_v1  ;;  %5590 = vadd.xlane.f32.xlu1 %v5589_v55  ;;  %v5595_v6 = vsel %vm1627_vm1, %v5351_v61, 0.0  ;;  %v5352_v61 = vmul.f32 %v16241_v36, %v16241_v36 }
 0x43a   : > { %11658 = vrsqrt.f32 %v6354_v46  ;;  %v5537_v62 = vpop.xlane.xlu1 %5536  ;;  %v5971_v5 = vmul.f32 %v16494_v14, %v16494_v14  ;;  %v6607_v4 = vmul.f32 %v11653_v21, %v6223_v50  ;;  %5587 = vadd.xlane.f32.xlu0 %v5586_v45  ;;  %v6226_v55 = vsub.f32 %v15888_v25, %v16458_v13 }
 0x43b   : > { %v5843_v40 = vmul.f32 0.015625, %v5537_v62  ;;  %v5540_v3 = vpop.xlane.xlu0 %5539  ;;  %v11655_v49 = vpop.eup %11654  ;;  %v5598_v25 = vsel %vm1627_vm1, %v5352_v61, 0.0  ;;  %v5354_v13 = vmul.f32 %v16259_v51, %v16259_v51 }
 0x43c   : > { %v5844_v15 = vmul.f32 0.015625, %v5540_v3  ;;  %v6608_v2 = vmul.f32 %v11655_v49, %v6224_v56  ;;  %v6735_v12 = vmax.f32 %v6607_v4, 0.0  ;;  %v16533_v56 = vpop.f32.mrb[156].mxu1  ;;  %v5592_v49 = vsel %vm1627_vm1, %v5350_v18, 0.0 }
 0x43d   : > { %v6099_v9 = vsub.f32 %v5843_v40, %v5971_v5  ;;  %5596 = vadd.xlane.f32.xlu1 %v5595_v6  ;;  %v5355_v18 = vmul.f32 %v16283_v20, %v16283_v20 }
 0x43e   : > { %v6100_v46 = vsub.f32 %v5844_v15, %v5972_v23  ;;  %v4906_v62 = vpop.xlane.xlu1 %4905  ;;  %v6736_v50 = vmax.f32 %v6608_v2, 0.0  ;;  %11108 = vmatprep.mubr.msk.f32.mxu0 %vm1627_vm1, %v6735_v12  ;;  %v16541_v23 = vpop.f32.mrb[157].mxu1  ;;  %5593 = vadd.xlane.f32.xlu0 %v5592_v49 }
 0x43f   : > { %v6355_v3 = vadd.f32 1e-05, %v6099_v9  ;;  %v4903_v34 = vpop.xlane.xlu0 %4902  ;;  %v16526_v5 = vmul.f32 0.015625, %v4906_v62  ;;  %v16552_v6 = vpop.f32.mrb[158].mxu1 }
 0x440   : > { %v6356_v21 = vadd.f32 1e-05, %v6100_v46  ;;  %v16528_v40 = vmul.f32 0.015625, %v4903_v34  ;;  %11109 = vmatmul.mubr.msk.f32.gmra.mrb[98].mxu0 %vm1627_vm1, %v6736_v50  ;;  %v6225_v34 = vsub.f32 %v15896_v41, %v16460_v28  ;;  %v5601_v46 = vsel %vm1627_vm1, %v5353_v10, 0.0  ;;  %v16557_v49 = vpop.f32.mrb[159].mxu1 }
 0x441   : > { %11660 = vrsqrt.f32 %v6355_v3  ;;  %v5974_v41 = vmul.f32 %v16526_v5, %v16526_v5  ;;  %5602 = vadd.xlane.f32.xlu1 %v5601_v46  ;;  %v6228_v46 = vsub.f32 %v15940_v53, %v16492_v1  ;;  %v5358_v1 = vmul.f32 %v16298_v8, %v16298_v8 }
 0x442   : > { %11662 = vrsqrt.f32 %v6356_v21  ;;  %v5543_v12 = vpop.xlane.xlu1 %5542  ;;  %v5973_v4 = vmul.f32 %v16528_v40, %v16528_v40  ;;  %5599 = vadd.xlane.f32.xlu0 %v5598_v25 }
 0x443   : > { %v11657_v15 = vpop.eup %11656  ;;  %v5845_v9 = vmul.f32 0.015625, %v5543_v12  ;;  %v5546_v45 = vpop.xlane.xlu0 %5545 }
 0x444   : > { %v11659_v2 = vpop.eup %11658  ;;  %v5846_v28 = vmul.f32 0.015625, %v5546_v45  ;;  %v6609_v62 = vmul.f32 %v11657_v15, %v6225_v34  ;;  %v5357_v34 = vmul.f32 %v16305_v17, %v16305_v17 }
 0x445   : > { %v6101_v3 = vsub.f32 %v5845_v9, %v5973_v4  ;;  %v6610_v50 = vmul.f32 %v11659_v2, %v6226_v55  ;;  %v5607_v9 = vsel %vm1627_vm1, %v5355_v18, 0.0  ;;  %v16567_v55 = vpop.f32.mrb[160].mxu1  ;;  %v5604_v2 = vsel %vm1627_vm1, %v5354_v13, 0.0 }
 0x446   : > { %v6102_v21 = vsub.f32 %v5846_v28, %v5974_v41  ;;  %v4912_v12 = vpop.xlane.xlu1 %4911  ;;  %v6737_v20 = vmax.f32 %v6609_v62, 0.0  ;;  %5608 = vadd.xlane.f32.xlu1 %v5607_v9  ;;  %v5356_v41 = vmul.f32 %v16275_v19, %v16275_v19  ;;  %v6227_v28 = vsub.f32 %v15935_v32, %v16494_v14  ;;  %5605 = vadd.xlane.f32.xlu0 %v5604_v2 }
 0x447   : > { %v6357_v45 = vadd.f32 1e-05, %v6101_v3  ;;  %v4909_v63 = vpop.xlane.xlu0 %4908  ;;  %v6738_v10 = vmax.f32 %v6610_v50, 0.0  ;;  %v16561_v4 = vmul.f32 0.015625, %v4912_v12  ;;  %v5613_v13 = vsel %vm1627_vm1, %v5357_v34, 0.0 }
 0x448   : > { %v6358_v15 = vadd.f32 1e-05, %v6102_v21  ;;  %v16563_v61 = vmul.f32 0.015625, %v4909_v63  ;;  %11111 = vmatprep.mubr.msk.f32.mxu0 %vm1627_vm1, %v6737_v20  ;;  %v16575_v63 = vpop.f32.mrb[161].mxu1  ;;  %v5359_v21 = vmul.f32 %v16317_v29, %v16317_v29  ;;  %v5610_v53 = vsel %vm1627_vm1, %v5356_v41, 0.0 }
 0x449   : > { %11664 = vrsqrt.f32 %v6357_v45  ;;  %11112 = vmatmul.mubr.msk.f32.gmra.mrb[100].mxu0 %vm1627_vm1, %v6738_v10  ;;  %v5976_v32 = vmul.f32 %v16561_v4, %v16561_v4  ;;  %v16586_v10 = vpop.f32.mrb[162].mxu1 }
 0x44a   : > { %11666 = vrsqrt.f32 %v6358_v15  ;;  %v5549_v18 = vpop.xlane.xlu1 %5548  ;;  %v5975_v62 = vmul.f32 %v16563_v61, %v16563_v61  ;;  %5614 = vadd.xlane.f32.xlu1 %v5613_v13  ;;  %v16591_v9 = vpop.f32.mrb[163].mxu1  ;;  %5611 = vadd.xlane.f32.xlu0 %v5610_v53  ;;  %v5616_v13 = vsel %vm1627_vm1, %v5358_v1, 0.0 }
 0x44b   : > { %v11661_v20 = vpop.eup %11660  ;;  %v5847_v3 = vmul.f32 0.015625, %v5549_v18  ;;  %v5552_v25 = vpop.xlane.xlu0 %5551 }
 0x44c   : > { %v11663_v50 = vpop.eup %11662  ;;  %v5848_v14 = vmul.f32 0.015625, %v5552_v25  ;;  %v6611_v12 = vmul.f32 %v11661_v20, %v6227_v28  ;;  %v5361_v28 = vmul.f32 %v16339_v38, %v16339_v38 }
 0x44d   : > { %v6103_v45 = vsub.f32 %v5847_v3, %v5975_v62  ;;  %v6612_v15 = vmul.f32 %v11663_v50, %v6228_v46  ;;  %v5619_v3 = vsel %vm1627_vm1, %v5359_v21, 0.0  ;;  %v5360_v50 = vmul.f32 %v16314_v26, %v16314_v26 }
 0x44e   : > { %v6104_v34 = vsub.f32 %v5848_v14, %v5976_v32  ;;  %v4918_v2 = vpop.xlane.xlu1 %4917  ;;  %v6739_v18 = vmax.f32 %v6611_v12, 0.0  ;;  %5620 = vadd.xlane.f32.xlu1 %v5619_v3  ;;  %v16601_v46 = vpop.f32.mrb[164].mxu1  ;;  %v6229_v32 = vsub.f32 %v15979_v35, %v16528_v40  ;;  %5617 = vadd.xlane.f32.xlu0 %v5616_v13  ;;  %v6230_v12 = vsub.f32 %v15985_v48, %v16526_v5  ;;  %v20415_v5 = vld [vmem:[#allocation5_spill] sm:$0xff] }
 0x44f   : > { %v6359_v25 = vadd.f32 1e-05, %v6103_v45  ;;  %v4915_v17 = vpop.xlane.xlu0 %4914  ;;  %v6740_v29 = vmax.f32 %v6612_v15, 0.0  ;;  %v16595_v62 = vmul.f32 0.015625, %v4918_v2  ;;  %v5625_v1 = vsel %vm1627_vm1, %v5361_v28, 0.0 }
 0x450   : > { %v6360_v20 = vadd.f32 1e-05, %v6104_v34  ;;  %v16597_v41 = vmul.f32 0.015625, %v4915_v17  ;;  %11114 = vmatprep.mubr.msk.f32.mxu0 %vm1627_vm1, %v6739_v18  ;;  %v16609_v17 = vpop.f32.mrb[165].mxu1  ;;  %v5363_v34 = vmul.f32 %v16351_v31, %v16351_v31  ;;  %v5622_v48 = vsel %vm1627_vm1, %v5360_v50, 0.0 }
 0x451   : > { %11668 = vrsqrt.f32 %v6359_v25  ;;  %11115 = vmatmul.mubr.msk.f32.gmra.mrb[102].mxu0 %vm1627_vm1, %v6740_v29  ;;  %v5978_v35 = vmul.f32 %v16595_v62, %v16595_v62 }
 0x452   : > { %11670 = vrsqrt.f32 %v6360_v20  ;;  %v5555_v14 = vpop.xlane.xlu1 %5554  ;;  %v5977_v45 = vmul.f32 %v16597_v41, %v16597_v41  ;;  %5626 = vadd.xlane.f32.xlu1 %v5625_v1  ;;  %v16620_v25 = vpop.f32.mrb[166].mxu1  ;;  %v5362_v20 = vmul.f32 %v20415_v5, %v20415_v5  ;;  %5623 = vadd.xlane.f32.xlu0 %v5622_v48 }
 0x453   : > { %v11665_v21 = vpop.eup %11664  ;;  %v5849_v53 = vmul.f32 0.015625, %v5555_v14  ;;  %v5558_v29 = vpop.xlane.xlu0 %5557 }
 0x454   : > { %v11667_v15 = vpop.eup %11666  ;;  %v5850_v40 = vmul.f32 0.015625, %v5558_v29  ;;  %v6613_v2 = vmul.f32 %v11665_v21, %v6229_v32  ;;  %v16625_v13 = vpop.f32.mrb[167].mxu1  ;;  %v5631_v32 = vsel %vm1627_vm1, %v5363_v34, 0.0  ;;  %v20416_v21 = vld [vmem:[#allocation116_spill] sm:$0xff] }
 0x455   : > { %v6105_v18 = vsub.f32 %v5849_v53, %v5977_v45  ;;  %v6614_v3 = vmul.f32 %v11667_v15, %v6230_v12  ;;  %v5365_v45 = vmul.f32 %v20416_v21, %v20416_v21  ;;  %v5628_v12 = vsel %vm1627_vm1, %v5362_v20, 0.0  ;;  %v20417_v53 = vld [vmem:[#allocation53_spill] sm:$0xff]  ;;  %v20418_v15 = vld [vmem:[#allocation206_spill] sm:$0xff] }
 0x456   : > { %v6106_v28 = vsub.f32 %v5850_v40, %v5978_v35  ;;  %v6741_v14 = vmax.f32 %v6613_v2, 0.0  ;;  %5632 = vadd.xlane.f32.xlu1 %v5631_v32  ;;  %v5364_v1 = vmul.f32 %v20417_v53, %v20417_v53  ;;  %v6231_v35 = vsub.f32 %v20418_v15, %v16563_v61  ;;  %5629 = vadd.xlane.f32.xlu0 %v5628_v12  ;;  %v20419_v2 = vld [vmem:[#allocation115_spill] sm:$0xff]  ;;  %v20420_v20 = vld [vmem:[#allocation117_spill] sm:$0xff] }
 0x457   : > { %v6361_v29 = vadd.f32 1e-05, %v6105_v18  ;;  %v6742_v38 = vmax.f32 %v6614_v3, 0.0  ;;  %v16631_v50 = vpop.f32.mrb[168].mxu1  ;;  %v6232_v18 = vsub.f32 %v20419_v2, %v16561_v4  ;;  %v5637_v3 = vsel %vm1627_vm1, %v5365_v45, 0.0  ;;  %v20422_v2 = vld [vmem:[#allocation156_spill] sm:$0xff] }
 0x458   : > { %v6362_v26 = vadd.f32 1e-05, %v6106_v28  ;;  %11117 = vmatprep.mubr.msk.f32.mxu0 %vm1627_vm1, %v6741_v14  ;;  %v16639_v40 = vpop.f32.mrb[169].mxu1  ;;  %v5634_v61 = vsel %vm1627_vm1, %v5364_v1, 0.0 }
 0x459   : > { %11672 = vrsqrt.f32 %v6361_v29  ;;  %11118 = vmatmul.mubr.msk.f32.gmra.mrb[104].mxu0 %vm1627_vm1, %v6742_v38  ;;  %v5367_v38 = vmul.f32 %v20420_v20, %v20420_v20 }
 0x45a   : > { %11674 = vrsqrt.f32 %v6362_v26  ;;  %5638 = vadd.xlane.f32.xlu1 %v5637_v3  ;;  %v20421_v26 = vld [vmem:[#allocation55_spill] sm:$0xff]  ;;  %5635 = vadd.xlane.f32.xlu0 %v5634_v61  ;;  %v20424_v61 = vld [vmem:[#allocation56_spill] sm:$0xff] }
 0x45b   : > { %v11669_v34 = vpop.eup %11668  ;;  %v16646_v14 = vpop.f32.mrb[170].mxu1  ;;  %v5366_v29 = vmul.f32 %v20421_v26, %v20421_v26  ;;  %v5643_v45 = vsel %vm1627_vm1, %v5367_v38, 0.0 }
 0x45c   : > { %v11671_v48 = vpop.eup %11670  ;;  %v6615_v28 = vmul.f32 %v11669_v34, %v6231_v35  ;;  %v16651_v12 = vpop.f32.mrb[171].mxu1  ;;  %v5369_v35 = vmul.f32 %v16409_v22, %v16409_v22 }
 0x45d   : > { %v6616_v32 = vmul.f32 %v11671_v48, %v6232_v18  ;;  %v5640_v1 = vsel %vm1627_vm1, %v5366_v29, 0.0  ;;  %v5368_v18 = vmul.f32 %v20422_v2, %v20422_v2  ;;  %v20423_v48 = vld [vmem:[#allocation149_spill] sm:$0xff] }
 0x45e   : > { %v6743_v4 = vmax.f32 %v6615_v28, 0.0  ;;  %5644 = vadd.xlane.f32.xlu1 %v5643_v45  ;;  %v6233_v3 = vsub.f32 %v20423_v48, %v16597_v41  ;;  %5641 = vadd.xlane.f32.xlu0 %v5640_v1  ;;  %v16671_v45 = vadd.f32 %v16280_v37, %v16415_v43  ;;  %v5649_v29 = vsel %vm1627_vm1, %v5369_v35, 0.0 }
 0x45f   : > { %v6744_v15 = vmax.f32 %v6616_v32, 0.0  ;;  %v6234_v32 = vsub.f32 %v20424_v61, %v16595_v62  ;;  %v5646_v41 = vsel %vm1627_vm1, %v5368_v18, 0.0  ;;  %v5370_v1 = vmul.f32 %v16400_v54, %v16400_v54 }
 0x460   : > { %11120 = vmatprep.mubr.msk.f32.mxu0 %vm1627_vm1, %v6743_v4  ;;  %v16657_v34 = vpop.f32.mrb[172].mxu1  ;;  %20425 = vst [vmem:[#allocation8_spill] sm:$0xff] %v16671_v45  ;;  %v5018_v43 = vsel %vm1627_vm1, %v16671_v45, 0.0  ;;  %v5372_v35 = vmul.f32 %v16671_v45, %v16671_v45 }
 0x461   : > { %11121 = vmatmul.mubr.msk.f32.gmra.mrb[106].mxu0 %vm1627_vm1, %v6744_v15  ;;  %v16665_v28 = vpop.f32.mrb[173].mxu1  ;;  %v5652_v18 = vsel %vm1627_vm1, %v5370_v1, 0.0 }
 0x462   : > { %5650 = vadd.xlane.f32.xlu1 %v5649_v29  ;;  %5647 = vadd.xlane.f32.xlu0 %v5646_v41  ;;  %v5658_v29 = vsel %vm1627_vm1, %v5372_v35, 0.0 }
 0x463   : > { %v11673_v38 = vpop.eup %11672 }
 0x464   : > { %v11675_v4 = vpop.eup %11674  ;;  %v6617_v15 = vmul.f32 %v11673_v38, %v6233_v3  ;;  %v5371_v38 = vmul.f32 %v16420_v39, %v16420_v39  ;;  %v16732_v39 = vpop.xlane.xlu1 %4923 }
 0x465   : > { %v16674_v2 = vpop.f32.mrb[174].mxu1  ;;  %v6618_v48 = vmul.f32 %v11675_v4, %v6234_v32  ;;  %v16696_v4 = vadd.f32 %v16280_v37, %v16430_v27 }
 0x466   : > { %v16679_v22 = vpop.f32.mrb[175].mxu1  ;;  %v6745_v62 = vmax.f32 %v6617_v15, 0.0  ;;  %5019 = vadd.xlane.f32.xlu1 %v5018_v43  ;;  %5653 = vadd.xlane.f32.xlu0 %v5652_v18  ;;  %v20427_v15 = vld [vmem:[#allocation157_spill] sm:$0xff] }
 0x467   : > { %v6746_v61 = vmax.f32 %v6618_v48, 0.0  ;;  %20426 = vst [vmem:[#allocation63_spill] sm:$0xff] %v16696_v4  ;;  %v16701_v41 = vadd.f32 %v16280_v37, %v20427_v15  ;;  %v5655_v48 = vsel %vm1627_vm1, %v5371_v38, 0.0  ;;  %v5374_v27 = vmul.f32 %v16696_v4, %v16696_v4 }
 0x468   : > { %11123 = vmatprep.mubr.msk.f32.mxu0 %vm1627_vm1, %v6745_v62  ;;  %v16722_v38 = vadd.f32 %v16280_v37, %v16450_v16 }
 0x469   : > { %v16686_v3 = vpop.f32.mrb[176].mxu1  ;;  %11124 = vmatmul.mubr.msk.f32.gmra.mrb[108].mxu0 %vm1627_vm1, %v6746_v61  ;;  %20428 = vst [vmem:[#allocation158_spill] sm:$0xff] %v16701_v41  ;;  %v5024_v61 = vsel %vm1627_vm1, %v16696_v4, 0.0  ;;  %v5021_v35 = vsel %vm1627_vm1, %v16701_v41, 0.0  ;;  %v5373_v18 = vmul.f32 %v16701_v41, %v16701_v41  ;;  %v5664_v15 = vsel %vm1627_vm1, %v5374_v27, 0.0 }
 0x46a   : > { %v16692_v32 = vpop.f32.mrb[177].mxu1  ;;  %5659 = vadd.xlane.f32.xlu1 %v5658_v29  ;;  %5656 = vadd.xlane.f32.xlu0 %v5655_v48  ;;  %20430 = vst [vmem:[#allocation188_spill] sm:$0xff] %v16722_v38  ;;  %v16727_v48 = vadd.f32 %v16280_v37, %v16455_v42  ;;  %v5030_v16 = vsel %vm1627_vm1, %v16722_v38, 0.0  ;;  %v5376_v27 = vmul.f32 %v16722_v38, %v16722_v38  ;;  %v16757_v38 = vld [vmem:[%s19167_s6] ss:$0 sm:$0xff] }
 0x46b   : > { %v5661_v4 = vsel %vm1627_vm1, %v5373_v18, 0.0  ;;  %v16795_v26 = vadd.f32 %v16757_v38, %v16484_v30 }
 0x46c   : > { %20431 = vst [vmem:[#allocation9_spill] sm:$0xff] %v16727_v48  ;;  %v5027_v37 = vsel %vm1627_vm1, %v16727_v48, 0.0  ;;  %v5375_v18 = vmul.f32 %v16727_v48, %v16727_v48  ;;  %v16766_v48 = vadd.f32 %v16757_v38, %v16473_v44 }
 0x46d   : > { %20442 = vst [vmem:[#allocation194_spill] sm:$0xff] %v16795_v26  ;;  %v5042_v30 = vsel %vm1627_vm1, %v16795_v26, 0.0 }
 0x46e   : > { %v16703_v1 = vpop.f32.mrb[178].mxu1  ;;  %5025 = vadd.xlane.f32.xlu1 %v5024_v61  ;;  %5022 = vadd.xlane.f32.xlu0 %v5021_v35  ;;  %v16736_v35 = vpop.xlane.xlu0 %4920  ;;  %20437 = vst [vmem:[#allocation11_spill] sm:$0xff] %v16766_v48 }
 0x46f   : > { %v16706_v62 = vpop.f32.mrb[179].mxu1 }
 0x472   : > { %v16712_v43 = vpop.f32.mrb[180].mxu1  ;;  %5665 = vadd.xlane.f32.xlu1 %v5664_v15  ;;  %5662 = vadd.xlane.f32.xlu0 %v5661_v4  ;;  %v16748_v15 = vpop.xlane.xlu1 %4929 }
 0x473   : > { %v16718_v29 = vpop.f32.mrb[181].mxu1  ;;  %v16752_v45 = vpop.xlane.xlu0 %4926 }
 0x474   : > { %20429 = vst [vmem:[#allocation219_spill] sm:$0xff] %v16718_v29 }
 0x476   : > { %v16729_v61 = vpop.f32.mrb[182].mxu1  ;;  %5031 = vadd.xlane.f32.xlu1 %v5030_v16  ;;  %5028 = vadd.xlane.f32.xlu0 %v5027_v37  ;;  %v16761_v16 = vadd.f32 %v16757_v38, %v16465_v59  ;;  %v5667_v37 = vsel %vm1627_vm1, %v5375_v18, 0.0  ;;  %v16771_v54 = vpop.xlane.xlu1 %4935  ;;  %v5377_v18 = vmul.f32 %v16766_v48, %v16766_v48 }
 0x477   : > { %20432 = vst [vmem:[#allocation71_spill] sm:$0xff] %v16729_v61  ;;  %v16734_v41 = vpop.f32.mrb[183].mxu1  ;;  %v16775_v61 = vpop.xlane.xlu0 %4932 }
 0x478   : > { %20433 = vst [vmem:[#allocation159_spill] sm:$0xff] %v16734_v41  ;;  %20436 = vst [vmem:[#allocation160_spill] sm:$0xff] %v16761_v16  ;;  %v5036_v59 = vsel %vm1627_vm1, %v16761_v16, 0.0 }
 0x47a   : > { %5668 = vadd.xlane.f32.xlu0 %v5667_v37 }
 0x47b   : > { %v16742_v42 = vpop.f32.mrb[184].mxu1 }
 0x47c   : > { %20434 = vst [vmem:[#allocation10_spill] sm:$0xff] %v16742_v42  ;;  %v16750_v4 = vpop.f32.mrb[185].mxu1  ;;  %v5670_v42 = vsel %vm1627_vm1, %v5376_v27, 0.0  ;;  %v5378_v27 = vmul.f32 %v16761_v16, %v16761_v16  ;;  %v16800_v16 = vadd.f32 %v16757_v38, %v16489_v0 }
 0x47d   : > { %20435 = vst [vmem:[#allocation72_spill] sm:$0xff] %v16750_v4  ;;  %5671 = vadd.xlane.f32.xlu1 %v5670_v42  ;;  %v5033_v42 = vsel %vm1627_vm1, %v16766_v48, 0.0  ;;  %v5673_v48 = vsel %vm1627_vm1, %v5377_v18, 0.0 }
 0x47e   : > { %5034 = vadd.xlane.f32.xlu0 %v5033_v42  ;;  %20443 = vst [vmem:[#allocation164_spill] sm:$0xff] %v16800_v16  ;;  %v5039_v0 = vsel %vm1627_vm1, %v16800_v16, 0.0  ;;  %v5379_v18 = vmul.f32 %v16800_v16, %v16800_v16 }
 0x47f   : > { %v16768_v4 = vpop.f32.mrb[186].mxu1 }
 0x480   : > { %20438 = vst [vmem:[#allocation77_spill] sm:$0xff] %v16768_v4  ;;  %v16773_v41 = vpop.f32.mrb[187].mxu1  ;;  %v16787_v4 = vpop.xlane.xlu1 %4941  ;;  %v5679_v16 = vsel %vm1627_vm1, %v5379_v18, 0.0 }
 0x481   : > { %20439 = vst [vmem:[#allocation163_spill] sm:$0xff] %v16773_v41  ;;  %5037 = vadd.xlane.f32.xlu1 %v5036_v59  ;;  %v16791_v41 = vpop.xlane.xlu0 %4938  ;;  %v5676_v59 = vsel %vm1627_vm1, %v5378_v27, 0.0  ;;  %v5380_v27 = vmul.f32 %v16795_v26, %v16795_v26 }
 0x482   : > { %5674 = vadd.xlane.f32.xlu0 %v5673_v48  ;;  %v16825_v48 = vadd.f32 %v16757_v38, %v16499_v33 }
 0x483   : > { %v16781_v44 = vpop.f32.mrb[188].mxu1 }
 0x484   : > { %20440 = vst [vmem:[#allocation12_spill] sm:$0xff] %v16781_v44  ;;  %v16789_v37 = vpop.f32.mrb[189].mxu1  ;;  %v16805_v20 = vpop.xlane.xlu1 %4947  ;;  %20446 = vst [vmem:[#allocation13_spill] sm:$0xff] %v16825_v48  ;;  %v5048_v33 = vsel %vm1627_vm1, %v16825_v48, 0.0 }
 0x485   : > { %20441 = vst [vmem:[#allocation78_spill] sm:$0xff] %v16789_v37  ;;  %5677 = vadd.xlane.f32.xlu1 %v5676_v59  ;;  %v16809_v37 = vpop.xlane.xlu0 %4944 }
 0x486   : > { %5040 = vadd.xlane.f32.xlu0 %v5039_v0 }
 0x487   : > { %v16802_v44 = vpop.f32.mrb[190].mxu1 }
 0x488   : > { %20444 = vst [vmem:[#allocation224_spill] sm:$0xff] %v16802_v44  ;;  %v16807_v42 = vpop.f32.mrb[191].mxu1  ;;  %v16819_v59 = vpop.xlane.xlu1 %4953  ;;  %v5682_v44 = vsel %vm1627_vm1, %v5380_v27, 0.0  ;;  %v5382_v27 = vmul.f32 %v16825_v48, %v16825_v48 }
 0x489   : > { %20445 = vst [vmem:[#allocation196_spill] sm:$0xff] %v16807_v42  ;;  %5043 = vadd.xlane.f32.xlu1 %v5042_v30  ;;  %v16821_v42 = vpop.xlane.xlu0 %4950  ;;  %v16832_v30 = vadd.f32 %v16757_v38, %v16507_v60 }
 0x48a   : > { %5680 = vadd.xlane.f32.xlu0 %v5679_v16  ;;  %v16855_v16 = vadd.f32 %v16757_v38, %v16518_v24 }
 0x48b   : > { %20448 = vst [vmem:[#allocation165_spill] sm:$0xff] %v16832_v30  ;;  %v5045_v60 = vsel %vm1627_vm1, %v16832_v30, 0.0 }
 0x48c   : > { %v16828_v21 = vpop.f32.mrb[64].mxu0  ;;  %v16837_v0 = vpop.xlane.xlu1 %4959  ;;  %20450 = vst [vmem:[#allocation84_spill] sm:$0xff] %v16855_v16  ;;  %v5054_v24 = vsel %vm1627_vm1, %v16855_v16, 0.0 }
 0x48d   : > { %20447 = vst [vmem:[#allocation83_spill] sm:$0xff] %v16828_v21  ;;  %5683 = vadd.xlane.f32.xlu1 %v5682_v44  ;;  %v16834_v26 = vpop.f32.mrb[65].mxu0  ;;  %v16839_v53 = vpop.xlane.xlu0 %4956  ;;  %v5381_v44 = vmul.f32 %v16832_v30, %v16832_v30 }
 0x48e   : > { %20449 = vst [vmem:[#allocation14_spill] sm:$0xff] %v16834_v26  ;;  %5046 = vadd.xlane.f32.xlu0 %v5045_v60  ;;  %v5688_v26 = vsel %vm1627_vm1, %v5382_v27, 0.0  ;;  %v5384_v27 = vmul.f32 %v16855_v16, %v16855_v16 }
 0x48f   : > { %v5685_v30 = vsel %vm1627_vm1, %v5381_v44, 0.0 }
 0x490   : > { %v16849_v21 = vpop.xlane.xlu1 %4965 }
 0x491   : > { %5049 = vadd.xlane.f32.xlu1 %v5048_v33  ;;  %v16851_v18 = vpop.xlane.xlu0 %4962  ;;  %v16862_v33 = vadd.f32 %v16757_v38, %v16523_v11 }
 0x492   : > { %5686 = vadd.xlane.f32.xlu0 %v5685_v30  ;;  %v16885_v30 = vadd.f32 %v16757_v38, %v16533_v56  ;;  %v16903_v56 = vadd.f32 %v16757_v38, %v16552_v6 }
 0x493   : > { %20452 = vst [vmem:[#allocation205_spill] sm:$0xff] %v16862_v33  ;;  %v5051_v11 = vsel %vm1627_vm1, %v16862_v33, 0.0 }
 0x494   : > { %v16858_v29 = vpop.f32.mrb[66].mxu0  ;;  %v16867_v60 = vpop.xlane.xlu1 %4971  ;;  %20458 = vst [vmem:[#allocation90_spill] sm:$0xff] %v16885_v30  ;;  %20464 = vst [vmem:[#allocation172_spill] sm:$0xff] %v16903_v56 }
 0x495   : > { %20451 = vst [vmem:[#allocation166_spill] sm:$0xff] %v16858_v29  ;;  %5689 = vadd.xlane.f32.xlu1 %v5688_v26  ;;  %v16864_v48 = vpop.f32.mrb[67].mxu0  ;;  %20454 = vst [vmem:[#allocation89_spill] sm:$0xff] %v16867_v60  ;;  %v16869_v31 = vpop.xlane.xlu0 %4968  ;;  %v5383_v26 = vmul.f32 %v16862_v33, %v16862_v33 }
 0x496   : > { %20453 = vst [vmem:[#allocation17_spill] sm:$0xff] %v16864_v48  ;;  %20455 = vst [vmem:[#allocation204_spill] sm:$0xff] %v16869_v31  ;;  %5052 = vadd.xlane.f32.xlu0 %v5051_v11  ;;  %v5694_v48 = vsel %vm1627_vm1, %v5384_v27, 0.0  ;;  %v16906_v27 = vmul.f32 0.015625, %v16732_v39  ;;  %v16922_v39 = vadd.f32 %v16757_v38, %v16567_v55  ;;  %v16943_v55 = vadd.f32 %v16757_v38, %v16601_v46 }
 0x497   : > { %v5691_v33 = vsel %vm1627_vm1, %v5383_v26, 0.0  ;;  %v16914_v26 = vadd.f32 %v16757_v38, %v16557_v49  ;;  %v16933_v49 = vmul.f32 0.015625, %v16736_v35 }
 0x498   : > { %v16879_v29 = vpop.xlane.xlu1 %4977  ;;  %20465 = vst [vmem:[#allocation22_spill] sm:$0xff] %v16906_v27  ;;  %20467 = vst [vmem:[#allocation173_spill] sm:$0xff] %v16922_v39 }
 0x499   : > { %5055 = vadd.xlane.f32.xlu1 %v5054_v24  ;;  %20456 = vst [vmem:[#allocation168_spill] sm:$0xff] %v16879_v29  ;;  %v16881_v44 = vpop.xlane.xlu0 %4974  ;;  %v16892_v24 = vadd.f32 %v16757_v38, %v16541_v23  ;;  %v5060_v23 = vsel %vm1627_vm1, %v16885_v30, 0.0  ;;  %20466 = vst [vmem:[#allocation95_spill] sm:$0xff] %v16914_v26 }
 0x49a   : > { %20457 = vst [vmem:[#allocation18_spill] sm:$0xff] %v16881_v44  ;;  %5692 = vadd.xlane.f32.xlu0 %v5691_v33  ;;  %20472 = vst [vmem:[#allocation97_spill] sm:$0xff] %v16943_v55  ;;  %v5063_v44 = vsel %vm1627_vm1, %v16914_v26, 0.0 }
 0x49b   : > { %v16888_v5 = vpop.f32.mrb[68].mxu0  ;;  %20460 = vst [vmem:[#allocation169_spill] sm:$0xff] %v16892_v24  ;;  %v5057_v33 = vsel %vm1627_vm1, %v16892_v24, 0.0  ;;  %v5385_v6 = vmul.f32 %v16892_v24, %v16892_v24  ;;  %v16939_v24 = vadd.f32 %v16757_v38, %v16591_v9  ;;  %v16961_v9 = vmul.f32 %v16906_v27, %v16906_v27 }
 0x49c   : > { %20459 = vst [vmem:[#allocation208_spill] sm:$0xff] %v16888_v5  ;;  %v16894_v16 = vpop.f32.mrb[69].mxu0  ;;  %v16897_v11 = vpop.xlane.xlu1 %4983  ;;  %v16926_v5 = vadd.f32 %v16757_v38, %v16575_v63  ;;  %v16947_v63 = vadd.f32 %v16757_v38, %v16609_v17  ;;  %v5388_v17 = vmul.f32 %v16903_v56, %v16903_v56  ;;  %v17064_v27 = vadd.f32 %v16757_v38, %v16665_v28 }
 0x49d   : > { %5695 = vadd.xlane.f32.xlu1 %v5694_v48  ;;  %20461 = vst [vmem:[#allocation209_spill] sm:$0xff] %v16894_v16  ;;  %20462 = vst [vmem:[#allocation21_spill] sm:$0xff] %v16897_v11  ;;  %v16899_v8 = vpop.xlane.xlu0 %4980  ;;  %v5386_v48 = vmul.f32 %v16885_v30, %v16885_v30  ;;  %v16930_v16 = vadd.f32 %v16757_v38, %v16586_v10  ;;  %v16951_v10 = vadd.f32 %v16757_v38, %v16620_v25 }
 0x49e   : > { %20463 = vst [vmem:[#allocation94_spill] sm:$0xff] %v16899_v8  ;;  %20468 = vst [vmem:[#allocation25_spill] sm:$0xff] %v16926_v5  ;;  %5058 = vadd.xlane.f32.xlu0 %v5057_v33  ;;  %v16957_v33 = vadd.f32 %v16757_v38, %v16625_v13  ;;  %v5697_v13 = vsel %vm1627_vm1, %v5385_v6, 0.0  ;;  %v5066_v8 = vsel %vm1627_vm1, %v16903_v56, 0.0  ;;  %v5387_v11 = vmul.f32 %v16914_v26, %v16914_v26 }
 0x49f   : > { %20469 = vst [vmem:[#allocation16_spill] sm:$0xff] %v16930_v16  ;;  %20471 = vst [vmem:[#allocation26_spill] sm:$0xff] %v16939_v24  ;;  %v5700_v46 = vsel %vm1627_vm1, %v5386_v48, 0.0  ;;  %v16979_v48 = vmul.f32 %v16933_v49, %v16933_v49  ;;  %v5389_v6 = vmul.f32 %v16926_v5, %v16926_v5  ;;  %v5706_v19 = vsel %vm1627_vm1, %v5388_v17, 0.0 }
 0x4a0   : > { %20473 = vst [vmem:[#allocation174_spill] sm:$0xff] %v16947_v63  ;;  %20474 = vst [vmem:[#allocation62_spill] sm:$0xff] %v16951_v10  ;;  %v5703_v26 = vsel %vm1627_vm1, %v5387_v11, 0.0 }
 0x4a1   : > { %5061 = vadd.xlane.f32.xlu1 %v5060_v23  ;;  %v16935_v23 = vpop.xlane.xlu1 %4989  ;;  %v16953_v35 = vpop.xlane.xlu0 %4986  ;;  %20476 = vst [vmem:[#allocation20_spill] sm:$0xff] %v16957_v33  ;;  %v5709_v31 = vsel %vm1627_vm1, %v5389_v6, 0.0  ;;  %v17049_v6 = vadd.f32 %v16757_v38, %v16657_v34  ;;  %20491 = vst [vmem:[#allocation177_spill] sm:$0xff] %v17064_v27 }
 0x4a2   : > { %20470 = vst [vmem:[#allocation146_spill] sm:$0xff] %v16935_v23  ;;  %20475 = vst [vmem:[#allocation29_spill] sm:$0xff] %v16953_v35  ;;  %v16964_v30 = vpop.f32.mrb[70].mxu0  ;;  %5698 = vadd.xlane.f32.xlu0 %v5697_v13  ;;  %v16991_v23 = vadd.f32 %v16757_v38, %v16631_v50  ;;  %v5072_v13 = vsel %vm1627_vm1, %v16922_v39, 0.0  ;;  %v5069_v50 = vsel %vm1627_vm1, %v16926_v5, 0.0 }
 0x4a3   : > { %20477 = vst [vmem:[#allocation215_spill] sm:$0xff] %v16964_v30  ;;  %v16970_v35 = vpop.f32.mrb[71].mxu0  ;;  %v20480_v30 = vld [vmem:[#allocation57_spill] sm:$0xff]  ;;  %20489 = vst [vmem:[#allocation34_spill] sm:$0xff] %v17049_v6 }
 0x4a4   : > { %20479 = vst [vmem:[#allocation147_spill] sm:$0xff] %v16970_v35  ;;  %20482 = vst [vmem:[#allocation99_spill] sm:$0xff] %v16991_v23  ;;  %v16995_v35 = vadd.f32 %v16757_v38, %v16639_v40  ;;  %v5392_v40 = vmul.f32 %v16930_v16, %v16930_v16 }
 0x4a5   : > { %5701 = vadd.xlane.f32.xlu1 %v5700_v46  ;;  %v16983_v29 = vpop.xlane.xlu1 %4995  ;;  %v5390_v46 = vmul.f32 %v16922_v39, %v16922_v39  ;;  %v16997_v56 = vpop.xlane.xlu0 %4992  ;;  %v17019_v39 = vsel %vm1627_vm1, %v16930_v16, 0.0  ;;  %v17035_v16 = vsel %vm1627_vm1, %v16939_v24, 0.0 }
 0x4a6   : > { %20481 = vst [vmem:[#allocation30_spill] sm:$0xff] %v16983_v29  ;;  %20483 = vst [vmem:[#allocation220_spill] sm:$0xff] %v16995_v35  ;;  %v17005_v29 = vadd.f32 %v16757_v38, %v16646_v14  ;;  %v5391_v14 = vmul.f32 %v16939_v24, %v16939_v24  ;;  %5064 = vadd.xlane.f32.xlu0 %v5063_v44  ;;  %v17043_v44 = vsel %vm1627_vm1, %v16947_v63, 0.0  ;;  %v17054_v24 = vsel %vm1627_vm1, %v5392_v40, 0.0 }
 0x4a7   : > { %20484 = vst [vmem:[#allocation175_spill] sm:$0xff] %v16997_v56  ;;  %v17014_v56 = vadd.f32 %v16757_v38, %v16651_v12  ;;  %v5712_v5 = vsel %vm1627_vm1, %v5390_v46, 0.0  ;;  %v5394_v12 = vmul.f32 %v16943_v55, %v16943_v55  ;;  %v5396_v46 = vmul.f32 %v16951_v10, %v16951_v10 }
 0x4a8   : > { %20485 = vst [vmem:[#allocation221_spill] sm:$0xff] %v17005_v29  ;;  %v17069_v34 = vsel %vm1627_vm1, %v5391_v14, 0.0  ;;  %v17073_v40 = vsel %vm1627_vm1, %v16957_v33, 0.0  ;;  %v5397_v14 = vmul.f32 %v16995_v35, %v16995_v35 }
 0x4a9   : > { %20486 = vst [vmem:[#allocation33_spill] sm:$0xff] %v17014_v56  ;;  %5067 = vadd.xlane.f32.xlu1 %v5066_v8  ;;  %v17023_v17 = vpop.xlane.xlu1 %5001  ;;  %v5393_v8 = vmul.f32 %v16947_v63, %v16947_v63  ;;  %v17031_v11 = vpop.xlane.xlu0 %4998  ;;  %v5395_v63 = vmul.f32 %v16957_v33, %v16957_v33 }
 0x4aa   : > { %20487 = vst [vmem:[#allocation24_spill] sm:$0xff] %v17023_v17  ;;  %20488 = vst [vmem:[#allocation176_spill] sm:$0xff] %v17031_v11  ;;  %v17039_v17 = vsel %vm1627_vm1, %v16943_v55, 0.0  ;;  %v17051_v11 = vpop.f32.mrb[72].mxu0  ;;  %v17058_v55 = vsel %vm1627_vm1, %v16951_v10, 0.0  ;;  %v17079_v10 = vadd.f32 %v16757_v38, %v16674_v2  ;;  %5704 = vadd.xlane.f32.xlu0 %v5703_v26  ;;  %v17098_v2 = vsel %vm1627_vm1, %v5396_v46, 0.0 }
 0x4ab   : > { %20490 = vst [vmem:[#allocation101_spill] sm:$0xff] %v17051_v11  ;;  %v17066_v25 = vpop.f32.mrb[73].mxu0  ;;  %v5398_v11 = vmul.f32 %v16991_v23, %v16991_v23  ;;  %v17087_v28 = vsel %vm1627_vm1, %v5393_v8, 0.0  ;;  %v17102_v26 = vsel %vm1627_vm1, %v16991_v23, 0.0  ;;  %v17110_v8 = vadd.f32 %v16757_v38, %v16686_v3 }
 0x4ac   : > { %20492 = vst [vmem:[#allocation37_spill] sm:$0xff] %v17066_v25  ;;  %20493 = vst [vmem:[#allocation47_spill] sm:$0xff] %v17079_v10  ;;  %v17093_v25 = vadd.f32 %v16757_v38, %v16679_v22  ;;  %v17114_v22 = vadd.f32 %v16757_v38, %v16692_v32  ;;  %v5400_v46 = vmul.f32 %v17005_v29, %v17005_v29 }
 0x4ad   : > { %5707 = vadd.xlane.f32.xlu1 %v5706_v19  ;;  %v17081_v60 = vpop.xlane.xlu1 %5007  ;;  %v17084_v19 = vsel %vm1627_vm1, %v5394_v12, 0.0  ;;  %v17095_v33 = vpop.xlane.xlu0 %5004  ;;  %v17106_v12 = vsel %vm1627_vm1, %v16995_v35, 0.0  ;;  %20497 = vst [vmem:[#allocation227_spill] sm:$0xff] %v17110_v8  ;;  %v17122_v23 = vsel %vm1627_vm1, %v5398_v11, 0.0  ;;  %v17126_v35 = vsel %vm1627_vm1, %v17005_v29, 0.0 }
 0x4ae   : > { %20494 = vst [vmem:[#allocation178_spill] sm:$0xff] %v17081_v60  ;;  %20495 = vst [vmem:[#allocation38_spill] sm:$0xff] %v17093_v25  ;;  %v17117_v60 = vsel %vm1627_vm1, %v5395_v63, 0.0  ;;  %v5399_v3 = vmul.f32 %v17014_v56, %v17014_v56  ;;  %v5402_v32 = vmul.f32 %v17049_v6, %v17049_v6  ;;  %5070 = vadd.xlane.f32.xlu0 %v5069_v50  ;;  %v17135_v63 = vsel %vm1627_vm1, %v5397_v14, 0.0 }
 0x4af   : > { %20496 = vst [vmem:[#allocation28_spill] sm:$0xff] %v17095_v33  ;;  %20498 = vst [vmem:[#allocation179_spill] sm:$0xff] %v17114_v22  ;;  %v5401_v11 = vmul.f32 %v17064_v27, %v17064_v27  ;;  %v5404_v29 = vmul.f32 %v17079_v10, %v17079_v10  ;;  %v17153_v50 = vsel %vm1627_vm1, %v17064_v27, 0.0  ;;  %v17157_v14 = vsel %vm1627_vm1, %v17079_v10, 0.0 }
 0x4b0   : > { %20499 = vst [vmem:[#allocation228_spill] sm:$0xff] %v17122_v23  ;;  %20500 = vst [vmem:[#allocation41_spill] sm:$0xff] %v17126_v35  ;;  %v17149_v23 = vsel %vm1627_vm1, %v17049_v6, 0.0  ;;  %v17168_v6 = vsel %vm1627_vm1, %v5400_v46, 0.0  ;;  %v5406_v27 = vmul.f32 %v17110_v8, %v17110_v8  ;;  %v17176_v10 = vadd.f32 %v16757_v38, %v16706_v62 }
 0x4b1   : > { %5073 = vadd.xlane.f32.xlu1 %v5072_v13  ;;  %v17132_v33 = vpop.xlane.xlu1 %5013  ;;  %v17139_v13 = vsel %vm1627_vm1, %v17014_v56, 0.0  ;;  %v17145_v35 = vpop.xlane.xlu0 %5010  ;;  %20503 = vst [vmem:[#allocation42_spill] sm:$0xff] %v17149_v23  ;;  %20504 = vst [vmem:[#allocation32_spill] sm:$0xff] %v17153_v50  ;;  %v5403_v56 = vmul.f32 %v17093_v25, %v17093_v25  ;;  %v5405_v50 = vmul.f32 %v17114_v22, %v17114_v22  ;;  %v17188_v46 = vsel %vm1627_vm1, %v17093_v25, 0.0 }
 0x4b2   : > { %20501 = vst [vmem:[#allocation58_spill] sm:$0xff] %v17132_v33  ;;  %20502 = vst [vmem:[#allocation180_spill] sm:$0xff] %v17145_v35  ;;  %v17163_v33 = vadd.f32 %v16757_v38, %v16703_v1  ;;  %v17165_v35 = vpop.f32.mrb[74].mxu0  ;;  %v17181_v1 = vsel %vm1627_vm1, %v5399_v3, 0.0  ;;  %v17191_v23 = vmul.f32 0.015625, %v16748_v15  ;;  %5710 = vadd.xlane.f32.xlu0 %v5709_v31  ;;  %v17194_v62 = vsel %vm1627_vm1, %v5401_v11, 0.0 }
 0x4b3   : > { %20505 = vst [vmem:[#allocation182_spill] sm:$0xff] %v17157_v14  ;;  %20507 = vst [vmem:[#allocation36_spill] sm:$0xff] %v17165_v35  ;;  %v17178_v14 = vpop.f32.mrb[75].mxu0  ;;  %v17184_v35 = vsel %vm1627_vm1, %v5402_v32, 0.0  ;;  %v17201_v3 = vsel %vm1627_vm1, %v17110_v8, 0.0  ;;  %v17204_v32 = vmul.f32 0.015625, %v16752_v45 }
 0x4b4   : > { %20506 = vst [vmem:[#allocation50_spill] sm:$0xff] %v17163_v33  ;;  %20508 = vst [vmem:[#allocation183_spill] sm:$0xff] %v17168_v6  ;;  %v17209_v15 = vsel %vm1627_vm1, %v5403_v56, 0.0  ;;  %v17213_v31 = vsel %vm1627_vm1, %v17114_v22, 0.0  ;;  %v17219_v11 = vsel %vm1627_vm1, %v5406_v27, 0.0  ;;  %v17222_v8 = vsel %vm1627_vm1, %v5405_v50, 0.0 }
 0x4b5   : > { %20509 = vst [vmem:[#allocation51_spill] sm:$0xff] %v17176_v10  ;;  %5713 = vadd.xlane.f32.xlu1 %v5712_v5  ;;  %20510 = vst [vmem:[#allocation102_spill] sm:$0xff] %v17178_v14  ;;  %v5561_v6 = vpop.xlane.xlu1 %5560  ;;  %v17197_v5 = vsel %vm1627_vm1, %v5404_v29, 0.0  ;;  %v17206_v14 = vpop.xlane.xlu0 %5016  ;;  %v17216_v29 = vmul.f32 0.015625, %v16771_v54  ;;  %v17226_v45 = vsel %vm1627_vm1, %v17163_v33, 0.0  ;;  %v17236_v54 = vmul.f32 %v17163_v33, %v17163_v33 }
 0x4b6   : > { %v5851_v25 = vmul.f32 0.015625, %v5561_v6  ;;  %20511 = vst [vmem:[#allocation184_spill] sm:$0xff] %v17206_v14  ;;  %20512 = vst [vmem:[#allocation60_spill] sm:$0xff] %v17213_v31  ;;  %v17232_v6 = vsel %vm1627_vm1, %v17176_v10, 0.0  ;;  %v17240_v27 = vmul.f32 %v17176_v10, %v17176_v10  ;;  %v17244_v50 = vadd.f32 %v16757_v38, %v16712_v43  ;;  %5076 = vadd.xlane.f32.xlu0 %v17035_v16 }
 0x4b7   : > { %20513 = vst [vmem:[#allocation106_spill] sm:$0xff] %v17219_v11  ;;  %20514 = vst [vmem:[#allocation185_spill] sm:$0xff] %v17222_v8  ;;  %v5981_v33 = vmul.f32 %v17204_v32, %v17204_v32  ;;  %v17296_v14 = vmul.f32 0.015625, %v16819_v59 }
 0x4b8   : > { %20515 = vst [vmem:[#allocation61_spill] sm:$0xff] %v17226_v45  ;;  %v6107_v56 = vsub.f32 %v5851_v25, %v16979_v48  ;;  %20516 = vst [vmem:[#allocation108_spill] sm:$0xff] %v17232_v6  ;;  %v5982_v25 = vmul.f32 %v17191_v23, %v17191_v23  ;;  %v17252_v48 = vmul.f32 0.015625, %v16787_v4  ;;  %v17266_v4 = vmul.f32 0.015625, %v16791_v41  ;;  %v20523_v41 = vld [vmem:[#allocation151_spill] sm:$0xff] }
 0x4b9   : > { %5079 = vadd.xlane.f32.xlu1 %v17019_v39  ;;  %20517 = vst [vmem:[#allocation190_spill] sm:$0xff] %v17236_v54  ;;  %20518 = vst [vmem:[#allocation69_spill] sm:$0xff] %v17240_v27  ;;  %v17249_v39 = vmul.f32 0.015625, %v16775_v61  ;;  %v5567_v22 = vpop.xlane.xlu1 %5566  ;;  %v20520_v27 = vld [vmem:[#allocation48_spill] sm:$0xff]  ;;  %v17263_v61 = vmul.f32 %v17216_v29, %v17216_v29 }
 0x4ba   : > { %20519 = vst [vmem:[#allocation112_spill] sm:$0xff] %v17244_v50  ;;  %v6363_v43 = vadd.f32 1e-05, %v6107_v56  ;;  %v5853_v38 = vmul.f32 0.015625, %v5567_v22  ;;  %v5564_v50 = vpop.xlane.xlu0 %5563  ;;  %v17268_v54 = vpop.f32.mrb[76].mxu0  ;;  %v17273_v56 = vmul.f32 0.015625, %v16805_v20  ;;  %5716 = vadd.xlane.f32.xlu0 %v17069_v34 }
 0x4bb   : > { %v5852_v16 = vmul.f32 0.015625, %v5564_v50  ;;  %20521 = vst [vmem:[#allocation191_spill] sm:$0xff] %v17268_v54  ;;  %v17276_v6 = vpop.f32.mrb[77].mxu0  ;;  %v5983_v45 = vmul.f32 %v17249_v39, %v17249_v39  ;;  %v17284_v54 = vmul.f32 %v17252_v48, %v17252_v48  ;;  %v5985_v50 = vmul.f32 %v17266_v4, %v17266_v4 }
 0x4bc   : > { %11676 = vrsqrt.f32 %v6363_v43  ;;  %v6109_v22 = vsub.f32 %v5853_v38, %v5981_v33  ;;  %20522 = vst [vmem:[#allocation70_spill] sm:$0xff] %v17276_v6  ;;  %v17291_v33 = vmul.f32 0.015625, %v16809_v37  ;;  %v17314_v34 = vmul.f32 0.015625, %v16837_v0 }
 0x4bd   : > { %5719 = vadd.xlane.f32.xlu1 %v17054_v24  ;;  %v6108_v10 = vsub.f32 %v5852_v16, %v16961_v9  ;;  %v5573_v20 = vpop.xlane.xlu1 %5572  ;;  %v20524_v16 = vld [vmem:[#allocation122_spill] sm:$0xff]  ;;  %v17302_v24 = vmul.f32 %v17273_v56, %v17273_v56  ;;  %v17327_v0 = vmul.f32 0.015625, %v16839_v53 }
 0x4be   : > { %v6365_v43 = vadd.f32 1e-05, %v6109_v22  ;;  %v5855_v38 = vmul.f32 0.015625, %v5573_v20  ;;  %v5570_v6 = vpop.xlane.xlu0 %5569  ;;  %v17308_v20 = vmul.f32 0.015625, %v16821_v42  ;;  %5082 = vadd.xlane.f32.xlu0 %v17043_v44  ;;  %v17320_v42 = vmul.f32 %v17296_v14, %v17296_v14 }
 0x4bf   : > { %v6364_v8 = vadd.f32 1e-05, %v6108_v10  ;;  %v5854_v9 = vmul.f32 0.015625, %v5570_v6  ;;  %v5987_v6 = vmul.f32 %v17291_v33, %v17291_v33 }
 0x4c0   : > { %11678 = vrsqrt.f32 %v6365_v43  ;;  %v6111_v37 = vsub.f32 %v5855_v38, %v5983_v45  ;;  %v20525_v38 = vld [vmem:[#allocation152_spill] sm:$0xff]  ;;  %v5989_v22 = vmul.f32 %v17308_v20, %v17308_v20 }
 0x4c1   : > { %5085 = vadd.xlane.f32.xlu1 %v17039_v17  ;;  %11680 = vrsqrt.f32 %v6364_v8  ;;  %v6110_v59 = vsub.f32 %v5854_v9, %v5982_v25  ;;  %v5579_v10 = vpop.xlane.xlu1 %5578 }
 0x4c2   : > { %v6367_v45 = vadd.f32 1e-05, %v6111_v37  ;;  %v5857_v43 = vmul.f32 0.015625, %v5579_v10  ;;  %v5576_v17 = vpop.xlane.xlu0 %5575  ;;  %v17322_v9 = vpop.f32.mrb[78].mxu0  ;;  %5722 = vadd.xlane.f32.xlu0 %v17087_v28 }
 0x4c3   : > { %v6366_v8 = vadd.f32 1e-05, %v6110_v59  ;;  %v5856_v25 = vmul.f32 0.015625, %v5576_v17  ;;  %20526 = vst [vmem:[#allocation114_spill] sm:$0xff] %v17322_v9  ;;  %v17330_v10 = vpop.f32.mrb[79].mxu0  ;;  %v20528_v59 = vld [vmem:[#allocation123_spill] sm:$0xff] }
 0x4c4   : > { %11682 = vrsqrt.f32 %v6367_v45  ;;  %v6113_v37 = vsub.f32 %v5857_v43, %v5985_v50  ;;  %20527 = vst [vmem:[#allocation192_spill] sm:$0xff] %v17330_v10  ;;  %v17340_v50 = vmul.f32 %v17314_v34, %v17314_v34  ;;  %v20533_v17 = vld [vmem:[#allocation89_spill] sm:$0xff] }
 0x4c5   : > { %5725 = vadd.xlane.f32.xlu1 %v17084_v19  ;;  %11684 = vrsqrt.f32 %v6366_v8  ;;  %v6112_v9 = vsub.f32 %v5856_v25, %v17263_v61  ;;  %v5585_v11 = vpop.xlane.xlu1 %5584  ;;  %v17343_v19 = vmul.f32 0.015625, %v16849_v21  ;;  %v20529_v61 = vsub.f32 %v20480_v30, %v16933_v49  ;;  %v20530_v49 = vld [vmem:[#allocation125_spill] sm:$0xff] }
 0x4c6   : > { %v11677_v53 = vpop.eup %11676  ;;  %v6369_v45 = vadd.f32 1e-05, %v6113_v37  ;;  %v5859_v43 = vmul.f32 0.015625, %v5585_v11  ;;  %v5582_v44 = vpop.xlane.xlu0 %5581  ;;  %v17352_v25 = vmul.f32 %v17327_v0, %v17327_v0  ;;  %v17356_v21 = vmul.f32 0.015625, %v16851_v18  ;;  %5088 = vadd.xlane.f32.xlu0 %v17073_v40 }
 0x4c7   : > { %v6368_v8 = vadd.f32 1e-05, %v6112_v9  ;;  %v5858_v10 = vmul.f32 0.015625, %v5582_v44  ;;  %v6619_v28 = vmul.f32 %v11677_v53, %v20529_v61  ;;  %v17364_v53 = vmul.f32 %v17343_v19, %v17343_v19 }
 0x4c8   : > { %11686 = vrsqrt.f32 %v6369_v45  ;;  %v6115_v31 = vsub.f32 %v5859_v43, %v5987_v6  ;;  %v11953_v18 = vmov 0   ;;  %v20532_v61 = vsub.f32 %v20520_v27, %v17204_v32 }
 0x4c9   : > { %5091 = vadd.xlane.f32.xlu1 %v17058_v55  ;;  %11688 = vrsqrt.f32 %v6368_v8  ;;  %v6114_v11 = vsub.f32 %v5858_v10, %v17284_v54  ;;  %v5591_v9 = vpop.xlane.xlu1 %5590  ;;  %v6747_v44 = vmax.f32 %v6619_v28, 0.0  ;;  %11327 = vset.pattern.permute.xlu0 %v11953_v18  ;;  %v20535_v54 = vld [vmem:[#allocation150_spill] sm:$0xff] }
 0x4ca   : > { %v11679_v30 = vpop.eup %11678  ;;  %v6371_v6 = vadd.f32 1e-05, %v6115_v31  ;;  %v5861_v55 = vmul.f32 0.015625, %v5591_v9  ;;  %v5588_v45 = vpop.xlane.xlu0 %5587  ;;  %v17375_v31 = vmul.f32 0.015625, %v20533_v17  ;;  %5728 = vadd.xlane.f32.xlu0 %v17117_v60 }
 0x4cb   : > { %v11681_v43 = vpop.eup %11680  ;;  %v6370_v10 = vadd.f32 1e-05, %v6114_v11  ;;  %v5860_v40 = vmul.f32 0.015625, %v5588_v45  ;;  %11126 = vmatprep.mubr.msk.f32.mxu0 %vm1627_vm1, %v6747_v44  ;;  %v17369_v8 = vpop.f32.mrb[80].mxu0  ;;  %v6621_v28 = vmul.f32 %v11679_v30, %v20532_v61  ;;  %v20536_v11 = vld [vmem:[#allocation22_spill] sm:$0xff]  ;;  %v5993_v44 = vmul.f32 %v17356_v21, %v17356_v21 }
 0x4cc   : > { %20531 = vst [vmem:[#allocation75_spill] sm:$0xff] %v17369_v8  ;;  %11690 = vrsqrt.f32 %v6371_v6  ;;  %v6117_v9 = vsub.f32 %v5861_v55, %v5989_v22  ;;  %v17378_v18 = vpop.f32.mrb[81].mxu0  ;;  %v20537_v45 = vsub.f32 %v20535_v54, %v20536_v11  ;;  %v20538_v8 = vld [vmem:[#allocation153_spill] sm:$0xff] }
 0x4cd   : > { %5731 = vadd.xlane.f32.xlu1 %v17098_v2  ;;  %20534 = vst [vmem:[#allocation118_spill] sm:$0xff] %v17378_v18  ;;  %11692 = vrsqrt.f32 %v6370_v10  ;;  %v6116_v27 = vsub.f32 %v5860_v40, %v17302_v24  ;;  %v5597_v17 = vpop.xlane.xlu1 %5596  ;;  %v20539_v2 = vld [vmem:[#allocation204_spill] sm:$0xff]  ;;  %v6749_v18 = vmax.f32 %v6621_v28, 0.0  ;;  %v20540_v10 = vsub.f32 %v20523_v41, %v17249_v39  ;;  %v20542_v28 = vld [vmem:[#allocation127_spill] sm:$0xff] }
 0x4ce   : > { %v6620_v37 = vmul.f32 %v11681_v43, %v20537_v45  ;;  %v11683_v22 = vpop.eup %11682  ;;  %v17390_v30 = vmul.f32 0.015625, %v20539_v2  ;;  %v6373_v6 = vadd.f32 1e-05, %v6117_v9  ;;  %v5863_v55 = vmul.f32 0.015625, %v5597_v17  ;;  %v5594_v54 = vpop.xlane.xlu0 %5593  ;;  %v20543_v39 = vld [vmem:[#allocation168_spill] sm:$0xff]  ;;  %5094 = vadd.xlane.f32.xlu0 %v17106_v12 }
 0x4cf   : > { %v11685_v61 = vpop.eup %11684  ;;  %v6372_v11 = vadd.f32 1e-05, %v6116_v27  ;;  %v5862_v45 = vmul.f32 0.015625, %v5594_v54  ;;  %v6623_v32 = vmul.f32 %v11683_v22, %v20540_v10  ;;  %v17397_v24 = vmul.f32 %v17375_v31, %v17375_v31  ;;  %v20546_v10 = vld [vmem:[#allocation228_spill] sm:$0xff] }
 0x4d0   : > { %v6748_v43 = vmax.f32 %v6620_v37, 0.0  ;;  %11694 = vrsqrt.f32 %v6373_v6  ;;  %v6119_v60 = vsub.f32 %v5863_v55, %v17352_v25  ;;  %v20541_v37 = vsub.f32 %v16157_v57, %v17191_v23 }
 0x4d1   : > { %5097 = vadd.xlane.f32.xlu1 %v17102_v26  ;;  %v6252_v9 = vsub.f32 %v20542_v28, %v17375_v31  ;;  %v17408_v41 = vmul.f32 0.015625, %v20543_v39  ;;  %11696 = vrsqrt.f32 %v6372_v11  ;;  %v6118_v27 = vsub.f32 %v5862_v45, %v17320_v42  ;;  %v5603_v17 = vpop.xlane.xlu1 %5602 }
 0x4d2   : > { %11127 = vmatmul.mubr.msk.f32.gmra.mrb[110].mxu0 %vm1627_vm1, %v6748_v43  ;;  %v6622_v40 = vmul.f32 %v11685_v61, %v20541_v37  ;;  %v11687_v26 = vpop.eup %11686  ;;  %v5995_v25 = vmul.f32 %v17390_v30, %v17390_v30  ;;  %v6375_v57 = vadd.f32 1e-05, %v6119_v60  ;;  %v5865_v23 = vmul.f32 0.015625, %v5603_v17  ;;  %v5600_v22 = vpop.xlane.xlu0 %5599  ;;  %5734 = vadd.xlane.f32.xlu0 %v17135_v63  ;;  %v20549_v17 = vld [vmem:[#allocation148_spill] sm:$0xff] }
 0x4d3   : > { %11129 = vmatprep.mubr.msk.f32.mxu0 %vm1627_vm1, %v6749_v18  ;;  %v11689_v6 = vpop.eup %11688  ;;  %v6374_v55 = vadd.f32 1e-05, %v6118_v27  ;;  %v5864_v54 = vmul.f32 0.015625, %v5600_v22  ;;  %v17415_v43 = vpop.f32.mrb[82].mxu0  ;;  %v6751_v61 = vmax.f32 %v6623_v32, 0.0  ;;  %v20544_v42 = vsub.f32 %v20524_v16, %v17266_v4  ;;  %v20545_v18 = vld [vmem:[#allocation154_spill] sm:$0xff] }
 0x4d4   : > { %v6750_v2 = vmax.f32 %v6622_v40, 0.0  ;;  %v6251_v11 = vsub.f32 %v20545_v18, %v17390_v30  ;;  %11698 = vrsqrt.f32 %v6375_v57  ;;  %v6121_v45 = vsub.f32 %v5865_v23, %v5993_v44  ;;  %v17424_v60 = vpop.f32.mrb[83].mxu0  ;;  %v20548_v4 = vld [vmem:[#allocation18_spill] sm:$0xff] }
 0x4d5   : > { %v6625_v12 = vmul.f32 %v11687_v26, %v20544_v42  ;;  %5737 = vadd.xlane.f32.xlu1 %v20546_v10  ;;  %v20547_v37 = vsub.f32 %v16173_v47, %v17216_v29  ;;  %v17431_v32 = vmul.f32 %v17408_v41, %v17408_v41  ;;  %v17434_v16 = vmul.f32 0.015625, %v20548_v4  ;;  %v5609_v39 = vpop.xlane.xlu1 %5608  ;;  %v20552_v10 = vld [vmem:[#allocation41_spill] sm:$0xff] }
 0x4d6   : > { %11130 = vmatmul.mubr.msk.f32.gmra.mrb[112].mxu0 %vm1627_vm1, %v6750_v2  ;;  %11700 = vrsqrt.f32 %v6374_v55  ;;  %v6120_v44 = vsub.f32 %v5864_v54, %v17340_v50  ;;  %v11691_v27 = vpop.eup %11690  ;;  %v6254_v47 = vsub.f32 %v20549_v17, %v17408_v41  ;;  %v6377_v29 = vadd.f32 1e-05, %v6121_v45  ;;  %v5606_v57 = vpop.xlane.xlu0 %5605  ;;  %v20551_v54 = vld [vmem:[#allocation21_spill] sm:$0xff]  ;;  %5100 = vadd.xlane.f32.xlu0 %v17139_v13 }
 0x4d7   : > { %v6624_v40 = vmul.f32 %v11689_v6, %v20547_v37  ;;  %11132 = vmatprep.mubr.msk.f32.mxu0 %vm1627_vm1, %v6751_v61  ;;  %v5867_v26 = vmul.f32 0.015625, %v5609_v39  ;;  %v11693_v22 = vpop.eup %11692  ;;  %v5866_v6 = vmul.f32 0.015625, %v5606_v57  ;;  %v6753_v42 = vmax.f32 %v6625_v12, 0.0 }
 0x4d8   : > { %v6376_v2 = vadd.f32 1e-05, %v6120_v44  ;;  %v20550_v50 = vsub.f32 %v20525_v38, %v17291_v33  ;;  %v17445_v63 = vmul.f32 0.015625, %v20551_v54  ;;  %11702 = vrsqrt.f32 %v6377_v29  ;;  %v20555_v44 = vld [vmem:[#allocation155_spill] sm:$0xff] }
 0x4d9   : > { %v6752_v23 = vmax.f32 %v6624_v40, 0.0  ;;  %v6123_v61 = vsub.f32 %v5867_v26, %v5995_v25  ;;  %5103 = vadd.xlane.f32.xlu1 %v20552_v10  ;;  %v20553_v45 = vsub.f32 %v16191_v52, %v17252_v48  ;;  %v5997_v12 = vmul.f32 %v17434_v16, %v17434_v16  ;;  %v20554_v40 = vld [vmem:[#allocation94_spill] sm:$0xff]  ;;  %v5615_v38 = vpop.xlane.xlu1 %5614  ;;  %v20559_v10 = vld [vmem:[#allocation52_spill] sm:$0xff] }
 0x4da   : > { %v6627_v55 = vmul.f32 %v11691_v27, %v20550_v50  ;;  %v17455_v4 = vmul.f32 0.015625, %v20554_v40  ;;  %11704 = vrsqrt.f32 %v6376_v2  ;;  %v6122_v33 = vsub.f32 %v5866_v6, %v17364_v53  ;;  %v11695_v25 = vpop.eup %11694  ;;  %v5612_v27 = vpop.xlane.xlu0 %5611  ;;  %v20557_v50 = vld [vmem:[#allocation183_spill] sm:$0xff]  ;;  %5740 = vadd.xlane.f32.xlu0 %v17181_v1  ;;  %v20560_v40 = vld [vmem:[#allocation29_spill] sm:$0xff] }
 0x4db   : > { %11133 = vmatmul.mubr.msk.f32.gmra.mrb[114].mxu0 %vm1627_vm1, %v6752_v23  ;;  %v6626_v37 = vmul.f32 %v11693_v22, %v20553_v45  ;;  %v6253_v39 = vsub.f32 %v20555_v44, %v17434_v16  ;;  %v6379_v52 = vadd.f32 1e-05, %v6123_v61  ;;  %v5869_v48 = vmul.f32 0.015625, %v5615_v38  ;;  %v11697_v26 = vpop.eup %11696  ;;  %v17462_v22 = vpop.f32.mrb[84].mxu0 }
 0x4dc   : > { %11135 = vmatprep.mubr.msk.f32.mxu0 %vm1627_vm1, %v6753_v42  ;;  %v6378_v57 = vadd.f32 1e-05, %v6122_v33  ;;  %v5868_v23 = vmul.f32 0.015625, %v5612_v27  ;;  %v6755_v2 = vmax.f32 %v6627_v55, 0.0  ;;  %v20556_v53 = vsub.f32 %v20528_v59, %v17308_v20  ;;  %v17473_v54 = vpop.f32.mrb[85].mxu0 }
 0x4dd   : > { %v6754_v29 = vmax.f32 %v6626_v37, 0.0  ;;  %v17469_v6 = vmul.f32 %v17445_v63, %v17445_v63  ;;  %11706 = vrsqrt.f32 %v6379_v52  ;;  %v6125_v42 = vsub.f32 %v5869_v48, %v5997_v12  ;;  %5743 = vadd.xlane.f32.xlu1 %v20557_v50  ;;  %v5621_v37 = vpop.xlane.xlu1 %5620  ;;  %v20565_v50 = vld [vmem:[#allocation181_spill] sm:$0xff] }
 0x4de   : > { %v6629_v13 = vmul.f32 %v11695_v25, %v20556_v53  ;;  %v20558_v61 = vsub.f32 %v16207_v7, %v17273_v56  ;;  %v6256_v20 = vsub.f32 %v20559_v10, %v17445_v63  ;;  %v5999_v59 = vmul.f32 %v17455_v4, %v17455_v4  ;;  %v11699_v12 = vpop.eup %11698  ;;  %v5618_v38 = vpop.xlane.xlu0 %5617 }
 0x4df   : > { %11136 = vmatmul.mubr.msk.f32.gmra.mrb[116].mxu0 %vm1627_vm1, %v6754_v29  ;;  %11708 = vrsqrt.f32 %v6378_v57  ;;  %v6124_v45 = vsub.f32 %v5868_v23, %v17397_v24  ;;  %v17486_v33 = vmul.f32 0.015625, %v20560_v40  ;;  %v6381_v7 = vadd.f32 1e-05, %v6125_v42  ;;  %v20562_v57 = vld [vmem:[#allocation146_spill] sm:$0xff] }
 0x4e0   : > { %v6628_v55 = vmul.f32 %v11697_v26, %v20558_v61  ;;  %11138 = vmatprep.mubr.msk.f32.mxu0 %vm1627_vm1, %v6755_v2  ;;  %v5871_v56 = vmul.f32 0.015625, %v5621_v37  ;;  %v11701_v52 = vpop.eup %11700  ;;  %v5870_v27 = vmul.f32 0.015625, %v5618_v38  ;;  %v6757_v29 = vmax.f32 %v6629_v13, 0.0  ;;  %v20563_v2 = vld [vmem:[#allocation42_spill] sm:$0xff]  ;;  %v20566_v61 = vld [vmem:[#allocation175_spill] sm:$0xff] }
 0x4e1   : > { %v6380_v48 = vadd.f32 1e-05, %v6124_v45  ;;  %v20561_v24 = vsub.f32 %v20530_v49, %v17327_v0  ;;  %v17492_v1 = vmul.f32 0.015625, %v20562_v57  ;;  %11710 = vrsqrt.f32 %v6381_v7  ;;  %5109 = vadd.xlane.f32.xlu1 %v20563_v2  ;;  %v5627_v49 = vpop.xlane.xlu1 %5626  ;;  %v20567_v45 = vld [vmem:[#allocation32_spill] sm:$0xff] }
 0x4e2   : > { %v6756_v25 = vmax.f32 %v6628_v55, 0.0  ;;  %v6127_v23 = vsub.f32 %v5871_v56, %v5999_v59  ;;  %v20564_v53 = vsub.f32 %v16225_v58, %v17296_v14  ;;  %v6255_v13 = vsub.f32 %v20565_v50, %v17455_v4  ;;  %5106 = vadd.xlane.f32.xlu0 %v20567_v45  ;;  %v11703_v59 = vpop.eup %11702 }
 0x4e3   : > { %v6631_v26 = vmul.f32 %v11699_v12, %v20561_v24  ;;  %v17502_v55 = vmul.f32 0.015625, %v20566_v61  ;;  %11712 = vrsqrt.f32 %v6380_v48  ;;  %v6126_v0 = vsub.f32 %v5870_v27, %v17431_v32  ;;  %v5624_v12 = vpop.xlane.xlu0 %5623 }
 0x4e4   : > { %11139 = vmatmul.mubr.msk.f32.gmra.mrb[118].mxu0 %vm1627_vm1, %v6756_v25  ;;  %v6630_v42 = vmul.f32 %v11701_v52, %v20564_v53  ;;  %v6001_v37 = vmul.f32 %v17486_v33, %v17486_v33  ;;  %v6383_v58 = vadd.f32 1e-05, %v6127_v23  ;;  %v5873_v14 = vmul.f32 0.015625, %v5627_v49  ;;  %v11705_v7 = vpop.eup %11704  ;;  %v17509_v25 = vpop.f32.mrb[86].mxu0 }
 0x4e5   : > { %11141 = vmatprep.mubr.msk.f32.mxu0 %vm1627_vm1, %v6757_v29  ;;  %v6382_v56 = vadd.f32 1e-05, %v6126_v0  ;;  %v5872_v38 = vmul.f32 0.015625, %v5624_v12  ;;  %v6759_v52 = vmax.f32 %v6631_v26, 0.0  ;;  %v20568_v32 = vsub.f32 %v20538_v8, %v17356_v21  ;;  %5749 = vadd.xlane.f32.xlu1 %v17184_v35  ;;  %v17518_v24 = vpop.f32.mrb[87].mxu0  ;;  %v20570_v26 = vld [vmem:[#allocation30_spill] sm:$0xff]  ;;  %v5633_v53 = vpop.xlane.xlu1 %5632 }
 0x4e6   : > { %v6758_v40 = vmax.f32 %v6630_v42, 0.0  ;;  %v6002_v27 = vmul.f32 %v17492_v1, %v17492_v1  ;;  %11714 = vrsqrt.f32 %v6383_v58  ;;  %v6129_v29 = vsub.f32 %v5873_v14, %v6001_v37  ;;  %5746 = vadd.xlane.f32.xlu0 %v17194_v62  ;;  %v20571_v42 = vld [vmem:[#allocation176_spill] sm:$0xff] }
 0x4e7   : > { %v6633_v48 = vmul.f32 %v11703_v59, %v20568_v32  ;;  %v20569_v57 = vsub.f32 %v16241_v36, %v17314_v34  ;;  %v17524_v2 = vmul.f32 0.015625, %v20570_v26  ;;  %v6003_v21 = vmul.f32 %v17502_v55, %v17502_v55  ;;  %v11707_v35 = vpop.eup %11706  ;;  %v5630_v0 = vpop.xlane.xlu0 %5629  ;;  %v20572_v14 = vld [vmem:[#allocation24_spill] sm:$0xff] }
 0x4e8   : > { %11142 = vmatmul.mubr.msk.f32.gmra.mrb[120].mxu0 %vm1627_vm1, %v6758_v40  ;;  %11716 = vrsqrt.f32 %v6382_v56  ;;  %v6128_v8 = vsub.f32 %v5872_v38, %v17469_v6  ;;  %v17532_v61 = vmul.f32 0.015625, %v20571_v42  ;;  %v6385_v36 = vadd.f32 1e-05, %v6129_v29  ;;  %v20573_v40 = vld [vmem:[#allocation182_spill] sm:$0xff] }
 0x4e9   : > { %v6632_v23 = vmul.f32 %v11705_v7, %v20569_v57  ;;  %11144 = vmatprep.mubr.msk.f32.mxu0 %vm1627_vm1, %v6759_v52  ;;  %v5875_v34 = vmul.f32 0.015625, %v5633_v53  ;;  %v11709_v45 = vpop.eup %11708  ;;  %v5874_v37 = vmul.f32 0.015625, %v5630_v0  ;;  %v6761_v58 = vmax.f32 %v6633_v48, 0.0  ;;  %5115 = vadd.xlane.f32.xlu1 %v20573_v40  ;;  %v20575_v52 = vld [vmem:[#allocation28_spill] sm:$0xff]  ;;  %v5639_v18 = vpop.xlane.xlu1 %5638 }
 0x4ea   : > { %v6384_v59 = vadd.f32 1e-05, %v6128_v8  ;;  %v6635_v6 = vmul.f32 %v11707_v35, %v6251_v11  ;;  %v17538_v62 = vmul.f32 0.015625, %v20572_v14  ;;  %11718 = vrsqrt.f32 %v6385_v36  ;;  %5112 = vadd.xlane.f32.xlu0 %v17188_v46  ;;  %v17554_v8 = vpop.f32.mrb[88].mxu0 }
 0x4eb   : > { %v6760_v49 = vmax.f32 %v6632_v23, 0.0  ;;  %v6131_v12 = vsub.f32 %v5875_v34, %v6003_v21  ;;  %v20574_v7 = vsub.f32 %v16259_v51, %v17343_v19  ;;  %v6004_v38 = vmul.f32 %v17524_v2, %v17524_v2  ;;  %v11711_v11 = vpop.eup %11710  ;;  %v5636_v19 = vpop.xlane.xlu0 %5635  ;;  %v20576_v34 = vld [vmem:[#allocation178_spill] sm:$0xff] }
 0x4ec   : > { %v17548_v32 = vmul.f32 0.015625, %v20575_v52  ;;  %11720 = vrsqrt.f32 %v6384_v59  ;;  %v6130_v30 = vsub.f32 %v5874_v37, %v6002_v27  ;;  %v6005_v48 = vmul.f32 %v17532_v61, %v17532_v61  ;;  %v17563_v42 = vpop.f32.mrb[89].mxu0  ;;  %v20579_v52 = vld [vmem:[#allocation58_spill] sm:$0xff] }
 0x4ed   : > { %11145 = vmatmul.mubr.msk.f32.gmra.mrb[122].mxu0 %vm1627_vm1, %v6760_v49  ;;  %v6634_v56 = vmul.f32 %v11709_v45, %v20574_v7  ;;  %v6387_v29 = vadd.f32 1e-05, %v6131_v12  ;;  %v5877_v51 = vmul.f32 0.015625, %v5639_v18  ;;  %v11713_v23 = vpop.eup %11712  ;;  %v5876_v21 = vmul.f32 0.015625, %v5636_v19  ;;  %5755 = vadd.xlane.f32.xlu1 %v17197_v5  ;;  %v20577_v49 = vld [vmem:[#allocation180_spill] sm:$0xff] }
 0x4ee   : > { %11147 = vmatprep.mubr.msk.f32.mxu0 %vm1627_vm1, %v6761_v58  ;;  %v6386_v26 = vadd.f32 1e-05, %v6130_v30  ;;  %v6763_v53 = vmax.f32 %v6635_v6, 0.0  ;;  %v6637_v46 = vmul.f32 %v11711_v11, %v6253_v39  ;;  %v6006_v27 = vmul.f32 %v17538_v62, %v17538_v62  ;;  %v5645_v39 = vpop.xlane.xlu1 %5644  ;;  %5752 = vadd.xlane.f32.xlu0 %v17209_v15  ;;  %v20578_v15 = vld [vmem:[#allocation49_spill] sm:$0xff] }
 0x4ef   : > { %v6762_v57 = vmax.f32 %v6634_v56, 0.0  ;;  %11722 = vrsqrt.f32 %v6387_v29  ;;  %v6133_v35 = vsub.f32 %v5877_v51, %v6005_v48  ;;  %v6636_v36 = vmul.f32 %v11713_v23, %v6252_v9  ;;  %v5642_v28 = vpop.xlane.xlu0 %5641  ;;  %v20581_v23 = vld [vmem:[#allocation5_spill] sm:$0xff] }
 0x4f0   : > { %v17569_v0 = vmul.f32 0.015625, %v20576_v34  ;;  %v6007_v16 = vmul.f32 %v17548_v32, %v17548_v32  ;;  %11724 = vrsqrt.f32 %v6386_v26  ;;  %v6132_v44 = vsub.f32 %v5876_v21, %v6004_v38  ;;  %v11715_v5 = vpop.eup %11714 }
 0x4f1   : > { %11148 = vmatmul.mubr.msk.f32.gmra.mrb[124].mxu0 %vm1627_vm1, %v6762_v57  ;;  %v17576_v45 = vmul.f32 0.015625, %v20577_v49  ;;  %v6389_v59 = vadd.f32 1e-05, %v6133_v35  ;;  %v5879_v31 = vmul.f32 0.015625, %v5645_v39  ;;  %v6764_v9 = vmax.f32 %v6636_v36, 0.0  ;;  %5121 = vadd.xlane.f32.xlu1 %v17201_v3  ;;  %v20583_v35 = vld [vmem:[#allocation6_spill] sm:$0xff] }
 0x4f2   : > { %11150 = vmatprep.mubr.msk.f32.mxu0 %vm1627_vm1, %v6763_v53  ;;  %v11717_v37 = vpop.eup %11716  ;;  %v6388_v58 = vadd.f32 1e-05, %v6132_v44  ;;  %v5878_v6 = vmul.f32 0.015625, %v5642_v28  ;;  %v6765_v14 = vmax.f32 %v6637_v46, 0.0  ;;  %v6639_v12 = vmul.f32 %v11715_v5, %v6255_v13  ;;  %v5651_v50 = vpop.xlane.xlu1 %5650  ;;  %v20582_v53 = vld [vmem:[#allocation106_spill] sm:$0xff]  ;;  %v20584_v44 = vld [vmem:[#allocation185_spill] sm:$0xff] }
 0x4f3   : > { %v6257_v40 = vsub.f32 %v20578_v15, %v17486_v33  ;;  %11726 = vrsqrt.f32 %v6389_v59  ;;  %v6135_v7 = vsub.f32 %v5879_v31, %v6007_v16  ;;  %v6638_v56 = vmul.f32 %v11717_v37, %v6254_v47  ;;  %v20580_v33 = vld [vmem:[#allocation60_spill] sm:$0xff]  ;;  %v5648_v17 = vpop.xlane.xlu0 %5647  ;;  %v17597_v51 = vpop.f32.mrb[90].mxu0  ;;  %v20588_v15 = vld [vmem:[#allocation190_spill] sm:$0xff] }
 0x4f4   : > { %v6008_v38 = vmul.f32 %v17569_v0, %v17569_v0  ;;  %v17591_v30 = vmul.f32 0.015625, %v20579_v52  ;;  %11728 = vrsqrt.f32 %v6388_v58  ;;  %v6134_v4 = vsub.f32 %v5878_v6, %v6006_v27  ;;  %5118 = vadd.xlane.f32.xlu0 %v20580_v33  ;;  %v11719_v3 = vpop.eup %11718  ;;  %v17603_v46 = vpop.f32.mrb[91].mxu0  ;;  %v20585_v5 = vld [vmem:[#allocation184_spill] sm:$0xff]  ;;  %v17622_v58 = vld [vmem:[%s19167_s6] ss:$0 sm:$0xff]  ;;  %v20586_v6 = vld [vmem:[#allocation219_spill] sm:$0xff] }
 0x4f5   : > { %11151 = vmatmul.mubr.msk.f32.gmra.mrb[126].mxu0 %vm1627_vm1, %v6764_v9  ;;  %v6009_v13 = vmul.f32 %v17576_v45, %v17576_v45  ;;  %v6391_v18 = vadd.f32 1e-05, %v6135_v7  ;;  %v5881_v41 = vmul.f32 0.015625, %v5651_v50  ;;  %v6766_v47 = vmax.f32 %v6638_v56, 0.0  ;;  %5761 = vadd.xlane.f32.xlu1 %v20582_v53  ;;  %v20589_v56 = vld [vmem:[#allocation53_spill] sm:$0xff]  ;;  %v20590_v52 = vld [vmem:[#allocation116_spill] sm:$0xff] }
 0x4f6   : > { %11153 = vmatprep.mubr.msk.f32.mxu0 %vm1627_vm1, %v6765_v14  ;;  %v11721_v11 = vpop.eup %11720  ;;  %v6390_v48 = vadd.f32 1e-05, %v6134_v4  ;;  %v5880_v29 = vmul.f32 0.015625, %v5648_v17  ;;  %v6767_v19 = vmax.f32 %v6639_v12, 0.0  ;;  %v6641_v57 = vmul.f32 %v11719_v3, %v6257_v40  ;;  %v5020_v16 = vpop.xlane.xlu1 %5019  ;;  %v20587_v12 = vld [vmem:[#allocation61_spill] sm:$0xff]  ;;  %v20591_v3 = vld [vmem:[#allocation108_spill] sm:$0xff] }
 0x4f7   : > { %v6258_v26 = vsub.f32 %v20581_v23, %v17492_v1  ;;  %11730 = vrsqrt.f32 %v6391_v18  ;;  %v6137_v21 = vsub.f32 %v5881_v41, %v6009_v13  ;;  %v6640_v27 = vmul.f32 %v11721_v11, %v6256_v20  ;;  %v5654_v10 = vpop.xlane.xlu0 %5653 }
 0x4f8   : > { %v6259_v36 = vsub.f32 %v20583_v35, %v17502_v55  ;;  %v6010_v34 = vmul.f32 %v17591_v30, %v17591_v30  ;;  %11732 = vrsqrt.f32 %v6390_v48  ;;  %v6136_v1 = vsub.f32 %v5880_v29, %v6008_v38  ;;  %5758 = vadd.xlane.f32.xlu0 %v20584_v44 }
 0x4f9   : > { %11154 = vmatmul.mubr.msk.f32.gmra.mrb[128].mxu0 %vm1627_vm1, %v6766_v47  ;;  %v11723_v39 = vpop.eup %11722  ;;  %v17615_v49 = vmul.f32 0.015625, %v20585_v5  ;;  %v6393_v59 = vadd.f32 1e-05, %v6137_v21  ;;  %v17617_v63 = vmul.f32 0.015625, %v5020_v16  ;;  %v6768_v20 = vmax.f32 %v6640_v27, 0.0  ;;  %5127 = vadd.xlane.f32.xlu1 %v20587_v12  ;;  %v20592_v21 = vld [vmem:[#allocation69_spill] sm:$0xff] }
 0x4fa   : > { %11156 = vmatprep.mubr.msk.f32.mxu0 %vm1627_vm1, %v6767_v19  ;;  %v11725_v55 = vpop.eup %11724  ;;  %v6392_v31 = vadd.f32 1e-05, %v6136_v1  ;;  %v5882_v28 = vmul.f32 0.015625, %v5654_v10  ;;  %v6769_v9 = vmax.f32 %v6641_v57, 0.0  ;;  %v6643_v37 = vmul.f32 %v11723_v39, %v6259_v36  ;;  %v5660_v33 = vpop.xlane.xlu1 %5659  ;;  %v20593_v27 = vld [vmem:[#allocation112_spill] sm:$0xff] }
 0x4fb   : > { %v17626_v14 = vadd.f32 %v17622_v58, %v20586_v6  ;;  %11734 = vrsqrt.f32 %v6393_v59  ;;  %v5766_v40 = vsel %vm1627_vm1, %v20588_v15, 0.0  ;;  %v6642_v7 = vmul.f32 %v11725_v55, %v6258_v26  ;;  %v5657_v47 = vpop.xlane.xlu0 %5656  ;;  %v17642_v29 = vpop.f32.mrb[92].mxu0  ;;  %v20595_v59 = vld [vmem:[#allocation55_spill] sm:$0xff] }
 0x4fc   : > { %v6260_v38 = vsub.f32 %v20589_v56, %v17524_v2  ;;  %v6261_v4 = vsub.f32 %v20590_v52, %v17532_v61  ;;  %11736 = vrsqrt.f32 %v6392_v31  ;;  %v6138_v50 = vsub.f32 %v5882_v28, %v6010_v34  ;;  %5124 = vadd.xlane.f32.xlu0 %v20591_v3  ;;  %v17645_v26 = vpop.f32.mrb[93].mxu0  ;;  %v20594_v34 = vld [vmem:[#allocation117_spill] sm:$0xff]  ;;  %v20598_v3 = vld [vmem:[#allocation156_spill] sm:$0xff] }
 0x4fd   : > { %11157 = vmatmul.mubr.msk.f32.gmra.mrb[130].mxu0 %vm1627_vm1, %v6768_v20  ;;  %v11727_v13 = vpop.eup %11726  ;;  %v6011_v18 = vmul.f32 %v17615_v49, %v17615_v49  ;;  %v6012_v41 = vmul.f32 %v17617_v63, %v17617_v63  ;;  %v5884_v17 = vmul.f32 0.015625, %v5660_v33  ;;  %v6770_v2 = vmax.f32 %v6642_v7, 0.0  ;;  %5767 = vadd.xlane.f32.xlu1 %v5766_v40  ;;  %v20596_v7 = vld [vmem:[#allocation71_spill] sm:$0xff] }
 0x4fe   : > { %11159 = vmatprep.mubr.msk.f32.mxu0 %vm1627_vm1, %v6769_v9  ;;  %v11729_v11 = vpop.eup %11728  ;;  %v6394_v48 = vadd.f32 1e-05, %v6138_v50  ;;  %v5883_v61 = vmul.f32 0.015625, %v5657_v47  ;;  %v6771_v19 = vmax.f32 %v6643_v37, 0.0  ;;  %v6645_v57 = vmul.f32 %v11727_v13, %v6261_v4  ;;  %v5026_v44 = vpop.xlane.xlu1 %5025 }
 0x4ff   : > { %v6140_v23 = vsub.f32 %v5884_v17, %v6012_v41  ;;  %v5763_v53 = vsel %vm1627_vm1, %v20592_v21, 0.0  ;;  %v5132_v35 = vsel %vm1627_vm1, %v20593_v27, 0.0  ;;  %v6644_v36 = vmul.f32 %v11729_v11, %v6260_v38  ;;  %v5023_v31 = vpop.xlane.xlu0 %5022  ;;  %v20597_v38 = vld [vmem:[#allocation59_spill] sm:$0xff] }
 0x500   : > { %v6263_v1 = vsub.f32 %v20594_v34, %v17548_v32  ;;  %11738 = vrsqrt.f32 %v6394_v48  ;;  %v6139_v16 = vsub.f32 %v5883_v61, %v6011_v18  ;;  %5764 = vadd.xlane.f32.xlu0 %v5763_v53  ;;  %v5410_v39 = vmul.f32 %v20593_v27, %v20593_v27 }
 0x501   : > { %11160 = vmatmul.mubr.msk.f32.gmra.mrb[132].mxu0 %vm1627_vm1, %v6770_v2  ;;  %v11731_v5 = vpop.eup %11730  ;;  %v6262_v10 = vsub.f32 %v20595_v59, %v17538_v62  ;;  %v6396_v20 = vadd.f32 1e-05, %v6140_v23  ;;  %v17658_v55 = vmul.f32 0.015625, %v5026_v44  ;;  %v6772_v28 = vmax.f32 %v6644_v36, 0.0  ;;  %5133 = vadd.xlane.f32.xlu1 %v5132_v35 }
 0x502   : > { %11162 = vmatprep.mubr.msk.f32.mxu0 %vm1627_vm1, %v6771_v19  ;;  %v11733_v9 = vpop.eup %11732  ;;  %v6395_v32 = vadd.f32 1e-05, %v6139_v16  ;;  %v17660_v37 = vmul.f32 0.015625, %v5023_v31  ;;  %v6773_v6 = vmax.f32 %v6645_v57, 0.0  ;;  %v6647_v12 = vmul.f32 %v11731_v5, %v6263_v1  ;;  %v5666_v4 = vpop.xlane.xlu1 %5665  ;;  %v20599_v57 = vld [vmem:[#allocation159_spill] sm:$0xff] }
 0x503   : > { %11740 = vrsqrt.f32 %v6396_v20  ;;  %v5129_v15 = vsel %vm1627_vm1, %v17626_v14, 0.0  ;;  %v6646_v40 = vmul.f32 %v11733_v9, %v6262_v10  ;;  %v5409_v62 = vmul.f32 %v17626_v14, %v17626_v14  ;;  %v5663_v17 = vpop.xlane.xlu0 %5662  ;;  %v17681_v48 = vpop.f32.mrb[94].mxu0  ;;  %v20600_v16 = vld [vmem:[#allocation7_spill] sm:$0xff] }
 0x504   : > { %v17669_v56 = vadd.f32 %v17622_v58, %v20596_v7  ;;  %v6265_v52 = vsub.f32 %v20597_v38, %v17576_v45  ;;  %11742 = vrsqrt.f32 %v6395_v32  ;;  %5130 = vadd.xlane.f32.xlu0 %v5129_v15  ;;  %v5772_v50 = vsel %vm1627_vm1, %v5410_v39, 0.0  ;;  %v17688_v21 = vpop.f32.mrb[95].mxu0  ;;  %v20601_v15 = vld [vmem:[#allocation10_spill] sm:$0xff] }
 0x505   : > { %11163 = vmatmul.mubr.msk.f32.gmra.mrb[134].mxu0 %vm1627_vm1, %v6772_v28  ;;  %v11735_v33 = vpop.eup %11734  ;;  %v6264_v13 = vsub.f32 %v20598_v3, %v17569_v0  ;;  %v6014_v18 = vmul.f32 %v17658_v55, %v17658_v55  ;;  %v5886_v41 = vmul.f32 0.015625, %v5666_v4  ;;  %v6774_v47 = vmax.f32 %v6646_v40, 0.0  ;;  %5773 = vadd.xlane.f32.xlu1 %v5772_v50  ;;  %v20603_v4 = vld [vmem:[#allocation186_spill] sm:$0xff] }
 0x506   : > { %11165 = vmatprep.mubr.msk.f32.mxu0 %vm1627_vm1, %v6773_v6  ;;  %v11737_v2 = vpop.eup %11736  ;;  %v6013_v45 = vmul.f32 %v17660_v37, %v17660_v37  ;;  %v5885_v11 = vmul.f32 0.015625, %v5663_v17  ;;  %v6775_v61 = vmax.f32 %v6647_v12, 0.0  ;;  %v6649_v19 = vmul.f32 %v11735_v33, %v6265_v52  ;;  %v5032_v34 = vpop.xlane.xlu1 %5031 }
 0x507   : > { %v17685_v23 = vadd.f32 %v17622_v58, %v20599_v57  ;;  %v6142_v0 = vsub.f32 %v5886_v41, %v6014_v18  ;;  %v5769_v53 = vsel %vm1627_vm1, %v5409_v62, 0.0  ;;  %v6648_v35 = vmul.f32 %v11737_v2, %v6264_v13  ;;  %v5029_v59 = vpop.xlane.xlu0 %5028  ;;  %v20602_v62 = vld [vmem:[#allocation8_spill] sm:$0xff] }
 0x508   : > { %v6141_v36 = vsub.f32 %v5885_v11, %v6013_v45  ;;  %5770 = vadd.xlane.f32.xlu0 %v5769_v53  ;;  %v5138_v1 = vsel %vm1627_vm1, %v17669_v56, 0.0  ;;  %v6266_v44 = vsub.f32 %v20600_v16, %v17591_v30  ;;  %v17696_v5 = vmul.f32 0.015625, %v5032_v34  ;;  %v20604_v11 = vld [vmem:[#allocation72_spill] sm:$0xff] }
 0x509   : > { %11166 = vmatmul.mubr.msk.f32.gmra.mrb[136].mxu0 %vm1627_vm1, %v6774_v47  ;;  %v6398_v39 = vadd.f32 1e-05, %v6142_v0  ;;  %v6776_v10 = vmax.f32 %v6648_v35, 0.0  ;;  %v17698_v28 = vmul.f32 0.015625, %v5029_v59  ;;  %v6777_v9 = vmax.f32 %v6649_v19, 0.0  ;;  %5139 = vadd.xlane.f32.xlu1 %v5138_v1 }
 0x50a   : > { %11168 = vmatprep.mubr.msk.f32.mxu0 %vm1627_vm1, %v6775_v61  ;;  %v11739_v20 = vpop.eup %11738  ;;  %v6397_v31 = vadd.f32 1e-05, %v6141_v36  ;;  %v5412_v32 = vmul.f32 %v17669_v56, %v17669_v56  ;;  %v5135_v30 = vsel %vm1627_vm1, %v17685_v23, 0.0  ;;  %v5411_v12 = vmul.f32 %v17685_v23, %v17685_v23  ;;  %v5672_v38 = vpop.xlane.xlu1 %5671 }
 0x50b   : > { %11744 = vrsqrt.f32 %v6398_v39  ;;  %v6650_v6 = vmul.f32 %v11739_v20, %v6266_v44  ;;  %v17709_v40 = vadd.f32 %v17622_v58, %v20601_v15  ;;  %v6268_v7 = vsub.f32 %v20602_v62, %v17617_v63  ;;  %v5669_v13 = vpop.xlane.xlu0 %5668  ;;  %v17721_v2 = vpop.f32.mrb[96].mxu0  ;;  %v20606_v15 = vld [vmem:[#allocation77_spill] sm:$0xff] }
 0x50c   : > { %11746 = vrsqrt.f32 %v6397_v31  ;;  %5136 = vadd.xlane.f32.xlu0 %v5135_v30  ;;  %v6267_v50 = vsub.f32 %v20603_v4, %v17615_v49  ;;  %v6016_v33 = vmul.f32 %v17696_v5, %v17696_v5  ;;  %v5888_v3 = vmul.f32 0.015625, %v5672_v38  ;;  %v17728_v19 = vpop.f32.mrb[97].mxu0 }
 0x50d   : > { %11169 = vmatmul.mubr.msk.f32.gmra.mrb[138].mxu0 %vm1627_vm1, %v6776_v10  ;;  %v11741_v52 = vpop.eup %11740  ;;  %v6778_v18 = vmax.f32 %v6650_v6, 0.0  ;;  %v6015_v17 = vmul.f32 %v17698_v28, %v17698_v28  ;;  %v5887_v63 = vmul.f32 0.015625, %v5669_v13  ;;  %v5778_v47 = vsel %vm1627_vm1, %v5412_v32, 0.0  ;;  %v20605_v32 = vld [vmem:[#allocation63_spill] sm:$0xff] }
 0x50e   : > { %11171 = vmatprep.mubr.msk.f32.mxu0 %vm1627_vm1, %v6777_v9  ;;  %v11743_v41 = vpop.eup %11742  ;;  %v6652_v45 = vmul.f32 %v11741_v52, %v6268_v7  ;;  %v17725_v61 = vadd.f32 %v17622_v58, %v20604_v11  ;;  %v6144_v49 = vsub.f32 %v5888_v3, %v6016_v33  ;;  %5779 = vadd.xlane.f32.xlu1 %v5778_v47  ;;  %v5775_v57 = vsel %vm1627_vm1, %v5411_v12, 0.0  ;;  %v5038_v35 = vpop.xlane.xlu1 %5037  ;;  %v20607_v7 = vld [vmem:[#allocation158_spill] sm:$0xff] }
 0x50f   : > { %v6651_v0 = vmul.f32 %v11743_v41, %v6267_v50  ;;  %v6143_v53 = vsub.f32 %v5887_v63, %v6015_v17  ;;  %v17731_v34 = vmul.f32 0.015625, %v5038_v35  ;;  %v5035_v1 = vpop.xlane.xlu0 %5034  ;;  %v5144_v16 = vsel %vm1627_vm1, %v17709_v40, 0.0  ;;  %v20608_v17 = vld [vmem:[#allocation163_spill] sm:$0xff] }
 0x510   : > { %5776 = vadd.xlane.f32.xlu0 %v5775_v57  ;;  %v6400_v36 = vadd.f32 1e-05, %v6144_v49  ;;  %v17735_v59 = vmul.f32 0.015625, %v5035_v1  ;;  %v6780_v10 = vmax.f32 %v6652_v45, 0.0  ;;  %v5414_v20 = vmul.f32 %v17709_v40, %v17709_v40 }
 0x511   : > { %11172 = vmatmul.mubr.msk.f32.gmra.mrb[140].mxu0 %vm1627_vm1, %v6778_v18  ;;  %v6779_v44 = vmax.f32 %v6651_v0, 0.0  ;;  %v6399_v39 = vadd.f32 1e-05, %v6143_v53  ;;  %v5141_v31 = vsel %vm1627_vm1, %v17725_v61, 0.0  ;;  %v5413_v9 = vmul.f32 %v17725_v61, %v17725_v61 }
 0x512   : > { %11748 = vrsqrt.f32 %v6400_v36  ;;  %5145 = vadd.xlane.f32.xlu1 %v5144_v16  ;;  %v6270_v30 = vsub.f32 %v20605_v32, %v17658_v55  ;;  %v5678_v6 = vpop.xlane.xlu1 %5677  ;;  %v17749_v62 = vadd.f32 %v17622_v58, %v20606_v15  ;;  %v6269_v38 = vsub.f32 %v20607_v7, %v17660_v37  ;;  %v20611_v7 = vld [vmem:[#allocation9_spill] sm:$0xff] }
 0x513   : > { %11174 = vmatprep.mubr.msk.f32.mxu0 %vm1627_vm1, %v6779_v44  ;;  %11750 = vrsqrt.f32 %v6399_v39  ;;  %v6018_v52 = vmul.f32 %v17731_v34, %v17731_v34  ;;  %v5890_v4 = vmul.f32 0.015625, %v5678_v6  ;;  %v5675_v50 = vpop.xlane.xlu0 %5674  ;;  %v6017_v55 = vmul.f32 %v17735_v59, %v17735_v59  ;;  %v17758_v18 = vpop.f32.mrb[98].mxu0 }
 0x514   : > { %5142 = vadd.xlane.f32.xlu0 %v5141_v31  ;;  %v5889_v3 = vmul.f32 0.015625, %v5675_v50  ;;  %v5784_v13 = vsel %vm1627_vm1, %v5414_v20, 0.0  ;;  %v17762_v63 = vadd.f32 %v17622_v58, %v20608_v17  ;;  %v17764_v47 = vpop.f32.mrb[99].mxu0  ;;  %v5781_v45 = vsel %vm1627_vm1, %v5413_v9, 0.0  ;;  %v20609_v9 = vld [vmem:[#allocation188_spill] sm:$0xff]  ;;  %v20612_v17 = vld [vmem:[#allocation78_spill] sm:$0xff] }
 0x515   : > { %11175 = vmatmul.mubr.msk.f32.gmra.mrb[142].mxu0 %vm1627_vm1, %v6780_v10  ;;  %v11745_v12 = vpop.eup %11744  ;;  %v6146_v37 = vsub.f32 %v5890_v4, %v6018_v52  ;;  %v5150_v36 = vsel %vm1627_vm1, %v17749_v62, 0.0  ;;  %v5416_v10 = vmul.f32 %v17749_v62, %v17749_v62  ;;  %v6272_v32 = vsub.f32 %v20609_v9, %v17696_v5 }
 0x516   : > { %v11747_v33 = vpop.eup %11746  ;;  %v6654_v41 = vmul.f32 %v11745_v12, %v6270_v30  ;;  %5785 = vadd.xlane.f32.xlu1 %v5784_v13  ;;  %v6145_v49 = vsub.f32 %v5889_v3, %v6017_v55  ;;  %v5044_v57 = vpop.xlane.xlu1 %5043  ;;  %v5147_v20 = vsel %vm1627_vm1, %v17762_v63, 0.0  ;;  %v5415_v31 = vmul.f32 %v17762_v63, %v17762_v63  ;;  %v20610_v12 = vld [vmem:[#allocation12_spill] sm:$0xff] }
 0x517   : > { %v6653_v11 = vmul.f32 %v11747_v33, %v6269_v38  ;;  %v6402_v0 = vadd.f32 1e-05, %v6146_v37  ;;  %v17767_v53 = vmul.f32 0.015625, %v5044_v57  ;;  %v5041_v35 = vpop.xlane.xlu0 %5040  ;;  %v17785_v15 = vadd.f32 %v17622_v58, %v20610_v12 }
 0x518   : > { %5782 = vadd.xlane.f32.xlu0 %v5781_v45  ;;  %v6401_v16 = vadd.f32 1e-05, %v6145_v49  ;;  %v17771_v44 = vmul.f32 0.015625, %v5041_v35  ;;  %v6782_v39 = vmax.f32 %v6654_v41, 0.0  ;;  %v6271_v38 = vsub.f32 %v20611_v7, %v17698_v28 }
 0x519   : > { %v6781_v1 = vmax.f32 %v6653_v11, 0.0  ;;  %11752 = vrsqrt.f32 %v6402_v0  ;;  %v6020_v52 = vmul.f32 %v17767_v53, %v17767_v53  ;;  %v5790_v3 = vsel %vm1627_vm1, %v5416_v10, 0.0 }
 0x51a   : > { %5151 = vadd.xlane.f32.xlu1 %v5150_v36  ;;  %11754 = vrsqrt.f32 %v6401_v16  ;;  %v5684_v30 = vpop.xlane.xlu1 %5683  ;;  %v6019_v5 = vmul.f32 %v17771_v44, %v17771_v44  ;;  %v17798_v37 = vadd.f32 %v17622_v58, %v20612_v17  ;;  %v5787_v11 = vsel %vm1627_vm1, %v5415_v31, 0.0 }
 0x51b   : > { %11177 = vmatprep.mubr.msk.f32.mxu0 %vm1627_vm1, %v6781_v1  ;;  %v5892_v4 = vmul.f32 0.015625, %v5684_v30  ;;  %v5681_v50 = vpop.xlane.xlu0 %5680  ;;  %v5156_v16 = vsel %vm1627_vm1, %v17785_v15, 0.0 }
 0x51c   : > { %5148 = vadd.xlane.f32.xlu0 %v5147_v20  ;;  %11178 = vmatmul.mubr.msk.f32.gmra.mrb[144].mxu0 %vm1627_vm1, %v6782_v39  ;;  %v11749_v6 = vpop.eup %11748  ;;  %v5891_v55 = vmul.f32 0.015625, %v5681_v50  ;;  %v17794_v13 = vpop.f32.mrb[100].mxu0  ;;  %v5153_v31 = vsel %vm1627_vm1, %v17798_v37, 0.0  ;;  %v5417_v30 = vmul.f32 %v17798_v37, %v17798_v37  ;;  %v20616_v50 = vld [vmem:[#allocation11_spill] sm:$0xff] }
 0x51d   : > { %v11751_v33 = vpop.eup %11750  ;;  %v6656_v41 = vmul.f32 %v11749_v6, %v6272_v32  ;;  %v6148_v28 = vsub.f32 %v5892_v4, %v6020_v52  ;;  %v17800_v45 = vpop.f32.mrb[101].mxu0  ;;  %v5418_v32 = vmul.f32 %v17785_v15, %v17785_v15  ;;  %v20613_v6 = vld [vmem:[#allocation160_spill] sm:$0xff] }
 0x51e   : > { %5791 = vadd.xlane.f32.xlu1 %v5790_v3  ;;  %v6655_v49 = vmul.f32 %v11751_v33, %v6271_v38  ;;  %v6147_v57 = vsub.f32 %v5891_v55, %v6019_v5  ;;  %v5050_v0 = vpop.xlane.xlu1 %5049  ;;  %v6274_v12 = vsub.f32 %v20613_v6, %v17731_v34  ;;  %v20614_v52 = vld [vmem:[#allocation224_spill] sm:$0xff]  ;;  %v6273_v33 = vsub.f32 %v20616_v50, %v17735_v59 }
 0x51f   : > { %v6404_v35 = vadd.f32 1e-05, %v6148_v28  ;;  %v17803_v36 = vmul.f32 0.015625, %v5050_v0  ;;  %v5047_v1 = vpop.xlane.xlu0 %5046  ;;  %v6784_v9 = vmax.f32 %v6656_v41, 0.0  ;;  %v17821_v4 = vadd.f32 %v17622_v58, %v20614_v52 }
 0x520   : > { %5788 = vadd.xlane.f32.xlu0 %v5787_v11  ;;  %v6783_v39 = vmax.f32 %v6655_v49, 0.0  ;;  %v6403_v10 = vadd.f32 1e-05, %v6147_v57  ;;  %v17807_v20 = vmul.f32 0.015625, %v5047_v1  ;;  %v5796_v28 = vsel %vm1627_vm1, %v5418_v32, 0.0  ;;  %v20617_v57 = vld [vmem:[#allocation196_spill] sm:$0xff] }
 0x521   : > { %11756 = vrsqrt.f32 %v6404_v35  ;;  %20615 = vst [vmem:[#allocation193_spill] sm:$0xff] %v17821_v4  ;;  %v6022_v5 = vmul.f32 %v17803_v36, %v17803_v36  ;;  %v17834_v0 = vadd.f32 %v17622_v58, %v20617_v57  ;;  %v5793_v1 = vsel %vm1627_vm1, %v5417_v30, 0.0 }
 0x522   : > { %5157 = vadd.xlane.f32.xlu1 %v5156_v16  ;;  %11180 = vmatprep.mubr.msk.f32.mxu0 %vm1627_vm1, %v6783_v39  ;;  %11758 = vrsqrt.f32 %v6403_v10  ;;  %v5690_v7 = vpop.xlane.xlu1 %5689  ;;  %v6021_v34 = vmul.f32 %v17807_v20, %v17807_v20  ;;  %v5162_v6 = vsel %vm1627_vm1, %v17821_v4, 0.0  ;;  %v5420_v52 = vmul.f32 %v17821_v4, %v17821_v4 }
 0x523   : > { %11181 = vmatmul.mubr.msk.f32.gmra.mrb[146].mxu0 %vm1627_vm1, %v6784_v9  ;;  %v11753_v38 = vpop.eup %11752  ;;  %v5894_v55 = vmul.f32 0.015625, %v5690_v7  ;;  %v5687_v3 = vpop.xlane.xlu0 %5686  ;;  %20618 = vst [vmem:[#allocation76_spill] sm:$0xff] %v17834_v0  ;;  %v5159_v30 = vsel %vm1627_vm1, %v17834_v0, 0.0  ;;  %v5419_v50 = vmul.f32 %v17834_v0, %v17834_v0 }
 0x524   : > { %5154 = vadd.xlane.f32.xlu0 %v5153_v31  ;;  %v11755_v41 = vpop.eup %11754  ;;  %v5893_v17 = vmul.f32 0.015625, %v5687_v3  ;;  %v17830_v11 = vpop.f32.mrb[102].mxu0  ;;  %v6658_v49 = vmul.f32 %v11753_v38, %v6274_v12 }
 0x525   : > { %v6150_v59 = vsub.f32 %v5894_v55, %v6022_v5  ;;  %v17836_v35 = vpop.f32.mrb[103].mxu0  ;;  %v6657_v16 = vmul.f32 %v11755_v41, %v6273_v33  ;;  %v20619_v33 = vld [vmem:[#allocation194_spill] sm:$0xff]  ;;  %v20620_v41 = vld [vmem:[#allocation164_spill] sm:$0xff] }
 0x526   : > { %5797 = vadd.xlane.f32.xlu1 %v5796_v28  ;;  %v6149_v39 = vsub.f32 %v5893_v17, %v6021_v34  ;;  %v5056_v10 = vpop.xlane.xlu1 %5055  ;;  %v6786_v38 = vmax.f32 %v6658_v49, 0.0  ;;  %v6276_v5 = vsub.f32 %v20619_v33, %v17767_v53  ;;  %v6275_v34 = vsub.f32 %v20620_v41, %v17771_v44 }
 0x527   : > { %v6406_v9 = vadd.f32 1e-05, %v6150_v59  ;;  %v17839_v31 = vmul.f32 0.015625, %v5056_v10  ;;  %v5053_v32 = vpop.xlane.xlu0 %5052  ;;  %v6785_v12 = vmax.f32 %v6657_v16, 0.0  ;;  %v5802_v53 = vsel %vm1627_vm1, %v5420_v52, 0.0 }
 0x528   : > { %5794 = vadd.xlane.f32.xlu0 %v5793_v1  ;;  %v6405_v58 = vadd.f32 1e-05, %v6149_v39  ;;  %v17843_v7 = vmul.f32 0.015625, %v5053_v32  ;;  %v5799_v44 = vsel %vm1627_vm1, %v5419_v50, 0.0 }
 0x529   : > { %11760 = vrsqrt.f32 %v6406_v9  ;;  %11183 = vmatprep.mubr.msk.f32.mxu0 %vm1627_vm1, %v6785_v12  ;;  %v6024_v17 = vmul.f32 %v17839_v31, %v17839_v31 }
 0x52a   : > { %5163 = vadd.xlane.f32.xlu1 %v5162_v6  ;;  %11762 = vrsqrt.f32 %v6405_v58  ;;  %v5696_v55 = vpop.xlane.xlu1 %5695  ;;  %11184 = vmatmul.mubr.msk.f32.gmra.mrb[148].mxu0 %vm1627_vm1, %v6786_v38  ;;  %v6023_v59 = vmul.f32 %v17843_v7, %v17843_v7 }
 0x52b   : > { %v11757_v3 = vpop.eup %11756  ;;  %v5896_v28 = vmul.f32 0.015625, %v5696_v55  ;;  %v5693_v49 = vpop.xlane.xlu0 %5692 }
 0x52c   : > { %5160 = vadd.xlane.f32.xlu0 %v5159_v30  ;;  %v11759_v57 = vpop.eup %11758  ;;  %v5895_v1 = vmul.f32 0.015625, %v5693_v49  ;;  %v17862_v16 = vpop.f32.mrb[104].mxu0  ;;  %v6660_v39 = vmul.f32 %v11757_v3, %v6276_v5  ;;  %v20621_v5 = vld [vmem:[#allocation13_spill] sm:$0xff] }
 0x52d   : > { %v6152_v10 = vsub.f32 %v5896_v28, %v6024_v17  ;;  %v17864_v9 = vpop.f32.mrb[105].mxu0  ;;  %v6659_v32 = vmul.f32 %v11759_v57, %v6275_v34  ;;  %v6278_v3 = vsub.f32 %v20621_v5, %v17803_v36  ;;  %v20622_v17 = vld [vmem:[#allocation165_spill] sm:$0xff] }
 0x52e   : > { %5803 = vadd.xlane.f32.xlu1 %v5802_v53  ;;  %v6151_v6 = vsub.f32 %v5895_v1, %v6023_v59  ;;  %v5062_v12 = vpop.xlane.xlu1 %5061  ;;  %v6788_v41 = vmax.f32 %v6660_v39, 0.0  ;;  %v6277_v28 = vsub.f32 %v20622_v17, %v17807_v20 }
 0x52f   : > { %v6408_v58 = vadd.f32 1e-05, %v6152_v10  ;;  %v17867_v38 = vmul.f32 0.015625, %v5062_v12  ;;  %v5059_v30 = vpop.xlane.xlu0 %5058  ;;  %v6787_v33 = vmax.f32 %v6659_v32, 0.0 }
 0x530   : > { %5800 = vadd.xlane.f32.xlu0 %v5799_v44  ;;  %v6407_v55 = vadd.f32 1e-05, %v6151_v6  ;;  %v17869_v52 = vmul.f32 0.015625, %v5059_v30 }
 0x531   : > { %11764 = vrsqrt.f32 %v6408_v58  ;;  %11186 = vmatprep.mubr.msk.f32.mxu0 %vm1627_vm1, %v6787_v33  ;;  %v6026_v49 = vmul.f32 %v17867_v38, %v17867_v38 }
 0x532   : > { %11766 = vrsqrt.f32 %v6407_v55  ;;  %v5702_v50 = vpop.xlane.xlu1 %5701  ;;  %11187 = vmatmul.mubr.msk.f32.gmra.mrb[150].mxu0 %vm1627_vm1, %v6788_v41  ;;  %v6025_v53 = vmul.f32 %v17869_v52, %v17869_v52 }
 0x533   : > { %v11761_v34 = vpop.eup %11760  ;;  %v5898_v57 = vmul.f32 0.015625, %v5702_v50  ;;  %v5699_v59 = vpop.xlane.xlu0 %5698 }
 0x534   : > { %v11763_v1 = vpop.eup %11762  ;;  %v5897_v39 = vmul.f32 0.015625, %v5699_v59  ;;  %v17881_v10 = vpop.f32.mrb[106].mxu0  ;;  %v6662_v36 = vmul.f32 %v11761_v34, %v6278_v3  ;;  %v20624_v3 = vld [vmem:[#allocation84_spill] sm:$0xff] }
 0x535   : > { %20623 = vst [vmem:[#allocation120_spill] sm:$0xff] %v17881_v10  ;;  %v6154_v44 = vsub.f32 %v5898_v57, %v6026_v49  ;;  %v17883_v32 = vpop.f32.mrb[107].mxu0  ;;  %v6661_v6 = vmul.f32 %v11763_v1, %v6277_v28  ;;  %v6280_v34 = vsub.f32 %v20624_v3, %v17839_v31  ;;  %v20625_v49 = vld [vmem:[#allocation205_spill] sm:$0xff] }
 0x536   : > { %v6153_v12 = vsub.f32 %v5897_v39, %v6025_v53  ;;  %v5068_v58 = vpop.xlane.xlu1 %5067  ;;  %v6790_v50 = vmax.f32 %v6662_v36, 0.0  ;;  %v6279_v57 = vsub.f32 %v20625_v49, %v17843_v7 }
 0x537   : > { %v6410_v20 = vadd.f32 1e-05, %v6154_v44  ;;  %v17885_v30 = vmul.f32 0.015625, %v5068_v58  ;;  %v5065_v33 = vpop.xlane.xlu0 %5064  ;;  %v6789_v55 = vmax.f32 %v6661_v6, 0.0 }
 0x538   : > { %v6409_v41 = vadd.f32 1e-05, %v6153_v12  ;;  %v17887_v5 = vmul.f32 0.015625, %v5065_v33 }
 0x539   : > { %11768 = vrsqrt.f32 %v6410_v20  ;;  %11189 = vmatprep.mubr.msk.f32.mxu0 %vm1627_vm1, %v6789_v55  ;;  %v6028_v59 = vmul.f32 %v17885_v30, %v17885_v30 }
 0x53a   : > { %11770 = vrsqrt.f32 %v6409_v41  ;;  %v5708_v17 = vpop.xlane.xlu1 %5707  ;;  %11190 = vmatmul.mubr.msk.f32.gmra.mrb[152].mxu0 %vm1627_vm1, %v6790_v50  ;;  %v6027_v36 = vmul.f32 %v17887_v5, %v17887_v5 }
 0x53b   : > { %v11765_v28 = vpop.eup %11764  ;;  %v5900_v1 = vmul.f32 0.015625, %v5708_v17  ;;  %v5705_v53 = vpop.xlane.xlu0 %5704 }
 0x53c   : > { %v11767_v39 = vpop.eup %11766  ;;  %v5899_v44 = vmul.f32 0.015625, %v5705_v53  ;;  %v17899_v6 = vpop.f32.mrb[108].mxu0  ;;  %v6664_v31 = vmul.f32 %v11765_v28, %v6280_v34  ;;  %v8193_v34 = vld [vmem:[%s19162_s1] sm:$0x7]  ;;  %v20628_v28 = vld [vmem:[#allocation90_spill] sm:$0xff] }
 0x53d   : > { %20626 = vst [vmem:[#allocation195_spill] sm:$0xff] %v17899_v6  ;;  %v6156_v12 = vsub.f32 %v5900_v1, %v6028_v59  ;;  %v17901_v58 = vpop.f32.mrb[109].mxu0  ;;  %v6663_v20 = vmul.f32 %v11767_v39, %v6279_v57  ;;  %v6282_v57 = vsub.f32 %v20628_v28, %v17867_v38  ;;  %v20629_v53 = vld [vmem:[#allocation169_spill] sm:$0xff] }
 0x53e   : > { %20627 = vst [vmem:[#allocation81_spill] sm:$0xff] %v17901_v58  ;;  %v6155_v33 = vsub.f32 %v5899_v44, %v6027_v36  ;;  %v5074_v55 = vpop.xlane.xlu1 %5073  ;;  %v6792_v10 = vmax.f32 %v6664_v31, 0.0  ;;  %v6281_v39 = vsub.f32 %v20629_v53, %v17869_v52 }
 0x53f   : > { %v6412_v7 = vadd.f32 1e-05, %v6156_v12  ;;  %v17903_v41 = vmul.f32 0.015625, %v5074_v55  ;;  %v5071_v50 = vpop.xlane.xlu0 %5070  ;;  %v6791_v3 = vmax.f32 %v6663_v20, 0.0 }
 0x540   : > { %v6411_v17 = vadd.f32 1e-05, %v6155_v33  ;;  %v17905_v49 = vmul.f32 0.015625, %v5071_v50 }
 0x541   : > { %11772 = vrsqrt.f32 %v6412_v7  ;;  %11192 = vmatprep.mubr.msk.f32.mxu0 %vm1627_vm1, %v6791_v3  ;;  %v6030_v36 = vmul.f32 %v17903_v41, %v17903_v41 }
 0x542   : > { %11774 = vrsqrt.f32 %v6411_v17  ;;  %v5714_v59 = vpop.xlane.xlu1 %5713  ;;  %11193 = vmatmul.mubr.msk.f32.gmra.mrb[154].mxu0 %vm1627_vm1, %v6792_v10  ;;  %v6029_v20 = vmul.f32 %v17905_v49, %v17905_v49 }
 0x543   : > { %v11769_v1 = vpop.eup %11768  ;;  %v5902_v44 = vmul.f32 0.015625, %v5714_v59  ;;  %v5711_v31 = vpop.xlane.xlu0 %5710 }
 0x544   : > { %v11771_v12 = vpop.eup %11770  ;;  %v5901_v33 = vmul.f32 0.015625, %v5711_v31  ;;  %v6666_v38 = vmul.f32 %v11769_v1, %v6282_v57  ;;  %v20630_v31 = vld [vmem:[#allocation172_spill] sm:$0xff] }
 0x545   : > { %v6158_v55 = vsub.f32 %v5902_v44, %v6030_v36  ;;  %v6665_v7 = vmul.f32 %v11771_v12, %v6281_v39  ;;  %v20631_v39 = vld [vmem:[#allocation95_spill] sm:$0xff] }
 0x546   : > { %8196 = vperm.xlu0 %11327, %v8193_v34   ;;  %v6157_v50 = vsub.f32 %v5901_v33, %v6029_v20  ;;  %v5080_v10 = vpop.xlane.xlu1 %5079  ;;  %v6794_v59 = vmax.f32 %v6666_v38, 0.0  ;;  %v6284_v34 = vsub.f32 %v20630_v31, %v17885_v30  ;;  %v6283_v36 = vsub.f32 %v20631_v39, %v17887_v5  ;;  %v20632_v39 = vld [vmem:[#allocation173_spill] sm:$0xff] }
 0x547   : > { %v6414_v3 = vadd.f32 1e-05, %v6158_v55  ;;  %v17920_v17 = vmul.f32 0.015625, %v5080_v10  ;;  %v5077_v52 = vpop.xlane.xlu0 %5076  ;;  %v6793_v28 = vmax.f32 %v6665_v7, 0.0 }
 0x548   : > { %v6413_v53 = vadd.f32 1e-05, %v6157_v50  ;;  %v17922_v6 = vmul.f32 0.015625, %v5077_v52 }
 0x549   : > { %11776 = vrsqrt.f32 %v6414_v3  ;;  %11195 = vmatprep.mubr.msk.f32.mxu0 %vm1627_vm1, %v6793_v28  ;;  %v6032_v44 = vmul.f32 %v17920_v17, %v17920_v17 }
 0x54a   : > { %11778 = vrsqrt.f32 %v6413_v53  ;;  %v5720_v57 = vpop.xlane.xlu1 %5719  ;;  %11196 = vmatmul.mubr.msk.f32.gmra.mrb[156].mxu0 %vm1627_vm1, %v6794_v59  ;;  %v6031_v38 = vmul.f32 %v17922_v6, %v17922_v6 }
 0x54b   : > { %v11773_v1 = vpop.eup %11772  ;;  %v5904_v12 = vmul.f32 0.015625, %v5720_v57  ;;  %v5717_v20 = vpop.xlane.xlu0 %5716 }
 0x54c   : > { %v11775_v33 = vpop.eup %11774  ;;  %v5903_v55 = vmul.f32 0.015625, %v5717_v20  ;;  %v6668_v7 = vmul.f32 %v11773_v1, %v6284_v34  ;;  %v6286_v20 = vsub.f32 %v20632_v39, %v17903_v41 }
 0x54d   : > { %v6160_v30 = vsub.f32 %v5904_v12, %v6032_v44  ;;  %v6667_v50 = vmul.f32 %v11775_v33, %v6283_v36  ;;  %v20633_v36 = vld [vmem:[#allocation25_spill] sm:$0xff] }
 0x54e   : > { %v6159_v10 = vsub.f32 %v5903_v55, %v6031_v38  ;;  %v5086_v3 = vpop.xlane.xlu1 %5085  ;;  %v6796_v57 = vmax.f32 %v6668_v7, 0.0  ;;  %v6285_v44 = vsub.f32 %v20633_v36, %v17905_v49  ;;  %v20634_v36 = vld [vmem:[#allocation16_spill] sm:$0xff] }
 0x54f   : > { %v6416_v52 = vadd.f32 1e-05, %v6160_v30  ;;  %v17934_v28 = vmul.f32 0.015625, %v5086_v3  ;;  %v5083_v53 = vpop.xlane.xlu0 %5082  ;;  %v6795_v5 = vmax.f32 %v6667_v50, 0.0 }
 0x550   : > { %v6415_v59 = vadd.f32 1e-05, %v6159_v10  ;;  %v17936_v31 = vmul.f32 0.015625, %v5083_v53 }
 0x551   : > { %11780 = vrsqrt.f32 %v6416_v52  ;;  %11198 = vmatprep.mubr.msk.f32.mxu0 %vm1627_vm1, %v6795_v5  ;;  %v6034_v12 = vmul.f32 %v17934_v28, %v17934_v28 }
 0x552   : > { %11782 = vrsqrt.f32 %v6415_v59  ;;  %v5726_v34 = vpop.xlane.xlu1 %5725  ;;  %11199 = vmatmul.mubr.msk.f32.gmra.mrb[158].mxu0 %vm1627_vm1, %v6796_v57  ;;  %v6033_v7 = vmul.f32 %v17936_v31, %v17936_v31 }
 0x553   : > { %v11777_v1 = vpop.eup %11776  ;;  %v5906_v33 = vmul.f32 0.015625, %v5726_v34  ;;  %v5723_v38 = vpop.xlane.xlu0 %5722 }
 0x554   : > { %v11779_v55 = vpop.eup %11778  ;;  %v5905_v30 = vmul.f32 0.015625, %v5723_v38  ;;  %v6670_v50 = vmul.f32 %v11777_v1, %v6286_v20  ;;  %v6288_v38 = vsub.f32 %v20634_v36, %v17920_v17  ;;  %v17965_v17 = vld [vmem:[%s19169_s8] ss:$0 sm:$0xff] }
 0x555   : > { %v6162_v41 = vsub.f32 %v5906_v33, %v6034_v12  ;;  %v6669_v10 = vmul.f32 %v11779_v55, %v6285_v44  ;;  %v20635_v44 = vld [vmem:[#allocation26_spill] sm:$0xff] }
 0x556   : > { %v6161_v3 = vsub.f32 %v5905_v30, %v6033_v7  ;;  %v5092_v52 = vpop.xlane.xlu1 %5091  ;;  %v6798_v34 = vmax.f32 %v6670_v50, 0.0  ;;  %v6287_v12 = vsub.f32 %v20635_v44, %v17922_v6  ;;  %v20637_v44 = vld [vmem:[#allocation14_spill] sm:$0xff] }
 0x557   : > { %v6418_v53 = vadd.f32 1e-05, %v6162_v41  ;;  %v17948_v5 = vmul.f32 0.015625, %v5092_v52  ;;  %v5089_v59 = vpop.xlane.xlu0 %5088  ;;  %v6797_v49 = vmax.f32 %v6669_v10, 0.0 }
 0x558   : > { %v6417_v57 = vadd.f32 1e-05, %v6161_v3  ;;  %v17950_v39 = vmul.f32 0.015625, %v5089_v59 }
 0x559   : > { %11784 = vrsqrt.f32 %v6418_v53  ;;  %11201 = vmatprep.mubr.msk.f32.mxu0 %vm1627_vm1, %v6797_v49  ;;  %v6036_v33 = vmul.f32 %v17948_v5, %v17948_v5  ;;  %v20636_v53 = vld [vmem:[#allocation118_spill] sm:$0xff] }
 0x55a   : > { %11786 = vrsqrt.f32 %v6417_v57  ;;  %v5732_v20 = vpop.xlane.xlu1 %5731  ;;  %11202 = vmatmul.mubr.msk.f32.gmra.mrb[160].mxu0 %vm1627_vm1, %v6798_v34  ;;  %v6035_v50 = vmul.f32 %v17950_v39, %v17950_v39  ;;  %v7375_v6 = vadd.f32 %v17965_v17, %v20636_v53 }
 0x55b   : > { %v11781_v1 = vpop.eup %11780  ;;  %v5908_v55 = vmul.f32 0.015625, %v5732_v20  ;;  %v5729_v7 = vpop.xlane.xlu0 %5728 }
 0x55c   : > { %v11783_v30 = vpop.eup %11782  ;;  %v5907_v41 = vmul.f32 0.015625, %v5729_v7  ;;  %v6672_v10 = vmul.f32 %v11781_v1, %v6288_v38  ;;  %v7295_v38 = vadd.f32 %v17965_v17, %v20637_v44 }
 0x55d   : > { %v6164_v3 = vsub.f32 %v5908_v55, %v6036_v33  ;;  %v6671_v52 = vmul.f32 %v11783_v30, %v6287_v12  ;;  %v20638_v12 = vld [vmem:[#allocation75_spill] sm:$0xff]  ;;  %v20639_v55 = vld [vmem:[#allocation97_spill] sm:$0xff] }
 0x55e   : > { %v6163_v59 = vsub.f32 %v5907_v41, %v6035_v50  ;;  %v5098_v49 = vpop.xlane.xlu1 %5097  ;;  %v6800_v58 = vmax.f32 %v6672_v10, 0.0  ;;  %v7380_v33 = vadd.f32 %v20638_v12, %v17965_v17  ;;  %v6290_v30 = vsub.f32 %v20639_v55, %v17934_v28 }
 0x55f   : > { %v6420_v57 = vadd.f32 1e-05, %v6164_v3  ;;  %v17969_v34 = vmul.f32 0.015625, %v5098_v49  ;;  %v5095_v36 = vpop.xlane.xlu0 %5094  ;;  %v6799_v20 = vmax.f32 %v6671_v52, 0.0  ;;  %v20640_v3 = vld [vmem:[#allocation174_spill] sm:$0xff]  ;;  %v20641_v49 = vld [vmem:[#allocation83_spill] sm:$0xff] }
 0x560   : > { %v6419_v1 = vadd.f32 1e-05, %v6163_v59  ;;  %v17973_v7 = vmul.f32 0.015625, %v5095_v36  ;;  %v6289_v52 = vsub.f32 %v20640_v3, %v17936_v31  ;;  %v7385_v31 = vadd.f32 %v17965_v17, %v17424_v60 }
 0x561   : > { %7965 = vxpose.xlu1.b32.start [1/16] (narrow) %v7375_v6, 48  ;;  %11788 = vrsqrt.f32 %v6420_v57  ;;  %11204 = vmatprep.mubr.msk.f32.mxu0 %vm1627_vm1, %v6799_v20  ;;  %v6038_v10 = vmul.f32 %v17969_v34, %v17969_v34  ;;  %v7300_v57 = vadd.f32 %v20641_v49, %v17965_v17  ;;  %v20642_v49 = vld [vmem:[#allocation17_spill] sm:$0xff]  ;;  %v7390_v60 = vadd.f32 %v17415_v43, %v17965_v17  ;;  %v20645_v43 = vld [vmem:[#allocation166_spill] sm:$0xff] }
 0x562   : > { %11790 = vrsqrt.f32 %v6419_v1  ;;  %v5738_v50 = vpop.xlane.xlu1 %5737  ;;  %11205 = vmatmul.mubr.msk.f32.gmra.mrb[162].mxu0 %vm1627_vm1, %v6800_v58  ;;  %v6037_v28 = vmul.f32 %v17973_v7, %v17973_v7  ;;  %v7305_v0 = vadd.f32 %v17965_v17, %v20642_v49 }
 0x563   : > { %v11785_v41 = vpop.eup %11784  ;;  %v5910_v53 = vmul.f32 0.015625, %v5738_v50  ;;  %v5735_v6 = vpop.xlane.xlu0 %5734 }
 0x564   : > { %7933 = vxpose.xlu0.b32.start [1/16] (narrow) %v7295_v38, 48  ;;  %v11787_v59 = vpop.eup %11786  ;;  %v5909_v36 = vmul.f32 0.015625, %v5735_v6  ;;  %v6674_v20 = vmul.f32 %v11785_v41, %v6290_v30  ;;  %v20643_v30 = vld [vmem:[#allocation62_spill] sm:$0xff] }
 0x565   : > { %7966 = vxpose.xlu1.b32.cont [2/16] (narrow) %v7380_v33, 48  ;;  %v6166_v58 = vsub.f32 %v5910_v53, %v6038_v10  ;;  %v6673_v44 = vmul.f32 %v11787_v59, %v6289_v52  ;;  %v6292_v41 = vsub.f32 %v20643_v30, %v17948_v5  ;;  %v20644_v53 = vld [vmem:[#allocation20_spill] sm:$0xff] }
 0x566   : > { %v6165_v38 = vsub.f32 %v5909_v36, %v6037_v28  ;;  %v5104_v1 = vpop.xlane.xlu1 %5103  ;;  %v6802_v33 = vmax.f32 %v6674_v20, 0.0  ;;  %v6291_v59 = vsub.f32 %v20644_v53, %v17950_v39  ;;  %v7395_v39 = vadd.f32 %v17965_v17, %v17473_v54 }
 0x567   : > { %v6422_v12 = vadd.f32 1e-05, %v6166_v58  ;;  %v17991_v55 = vmul.f32 0.015625, %v5104_v1  ;;  %v5101_v50 = vpop.xlane.xlu0 %5100  ;;  %v6801_v3 = vmax.f32 %v6673_v44, 0.0  ;;  %v7310_v58 = vadd.f32 %v20645_v43, %v17965_v17 }
 0x568   : > { %7934 = vxpose.xlu0.b32.cont [2/16] (narrow) %v7300_v57, 48  ;;  %v6421_v4 = vadd.f32 1e-05, %v6165_v38  ;;  %v17995_v6 = vmul.f32 0.015625, %v5101_v50  ;;  %v7400_v54 = vadd.f32 %v17462_v22, %v17965_v17  ;;  %v20649_v22 = vld [vmem:[#allocation208_spill] sm:$0xff] }
 0x569   : > { %7967 = vxpose.xlu1.b32.cont [3/16] (narrow) %v7385_v31, 48  ;;  %11792 = vrsqrt.f32 %v6422_v12  ;;  %11207 = vmatprep.mubr.msk.f32.mxu0 %vm1627_vm1, %v6801_v3  ;;  %v6040_v57 = vmul.f32 %v17991_v55, %v17991_v55 }
 0x56a   : > { %11794 = vrsqrt.f32 %v6421_v4  ;;  %v5744_v52 = vpop.xlane.xlu1 %5743  ;;  %11208 = vmatmul.mubr.msk.f32.gmra.mrb[164].mxu0 %vm1627_vm1, %v6802_v33  ;;  %v6039_v4 = vmul.f32 %v17995_v6, %v17995_v6  ;;  %v20646_v33 = vld [vmem:[#allocation209_spill] sm:$0xff] }
 0x56b   : > { %v11789_v10 = vpop.eup %11788  ;;  %v5912_v28 = vmul.f32 0.015625, %v5744_v52  ;;  %v5741_v36 = vpop.xlane.xlu0 %5740  ;;  %v7315_v30 = vadd.f32 %v17965_v17, %v20646_v33 }
 0x56c   : > { %7935 = vxpose.xlu0.b32.cont [3/16] (narrow) %v7305_v0, 48  ;;  %v11791_v20 = vpop.eup %11790  ;;  %v5911_v5 = vmul.f32 0.015625, %v5741_v36  ;;  %v6676_v0 = vmul.f32 %v11789_v10, %v6292_v41  ;;  %v20647_v41 = vld [vmem:[#allocation99_spill] sm:$0xff] }
 0x56d   : > { %7968 = vxpose.xlu1.b32.cont [4/16] (narrow) %v7390_v60, 48  ;;  %v6168_v44 = vsub.f32 %v5912_v28, %v6040_v57  ;;  %v6675_v31 = vmul.f32 %v11791_v20, %v6291_v59  ;;  %v6294_v10 = vsub.f32 %v20647_v41, %v17969_v34  ;;  %v20648_v28 = vld [vmem:[#allocation220_spill] sm:$0xff] }
 0x56e   : > { %v6167_v38 = vsub.f32 %v5911_v5, %v6039_v4  ;;  %v5110_v1 = vpop.xlane.xlu1 %5109  ;;  %v6804_v60 = vmax.f32 %v6676_v0, 0.0  ;;  %v6293_v36 = vsub.f32 %v20648_v28, %v17973_v7  ;;  %v7320_v5 = vadd.f32 %v20649_v22, %v17965_v17 }
 0x56f   : > { %v6424_v12 = vadd.f32 1e-05, %v6168_v44  ;;  %v18013_v50 = vmul.f32 0.015625, %v5110_v1  ;;  %v5107_v3 = vpop.xlane.xlu0 %5106  ;;  %v6803_v49 = vmax.f32 %v6675_v31, 0.0  ;;  %v7405_v7 = vadd.f32 %v17965_v17, %v17518_v24 }
 0x570   : > { %7936 = vxpose.xlu0.b32.cont [4/16] (narrow) %v7310_v58, 48  ;;  %v6423_v52 = vadd.f32 1e-05, %v6167_v38  ;;  %v18017_v53 = vmul.f32 0.015625, %v5107_v3  ;;  %v7410_v24 = vadd.f32 %v17509_v25, %v17965_v17  ;;  %v20653_v25 = vld [vmem:[#allocation215_spill] sm:$0xff] }
 0x571   : > { %7969 = vxpose.xlu1.b32.cont [5/16] (narrow) %v7395_v39, 48  ;;  %11796 = vrsqrt.f32 %v6424_v12  ;;  %11210 = vmatprep.mubr.msk.f32.mxu0 %vm1627_vm1, %v6803_v49  ;;  %v6042_v20 = vmul.f32 %v18013_v50, %v18013_v50 }
 0x572   : > { %11798 = vrsqrt.f32 %v6423_v52  ;;  %v5750_v59 = vpop.xlane.xlu1 %5749  ;;  %11211 = vmatmul.mubr.msk.f32.gmra.mrb[166].mxu0 %vm1627_vm1, %v6804_v60  ;;  %v6041_v34 = vmul.f32 %v18017_v53, %v18017_v53 }
 0x573   : > { %v11793_v57 = vpop.eup %11792  ;;  %v5914_v43 = vmul.f32 0.015625, %v5750_v59  ;;  %v5747_v58 = vpop.xlane.xlu0 %5746 }
 0x574   : > { %7937 = vxpose.xlu0.b32.cont [5/16] (narrow) %v7315_v30, 48  ;;  %v11795_v4 = vpop.eup %11794  ;;  %v5913_v0 = vmul.f32 0.015625, %v5747_v58  ;;  %v6678_v44 = vmul.f32 %v11793_v57, %v6294_v10  ;;  %v20650_v30 = vld [vmem:[#allocation147_spill] sm:$0xff]  ;;  %v20651_v10 = vld [vmem:[#allocation221_spill] sm:$0xff] }
 0x575   : > { %7970 = vxpose.xlu1.b32.cont [6/16] (narrow) %v7400_v54, 48  ;;  %v6170_v31 = vsub.f32 %v5914_v43, %v6042_v20  ;;  %v6677_v39 = vmul.f32 %v11795_v4, %v6293_v36  ;;  %v7325_v52 = vadd.f32 %v17965_v17, %v20650_v30  ;;  %v6296_v59 = vsub.f32 %v20651_v10, %v17991_v55  ;;  %v20652_v36 = vld [vmem:[#allocation33_spill] sm:$0xff] }
 0x576   : > { %v6169_v38 = vsub.f32 %v5913_v0, %v6041_v34  ;;  %v5116_v1 = vpop.xlane.xlu1 %5115  ;;  %v6806_v54 = vmax.f32 %v6678_v44, 0.0  ;;  %v6295_v20 = vsub.f32 %v20652_v36, %v17995_v6  ;;  %v7415_v6 = vadd.f32 %v17965_v17, %v17563_v42 }
 0x577   : > { %v6426_v12 = vadd.f32 1e-05, %v6170_v31  ;;  %v18035_v3 = vmul.f32 0.015625, %v5116_v1  ;;  %v5113_v49 = vpop.xlane.xlu0 %5112  ;;  %v6805_v33 = vmax.f32 %v6677_v39, 0.0  ;;  %v7420_v42 = vadd.f32 %v17554_v8, %v17965_v17  ;;  %v20657_v8 = vld [vmem:[#allocation101_spill] sm:$0xff] }
 0x578   : > { %7938 = vxpose.xlu0.b32.cont [6/16] (narrow) %v7320_v5, 48  ;;  %v6425_v60 = vadd.f32 1e-05, %v6169_v38  ;;  %v18039_v41 = vmul.f32 0.015625, %v5113_v49  ;;  %v7330_v5 = vadd.f32 %v20653_v25, %v17965_v17 }
 0x579   : > { %7971 = vxpose.xlu1.b32.cont [7/16] (narrow) %v7405_v7, 48  ;;  %11800 = vrsqrt.f32 %v6426_v12  ;;  %11213 = vmatprep.mubr.msk.f32.mxu0 %vm1627_vm1, %v6805_v33  ;;  %v6044_v43 = vmul.f32 %v18035_v3, %v18035_v3  ;;  %v20654_v33 = vld [vmem:[#allocation37_spill] sm:$0xff] }
 0x57a   : > { %11802 = vrsqrt.f32 %v6425_v60  ;;  %v5756_v57 = vpop.xlane.xlu1 %5755  ;;  %11214 = vmatmul.mubr.msk.f32.gmra.mrb[168].mxu0 %vm1627_vm1, %v6806_v54  ;;  %v6043_v55 = vmul.f32 %v18039_v41, %v18039_v41  ;;  %v7335_v30 = vadd.f32 %v17965_v17, %v20654_v33 }
 0x57b   : > { %v11797_v28 = vpop.eup %11796  ;;  %v5916_v58 = vmul.f32 0.015625, %v5756_v57  ;;  %v5753_v4 = vpop.xlane.xlu0 %5752 }
 0x57c   : > { %7939 = vxpose.xlu0.b32.cont [7/16] (narrow) %v7325_v52, 48  ;;  %v11799_v22 = vpop.eup %11798  ;;  %v5915_v34 = vmul.f32 0.015625, %v5753_v4  ;;  %v6680_v0 = vmul.f32 %v11797_v28, %v6296_v59  ;;  %v20656_v28 = vld [vmem:[#allocation177_spill] sm:$0xff] }
 0x57d   : > { %7972 = vxpose.xlu1.b32.cont [8/16] (narrow) %v7410_v24, 48  ;;  %v6172_v44 = vsub.f32 %v5916_v58, %v6044_v43  ;;  %v6679_v31 = vmul.f32 %v11799_v22, %v6295_v20  ;;  %v20655_v24 = vld [vmem:[#allocation34_spill] sm:$0xff]  ;;  %v6297_v36 = vsub.f32 %v20656_v28, %v18017_v53  ;;  %v7340_v22 = vadd.f32 %v20657_v8, %v17965_v17 }
 0x57e   : > { %v6171_v39 = vsub.f32 %v5915_v34, %v6043_v55  ;;  %v5122_v7 = vpop.xlane.xlu1 %5121  ;;  %v6808_v54 = vmax.f32 %v6680_v0, 0.0  ;;  %v6298_v10 = vsub.f32 %v20655_v24, %v18013_v50  ;;  %v7425_v53 = vadd.f32 %v17965_v17, %v17603_v46 }
 0x57f   : > { %v6428_v38 = vadd.f32 1e-05, %v6172_v44  ;;  %v18057_v1 = vmul.f32 0.015625, %v5122_v7  ;;  %v6807_v49 = vmax.f32 %v6679_v31, 0.0  ;;  %v7430_v46 = vadd.f32 %v17597_v51, %v17965_v17  ;;  %v20661_v51 = vld [vmem:[#allocation36_spill] sm:$0xff] }
 0x580   : > { %7940 = vxpose.xlu0.b32.cont [8/16] (narrow) %v7330_v5, 48  ;;  %v6427_v52 = vadd.f32 1e-05, %v6171_v39 }
 0x581   : > { %v5119_v12 = vpop.xlane.xlu0 %5118  ;;  %7973 = vxpose.xlu1.b32.cont [9/16] (narrow) %v7415_v6, 48  ;;  %11804 = vrsqrt.f32 %v6428_v38  ;;  %11216 = vmatprep.mubr.msk.f32.mxu0 %vm1627_vm1, %v6807_v49  ;;  %v6046_v20 = vmul.f32 %v18057_v1, %v18057_v1  ;;  %v20658_v38 = vld [vmem:[#allocation102_spill] sm:$0xff] }
 0x582   : > { %v18061_v60 = vmul.f32 0.015625, %v5119_v12  ;;  %11806 = vrsqrt.f32 %v6427_v52  ;;  %v5762_v59 = vpop.xlane.xlu1 %5761  ;;  %11217 = vmatmul.mubr.msk.f32.gmra.mrb[170].mxu0 %vm1627_vm1, %v6808_v54  ;;  %v7345_v12 = vadd.f32 %v17965_v17, %v20658_v38  ;;  %v20659_v52 = vld [vmem:[#allocation47_spill] sm:$0xff] }
 0x583   : > { %v11801_v57 = vpop.eup %11800  ;;  %v5918_v43 = vmul.f32 0.015625, %v5762_v59  ;;  %v6300_v54 = vsub.f32 %v20659_v52, %v18035_v3  ;;  %v20663_v38 = vld [vmem:[#allocation227_spill] sm:$0xff] }
 0x584   : > { %7941 = vxpose.xlu0.b32.cont [9/16] (narrow) %v7335_v30, 48  ;;  %v11803_v4 = vpop.eup %11802  ;;  %v6045_v50 = vmul.f32 %v18061_v60, %v18061_v60  ;;  %v6682_v5 = vmul.f32 %v11801_v57, %v6298_v10  ;;  %v20660_v10 = vld [vmem:[#allocation38_spill] sm:$0xff] }
 0x585   : > { %v5759_v58 = vpop.xlane.xlu0 %5758  ;;  %7974 = vxpose.xlu1.b32.cont [10/16] (narrow) %v7420_v42, 48  ;;  %v6174_v55 = vsub.f32 %v5918_v43, %v6046_v20  ;;  %v6681_v34 = vmul.f32 %v11803_v4, %v6297_v36  ;;  %v6299_v59 = vsub.f32 %v20660_v10, %v18039_v41  ;;  %v7350_v43 = vadd.f32 %v20661_v51, %v17965_v17 }
 0x586   : > { %v5917_v25 = vmul.f32 0.015625, %v5759_v58  ;;  %v5128_v44 = vpop.xlane.xlu1 %5127  ;;  %v6810_v30 = vmax.f32 %v6682_v5, 0.0  ;;  %v7435_v41 = vadd.f32 %v17965_v17, %v17645_v26  ;;  %v7440_v26 = vadd.f32 %v17642_v29, %v17965_v17  ;;  %v20665_v29 = vld [vmem:[#allocation191_spill] sm:$0xff] }
 0x587   : > { %v6430_v31 = vadd.f32 1e-05, %v6174_v55  ;;  %v18079_v6 = vmul.f32 0.015625, %v5128_v44  ;;  %v6809_v7 = vmax.f32 %v6681_v34, 0.0 }
 0x588   : > { %v6173_v0 = vsub.f32 %v5917_v25, %v6045_v50  ;;  %7942 = vxpose.xlu0.b32.cont [10/16] (narrow) %v7340_v22, 48 }
 0x589   : > { %v5125_v39 = vpop.xlane.xlu0 %5124  ;;  %7975 = vxpose.xlu1.b32.cont [11/16] (narrow) %v7425_v53, 48  ;;  %11808 = vrsqrt.f32 %v6430_v31  ;;  %11219 = vmatprep.mubr.msk.f32.mxu0 %vm1627_vm1, %v6809_v7  ;;  %v6048_v57 = vmul.f32 %v18079_v6, %v18079_v6 }
 0x58a   : > { %v6429_v49 = vadd.f32 1e-05, %v6173_v0  ;;  %v18083_v33 = vmul.f32 0.015625, %v5125_v39  ;;  %v5768_v42 = vpop.xlane.xlu1 %5767  ;;  %11220 = vmatmul.mubr.msk.f32.gmra.mrb[172].mxu0 %vm1627_vm1, %v6810_v30  ;;  %v20662_v0 = vld [vmem:[#allocation70_spill] sm:$0xff] }
 0x58b   : > { %v11805_v24 = vpop.eup %11804  ;;  %v5920_v28 = vmul.f32 0.015625, %v5768_v42  ;;  %v7355_v44 = vadd.f32 %v17965_v17, %v20662_v0 }
 0x58c   : > { %11810 = vrsqrt.f32 %v6429_v49  ;;  %7943 = vxpose.xlu0.b32.cont [11/16] (narrow) %v7345_v12, 48  ;;  %v11807_v20 = vpop.eup %11806  ;;  %v6047_v3 = vmul.f32 %v18083_v33, %v18083_v33  ;;  %v6684_v4 = vmul.f32 %v11805_v24, %v6300_v54  ;;  %v6302_v12 = vsub.f32 %v20663_v38, %v18057_v1 }
 0x58d   : > { %v5765_v36 = vpop.xlane.xlu0 %5764  ;;  %7976 = vxpose.xlu1.b32.cont [12/16] (narrow) %v7430_v46, 48  ;;  %v6176_v8 = vsub.f32 %v5920_v28, %v6048_v57  ;;  %v6683_v22 = vmul.f32 %v11807_v20, %v6299_v59  ;;  %v20664_v46 = vld [vmem:[#allocation179_spill] sm:$0xff]  ;;  %v7360_v59 = vadd.f32 %v20665_v29, %v17965_v17 }
 0x58e   : > { %v5919_v58 = vmul.f32 0.015625, %v5765_v36  ;;  %v5134_v25 = vpop.xlane.xlu1 %5133  ;;  %v6812_v7 = vmax.f32 %v6684_v4, 0.0  ;;  %v6301_v52 = vsub.f32 %v20664_v46, %v18061_v60  ;;  %v7445_v60 = vadd.f32 %v17965_v17, %v17688_v21 }
 0x58f   : > { %v6432_v5 = vadd.f32 1e-05, %v6176_v8  ;;  %v18101_v55 = vmul.f32 0.015625, %v5134_v25  ;;  %v6811_v53 = vmax.f32 %v6683_v22, 0.0  ;;  %v20666_v22 = vld [vmem:[#allocation192_spill] sm:$0xff]  ;;  %v7450_v21 = vadd.f32 %v17681_v48, %v17965_v17  ;;  %v20669_v48 = vld [vmem:[#allocation114_spill] sm:$0xff] }
 0x590   : > { %v6175_v50 = vsub.f32 %v5919_v58, %v6047_v3  ;;  %7944 = vxpose.xlu0.b32.cont [12/16] (narrow) %v7350_v43, 48 }
 0x591   : > { %v5131_v34 = vpop.xlane.xlu0 %5130  ;;  %7977 = vxpose.xlu1.b32.cont [13/16] (narrow) %v7435_v41, 48  ;;  %11812 = vrsqrt.f32 %v6432_v5  ;;  %11222 = vmatprep.mubr.msk.f32.mxu0 %vm1627_vm1, %v6811_v53  ;;  %v6050_v54 = vmul.f32 %v18101_v55, %v18101_v55  ;;  %v7365_v41 = vadd.f32 %v17965_v17, %v20666_v22 }
 0x592   : > { %v6431_v31 = vadd.f32 1e-05, %v6175_v50  ;;  %v18105_v39 = vmul.f32 0.015625, %v5131_v34  ;;  %v5774_v49 = vpop.xlane.xlu1 %5773  ;;  %11223 = vmatmul.mubr.msk.f32.gmra.mrb[174].mxu0 %vm1627_vm1, %v6812_v7  ;;  %v20667_v34 = vld [vmem:[#allocation50_spill] sm:$0xff] }
 0x593   : > { %v11809_v30 = vpop.eup %11808  ;;  %v5922_v42 = vmul.f32 0.015625, %v5774_v49  ;;  %v6304_v53 = vsub.f32 %v20667_v34, %v18079_v6 }
 0x594   : > { %11814 = vrsqrt.f32 %v6431_v31  ;;  %7945 = vxpose.xlu0.b32.cont [13/16] (narrow) %v7355_v44, 48  ;;  %v6049_v1 = vmul.f32 %v18105_v39, %v18105_v39  ;;  %v6686_v28 = vmul.f32 %v11809_v30, %v6302_v12  ;;  %v20668_v31 = vld [vmem:[#allocation51_spill] sm:$0xff]  ;;  %v7370_v30 = vadd.f32 %v20669_v48, %v17965_v17 }
 0x595   : > { %v5771_v24 = vpop.xlane.xlu0 %5770  ;;  %7978 = vxpose.xlu1.b32.cont [14/16] (narrow) %v7440_v26, 48  ;;  %v6178_v36 = vsub.f32 %v5922_v42, %v6050_v54  ;;  %v6303_v7 = vsub.f32 %v20668_v31, %v18083_v33 }
 0x596   : > { %v11811_v10 = vpop.eup %11810  ;;  %v5921_v57 = vmul.f32 0.015625, %v5771_v24  ;;  %v5140_v43 = vpop.xlane.xlu1 %5139  ;;  %v6814_v5 = vmax.f32 %v6686_v28, 0.0 }
 0x597   : > { %v6685_v20 = vmul.f32 %v11811_v10, %v6301_v52  ;;  %v6434_v3 = vadd.f32 1e-05, %v6178_v36  ;;  %v18123_v58 = vmul.f32 0.015625, %v5140_v43 }
 0x598   : > { %v6177_v51 = vsub.f32 %v5921_v57, %v6049_v1  ;;  %7946 = vxpose.xlu0.b32.cont [14/16] (narrow) %v7360_v59, 48  ;;  %v7455_v57 = vadd.f32 %v17965_v17, %v17728_v19 }
 0x599   : > { %v5137_v4 = vpop.xlane.xlu0 %5136  ;;  %v6813_v8 = vmax.f32 %v6685_v20, 0.0  ;;  %7979 = vxpose.xlu1.b32.cont [15/16] (narrow) %v7445_v60, 48  ;;  %11816 = vrsqrt.f32 %v6434_v3  ;;  %v6052_v26 = vmul.f32 %v18123_v58, %v18123_v58  ;;  %v6306_v60 = vsub.f32 %v20593_v27, %v18101_v55 }
 0x59a   : > { %v6433_v50 = vadd.f32 1e-05, %v6177_v51  ;;  %v18127_v25 = vmul.f32 0.015625, %v5137_v4  ;;  %v6305_v3 = vsub.f32 %v17626_v14, %v18105_v39 }
 0x59b   : > { %11225 = vmatprep.mubr.msk.f32.mxu0 %vm1627_vm1, %v6813_v8  ;;  %v5780_v0 = vpop.xlane.xlu1 %5779  ;;  %v11813_v44 = vpop.eup %11812 }
 0x59c   : > { %11818 = vrsqrt.f32 %v6433_v50  ;;  %7947 = vxpose.xlu0.b32.cont [15/16] (narrow) %v7365_v41, 48  ;;  %11226 = vmatmul.mubr.msk.f32.gmra.mrb[176].mxu0 %vm1627_vm1, %v6814_v5  ;;  %v5924_v38 = vmul.f32 0.015625, %v5780_v0  ;;  %v6051_v6 = vmul.f32 %v18127_v25, %v18127_v25  ;;  %v6688_v52 = vmul.f32 %v11813_v44, %v6304_v53 }
 0x59d   : > { %v5777_v12 = vpop.xlane.xlu0 %5776  ;;  %7980 = vxpose.xlu1.b32.end [16/16] (narrow) %v7450_v21, 48  ;;  %v7460_v41 = vadd.f32 %v17721_v2, %v17965_v17  ;;  %v7465_v2 = vadd.f32 %v17965_v17, %v17764_v47 }
 0x59e   : > { %v11815_v49 = vpop.eup %11814  ;;  %v5923_v46 = vmul.f32 0.015625, %v5777_v12  ;;  %v6180_v54 = vsub.f32 %v5924_v38, %v6052_v26  ;;  %v6816_v20 = vmax.f32 %v6688_v52, 0.0  ;;  %v6307_v52 = vsub.f32 %v17685_v23, %v18127_v25 }
 0x59f   : > { %v6687_v42 = vmul.f32 %v11815_v49, %v6303_v7  ;;  %v5146_v10 = vpop.xlane.xlu1 %5145 }
 0x5a0   : > { %v6179_v24 = vsub.f32 %v5923_v46, %v6051_v6  ;;  %7948 = vxpose.xlu0.b32.end [16/16] (narrow) %v7370_v30, 48  ;;  %v6436_v33 = vadd.f32 1e-05, %v6180_v54  ;;  %v18143_v29 = vmul.f32 0.015625, %v5146_v10  ;;  %v6308_v30 = vsub.f32 %v17669_v56, %v18123_v58 }
 0x5a1   : > { %v5143_v59 = vpop.xlane.xlu0 %5142  ;;  %v6815_v1 = vmax.f32 %v6687_v42, 0.0  ;;  %v7470_v56 = vadd.f32 %v17758_v18, %v17965_v17 }
 0x5a2   : > { %v6435_v28 = vadd.f32 1e-05, %v6179_v24  ;;  %v18147_v36 = vmul.f32 0.015625, %v5143_v59  ;;  %11820 = vrsqrt.f32 %v6436_v33  ;;  %v6054_v19 = vmul.f32 %v18143_v29, %v18143_v29 }
 0x5a3   : > { %11228 = vmatprep.mubr.msk.f32.mxu0 %vm1627_vm1, %v6815_v1  ;;  %v5786_v51 = vpop.xlane.xlu1 %5785  ;;  %v11817_v43 = vpop.eup %11816 }
 0x5a4   : > { %11822 = vrsqrt.f32 %v6435_v28  ;;  %7997 = vxpose.xlu0.b32.start [1/16] (narrow) %v7455_v57, 48  ;;  %11229 = vmatmul.mubr.msk.f32.gmra.mrb[178].mxu0 %vm1627_vm1, %v6816_v20  ;;  %v5926_v4 = vmul.f32 0.015625, %v5786_v51  ;;  %v6053_v27 = vmul.f32 %v18147_v36, %v18147_v36  ;;  %v6690_v5 = vmul.f32 %v11817_v43, %v6306_v60 }
 0x5a5   : > { %v5783_v8 = vpop.xlane.xlu0 %5782  ;;  %v18161_v50 = vpop.f32.mrb[110].mxu0 }
 0x5a6   : > { %v11819_v22 = vpop.eup %11818  ;;  %v5925_v55 = vmul.f32 0.015625, %v5783_v8  ;;  %v6182_v21 = vsub.f32 %v5926_v4, %v6054_v19  ;;  %v18163_v34 = vpop.f32.mrb[111].mxu0  ;;  %v6818_v49 = vmax.f32 %v6690_v5, 0.0  ;;  %v7475_v19 = vadd.f32 %v17965_v17, %v17800_v45 }
 0x5a7   : > { %v6689_v14 = vmul.f32 %v11819_v22, %v6305_v3  ;;  %v5152_v53 = vpop.xlane.xlu1 %5151 }
 0x5a8   : > { %v6181_v39 = vsub.f32 %v5925_v55, %v6053_v27  ;;  %7998 = vxpose.xlu0.b32.cont [2/16] (narrow) %v7460_v41, 48  ;;  %v6438_v0 = vadd.f32 1e-05, %v6182_v21  ;;  %v18165_v44 = vmul.f32 0.015625, %v5152_v53  ;;  %v6310_v55 = vsub.f32 %v17709_v40, %v18143_v29 }
 0x5a9   : > { %v5149_v31 = vpop.xlane.xlu0 %5148  ;;  %v6817_v7 = vmax.f32 %v6689_v14, 0.0  ;;  %v11131_v12 = vpop.f32.mrb[112].mxu0  ;;  %v7480_v14 = vadd.f32 %v17794_v13, %v17965_v17 }
 0x5aa   : > { %v6437_v26 = vadd.f32 1e-05, %v6181_v39  ;;  %v18169_v38 = vmul.f32 0.015625, %v5149_v31  ;;  %11824 = vrsqrt.f32 %v6438_v0  ;;  %v7534_v48 = vpop.f32.mrb[113].mxu0  ;;  %v6056_v54 = vmul.f32 %v18165_v44, %v18165_v44 }
 0x5ab   : > { %11231 = vmatprep.mubr.msk.f32.mxu0 %vm1627_vm1, %v6817_v7  ;;  %v7535_v6 = vadd.f32 %v17965_v17, %v7534_v48  ;;  %v5792_v46 = vpop.xlane.xlu1 %5791  ;;  %v7540_v23 = vadd.f32 %v11131_v12, %v17965_v17  ;;  %v6309_v39 = vsub.f32 %v17725_v61, %v18147_v36  ;;  %v7485_v61 = vadd.f32 %v17965_v17, %v17836_v35 }
 0x5ac   : > { %11826 = vrsqrt.f32 %v6437_v26  ;;  %7999 = vxpose.xlu0.b32.cont [3/16] (narrow) %v7465_v2, 48  ;;  %11232 = vmatmul.mubr.msk.f32.gmra.mrb[180].mxu0 %vm1627_vm1, %v6818_v49  ;;  %v11821_v47 = vpop.eup %11820  ;;  %v5928_v42 = vmul.f32 0.015625, %v5792_v46  ;;  %v6055_v58 = vmul.f32 %v18169_v38, %v18169_v38 }
 0x5ad   : > { %v5789_v24 = vpop.xlane.xlu0 %5788  ;;  %8029 = vxpose.xlu1.b32.start [1/16] (narrow) %v7535_v6, 48  ;;  %v6692_v1 = vmul.f32 %v11821_v47, %v6308_v30 }
 0x5ae   : > { %v11823_v10 = vpop.eup %11822  ;;  %v5927_v33 = vmul.f32 0.015625, %v5789_v24  ;;  %v11134_v59 = vpop.f32.mrb[114].mxu0  ;;  %v6184_v57 = vsub.f32 %v5928_v42, %v6056_v54  ;;  %v11954_v54 = vmov 839922192  }
 0x5af   : > { %v7544_v28 = vpop.f32.mrb[115].mxu0  ;;  %v6691_v20 = vmul.f32 %v11823_v10, %v6307_v52  ;;  %v5158_v60 = vpop.xlane.xlu1 %5157  ;;  %v6820_v41 = vmax.f32 %v6692_v1, 0.0  ;;  %v7550_v36 = vadd.f32 %v11134_v59, %v17965_v17  ;;  %v8199_v42 = vunpack.c.l.s4 %v11954_v54 }
 0x5b0   : > { %v6183_v25 = vsub.f32 %v5927_v33, %v6055_v58  ;;  %8000 = vxpose.xlu0.b32.cont [4/16] (narrow) %v7470_v56, 48  ;;  %v6440_v51 = vadd.f32 1e-05, %v6184_v57  ;;  %v18185_v43 = vmul.f32 0.015625, %v5158_v60  ;;  %v7545_v5 = vadd.f32 %v17965_v17, %v7544_v28 }
 0x5b1   : > { %v5155_v3 = vpop.xlane.xlu0 %5154  ;;  %v6819_v18 = vmax.f32 %v6691_v20, 0.0  ;;  %8030 = vxpose.xlu1.b32.cont [2/16] (narrow) %v7540_v23, 48  ;;  %v8201_v58 = vlaneseq  ;;  %v7490_v59 = vadd.f32 %v17830_v11, %v17965_v17  ;;  %v6312_v1 = vsub.f32 %v17749_v62, %v18165_v44 }
 0x5b2   : > { %v6439_v4 = vadd.f32 1e-05, %v6183_v25  ;;  %v18189_v8 = vmul.f32 0.015625, %v5155_v3  ;;  %v18191_v22 = vpop.f32.mrb[116].mxu0  ;;  %11828 = vrsqrt.f32 %v6440_v51  ;;  %v6058_v40 = vmul.f32 %v18185_v43, %v18185_v43 }
 0x5b3   : > { %v7554_v27 = vpop.f32.mrb[117].mxu0  ;;  %11234 = vmatprep.mubr.msk.f32.mxu0 %vm1627_vm1, %v6819_v18  ;;  %v5798_v21 = vpop.xlane.xlu1 %5797  ;;  %v6311_v23 = vsub.f32 %v17762_v63, %v18169_v38  ;;  %v8200_v51 = vunpack.c.0.s8 %v8199_v42  ;;  %v7560_v38 = vadd.f32 %v18191_v22, %v17965_v17  ;;  %v7505_v42 = vadd.f32 %v17965_v17, %v17883_v32 }
 0x5b4   : > { %11830 = vrsqrt.f32 %v6439_v4  ;;  %8001 = vxpose.xlu0.b32.cont [5/16] (narrow) %v7475_v19, 48  ;;  %11235 = vmatmul.mubr.msk.f32.gmra.mrb[182].mxu0 %vm1627_vm1, %v6820_v41  ;;  %v11825_v45 = vpop.eup %11824  ;;  %v5930_v29 = vmul.f32 0.015625, %v5798_v21  ;;  %v6057_v31 = vmul.f32 %v18189_v8, %v18189_v8  ;;  %v7555_v57 = vadd.f32 %v17965_v17, %v7554_v27 }
 0x5b5   : > { %v5795_v53 = vpop.xlane.xlu0 %5794  ;;  %8031 = vxpose.xlu1.b32.cont [3/16] (narrow) %v7545_v5, 48  ;;  %v6694_v26 = vmul.f32 %v11825_v45, %v6310_v55  ;;  %v18246_v4 = vshrl.u32 %v8201_v58, 7  ;;  %v7495_v45 = vadd.f32 %v17965_v17, %v17864_v9 }
 0x5b6   : > { %v11827_v0 = vpop.eup %11826  ;;  %v5929_v7 = vmul.f32 0.015625, %v5795_v53  ;;  %v6186_v12 = vsub.f32 %v5930_v29, %v6058_v40  ;;  %v6314_v53 = vsub.f32 %v17785_v15, %v18185_v43 }
 0x5b7   : > { %v18209_v2 = vpop.f32.mrb[118].mxu0  ;;  %v6693_v49 = vmul.f32 %v11827_v0, %v6309_v39  ;;  %v5164_v30 = vpop.xlane.xlu1 %5163  ;;  %v6822_v35 = vmax.f32 %v6694_v26, 0.0  ;;  %v8203_v29 = vsub.s32 %v8200_v51, %v18246_v4  ;;  %v8189_v26 = vld [vmem:[%s375_s14] sm:$0x77] }
 0x5b8   : > { %v18212_v13 = vpop.f32.mrb[119].mxu0  ;;  %v6185_v48 = vsub.f32 %v5929_v7, %v6057_v31  ;;  %8002 = vxpose.xlu0.b32.cont [6/16] (narrow) %v7480_v14, 48  ;;  %v6442_v6 = vadd.f32 1e-05, %v6186_v12  ;;  %v18218_v46 = vmul.f32 0.015625, %v5164_v30  ;;  %v6313_v31 = vsub.f32 %v17798_v37, %v18189_v8 }
 0x5b9   : > { %v5161_v47 = vpop.xlane.xlu0 %5160  ;;  %v6821_v52 = vmax.f32 %v6693_v49, 0.0  ;;  %8032 = vxpose.xlu1.b32.cont [4/16] (narrow) %v7550_v36, 48  ;;  %v7565_v9 = vadd.f32 %v17965_v17, %v18212_v13  ;;  %v8190_v12 = vld [vmem:[%s375_s14 + $0x8] sm:$0x77]  ;;  %v8191_v13 = vld [vmem:[%s375_s14 + $0x10] sm:$0x77]  ;;  %v7570_v37 = vadd.f32 %v18209_v2, %v17965_v17 }
 0x5ba   : > { %v6441_v24 = vadd.f32 1e-05, %v6185_v48  ;;  %v18220_v10 = vmul.f32 0.015625, %v5161_v47  ;;  %11832 = vrsqrt.f32 %v6442_v6  ;;  %v6060_v25 = vmul.f32 %v18218_v46, %v18218_v46  ;;  %v8192_v36 = vld [vmem:[%s375_s14 + $0x18] sm:$0x77] }
 0x5bb   : > { %v18222_v56 = vpop.f32.mrb[120].mxu0  ;;  %11237 = vmatprep.mubr.msk.f32.mxu0 %vm1627_vm1, %v6821_v52  ;;  %v5804_v28 = vpop.xlane.xlu1 %5803 }
 0x5bc   : > { %v18224_v33 = vpop.f32.mrb[121].mxu0  ;;  %11834 = vrsqrt.f32 %v6441_v24  ;;  %8003 = vxpose.xlu0.b32.cont [7/16] (narrow) %v7485_v61, 48  ;;  %11238 = vmatmul.mubr.msk.f32.gmra.mrb[184].mxu0 %vm1627_vm1, %v6822_v35  ;;  %v11829_v20 = vpop.eup %11828  ;;  %v5932_v60 = vmul.f32 0.015625, %v5804_v28  ;;  %v6059_v62 = vmul.f32 %v18220_v10, %v18220_v10  ;;  %v7500_v61 = vadd.f32 %v17862_v16, %v17965_v17 }
 0x5bd   : > { %v5801_v11 = vpop.xlane.xlu0 %5800  ;;  %8033 = vxpose.xlu1.b32.cont [5/16] (narrow) %v7555_v57, 48  ;;  %v6696_v19 = vmul.f32 %v11829_v20, %v6312_v1  ;;  %v7575_v32 = vadd.f32 %v17965_v17, %v18224_v33 }
 0x5be   : > { %v11831_v3 = vpop.eup %11830  ;;  %v5931_v44 = vmul.f32 0.015625, %v5801_v11  ;;  %v6188_v41 = vsub.f32 %v5932_v60, %v6060_v25  ;;  %v20673_v60 = vld [vmem:[#allocation76_spill] sm:$0xff] }
 0x5bf   : > { %v6695_v63 = vmul.f32 %v11831_v3, %v6311_v23  ;;  %v6824_v40 = vmax.f32 %v6696_v19, 0.0  ;;  %v6315_v11 = vsub.f32 %v20673_v60, %v18220_v10 }
 0x5c0   : > { %v18244_v18 = vpop.f32.mrb[122].mxu0  ;;  %v6187_v55 = vsub.f32 %v5931_v44, %v6059_v62  ;;  %8004 = vxpose.xlu0.b32.cont [8/16] (narrow) %v7490_v59, 48  ;;  %v6444_v5 = vadd.f32 1e-05, %v6188_v41  ;;  %v20672_v59 = vld [vmem:[#allocation193_spill] sm:$0xff] }
 0x5c1   : > { %v18248_v27 = vpop.f32.mrb[123].mxu0  ;;  %v6823_v21 = vmax.f32 %v6695_v63, 0.0  ;;  %8034 = vxpose.xlu1.b32.cont [6/16] (narrow) %v7560_v38, 48  ;;  %v6316_v1 = vsub.f32 %v20672_v59, %v18218_v46  ;;  %v20674_v46 = vld [vmem:[#allocation120_spill] sm:$0xff]  ;;  %v18347_v59 = vsub.s32 1, %v18246_v4 }
 0x5c2   : > { %v6443_v14 = vadd.f32 1e-05, %v6187_v55  ;;  %11836 = vrsqrt.f32 %v6444_v5  ;;  %v7510_v62 = vadd.f32 %v20674_v46, %v17965_v17  ;;  %v7580_v55 = vadd.f32 %v18222_v56, %v17965_v17 }
 0x5c3   : > { %11240 = vmatprep.mubr.msk.f32.mxu0 %vm1627_vm1, %v6823_v21  ;;  %v7585_v56 = vadd.f32 %v17965_v17, %v18248_v27 }
 0x5c4   : > { %v18255_v39 = vpop.f32.mrb[124].mxu0  ;;  %11838 = vrsqrt.f32 %v6443_v14  ;;  %8005 = vxpose.xlu0.b32.cont [9/16] (narrow) %v7495_v45, 48  ;;  %11241 = vmatmul.mubr.msk.f32.gmra.mrb[186].mxu0 %vm1627_vm1, %v6824_v40  ;;  %v11833_v0 = vpop.eup %11832  ;;  %v20675_v14 = vld [vmem:[#allocation81_spill] sm:$0xff] }
 0x5c5   : > { %v18261_v22 = vpop.f32.mrb[125].mxu0  ;;  %v8197_v7 = vpop.permute.xlu0 %8196  ;;  %8035 = vxpose.xlu1.b32.cont [7/16] (narrow) %v7565_v9, 48  ;;  %v6698_v43 = vmul.f32 %v11833_v0, %v6314_v53  ;;  %v7515_v40 = vadd.f32 %v17965_v17, %v20675_v14 }
 0x5c6   : > { %v11835_v49 = vpop.eup %11834  ;;  %v8204_v48 = vrot.slane %v8197_v7, %v8203_v29  ;;  %v18320_v7 = vld [vmem:[%s19169_s8] ss:$0 sm:$0xff] }
 0x5c7   : > { %v6697_v6 = vmul.f32 %v11835_v49, %v6313_v31  ;;  %v6826_v35 = vmax.f32 %v6698_v43, 0.0  ;;  %v7590_v17 = vadd.f32 %v18320_v7, %v18244_v18  ;;  %v7525_v27 = vadd.f32 %v18320_v7, %v18163_v34 }
 0x5c8   : > { %v18273_v15 = vpop.f32.mrb[126].mxu0  ;;  %8006 = vxpose.xlu0.b32.cont [10/16] (narrow) %v7500_v61, 48  ;;  %v18279_v8 = vsub.f32 %v8189_v26, %v8204_v48  ;;  %v18281_v47 = vsub.f32 %v8190_v12, %v8204_v48  ;;  %v18283_v16 = vsub.f32 %v8191_v13, %v8204_v48  ;;  %v18285_v54 = vsub.f32 %v8192_v36, %v8204_v48  ;;  %v20676_v26 = vld [vmem:[#allocation195_spill] sm:$0xff] }
 0x5c9   : > { %v18275_v30 = vpop.f32.mrb[127].mxu0  ;;  %v6825_v52 = vmax.f32 %v6697_v6, 0.0  ;;  %8036 = vxpose.xlu1.b32.cont [8/16] (narrow) %v7570_v37, 48  ;;  %v7520_v12 = vadd.f32 %v18320_v7, %v20676_v26  ;;  %v7595_v37 = vadd.f32 %v18320_v7, %v18261_v22  ;;  %v18337_v18 = vsub.s32 0, %v18246_v4 }
 0x5ca   : > { %20670 = vst [vmem:[#allocation124_spill] sm:$0xff] %v18283_v16  ;;  %20671 = vst [vmem:[#allocation197_spill] sm:$0xff] %v18285_v54  ;;  %v8210_v2 = vmul.f32 %v18279_v8, %v18279_v8  ;;  %v8211_v58 = vmul.f32 %v18281_v47, %v18281_v47  ;;  %v8212_v53 = vmul.f32 %v18283_v16, %v18283_v16  ;;  %v18340_v34 = vsub.s32 4, %v18246_v4 }
 0x5cb   : > { %11243 = vmatprep.mubr.msk.f32.mxu0 %vm1627_vm1, %v6825_v52  ;;  %v18331_v52 = vsub.s32 5, %v18246_v4  ;;  %v7605_v60 = vadd.f32 %v18320_v7, %v18275_v30 }
 0x5cc   : > { %v18289_v24 = vpop.f32.mrb[128].mxu0  ;;  %8007 = vxpose.xlu0.b32.cont [11/16] (narrow) %v7505_v42, 48  ;;  %11244 = vmatmul.mubr.msk.f32.gmra.mrb[188].mxu0 %vm1627_vm1, %v6826_v35  ;;  %v10189_v28 = vrot.slane %v8210_v2, 9  ;;  %v10190_v20 = vrot.slane %v8211_v58, 9  ;;  %v10193_v23 = vrot.slane %v8210_v2, 10  ;;  %v11837_v25 = vpop.eup %11836  ;;  %v10194_v51 = vrot.slane %v8211_v58, 10 }
 0x5cd   : > { %v18297_v57 = vpop.f32.mrb[129].mxu0  ;;  %8037 = vxpose.xlu1.b32.cont [9/16] (narrow) %v7575_v32, 48  ;;  %v6700_v19 = vmul.f32 %v11837_v25, %v6316_v1  ;;  %v10191_v61 = vrot.slane %v8212_v53, 9  ;;  %v10195_v48 = vrot.slane %v8212_v53, 10  ;;  %v18334_v42 = vsub.s32 6, %v18246_v4 }
 0x5ce   : > { %v11839_v3 = vpop.eup %11838  ;;  %v8230_v41 = vadd.f32 %v10189_v28, %v8210_v2  ;;  %v8231_v33 = vadd.f32 %v10190_v20, %v8211_v58  ;;  %v7530_v2 = vadd.f32 %v18320_v7, %v18161_v50  ;;  %v18350_v1 = vsub.s32 2, %v18246_v4 }
 0x5cf   : > { %v6699_v38 = vmul.f32 %v11839_v3, %v6315_v11  ;;  %v6828_v10 = vmax.f32 %v6700_v19, 0.0  ;;  %v8232_v36 = vadd.f32 %v10191_v61, %v8212_v53  ;;  %v7600_v28 = vadd.f32 %v18320_v7, %v18255_v39 }
 0x5d0   : > { %v11158_v44 = vpop.f32.mrb[130].mxu0  ;;  %8008 = vxpose.xlu0.b32.cont [12/16] (narrow) %v7510_v62, 48  ;;  %v8246_v5 = vadd.f32 %v10193_v23, %v8230_v41  ;;  %v8247_v21 = vadd.f32 %v10194_v51, %v8231_v33  ;;  %v7610_v20 = vadd.f32 %v18320_v7, %v18273_v15  ;;  %v18360_v11 = vadd.f32 %v18320_v7, %v18289_v24 }
 0x5d1   : > { %v7624_v63 = vpop.f32.mrb[131].mxu0  ;;  %v6827_v45 = vmax.f32 %v6699_v38, 0.0  ;;  %8038 = vxpose.xlu1.b32.cont [10/16] (narrow) %v7580_v55, 48  ;;  %v18344_v22 = vadd.f32 %v10195_v48, %v8232_v36  ;;  %v18364_v4 = vadd.f32 %v18320_v7, %v18297_v57  ;;  %v18367_v51 = vadd.f32 %v18320_v7, %v11158_v44 }
 0x5d2   : > { %v8250_v9 = vmax.f32 %v8246_v5, 1e-24  ;;  %v8251_v0 = vmax.f32 %v8247_v21, 1e-24  ;;  %v18370_v39 = vadd.f32 %v18320_v7, %v7624_v63 }
 0x5d3   : > { %11246 = vmatprep.mubr.msk.f32.mxu0 %vm1627_vm1, %v6827_v45  ;;  %20677 = vst [vmem:[#allocation82_spill] sm:$0xff] %v18344_v22 }
 0x5d4   : > { %v11161_v29 = vpop.f32.mrb[132].mxu0  ;;  %8009 = vxpose.xlu0.b32.cont [13/16] (narrow) %v7515_v40, 48  ;;  %11247 = vmatmul.mubr.msk.f32.gmra.mrb[190].mxu0 %vm1627_vm1, %v6828_v10  ;;  %11840 = vrsqrt.f32 %v8250_v9 }
 0x5d5   : > { %v7634_v31 = vpop.f32.mrb[133].mxu0  ;;  %11842 = vrsqrt.f32 %v8251_v0  ;;  %8039 = vxpose.xlu1.b32.cont [11/16] (narrow) %v7585_v56, 48  ;;  %v18373_v15 = vadd.f32 %v18320_v7, %v11161_v29 }
 0x5d6   : > { %v18379_v24 = vadd.f32 %v18320_v7, %v7634_v31 }
 0x5d8   : > { %v11164_v49 = vpop.f32.mrb[134].mxu0  ;;  %8010 = vxpose.xlu0.b32.cont [14/16] (narrow) %v7520_v12, 48 }
 0x5d9   : > { %v7644_v43 = vpop.f32.mrb[135].mxu0  ;;  %8040 = vxpose.xlu1.b32.cont [12/16] (narrow) %v7590_v17, 48  ;;  %v18382_v57 = vadd.f32 %v18320_v7, %v11164_v49 }
 0x5da   : > { %v18386_v19 = vadd.f32 %v18320_v7, %v7644_v43 }
 0x5dc   : > { %v11167_v13 = vpop.f32.mrb[136].mxu0  ;;  %8011 = vxpose.xlu0.b32.cont [15/16] (narrow) %v7525_v27, 48 }
 0x5dd   : > { %v7654_v6 = vpop.f32.mrb[137].mxu0  ;;  %8041 = vxpose.xlu1.b32.cont [13/16] (narrow) %v7595_v37, 48  ;;  %v18389_v41 = vadd.f32 %v18320_v7, %v11167_v13 }
 0x5de   : > { %v11841_v35 = vpop.eup %11840  ;;  %v18400_v55 = vadd.f32 %v18320_v7, %v7654_v6 }
 0x5df   : > { %v11843_v32 = vpop.eup %11842  ;;  %v8266_v25 = vrot.slane %v11841_v35, 7  ;;  %v8278_v50 = vrot.slane %v11841_v35, 6  ;;  %v18376_v30 = vmul.f32 %v11841_v35, %v18279_v8 }
 0x5e0   : > { %v11170_v58 = vpop.f32.mrb[138].mxu0  ;;  %8012 = vxpose.xlu0.b32.end [16/16] (narrow) %v7530_v2, 48  ;;  %v8267_v3 = vrot.slane %v11843_v32, 7  ;;  %v8279_v44 = vrot.slane %v11843_v32, 6  ;;  %v18409_v45 = vmul.f32 %v11843_v32, %v18281_v47 }
 0x5e1   : > { %v7664_v23 = vpop.f32.mrb[139].mxu0  ;;  %8042 = vxpose.xlu1.b32.cont [14/16] (narrow) %v7600_v28, 48  ;;  %v18394_v63 = vmul.f32 %v8266_v25, %v18279_v8  ;;  %v18397_v38 = vmul.f32 %v8278_v50, %v18279_v8  ;;  %v18403_v5 = vadd.f32 %v18320_v7, %v11170_v58  ;;  %v18417_v8 = vpop.trf.xlu1  ;;  %v18421_v40 = vmul.f32 %v18376_v30, %v18376_v30 }
 0x5e2   : > { %v18406_v21 = vadd.f32 %v18320_v7, %v7664_v23  ;;  %v18415_v14 = vmul.f32 %v8267_v3, %v18281_v47  ;;  %v18425_v53 = vmul.f32 %v8279_v44, %v18281_v47  ;;  %v8366_v48 = vmul.f32 -0.48860252, %v18376_v30 }
 0x5e3   : > { %v10197_v29 = vrot.slane %v18394_v63, 9  ;;  %v8298_v9 = vmul.f32 %v18397_v38, %v18397_v38  ;;  %v10201_v0 = vrot.slane %v18397_v38, 9  ;;  %v8342_v31 = vrot.slane %v18397_v38, 6 }
 0x5e4   : > { %v11173_v46 = vpop.f32.mrb[140].mxu0  ;;  %v18435_v26 = vmul.f32 %v18394_v63, %v18394_v63  ;;  %v18439_v47 = vmul.f32 -0.48860252, %v18394_v63  ;;  %v18442_v49 = vmul.f32 0.48860252, %v18397_v38  ;;  %v8386_v13 = vrot.slane %v18421_v40, 6  ;;  %v18448_v36 = vpop.trf.xlu0 }
 0x5e5   : > { %v18391_v33 = vpop.f32.mrb[141].mxu0  ;;  %v18412_v10 = vadd.f32 %v18320_v7, %v11173_v46  ;;  %8043 = vxpose.xlu1.b32.cont [15/16] (narrow) %v7605_v60, 48  ;;  %v8318_v12 = vmul.f32 %v10197_v29, %v18376_v30  ;;  %v8338_v43 = vmul.f32 %v10201_v0, %v18394_v63  ;;  %v8343_v17 = vrot.slane %v8342_v31, 4  ;;  %v18463_v60 = vpop.trf.xlu1 }
 0x5e6   : > { %v8378_v27 = vmul.f32 2.0, %v8298_v9  ;;  %v8402_v37 = vrot.slane %v18435_v26, 7  ;;  %v18455_v35 = vmul.f32 3.0, %v18421_v40  ;;  %v8482_v23 = vmul.f32 4.0, %v8298_v9 }
 0x5e7   : > { %20678 = vst [vmem:[#allocation126_spill] sm:$0xff] %v18412_v10  ;;  %v18451_v6 = vmul.f32 1.0925485, %v8318_v12  ;;  %v8354_v2 = vmul.f32 %v8343_v17, %v18376_v30  ;;  %v18458_v58 = vmul.f32 -1.0925485, %v8338_v43  ;;  %v8633_v50 = vrot.slane %v18439_v47, %v18331_v52 }
 0x5e8   : > { %v18431_v56 = vpop.f32.mrb[142].mxu0  ;;  %v8394_v32 = vsub.f32 %v8378_v27, %v8386_v13  ;;  %v8470_v28 = vmul.f32 2.8906114, %v8318_v12  ;;  %v8522_v25 = vrot.slane %v18455_v35, 6  ;;  %v18467_v3 = vmul.f32 %v18409_v45, %v18409_v45 }
 0x5e9   : > { %v18444_v61 = vpop.f32.mrb[143].mxu0  ;;  %8044 = vxpose.xlu1.b32.end [16/16] (narrow) %v7610_v20, 48  ;;  %v18469_v46 = vmul.f32 -1.0925485, %v8354_v2  ;;  %v8677_v29 = vrot.slane %v18442_v49, %v18334_v42  ;;  %v8486_v9 = vsub.f32 %v8482_v23, %v8386_v13  ;;  %v8721_v31 = vrot.slane %v8366_v48, %v18340_v34  ;;  %v18487_v13 = vpop.trf.xlu0 }
 0x5ea   : > { %v8410_v20 = vsub.f32 %v8394_v32, %v8402_v37  ;;  %v18471_v44 = vmul.f32 %v8470_v28, %v8343_v17  ;;  %v18475_v0 = vsub.f32 %v8378_v27, %v8522_v25  ;;  %v8765_v12 = vrot.slane %v18451_v6, %v18340_v34  ;;  %v18502_v22 = vpop.trf.xlu1 }
 0x5eb   : > { %v8809_v2 = vrot.slane %v18458_v58, %v18331_v52  ;;  %v8897_v17 = vrot.slane %v18469_v46, %v18340_v34  ;;  %v8490_v28 = vsub.f32 %v8486_v9, %v8402_v37  ;;  %v9284_v25 = vsel %vm9282_vm2, 0.2820948, %v8633_v50 }
 0x5ec   : > { %v8414_v43 = vmul.f32 0.31539157, %v8410_v20  ;;  %v9293_v16 = vsel %vm9291_vm3, %v9284_v25, %v8677_v29  ;;  %v8673_v32 = vrot.slane %v18442_v49, %v18350_v1  ;;  %v8717_v50 = vrot.slane %v8366_v48, %v18337_v18 }
 0x5ed   : > { %8061 = vxpose.xlu1.b32.start [1/16] (narrow) %v18364_v4, 48  ;;  %v8629_v4 = vrot.slane %v18439_v47, %v18347_v59  ;;  %v10205_v9 = vrot.slane %v8490_v28, 9  ;;  %v9302_v23 = vsel %vm9300_vm4, %v9293_v16, %v8721_v31  ;;  %v8805_v29 = vrot.slane %v18458_v58, %v18347_v59 }
 0x5ee   : > { %v8853_v54 = vrot.slane %v8414_v43, %v18334_v42  ;;  %v9311_v47 = vsel %vm9309_vm5, %v9302_v23, %v8765_v12  ;;  %v8849_v49 = vrot.slane %v8414_v43, %v18350_v1  ;;  %v8893_v16 = vrot.slane %v18469_v46, %v18337_v18  ;;  %v18520_v23 = vpop.trf.xlu0 }
 0x5ef   : > { %v11179_v27 = vpop.f32.mrb[144].mxu0  ;;  %v9283_v48 = vsel %vm9282_vm2, 0.2820948, %v8629_v4  ;;  %v8478_v58 = vmul.f32 -0.4570458, %v18394_v63  ;;  %v8534_v25 = vmul.f32 3.0, %v18435_v26 }
 0x5f0   : > { %v7700_v20 = vadd.f32 %v18320_v7, %v11179_v27  ;;  %v7694_v62 = vpop.f32.mrb[145].mxu0  ;;  %v8761_v27 = vrot.slane %v18451_v6, %v18337_v18  ;;  %v9292_v12 = vsel %vm9291_vm3, %v9283_v48, %v8673_v32  ;;  %v8442_v6 = vmul.f32 -0.5900436, %v18394_v63 }
 0x5f1   : > { %v7695_v37 = vadd.f32 %v18320_v7, %v7694_v62  ;;  %8062 = vxpose.xlu1.b32.cont [2/16] (narrow) %v18360_v11, 48  ;;  %v9320_v62 = vsel %vm9318_vm6, %v9311_v47, %v8809_v2  ;;  %v8422_v11 = vrot.slane %v18435_v26, 5  ;;  %v9301_v2 = vsel %vm9300_vm4, %v9292_v12, %v8717_v50 }
 0x5f2   : > { %v9329_v31 = vsel %vm9327_vm7, %v9320_v62, %v8853_v54  ;;  %v9310_v32 = vsel %vm9309_vm5, %v9301_v2, %v8761_v27  ;;  %v8514_v63 = vmul.f32 0.37317634, %v18397_v38  ;;  %v8558_v4 = vmul.f32 -0.4570458, %v18376_v30  ;;  %v18547_v10 = vpop.trf.xlu0 }
 0x5f3   : > { %8093 = vxpose.xlu0.b32.start [1/16] (narrow) %v7695_v37, 48  ;;  %v18523_v43 = vsel %vm9336_vm8, %v9329_v31, %v8897_v17  ;;  %v8423_v46 = vrot.slane %v8422_v11, 4  ;;  %v9319_v17 = vsel %vm9318_vm6, %v9310_v32, %v8805_v29  ;;  %v8542_v47 = vrot.slane %v8534_v25, 7 }
 0x5f4   : > { %v18530_v54 = vmul.f32 %v18523_v43, %v18417_v8  ;;  %v9328_v8 = vsel %vm9327_vm7, %v9319_v17, %v8849_v49  ;;  %v8510_v48 = vmul.f32 %v10205_v9, %v8478_v58  ;;  %v10209_v27 = vrot.slane %v8490_v28, 10 }
 0x5f5   : > { %8063 = vxpose.xlu1.b32.cont [3/16] (narrow) %v18370_v39, 48  ;;  %v8434_v50 = vsub.f32 %v18421_v40, %v8423_v46  ;;  %v8450_v26 = vsub.f32 %v18455_v35, %v8423_v46  ;;  %v18538_v39 = vpop.trf.xlu1  ;;  %v8578_v11 = vmul.f32 1.4453057, %v18397_v38  ;;  %v8550_v35 = vsub.f32 %v18475_v0, %v8542_v47 }
 0x5f6   : > { %v11182_v37 = vpop.f32.mrb[146].mxu0  ;;  %v8574_v46 = vmul.f32 %v10209_v27, %v8558_v4  ;;  %v8598_v9 = vmul.f32 -0.5900436, %v18376_v30  ;;  %v10213_v49 = vrot.slane %v8534_v25, 9  ;;  %v9073_v17 = vrot.slane %v8510_v48, %v18331_v52 }
 0x5f7   : > { %8094 = vxpose.xlu0.b32.cont [2/16] (narrow) %v7700_v20, 48  ;;  %v7704_v62 = vpop.f32.mrb[147].mxu0  ;;  %v9337_v20 = vsel %vm9336_vm8, %v9328_v8, %v8893_v16  ;;  %v8438_v12 = vmul.f32 0.54627424, %v8434_v50  ;;  %v8458_v29 = vrot.slane %v8450_v26, 7  ;;  %v7710_v2 = vadd.f32 %v18320_v7, %v11182_v37 }
 0x5f8   : > { %v7705_v31 = vadd.f32 %v18320_v7, %v7704_v62  ;;  %v8586_v32 = vrot.slane %v8434_v50, 6  ;;  %v18550_v28 = vmul.f32 %v9337_v20, %v18448_v36  ;;  %v8554_v16 = vmul.f32 %v8550_v35, %v8514_v63 }
 0x5f9   : > { %8064 = vxpose.xlu1.b32.cont [4/16] (narrow) %v18367_v51, 48  ;;  %v8466_v38 = vmul.f32 %v8458_v29, %v8442_v6  ;;  %v8937_v37 = vrot.slane %v8438_v12, %v18337_v18  ;;  %v8941_v51 = vrot.slane %v8438_v12, %v18340_v34  ;;  %v8614_v0 = vsub.f32 %v18421_v40, %v10213_v49  ;;  %v7985_v36 = vpop.trf.xlu1  ;;  %v7953_v29 = vpop.trf.xlu0 }
 0x5fa   : > { %v8594_v58 = vmul.f32 %v8586_v32, %v8578_v11  ;;  %v9117_v30 = vrot.slane %v8554_v16, %v18334_v42  ;;  %v9161_v6 = vrot.slane %v8574_v46, %v18340_v34  ;;  %v9069_v63 = vrot.slane %v8510_v48, %v18347_v59 }
 0x5fb   : > { %8095 = vxpose.xlu0.b32.cont [3/16] (narrow) %v7705_v31, 48  ;;  %v8985_v4 = vrot.slane %v8466_v38, %v18331_v52  ;;  %v8981_v50 = vrot.slane %v8466_v38, %v18347_v59  ;;  %v8618_v40 = vmul.f32 %v8614_v0, %v8598_v9  ;;  %v9113_v62 = vrot.slane %v8554_v16, %v18350_v1 }
 0x5fc   : > { %v9205_v25 = vrot.slane %v8594_v58, %v18334_v42  ;;  %v9157_v8 = vrot.slane %v8574_v46, %v18337_v18  ;;  %v20679_v11 = vrot.slane %v18471_v44, %v18340_v34  ;;  %v9201_v12 = vrot.slane %v8594_v58, %v18350_v1 }
 0x5fd   : > { %8065 = vxpose.xlu1.b32.cont [5/16] (narrow) %v18379_v24, 48  ;;  %v11185_v26 = vpop.f32.mrb[148].mxu0  ;;  %v9346_v47 = vsel %vm9282_vm2, %v8941_v51, %v8985_v4  ;;  %v9345_v48 = vsel %vm9282_vm2, %v8937_v37, %v8981_v50  ;;  %v9249_v35 = vrot.slane %v8618_v40, %v18340_v34  ;;  %v9474_v46 = vmul.f32 %v18523_v43, %v18502_v22 }
 0x5fe   : > { %v7720_v27 = vadd.f32 %v18320_v7, %v11185_v26  ;;  %v7714_v24 = vpop.f32.mrb[149].mxu0  ;;  %v9354_v31 = vsel %vm9291_vm3, %v9346_v47, %v20679_v11  ;;  %v9245_v9 = vrot.slane %v8618_v40, %v18337_v18  ;;  %v20680_v49 = vrot.slane %v18471_v44, %v18337_v18  ;;  %v7954_v26 = vpop.trf.xlu0 }
 0x5ff   : > { %8096 = vxpose.xlu0.b32.cont [4/16] (narrow) %v7710_v2, 48  ;;  %v7715_v2 = vadd.f32 %v18320_v7, %v7714_v24  ;;  %v9362_v32 = vsel %vm9300_vm4, %v9354_v31, %v9073_v17  ;;  %v9473_v58 = vmul.f32 %v9337_v20, %v18520_v23  ;;  %v9546_v22 = vmul.f32 %v18523_v43, %v7985_v36 }
 0x600   : > { %v9370_v38 = vsel %vm9309_vm5, %v9362_v32, %v9117_v30  ;;  %v9353_v16 = vsel %vm9291_vm3, %v9345_v48, %v20680_v49  ;;  %v9545_v0 = vmul.f32 %v9337_v20, %v7953_v29  ;;  %v18594_v44 = vmul.f32 %v18415_v14, %v18415_v14 }
 0x601   : > { %8066 = vxpose.xlu1.b32.cont [6/16] (narrow) %v18373_v15, 48  ;;  %v9378_v37 = vsel %vm9318_vm6, %v9370_v38, %v9161_v6  ;;  %v9361_v51 = vsel %vm9300_vm4, %v9353_v16, %v9069_v63  ;;  %v7986_v15 = vpop.trf.xlu1  ;;  %v10198_v50 = vrot.slane %v18415_v14, 9  ;;  %v10202_v6 = vrot.slane %v18425_v53, 9 }
 0x602   : > { %v9386_v4 = vsel %vm9327_vm7, %v9378_v37, %v9205_v25  ;;  %v9369_v17 = vsel %vm9309_vm5, %v9361_v51, %v9113_v62  ;;  %v8344_v43 = vrot.slane %v18425_v53, 6  ;;  %v18608_v62 = vmul.f32 %v18425_v53, %v18425_v53 }
 0x603   : > { %8097 = vxpose.xlu0.b32.cont [5/16] (narrow) %v7715_v2, 48  ;;  %v9394_v23 = vsel %vm9336_vm8, %v9386_v4, %v9249_v35  ;;  %v9377_v30 = vsel %vm9318_vm6, %v9369_v17, %v9157_v8  ;;  %v18611_v8 = vmul.f32 %v10198_v50, %v18409_v45  ;;  %v18630_v37 = vmul.f32 -0.48860252, %v18415_v14 }
 0x604   : > { %v9410_v20 = vmul.f32 %v9394_v23, %v18463_v60  ;;  %v9385_v36 = vsel %vm9327_vm7, %v9377_v30, %v9201_v12  ;;  %v9482_v25 = vmul.f32 %v9394_v23, %v18538_v39  ;;  %v9554_v63 = vmul.f32 %v9394_v23, %v7986_v15 }
 0x605   : > { %8067 = vxpose.xlu1.b32.cont [7/16] (narrow) %v18386_v19, 48  ;;  %v11188_v40 = vpop.f32.mrb[150].mxu0  ;;  %v9393_v47 = vsel %vm9336_vm8, %v9385_v36, %v9245_v9  ;;  %v18614_v19 = vmul.f32 %v10202_v6, %v18415_v14  ;;  %v18618_v31 = vrot.slane %v8344_v43, 4  ;;  %v18637_v4 = vmul.f32 -0.48860252, %v18409_v45 }
 0x606   : > { %v7724_v60 = vpop.f32.mrb[151].mxu0  ;;  %v9424_v24 = vadd.f32 %v9410_v20, %v18530_v54  ;;  %v9409_v39 = vmul.f32 %v9393_v47, %v18487_v13  ;;  %v9496_v11 = vadd.f32 %v9482_v25, %v9474_v46  ;;  %v9481_v12 = vmul.f32 %v9393_v47, %v18547_v10 }
 0x607   : > { %8098 = vxpose.xlu0.b32.cont [6/16] (narrow) %v7720_v27, 48  ;;  %v7725_v27 = vadd.f32 %v18320_v7, %v7724_v60  ;;  %v9568_v48 = vadd.f32 %v9554_v63, %v9546_v22  ;;  %v9553_v29 = vmul.f32 %v9393_v47, %v7954_v26  ;;  %v7730_v2 = vadd.f32 %v18320_v7, %v11188_v40 }
 0x608   : > { %v9425_v35 = vrot.slane %v9424_v24, 4  ;;  %v9417_v32 = vadd.f32 %v9409_v39, %v18550_v28  ;;  %v9497_v38 = vrot.slane %v9496_v11, 4  ;;  %v9489_v54 = vadd.f32 %v9481_v12, %v9473_v58 }
 0x609   : > { %8068 = vxpose.xlu1.b32.cont [8/16] (narrow) %v18382_v57, 48  ;;  %v9569_v13 = vrot.slane %v9568_v48, 4  ;;  %v9561_v46 = vadd.f32 %v9553_v29, %v9545_v0  ;;  %v18627_v9 = vmul.f32 %v18618_v31, %v18409_v45  ;;  %v18633_v28 = vmul.f32 0.48860252, %v18425_v53 }
 0x60a   : > { %v9426_v49 = vadd.f32 %v9425_v35, %v9424_v24  ;;  %v9418_v10 = vrot.slane %v9417_v32, 4  ;;  %v9498_v16 = vadd.f32 %v9497_v38, %v9496_v11  ;;  %v9490_v51 = vrot.slane %v9489_v54, 4 }
 0x60b   : > { %8099 = vxpose.xlu0.b32.cont [7/16] (narrow) %v7725_v27, 48  ;;  %v9570_v57 = vadd.f32 %v9569_v13, %v9568_v48  ;;  %v9562_v22 = vrot.slane %v9561_v46, 4  ;;  %v18640_v6 = vmul.f32 1.0925485, %v18611_v8  ;;  %v8379_v11 = vmul.f32 2.0, %v18608_v62 }
 0x60c   : > { %v9427_v15 = vrot.slane %v9426_v49, 2  ;;  %v9419_v58 = vadd.f32 %v9418_v10, %v9417_v32  ;;  %v9499_v0 = vrot.slane %v9498_v16, 2  ;;  %v9491_v50 = vadd.f32 %v9490_v51, %v9489_v54 }
 0x60d   : > { %8069 = vxpose.xlu1.b32.cont [9/16] (narrow) %v18400_v55, 48  ;;  %v11191_v17 = vpop.f32.mrb[152].mxu0  ;;  %v9571_v23 = vrot.slane %v9570_v57, 2  ;;  %v9563_v30 = vadd.f32 %v9562_v22, %v9561_v46  ;;  %v8387_v29 = vrot.slane %v18467_v3, 6  ;;  %v8403_v38 = vrot.slane %v18594_v44, 7 }
 0x60e   : > { %v9428_v43 = vadd.f32 %v9427_v15, %v9426_v49  ;;  %v9420_v20 = vrot.slane %v9419_v58, 2  ;;  %v7740_v36 = vadd.f32 %v18320_v7, %v11191_v17  ;;  %v7734_v25 = vpop.f32.mrb[153].mxu0  ;;  %v9500_v63 = vadd.f32 %v9499_v0, %v9498_v16 }
 0x60f   : > { %8100 = vxpose.xlu0.b32.cont [8/16] (narrow) %v7730_v2, 48  ;;  %v7735_v55 = vadd.f32 %v18320_v7, %v7734_v25  ;;  %v9492_v26 = vrot.slane %v9491_v50, 2  ;;  %v9572_v40 = vadd.f32 %v9571_v23, %v9570_v57  ;;  %v9564_v47 = vrot.slane %v9563_v30, 2 }
 0x610   : > { %v9429_v60 = vrot.slane %v9428_v43, 1  ;;  %v9421_v24 = vadd.f32 %v9420_v20, %v9419_v58  ;;  %v9501_v39 = vrot.slane %v9500_v63, 1  ;;  %v8395_v49 = vsub.f32 %v8379_v11, %v8387_v29 }
 0x611   : > { %8070 = vxpose.xlu1.b32.cont [10/16] (narrow) %v18389_v41, 48  ;;  %v9493_v27 = vadd.f32 %v9492_v26, %v9491_v50  ;;  %v9573_v12 = vrot.slane %v9572_v40, 1  ;;  %v9565_v48 = vadd.f32 %v9564_v47, %v9563_v30  ;;  %v18651_v16 = vmul.f32 -1.0925485, %v18614_v19 }
 0x612   : > { %v9430_v2 = vadd.f32 %v9429_v60, %v9428_v43  ;;  %v9422_v35 = vrot.slane %v9421_v24, 1  ;;  %v9502_v32 = vadd.f32 %v9501_v39, %v9500_v63  ;;  %v18654_v51 = vmul.f32 3.0, %v18467_v3 }
 0x613   : > { %8101 = vxpose.xlu0.b32.cont [9/16] (narrow) %v7735_v55, 48  ;;  %v9494_v54 = vrot.slane %v9493_v27, 1  ;;  %v9574_v13 = vadd.f32 %v9573_v12, %v9572_v40  ;;  %v9566_v46 = vrot.slane %v9565_v48, 1  ;;  %v8411_v0 = vsub.f32 %v8395_v49, %v8403_v38 }
 0x614   : > { %v9423_v10 = vadd.f32 %v9422_v35, %v9421_v24  ;;  %v9618_v41 = vsel %vm9282_vm2, %v9430_v2, %v9502_v32  ;;  %v7675_v17 = vadd.f32 %v18320_v7, %v18391_v33  ;;  %v8483_v19 = vmul.f32 4.0, %v18608_v62 }
 0x615   : > { %8071 = vxpose.xlu1.b32.cont [11/16] (narrow) %v18406_v21, 48  ;;  %v9495_v57 = vadd.f32 %v9494_v54, %v9493_v27  ;;  %v11194_v22 = vpop.f32.mrb[154].mxu0  ;;  %v9626_v15 = vsel %vm9291_vm3, %v9618_v41, %v9574_v13  ;;  %v9567_v58 = vadd.f32 %v9566_v46, %v9565_v48  ;;  %v8471_v21 = vmul.f32 2.8906114, %v18611_v8 }
 0x616   : > { %v7744_v50 = vpop.f32.mrb[155].mxu0  ;;  %v10218_v23 = vmul.f32 -1.442695, %v9626_v15  ;;  %v18664_v20 = vmul.f32 -1.0925485, %v18627_v9  ;;  %v8487_v63 = vsub.f32 %v8483_v19, %v8387_v29  ;;  %v8637_v55 = vrot.slane %v18630_v37, %v18347_v59 }
 0x617   : > { %8102 = vxpose.xlu0.b32.cont [10/16] (narrow) %v7740_v36, 48  ;;  %v9617_v30 = vsel %vm9282_vm2, %v9423_v10, %v9495_v57  ;;  %v7745_v43 = vadd.f32 %v18320_v7, %v7744_v50  ;;  %v8523_v36 = vrot.slane %v18654_v51, 6  ;;  %v18669_v25 = vmul.f32 0.31539157, %v8411_v0  ;;  %v20681_v57 = vld [vmem:[#allocation126_spill] sm:$0xff] }
 0x618   : > { %11844 = vpow2.f32 %v10218_v23  ;;  %v9625_v33 = vsel %vm9291_vm3, %v9617_v30, %v9567_v58  ;;  %v18672_v62 = vmul.f32 %v8471_v21, %v18618_v31  ;;  %v8681_v9 = vrot.slane %v18633_v28, %v18350_v1 }
 0x619   : > { %8072 = vxpose.xlu1.b32.cont [12/16] (narrow) %v18403_v5, 48  ;;  %v10217_v8 = vmul.f32 -1.442695, %v9625_v33  ;;  %v18680_v5 = vadd.f32 %v18320_v7, %v18431_v56  ;;  %v7685_v26 = vadd.f32 %v18320_v7, %v18444_v61  ;;  %v8491_v40 = vsub.f32 %v8487_v63, %v8403_v38 }
 0x61a   : > { %v8725_v47 = vrot.slane %v18637_v4, %v18337_v18  ;;  %v7750_v31 = vadd.f32 %v18320_v7, %v11194_v22  ;;  %v8531_v60 = vsub.f32 %v8379_v11, %v8523_v36  ;;  %v8769_v24 = vrot.slane %v18640_v6, %v18337_v18 }
 0x61b   : > { %8103 = vxpose.xlu0.b32.cont [11/16] (narrow) %v7745_v43, 48  ;;  %11846 = vpow2.f32 %v10217_v8  ;;  %v8813_v39 = vrot.slane %v18651_v16, %v18347_v59  ;;  %v8857_v56 = vrot.slane %v18669_v25, %v18350_v1  ;;  %v9285_v61 = vsel %vm9282_vm2, 0.2820948, %v8637_v55 }
 0x61c   : > { %v8424_v27 = vrot.slane %v18594_v44, 5  ;;  %v10206_v48 = vrot.slane %v8491_v40, 9  ;;  %v8901_v11 = vrot.slane %v18664_v20, %v18337_v18  ;;  %v9033_v29 = vrot.slane %v18672_v62, %v18337_v18 }
 0x61d   : > { %8073 = vxpose.xlu1.b32.cont [13/16] (narrow) %v7675_v17, 48  ;;  %v11197_v12 = vpop.f32.mrb[156].mxu0  ;;  %v9294_v2 = vsel %vm9291_vm3, %v9285_v61, %v8681_v9  ;;  %v8443_v54 = vmul.f32 -0.5900436, %v18415_v14  ;;  %v8479_v13 = vmul.f32 -0.4570458, %v18415_v14  ;;  %v9037_v14 = vrot.slane %v18672_v62, %v18340_v34 }
 0x61e   : > { %v7754_v35 = vpop.f32.mrb[157].mxu0  ;;  %v9303_v32 = vsel %vm9300_vm4, %v9294_v2, %v8725_v47  ;;  %v8425_v38 = vrot.slane %v8424_v27, 4  ;;  %v8515_v10 = vmul.f32 0.37317634, %v18425_v53  ;;  %v8535_v41 = vmul.f32 3.0, %v18594_v44 }
 0x61f   : > { %8104 = vxpose.xlu0.b32.cont [12/16] (narrow) %v7750_v31, 48  ;;  %v7755_v46 = vadd.f32 %v18320_v7, %v7754_v35  ;;  %v9312_v49 = vsel %vm9309_vm5, %v9303_v32, %v8769_v24  ;;  %v8559_v0 = vmul.f32 -0.4570458, %v18409_v45  ;;  %v10210_v50 = vrot.slane %v8491_v40, 10 }
 0x620   : > { %v9321_v22 = vsel %vm9318_vm6, %v9312_v49, %v8813_v39  ;;  %v8435_v15 = vsub.f32 %v18467_v3, %v8425_v38  ;;  %v8451_v58 = vsub.f32 %v18654_v51, %v8425_v38  ;;  %v8543_v17 = vrot.slane %v8535_v41, 7 }
 0x621   : > { %8074 = vxpose.xlu1.b32.cont [14/16] (narrow) %v20681_v57, 48  ;;  %v8579_v23 = vmul.f32 1.4453057, %v18425_v53  ;;  %v7760_v44 = vadd.f32 %v18320_v7, %v11197_v12  ;;  %v9330_v51 = vsel %vm9327_vm7, %v9321_v22, %v8857_v56  ;;  %v18719_v63 = vmul.f32 %v10206_v48, %v8479_v13 }
 0x622   : > { %v11845_v21 = vpop.eup %11844  ;;  %v18716_v30 = vmul.f32 0.54627424, %v8435_v15  ;;  %v8459_v43 = vrot.slane %v8451_v58, 7  ;;  %v8587_v36 = vrot.slane %v8435_v15, 6  ;;  %v8551_v8 = vsub.f32 %v8531_v60, %v8543_v17 }
 0x623   : > { %8105 = vxpose.xlu0.b32.cont [13/16] (narrow) %v7755_v46, 48  ;;  %v9658_v33 = vadd.f32 1.0, %v11845_v21  ;;  %v18723_v9 = vmul.f32 %v10210_v50, %v8559_v0  ;;  %v8599_v53 = vmul.f32 -0.5900436, %v18409_v45  ;;  %v10214_v40 = vrot.slane %v8535_v41, 9 }
 0x624   : > { %v8013_v19 = vpop.trf.xlu0  ;;  %v18721_v55 = vmul.f32 %v8459_v43, %v8443_v54  ;;  %v18726_v24 = vmul.f32 %v8551_v8, %v8515_v10  ;;  %v18728_v39 = vmul.f32 %v8587_v36, %v8579_v23  ;;  %v8945_v56 = vrot.slane %v18716_v30, %v18337_v18 }
 0x625   : > { %8075 = vxpose.xlu1.b32.cont [15/16] (narrow) %v7685_v26, 48  ;;  %v11847_v47 = vpop.eup %11846  ;;  %v11200_v31 = vpop.f32.mrb[158].mxu0  ;;  %v8641_v26 = vrot.slane %v18630_v37, %v18331_v52  ;;  %11848 = vrcp.f32 %v9658_v33  ;;  %v8615_v45 = vsub.f32 %v18467_v3, %v10214_v40  ;;  %v18738_v48 = vsel %vm9336_vm8, %v9330_v51, %v8901_v11 }
 0x626   : > { %v9657_v60 = vadd.f32 1.0, %v11847_v47  ;;  %v7764_v61 = vpop.f32.mrb[159].mxu0  ;;  %v8989_v12 = vrot.slane %v18721_v55, %v18347_v59  ;;  %v9077_v35 = vrot.slane %v18719_v63, %v18347_v59  ;;  %v9121_v37 = vrot.slane %v18726_v24, %v18350_v1  ;;  %v20682_v47 = vld [vmem:[#allocation82_spill] sm:$0xff] }
 0x627   : > { %8106 = vxpose.xlu0.b32.cont [14/16] (narrow) %v7760_v44, 48  ;;  %v7765_v2 = vadd.f32 %v18320_v7, %v7764_v61  ;;  %v18745_v32 = vmul.f32 %v8615_v45, %v8599_v53  ;;  %v9165_v3 = vrot.slane %v18723_v9, %v18337_v18  ;;  %v9209_v11 = vrot.slane %v18728_v39, %v18350_v1 }
 0x628   : > { %v8014_v27 = vpop.trf.xlu0  ;;  %11850 = vrcp.f32 %v9657_v60  ;;  %v9347_v38 = vsel %vm9282_vm2, %v8945_v56, %v8989_v12  ;;  %v8685_v13 = vrot.slane %v18633_v28, %v18334_v42  ;;  %v8729_v46 = vrot.slane %v18637_v4, %v18340_v34 }
 0x629   : > { %8076 = vxpose.xlu1.b32.end [16/16] (narrow) %v18680_v5, 48  ;;  %v9355_v54 = vsel %vm9291_vm3, %v9347_v38, %v9033_v29  ;;  %v9403_v49 = vmul.f32 %v18738_v48, %v8013_v19  ;;  %v9253_v10 = vrot.slane %v18745_v32, %v18337_v18  ;;  %v8773_v57 = vrot.slane %v18640_v6, %v18340_v34 }
 0x62a   : > { %v9363_v41 = vsel %vm9300_vm4, %v9355_v54, %v9077_v35  ;;  %v7770_v29 = vadd.f32 %v18320_v7, %v11200_v31  ;;  %v8817_v28 = vrot.slane %v18651_v16, %v18331_v52  ;;  %v9286_v4 = vsel %vm9282_vm2, 0.2820948, %v8641_v26 }
 0x62b   : > { %8107 = vxpose.xlu0.b32.cont [15/16] (narrow) %v7765_v2, 48  ;;  %v9371_v22 = vsel %vm9309_vm5, %v9363_v41, %v9121_v37  ;;  %v8949_v15 = vrot.slane %v18716_v30, %v18340_v34  ;;  %v9295_v17 = vsel %vm9291_vm3, %v9286_v4, %v8685_v13  ;;  %v8993_v6 = vrot.slane %v18721_v55, %v18331_v52 }
 0x62c   : > { %v8015_v5 = vpop.trf.xlu0  ;;  %v9379_v58 = vsel %vm9318_vm6, %v9371_v22, %v9165_v3  ;;  %v8861_v16 = vrot.slane %v18669_v25, %v18334_v42  ;;  %v9304_v21 = vsel %vm9300_vm4, %v9295_v17, %v8729_v46  ;;  %v9081_v33 = vrot.slane %v18719_v63, %v18331_v52 }
 0x62d   : > { %v8045_v0 = vpop.trf.xlu1  ;;  %v9387_v50 = vsel %vm9327_vm7, %v9379_v58, %v9209_v11  ;;  %v9475_v23 = vmul.f32 %v18738_v48, %v8015_v5  ;;  %v11203_v44 = vpop.f32.mrb[160].mxu0  ;;  %v9313_v30 = vsel %vm9309_vm5, %v9304_v21, %v8773_v57  ;;  %v9125_v51 = vrot.slane %v18726_v24, %v18334_v42 }
 0x62e   : > { %v9395_v19 = vsel %vm9336_vm8, %v9387_v50, %v9253_v10  ;;  %v7774_v43 = vpop.f32.mrb[161].mxu0  ;;  %v9322_v25 = vsel %vm9318_vm6, %v9313_v30, %v8817_v28  ;;  %v20683_v31 = vmax.f32 %v20682_v47, 1e-24  ;;  %v8905_v56 = vrot.slane %v18664_v20, %v18340_v34 }
 0x62f   : > { %8108 = vxpose.xlu0.b32.end [16/16] (narrow) %v7770_v29, 48  ;;  %v9411_v8 = vmul.f32 %v9395_v19, %v8014_v27  ;;  %v7775_v55 = vadd.f32 %v18320_v7, %v7774_v43  ;;  %v11849_v40 = vpop.eup %11848  ;;  %v9169_v63 = vrot.slane %v18723_v9, %v18340_v34  ;;  %v9348_v24 = vsel %vm9282_vm2, %v8949_v15, %v8993_v6 }
 0x630   : > { %v8016_v36 = vpop.trf.xlu0  ;;  %11852 = vrsqrt.f32 %v20683_v31  ;;  %v9213_v27 = vrot.slane %v18728_v39, %v18334_v42  ;;  %v9356_v45 = vsel %vm9291_vm3, %v9348_v24, %v9037_v14  ;;  %v9331_v20 = vsel %vm9327_vm7, %v9322_v25, %v8861_v16 }
 0x631   : > { %v9483_v53 = vmul.f32 %v9395_v19, %v8016_v36  ;;  %v8046_v26 = vpop.trf.xlu1  ;;  %v9431_v60 = vadd.f32 %v9411_v8, %v9403_v49  ;;  %8125 = vxpose.xlu1.b32.start [1/16] (narrow) %v7775_v55, 48  ;;  %v7780_v2 = vadd.f32 %v18320_v7, %v11203_v44  ;;  %v9257_v9 = vrot.slane %v18745_v32, %v18340_v34 }
 0x632   : > { %v11851_v12 = vpop.eup %11850  ;;  %v9364_v35 = vsel %vm9300_vm4, %v9356_v45, %v9081_v33  ;;  %v9340_v49 = vsel %vm9336_vm8, %v9331_v20, %v8905_v56  ;;  %v20684_v20 = vld [vmem:[#allocation124_spill] sm:$0xff] }
 0x633   : > { %v9503_v61 = vadd.f32 %v9483_v53, %v9475_v23  ;;  %v9689_v3 = vcombine.low %v11851_v12, %v11849_v40  ;;  %v9432_v38 = vrot.slane %v9431_v60, 4  ;;  %v9372_v11 = vsel %vm9309_vm5, %v9364_v35, %v9125_v51  ;;  %v18826_v35 = vld [vmem:[%s19169_s8] ss:$0 sm:$0xff] }
 0x634   : > { %v8017_v37 = vpop.trf.xlu0  ;;  %v9380_v62 = vsel %vm9318_vm6, %v9372_v11, %v9169_v63  ;;  %v9404_v57 = vmul.f32 %v9340_v49, %v8045_v0 }
 0x635   : > { %v9504_v39 = vrot.slane %v9503_v61, 4  ;;  %v8047_v14 = vpop.trf.xlu1  ;;  %9697 = vst [vmem:[%s18810_s22] sm:$0x77] %v9689_v3  ;;  %v9433_v54 = vadd.f32 %v9432_v38, %v9431_v60  ;;  %v9388_v46 = vsel %vm9327_vm7, %v9380_v62, %v9213_v27  ;;  %8126 = vxpose.xlu1.b32.cont [2/16] (narrow) %v7780_v2, 48  ;;  %v11206_v32 = vpop.f32.mrb[162].mxu0  ;;  %v9547_v4 = vmul.f32 %v18738_v48, %v8017_v37 }
 0x636   : > { %v9396_v10 = vsel %vm9336_vm8, %v9388_v46, %v9257_v9  ;;  %v7784_v41 = vpop.f32.mrb[163].mxu0  ;;  %v9476_v50 = vmul.f32 %v9340_v49, %v8047_v14  ;;  %v7790_v43 = vadd.f32 %v18320_v7, %v11206_v32 }
 0x637   : > { %v9505_v13 = vadd.f32 %v9504_v39, %v9503_v61  ;;  %v9412_v22 = vmul.f32 %v9396_v10, %v8046_v26  ;;  %v7785_v28 = vadd.f32 %v18320_v7, %v7784_v41  ;;  %v9434_v17 = vrot.slane %v9433_v54, 2 }
 0x638   : > { %v8018_v5 = vpop.trf.xlu0 }
 0x639   : > { %v9506_v29 = vrot.slane %v9505_v13, 2  ;;  %v9555_v15 = vmul.f32 %v9395_v19, %v8018_v5  ;;  %v8048_v58 = vpop.trf.xlu1  ;;  %v9438_v6 = vadd.f32 %v9412_v22, %v9404_v57  ;;  %8127 = vxpose.xlu1.b32.cont [3/16] (narrow) %v7785_v28, 48  ;;  %v9435_v51 = vadd.f32 %v9434_v17, %v9433_v54 }
 0x63a   : > { %v9484_v23 = vmul.f32 %v9396_v10, %v8048_v58  ;;  %v11853_v16 = vpop.eup %11852 }
 0x63b   : > { %v9575_v21 = vadd.f32 %v9555_v15, %v9547_v4  ;;  %v9507_v44 = vadd.f32 %v9506_v29, %v9505_v13  ;;  %v9439_v30 = vrot.slane %v9438_v6, 4  ;;  %v8268_v53 = vrot.slane %v11853_v16, 7 }
 0x63c   : > { %v9510_v0 = vadd.f32 %v9484_v23, %v9476_v50  ;;  %v8280_v56 = vrot.slane %v11853_v16, 6  ;;  %v9436_v24 = vrot.slane %v9435_v51, 1  ;;  %v18830_v3 = vmul.f32 %v11853_v16, %v20684_v20 }
 0x63d   : > { %v9576_v36 = vrot.slane %v9575_v21, 4  ;;  %v8049_v33 = vpop.trf.xlu1  ;;  %8128 = vxpose.xlu1.b32.cont [4/16] (narrow) %v7790_v43, 48  ;;  %v11209_v48 = vpop.f32.mrb[164].mxu0  ;;  %v9440_v19 = vadd.f32 %v9439_v30, %v9438_v6  ;;  %v9508_v40 = vrot.slane %v9507_v44, 1  ;;  %v18821_v2 = vmul.f32 %v8268_v53, %v20684_v20 }
 0x63e   : > { %v9511_v8 = vrot.slane %v9510_v0, 4  ;;  %v7794_v55 = vpop.f32.mrb[165].mxu0  ;;  %v9548_v61 = vmul.f32 %v9340_v49, %v8049_v33  ;;  %v18833_v11 = vmul.f32 %v8280_v56, %v20684_v20  ;;  %v9437_v62 = vadd.f32 %v9436_v24, %v9435_v51 }
 0x63f   : > { %v9577_v25 = vadd.f32 %v9576_v36, %v9575_v21  ;;  %v7795_v31 = vadd.f32 %v18320_v7, %v7794_v55  ;;  %v9441_v45 = vrot.slane %v9440_v19, 2  ;;  %v9509_v9 = vadd.f32 %v9508_v40, %v9507_v44 }
 0x640   : > { %v9512_v47 = vadd.f32 %v9511_v8, %v9510_v0  ;;  %v7800_v7 = vadd.f32 %v18826_v35, %v11209_v48  ;;  %v18839_v5 = vmul.f32 %v18821_v2, %v18821_v2  ;;  %v18844_v22 = vmul.f32 %v18830_v3, %v18830_v3 }
 0x641   : > { %v9578_v26 = vrot.slane %v9577_v25, 2  ;;  %v8050_v63 = vpop.trf.xlu1  ;;  %8129 = vxpose.xlu1.b32.cont [5/16] (narrow) %v7795_v31, 48  ;;  %v9442_v13 = vadd.f32 %v9441_v45, %v9440_v19  ;;  %v9619_v49 = vsel %vm9282_vm2, %v9437_v62, %v9509_v9  ;;  %v8300_v4 = vmul.f32 %v18833_v11, %v18833_v11 }
 0x642   : > { %v9513_v60 = vrot.slane %v9512_v47, 2  ;;  %v9556_v27 = vmul.f32 %v9396_v10, %v8050_v63  ;;  %v8426_v50 = vrot.slane %v18839_v5, 5  ;;  %v8448_v16 = vmul.f32 3.0, %v18844_v22 }
 0x643   : > { %v9579_v12 = vadd.f32 %v9578_v26, %v9577_v25  ;;  %v9443_v15 = vrot.slane %v9442_v13, 1  ;;  %v8388_v30 = vrot.slane %v18844_v22, 6  ;;  %v8484_v43 = vmul.f32 4.0, %v8300_v4 }
 0x644   : > { %v9582_v37 = vadd.f32 %v9556_v27, %v9548_v61  ;;  %v9514_v39 = vadd.f32 %v9513_v60, %v9512_v47  ;;  %v8427_v0 = vrot.slane %v8426_v50, 4  ;;  %v10199_v51 = vrot.slane %v18821_v2, 9 }
 0x645   : > { %v9580_v38 = vrot.slane %v9579_v12, 1  ;;  %8130 = vxpose.xlu1.b32.cont [6/16] (narrow) %v7800_v7, 48  ;;  %v11212_v54 = vpop.f32.mrb[166].mxu0  ;;  %v9444_v36 = vadd.f32 %v9443_v15, %v9442_v13  ;;  %v8404_v53 = vrot.slane %v18839_v5, 7  ;;  %v8488_v40 = vsub.f32 %v8484_v43, %v8388_v30 }
 0x646   : > { %v9583_v14 = vrot.slane %v9582_v37, 4  ;;  %v7804_v32 = vpop.f32.mrb[167].mxu0  ;;  %v9515_v29 = vrot.slane %v9514_v39, 1  ;;  %v7810_v6 = vadd.f32 %v18826_v35, %v11212_v54  ;;  %v8452_v25 = vsub.f32 %v8448_v16, %v8427_v0 }
 0x647   : > { %v9581_v46 = vadd.f32 %v9580_v38, %v9579_v12  ;;  %v7805_v41 = vadd.f32 %v18826_v35, %v7804_v32  ;;  %v8320_v31 = vmul.f32 %v10199_v51, %v18830_v3  ;;  %v8346_v56 = vrot.slane %v18833_v11, 6 }
 0x648   : > { %v9584_v10 = vadd.f32 %v9583_v14, %v9582_v37  ;;  %v9516_v23 = vadd.f32 %v9515_v29, %v9514_v39  ;;  %v18861_v63 = vsub.f32 %v18844_v22, %v8427_v0  ;;  %v8444_v24 = vmul.f32 -0.5900436, %v18821_v2 }
 0x649   : > { %v9627_v57 = vsel %vm9291_vm3, %v9619_v49, %v9581_v46  ;;  %8131 = vxpose.xlu1.b32.cont [7/16] (narrow) %v7805_v41, 48  ;;  %v8460_v60 = vrot.slane %v8452_v25, 7  ;;  %v8380_v61 = vmul.f32 2.0, %v8300_v4  ;;  %v8524_v27 = vrot.slane %v8448_v16, 6 }
 0x64a   : > { %v9585_v28 = vrot.slane %v9584_v10, 2  ;;  %v10219_v58 = vmul.f32 -1.442695, %v9627_v57  ;;  %v9620_v19 = vsel %vm9282_vm2, %v9444_v36, %v9516_v23  ;;  %v18865_v45 = vmul.f32 3.0, %v18839_v5 }
 0x64b   : > { %v10203_v20 = vrot.slane %v18833_v11, 9  ;;  %v8492_v9 = vsub.f32 %v8488_v40, %v8404_v53  ;;  %v8347_v37 = vrot.slane %v8346_v56, 4  ;;  %v8472_v38 = vmul.f32 2.8906114, %v8320_v31 }
 0x64c   : > { %v9586_v17 = vadd.f32 %v9585_v28, %v9584_v10  ;;  %11854 = vpow2.f32 %v10219_v58  ;;  %v8440_v62 = vmul.f32 0.54627424, %v18861_v63  ;;  %v8468_v14 = vmul.f32 %v8460_v60, %v8444_v24 }
 0x64d   : > { %8132 = vxpose.xlu1.b32.cont [8/16] (narrow) %v7810_v6, 48  ;;  %v11215_v44 = vpop.f32.mrb[168].mxu0  ;;  %v8532_v54 = vsub.f32 %v8380_v61, %v8524_v27  ;;  %v8544_v13 = vrot.slane %v18865_v45, 7  ;;  %v8340_v32 = vmul.f32 %v10203_v20, %v18821_v2  ;;  %v8360_v49 = vmul.f32 -0.48860252, %v18821_v2 }
 0x64e   : > { %v9587_v21 = vrot.slane %v9586_v17, 1  ;;  %v7814_v33 = vpop.f32.mrb[169].mxu0  ;;  %v7820_v26 = vadd.f32 %v18826_v35, %v11215_v44  ;;  %v10207_v10 = vrot.slane %v8492_v9, 9  ;;  %v8480_v41 = vmul.f32 -0.4570458, %v18821_v2 }
 0x64f   : > { %v7815_v48 = vadd.f32 %v18826_v35, %v7814_v33  ;;  %v18877_v57 = vmul.f32 0.48860252, %v18833_v11  ;;  %v8476_v29 = vmul.f32 %v8472_v38, %v8347_v37  ;;  %v18881_v4 = vmul.f32 -0.48860252, %v18830_v3 }
 0x650   : > { %v9588_v8 = vadd.f32 %v9587_v21, %v9586_v17  ;;  %v8953_v15 = vrot.slane %v8440_v62, %v18337_v18  ;;  %v8997_v58 = vrot.slane %v8468_v14, %v18347_v59  ;;  %v18885_v6 = vmul.f32 1.0925485, %v8320_v31 }
 0x651   : > { %8133 = vxpose.xlu1.b32.cont [9/16] (narrow) %v7815_v48, 48  ;;  %v8516_v50 = vmul.f32 0.37317634, %v18833_v11  ;;  %v8552_v23 = vsub.f32 %v8532_v54, %v8544_v13  ;;  %v18889_v16 = vmul.f32 %v8347_v37, %v18830_v3  ;;  %v18891_v21 = vmul.f32 -1.0925485, %v8340_v32 }
 0x652   : > { %v9628_v55 = vsel %vm9291_vm3, %v9620_v19, %v9588_v8  ;;  %v8645_v44 = vrot.slane %v8360_v49, %v18347_v59  ;;  %v8512_v43 = vmul.f32 %v10207_v10, %v8480_v41  ;;  %v8396_v33 = vsub.f32 %v8380_v61, %v8388_v30 }
 0x653   : > { %v10220_v47 = vmul.f32 -1.442695, %v9628_v55  ;;  %v8689_v51 = vrot.slane %v18877_v57, %v18350_v1  ;;  %v9041_v8 = vrot.slane %v8476_v29, %v18337_v18  ;;  %v8560_v48 = vmul.f32 -0.4570458, %v18830_v3 }
 0x654   : > { %v10211_v55 = vrot.slane %v8492_v9, 10  ;;  %v9349_v40 = vsel %vm9282_vm2, %v8953_v15, %v8997_v58  ;;  %v8957_v31 = vrot.slane %v8440_v62, %v18340_v34  ;;  %v9001_v30 = vrot.slane %v8468_v14, %v18331_v52 }
 0x655   : > { %11856 = vpow2.f32 %v10220_v47  ;;  %8134 = vxpose.xlu1.b32.cont [10/16] (narrow) %v7820_v26, 48  ;;  %v11218_v12 = vpop.f32.mrb[170].mxu0  ;;  %v18900_v47 = vmul.f32 %v8552_v23, %v8516_v50  ;;  %v9287_v56 = vsel %vm9282_vm2, 0.2820948, %v8645_v44  ;;  %v10215_v26 = vrot.slane %v18865_v45, 9 }
 0x656   : > { %v7824_v7 = vpop.f32.mrb[171].mxu0  ;;  %v11855_v46 = vpop.eup %11854  ;;  %v7830_v28 = vadd.f32 %v18826_v35, %v11218_v12  ;;  %v9085_v24 = vrot.slane %v8512_v43, %v18347_v59  ;;  %v8580_v60 = vmul.f32 1.4453057, %v18833_v11  ;;  %v8588_v61 = vrot.slane %v18861_v63, 6 }
 0x657   : > { %v7825_v39 = vadd.f32 %v18826_v35, %v7824_v7  ;;  %v9659_v17 = vadd.f32 1.0, %v11855_v46  ;;  %v9357_v27 = vsel %vm9291_vm3, %v9349_v40, %v9041_v8  ;;  %v8649_v12 = vrot.slane %v8360_v49, %v18331_v52 }
 0x658   : > { %v8733_v9 = vrot.slane %v18881_v4, %v18337_v18  ;;  %v9045_v7 = vrot.slane %v8476_v29, %v18340_v34  ;;  %v8576_v37 = vmul.f32 %v10211_v55, %v8560_v48  ;;  %v8412_v45 = vsub.f32 %v8396_v33, %v8404_v53 }
 0x659   : > { %8135 = vxpose.xlu1.b32.cont [11/16] (narrow) %v7825_v39, 48  ;;  %11858 = vrcp.f32 %v9659_v17  ;;  %v9296_v38 = vsel %vm9291_vm3, %v9287_v56, %v8689_v51  ;;  %v9129_v11 = vrot.slane %v18900_v47, %v18350_v1  ;;  %v9350_v63 = vsel %vm9282_vm2, %v8957_v31, %v9001_v30 }
 0x65a   : > { %v8600_v62 = vmul.f32 -0.5900436, %v18830_v3  ;;  %v8616_v14 = vsub.f32 %v18844_v22, %v10215_v26  ;;  %v9365_v54 = vsel %vm9300_vm4, %v9357_v27, %v9085_v24  ;;  %v8693_v13 = vrot.slane %v18877_v57, %v18334_v42 }
 0x65b   : > { %v8777_v53 = vrot.slane %v18885_v6, %v18337_v18  ;;  %v8596_v46 = vmul.f32 %v8588_v61, %v8580_v60  ;;  %v9288_v32 = vsel %vm9282_vm2, 0.2820948, %v8649_v12  ;;  %v9089_v49 = vrot.slane %v8512_v43, %v18331_v52 }
 0x65c   : > { %v9305_v3 = vsel %vm9300_vm4, %v9296_v38, %v8733_v9  ;;  %v9173_v22 = vrot.slane %v8576_v37, %v18337_v18  ;;  %v9358_v41 = vsel %vm9291_vm3, %v9350_v63, %v9045_v7  ;;  %v8416_v29 = vmul.f32 0.31539157, %v8412_v45 }
 0x65d   : > { %8136 = vxpose.xlu1.b32.cont [12/16] (narrow) %v7830_v28, 48  ;;  %v11221_v2 = vpop.f32.mrb[172].mxu0  ;;  %v9373_v57 = vsel %vm9309_vm5, %v9365_v54, %v9129_v11  ;;  %v8737_v28 = vrot.slane %v18881_v4, %v18340_v34  ;;  %v8821_v15 = vrot.slane %v18891_v21, %v18347_v59  ;;  %v8620_v58 = vmul.f32 %v8616_v14, %v8600_v62 }
 0x65e   : > { %v7834_v36 = vpop.f32.mrb[173].mxu0  ;;  %v7840_v20 = vadd.f32 %v18826_v35, %v11221_v2  ;;  %v9297_v17 = vsel %vm9291_vm3, %v9288_v32, %v8693_v13  ;;  %v9133_v50 = vrot.slane %v18900_v47, %v18334_v42  ;;  %v9314_v2 = vsel %vm9309_vm5, %v9305_v3, %v8777_v53 }
 0x65f   : > { %v11857_v0 = vpop.eup %11856  ;;  %v7835_v25 = vadd.f32 %v18826_v35, %v7834_v36  ;;  %v9217_v44 = vrot.slane %v8596_v46, %v18350_v1  ;;  %v9366_v43 = vsel %vm9300_vm4, %v9358_v41, %v9089_v49  ;;  %v8420_v36 = vmul.f32 -1.0925485, %v18889_v16 }
 0x660   : > { %v9660_v19 = vadd.f32 1.0, %v11857_v0  ;;  %v9381_v33 = vsel %vm9318_vm6, %v9373_v57, %v9173_v22  ;;  %v8781_v51 = vrot.slane %v18885_v6, %v18340_v34  ;;  %v9177_v55 = vrot.slane %v8576_v37, %v18340_v34 }
 0x661   : > { %8137 = vxpose.xlu1.b32.cont [13/16] (narrow) %v7835_v25, 48  ;;  %v9306_v25 = vsel %vm9300_vm4, %v9297_v17, %v8737_v28  ;;  %v9323_v40 = vsel %vm9318_vm6, %v9314_v2, %v8821_v15  ;;  %v9261_v31 = vrot.slane %v8620_v58, %v18337_v18  ;;  %v9374_v16 = vsel %vm9309_vm5, %v9366_v43, %v9133_v50 }
 0x662   : > { %11860 = vrcp.f32 %v9660_v19  ;;  %v8865_v19 = vrot.slane %v8416_v29, %v18350_v1  ;;  %v9389_v6 = vsel %vm9327_vm7, %v9381_v33, %v9217_v44  ;;  %v8825_v56 = vrot.slane %v18891_v21, %v18331_v52 }
 0x663   : > { %v11859_v23 = vpop.eup %11858  ;;  %v8909_v26 = vrot.slane %v8420_v36, %v18337_v18  ;;  %v9315_v60 = vsel %vm9309_vm5, %v9306_v25, %v8781_v51  ;;  %v9221_v61 = vrot.slane %v8596_v46, %v18334_v42  ;;  %v9397_v9 = vsel %vm9336_vm8, %v9389_v6, %v9261_v31 }
 0x664   : > { %v9332_v27 = vsel %vm9327_vm7, %v9323_v40, %v8865_v19  ;;  %v8869_v37 = vrot.slane %v8416_v29, %v18334_v42  ;;  %v9324_v45 = vsel %vm9318_vm6, %v9315_v60, %v8825_v56  ;;  %v9265_v38 = vrot.slane %v8620_v58, %v18340_v34 }
 0x665   : > { %8138 = vxpose.xlu1.b32.cont [14/16] (narrow) %v7840_v20, 48  ;;  %v11224_v39 = vpop.f32.mrb[174].mxu0  ;;  %v9382_v20 = vsel %vm9318_vm6, %v9374_v16, %v9177_v55  ;;  %v9341_v11 = vsel %vm9336_vm8, %v9332_v27, %v8909_v26  ;;  %v8913_v14 = vrot.slane %v8420_v36, %v18340_v34 }
 0x666   : > { %v7844_v5 = vpop.f32.mrb[175].mxu0  ;;  %v7850_v4 = vadd.f32 %v18826_v35, %v11224_v39  ;;  %v9390_v39 = vsel %vm9327_vm7, %v9382_v20, %v9221_v61  ;;  %v9333_v13 = vsel %vm9327_vm7, %v9324_v45, %v8869_v37 }
 0x667   : > { %v7845_v10 = vadd.f32 %v18826_v35, %v7844_v5  ;;  %v9398_v32 = vsel %vm9336_vm8, %v9390_v39, %v9265_v38  ;;  %v9342_v22 = vsel %vm9336_vm8, %v9333_v13, %v8913_v14 }
 0x669   : > { %8139 = vxpose.xlu1.b32.cont [15/16] (narrow) %v7845_v10, 48 }
 0x66c   : > { %v11861_v0 = vpop.eup %11860 }
 0x66d   : > { %v9690_v8 = vcombine.low %v11859_v23, %v11861_v0  ;;  %v8077_v48 = vpop.trf.xlu1  ;;  %8140 = vxpose.xlu1.b32.end [16/16] (narrow) %v7850_v4, 48 }
 0x66e   : > { %v9405_v62 = vmul.f32 %v9341_v11, %v8077_v48 }
 0x66f   : > { %v11227_v47 = vpop.f32.mrb[176].mxu0  ;;  %9698 = vst [vmem:[%s18810_s22 + $0x8] sm:$0x77] %v9690_v8 }
 0x670   : > { %v7854_v30 = vpop.f32.mrb[177].mxu0  ;;  %v7860_v63 = vadd.f32 %v18826_v35, %v11227_v47 }
 0x671   : > { %v7855_v24 = vadd.f32 %v18826_v35, %v7854_v30  ;;  %v8078_v12 = vpop.trf.xlu1 }
 0x672   : > { %v9413_v21 = vmul.f32 %v9397_v9, %v8078_v12 }
 0x673   : > { %8157 = vxpose.xlu0.b32.start [1/16] (narrow) %v7855_v24, 48  ;;  %v8109_v7 = vpop.trf.xlu0 }
 0x674   : > { %v9445_v46 = vadd.f32 %v9413_v21, %v9405_v62  ;;  %v9406_v29 = vmul.f32 %v9342_v22, %v8109_v7 }
 0x675   : > { %v8079_v54 = vpop.trf.xlu1 }
 0x676   : > { %v9477_v57 = vmul.f32 %v9341_v11, %v8079_v54  ;;  %v9446_v58 = vrot.slane %v9445_v46, 4 }
 0x677   : > { %8158 = vxpose.xlu0.b32.cont [2/16] (narrow) %v7860_v63, 48  ;;  %v11230_v5 = vpop.f32.mrb[178].mxu0  ;;  %v8110_v53 = vpop.trf.xlu0 }
 0x678   : > { %v7864_v49 = vpop.f32.mrb[179].mxu0  ;;  %v9414_v10 = vmul.f32 %v9398_v32, %v8110_v53  ;;  %v7870_v17 = vadd.f32 %v18826_v35, %v11230_v5  ;;  %v9447_v4 = vadd.f32 %v9446_v58, %v9445_v46 }
 0x679   : > { %v7865_v3 = vadd.f32 %v18826_v35, %v7864_v49  ;;  %v8080_v41 = vpop.trf.xlu1 }
 0x67a   : > { %v9485_v28 = vmul.f32 %v9397_v9, %v8080_v41  ;;  %v9452_v50 = vadd.f32 %v9414_v10, %v9406_v29  ;;  %v9448_v30 = vrot.slane %v9447_v4, 2 }
 0x67b   : > { %8159 = vxpose.xlu0.b32.cont [3/16] (narrow) %v7865_v3, 48  ;;  %v8111_v15 = vpop.trf.xlu0 }
 0x67c   : > { %v9517_v23 = vadd.f32 %v9485_v28, %v9477_v57  ;;  %v9478_v36 = vmul.f32 %v9342_v22, %v8111_v15  ;;  %v9453_v8 = vrot.slane %v9452_v50, 4  ;;  %v9449_v7 = vadd.f32 %v9448_v30, %v9447_v4 }
 0x67d   : > { %v8081_v2 = vpop.trf.xlu1 }
 0x67e   : > { %v9518_v44 = vrot.slane %v9517_v23, 4  ;;  %v9549_v47 = vmul.f32 %v9341_v11, %v8081_v2  ;;  %v9454_v56 = vadd.f32 %v9453_v8, %v9452_v50  ;;  %v9450_v13 = vrot.slane %v9449_v7, 1 }
 0x67f   : > { %8160 = vxpose.xlu0.b32.cont [4/16] (narrow) %v7870_v17, 48  ;;  %v11233_v43 = vpop.f32.mrb[180].mxu0  ;;  %v8112_v0 = vpop.trf.xlu0 }
 0x680   : > { %v9486_v33 = vmul.f32 %v9398_v32, %v8112_v0  ;;  %v7874_v51 = vpop.f32.mrb[181].mxu0  ;;  %v9519_v48 = vadd.f32 %v9518_v44, %v9517_v23  ;;  %v7880_v26 = vadd.f32 %v18826_v35, %v11233_v43  ;;  %v9451_v29 = vadd.f32 %v9450_v13, %v9449_v7 }
 0x681   : > { %v7875_v19 = vadd.f32 %v18826_v35, %v7874_v51  ;;  %v8082_v55 = vpop.trf.xlu1 }
 0x682   : > { %v9524_v25 = vadd.f32 %v9486_v33, %v9478_v36  ;;  %v9520_v40 = vrot.slane %v9519_v48, 2  ;;  %v9557_v31 = vmul.f32 %v9397_v9, %v8082_v55  ;;  %v9455_v9 = vrot.slane %v9454_v56, 2  ;;  %v20685_v33 = vld [vmem:[#allocation197_spill] sm:$0xff] }
 0x683   : > { %8161 = vxpose.xlu0.b32.cont [5/16] (narrow) %v7875_v19, 48  ;;  %v8113_v16 = vpop.trf.xlu0  ;;  %v8213_v51 = vmul.f32 %v20685_v33, %v20685_v33 }
 0x684   : > { %v9525_v6 = vrot.slane %v9524_v25, 4  ;;  %v9589_v24 = vadd.f32 %v9557_v31, %v9549_v47  ;;  %v9521_v60 = vadd.f32 %v9520_v40, %v9519_v48  ;;  %v9550_v21 = vmul.f32 %v9342_v22, %v8113_v16 }
 0x685   : > { %v9456_v53 = vadd.f32 %v9455_v9, %v9454_v56  ;;  %v10192_v31 = vrot.slane %v8213_v51, 9 }
 0x686   : > { %v9526_v61 = vadd.f32 %v9525_v6, %v9524_v25  ;;  %v9590_v27 = vrot.slane %v9589_v24, 4  ;;  %v9522_v39 = vrot.slane %v9521_v60, 1  ;;  %v10196_v6 = vrot.slane %v8213_v51, 10 }
 0x687   : > { %8162 = vxpose.xlu0.b32.cont [6/16] (narrow) %v7880_v26, 48  ;;  %v11236_v12 = vpop.f32.mrb[182].mxu0  ;;  %v8114_v20 = vpop.trf.xlu0  ;;  %v9457_v15 = vrot.slane %v9456_v53, 1  ;;  %v8233_v30 = vadd.f32 %v10192_v31, %v8213_v51 }
 0x688   : > { %v9527_v37 = vrot.slane %v9526_v61, 2  ;;  %v9558_v45 = vmul.f32 %v9398_v32, %v8114_v20  ;;  %v7884_v38 = vpop.f32.mrb[183].mxu0  ;;  %v9591_v11 = vadd.f32 %v9590_v27, %v9589_v24  ;;  %v7890_v49 = vadd.f32 %v18826_v35, %v11236_v12 }
 0x689   : > { %v7885_v63 = vadd.f32 %v18826_v35, %v7884_v38  ;;  %v9523_v10 = vadd.f32 %v9522_v39, %v9521_v60  ;;  %v9458_v4 = vadd.f32 %v9457_v15, %v9456_v53 }
 0x68a   : > { %v9596_v62 = vadd.f32 %v9558_v45, %v9550_v21  ;;  %v9528_v14 = vadd.f32 %v9527_v37, %v9526_v61  ;;  %v9592_v54 = vrot.slane %v9591_v11, 2  ;;  %v8249_v61 = vadd.f32 %v10196_v6, %v8233_v30 }
 0x68b   : > { %8163 = vxpose.xlu0.b32.cont [7/16] (narrow) %v7885_v63, 48  ;;  %v9621_v50 = vsel %vm9282_vm2, %v9451_v29, %v9523_v10 }
 0x68c   : > { %v9597_v5 = vrot.slane %v9596_v62, 4  ;;  %v9593_v46 = vadd.f32 %v9592_v54, %v9591_v11  ;;  %v9529_v22 = vrot.slane %v9528_v14, 1  ;;  %v8253_v7 = vmax.f32 %v8249_v61, 1e-24 }
 0x68e   : > { %v9598_v3 = vadd.f32 %v9597_v5, %v9596_v62  ;;  %v9594_v32 = vrot.slane %v9593_v46, 1  ;;  %v9530_v2 = vadd.f32 %v9529_v22, %v9528_v14 }
 0x68f   : > { %8164 = vxpose.xlu0.b32.cont [8/16] (narrow) %v7890_v49, 48  ;;  %v11239_v41 = vpop.f32.mrb[184].mxu0 }
 0x690   : > { %v9599_v57 = vrot.slane %v9598_v3, 2  ;;  %v7894_v28 = vpop.f32.mrb[185].mxu0  ;;  %v9595_v58 = vadd.f32 %v9594_v32, %v9593_v46  ;;  %v7900_v36 = vadd.f32 %v18826_v35, %v11239_v41  ;;  %v9622_v48 = vsel %vm9282_vm2, %v9458_v4, %v9530_v2 }
 0x691   : > { %v7895_v17 = vadd.f32 %v18826_v35, %v7894_v28 }
 0x692   : > { %v9600_v23 = vadd.f32 %v9599_v57, %v9598_v3  ;;  %v9629_v44 = vsel %vm9291_vm3, %v9621_v50, %v9595_v58 }
 0x693   : > { %8165 = vxpose.xlu0.b32.cont [9/16] (narrow) %v7895_v17, 48  ;;  %v10221_v43 = vmul.f32 -1.442695, %v9629_v44 }
 0x694   : > { %v9601_v0 = vrot.slane %v9600_v23, 1 }
 0x695   : > { %11862 = vpow2.f32 %v10221_v43 }
 0x696   : > { %v9602_v8 = vadd.f32 %v9601_v0, %v9600_v23 }
 0x697   : > { %8166 = vxpose.xlu0.b32.cont [10/16] (narrow) %v7900_v36, 48  ;;  %v11242_v19 = vpop.f32.mrb[186].mxu0 }
 0x698   : > { %v9630_v25 = vsel %vm9291_vm3, %v9622_v48, %v9602_v8  ;;  %v7904_v55 = vpop.f32.mrb[187].mxu0  ;;  %v7910_v16 = vadd.f32 %v18826_v35, %v11242_v19 }
 0x699   : > { %v10222_v40 = vmul.f32 -1.442695, %v9630_v25  ;;  %v7905_v47 = vadd.f32 %v18826_v35, %v7904_v55 }
 0x69b   : > { %11864 = vpow2.f32 %v10222_v40  ;;  %8167 = vxpose.xlu0.b32.cont [11/16] (narrow) %v7905_v47, 48 }
 0x69f   : > { %8168 = vxpose.xlu0.b32.cont [12/16] (narrow) %v7910_v16, 48  ;;  %v11245_v56 = vpop.f32.mrb[188].mxu0  ;;  %v11863_v26 = vpop.eup %11862 }
 0x6a0   : > { %v7914_v24 = vpop.f32.mrb[189].mxu0  ;;  %v9661_v27 = vadd.f32 1.0, %v11863_v26  ;;  %v7920_v20 = vadd.f32 %v18826_v35, %v11245_v56 }
 0x6a1   : > { %v7915_v60 = vadd.f32 %v18826_v35, %v7914_v24 }
 0x6a2   : > { %11866 = vrcp.f32 %v9661_v27 }
 0x6a3   : > { %8169 = vxpose.xlu0.b32.cont [13/16] (narrow) %v7915_v60, 48 }
 0x6a5   : > { %v11865_v12 = vpop.eup %11864 }
 0x6a6   : > { %v9662_v37 = vadd.f32 1.0, %v11865_v12 }
 0x6a7   : > { %8170 = vxpose.xlu0.b32.cont [14/16] (narrow) %v7920_v20, 48  ;;  %v11248_v21 = vpop.f32.mrb[190].mxu0 }
 0x6a8   : > { %11868 = vrcp.f32 %v9662_v37  ;;  %v7924_v45 = vpop.f32.mrb[191].mxu0  ;;  %v7930_v9 = vadd.f32 %v18826_v35, %v11248_v21 }
 0x6a9   : > { %v7925_v38 = vadd.f32 %v18826_v35, %v7924_v45  ;;  %11870 = vrsqrt.f32 %v8253_v7 }
 0x6ab   : > { %8171 = vxpose.xlu0.b32.cont [15/16] (narrow) %v7925_v38, 48 }
 0x6ac   : > { %v11867_v11 = vpop.eup %11866 }
 0x6af   : > { %8172 = vxpose.xlu0.b32.end [16/16] (narrow) %v7930_v9, 48 }
 0x6b1   : > { %v19009_v58 = vpop.trf.xlu1 }
 0x6b2   : > { %v11869_v63 = vpop.eup %11868 }
 0x6b3   : > { %v9691_v39 = vcombine.low %v11867_v11, %v11869_v63  ;;  %v11871_v62 = vpop.eup %11870 }
 0x6b4   : > { %v8269_v14 = vrot.slane %v11871_v62, 7  ;;  %v8281_v13 = vrot.slane %v11871_v62, 6  ;;  %v19000_v5 = vmul.f32 %v11871_v62, %v20685_v33 }
 0x6b5   : > { %9699 = vst [vmem:[%s18810_s22 + $0x10] sm:$0x77] %v9691_v39  ;;  %v19013_v25 = vpop.trf.xlu1 }
 0x6b6   : > { %v8277_v54 = vmul.f32 %v8269_v14, %v20685_v33  ;;  %v8289_v46 = vmul.f32 %v8281_v13, %v20685_v33  ;;  %v19005_v49 = vmul.f32 %v19000_v5, %v19000_v5  ;;  %v19029_v7 = vmul.f32 -0.48860252, %v19000_v5 }
 0x6b7   : > { %v8561_v37 = vmul.f32 -0.4570458, %v19000_v5 }
 0x6b8   : > { %v8297_v53 = vmul.f32 %v8277_v54, %v8277_v54  ;;  %v8301_v10 = vmul.f32 %v8289_v46, %v8289_v46  ;;  %v8449_v3 = vmul.f32 3.0, %v19005_v49  ;;  %v8389_v32 = vrot.slane %v19005_v49, 6 }
 0x6b9   : > { %v10200_v29 = vrot.slane %v8277_v54, 9  ;;  %v8348_v50 = vrot.slane %v8289_v46, 6  ;;  %v8445_v2 = vmul.f32 -0.5900436, %v8277_v54  ;;  %v8361_v40 = vmul.f32 -0.48860252, %v8277_v54  ;;  %v19026_v20 = vpop.trf.xlu1 }
 0x6ba   : > { %v8428_v35 = vrot.slane %v8297_v53, 5  ;;  %v8485_v41 = vmul.f32 4.0, %v8301_v10  ;;  %v8405_v28 = vrot.slane %v8297_v53, 7  ;;  %v8381_v43 = vmul.f32 2.0, %v8301_v10 }
 0x6bb   : > { %v8321_v17 = vmul.f32 %v10200_v29, %v19000_v5  ;;  %v8525_v0 = vrot.slane %v8449_v3, 6  ;;  %v8537_v4 = vmul.f32 3.0, %v8297_v53  ;;  %v8349_v33 = vrot.slane %v8348_v50, 4 }
 0x6bc   : > { %v8429_v22 = vrot.slane %v8428_v35, 4  ;;  %v8489_v15 = vsub.f32 %v8485_v41, %v8389_v32  ;;  %v8481_v31 = vmul.f32 -0.4570458, %v8277_v54  ;;  %v19019_v56 = vmul.f32 0.48860252, %v8289_v46 }
 0x6bd   : > { %v8473_v51 = vmul.f32 2.8906114, %v8321_v17  ;;  %v8533_v19 = vsub.f32 %v8381_v43, %v8525_v0  ;;  %v8545_v55 = vrot.slane %v8537_v4, 7  ;;  %v8517_v26 = vmul.f32 0.37317634, %v8289_v46  ;;  %v8144_v29 = vpop.trf.xlu1 }
 0x6be   : > { %v8453_v57 = vsub.f32 %v8449_v3, %v8429_v22  ;;  %v8437_v23 = vsub.f32 %v19005_v49, %v8429_v22  ;;  %v8493_v36 = vsub.f32 %v8489_v15, %v8405_v28  ;;  %v10204_v60 = vrot.slane %v8289_v46, 9 }
 0x6bf   : > { %v19015_v16 = vmul.f32 %v8473_v51, %v8349_v33  ;;  %v8553_v24 = vsub.f32 %v8533_v19, %v8545_v55  ;;  %v8653_v61 = vrot.slane %v8361_v40, %v18347_v59  ;;  %v8397_v38 = vsub.f32 %v8381_v43, %v8389_v32 }
 0x6c0   : > { %v8461_v44 = vrot.slane %v8453_v57, 7  ;;  %v8441_v8 = vmul.f32 0.54627424, %v8437_v23  ;;  %v10208_v47 = vrot.slane %v8493_v36, 9  ;;  %v10212_v21 = vrot.slane %v8493_v36, 10 }
 0x6c1   : > { %v9049_v12 = vrot.slane %v19015_v16, %v18337_v18  ;;  %v8697_v9 = vrot.slane %v19019_v56, %v18350_v1  ;;  %v8557_v11 = vmul.f32 %v8553_v24, %v8517_v26  ;;  %v8341_v63 = vmul.f32 %v10204_v60, %v8277_v54 }
 0x6c2   : > { %v8469_v48 = vmul.f32 %v8461_v44, %v8445_v2  ;;  %v8961_v30 = vrot.slane %v8441_v8, %v18337_v18  ;;  %v19022_v27 = vmul.f32 %v10208_v47, %v8481_v31  ;;  %v9289_v39 = vsel %vm9282_vm2, 0.2820948, %v8653_v61 }
 0x6c3   : > { %v10216_v62 = vrot.slane %v8537_v4, 9  ;;  %v8373_v13 = vmul.f32 1.0925485, %v8321_v17  ;;  %v8581_v53 = vmul.f32 1.4453057, %v8289_v46  ;;  %v8589_v35 = vrot.slane %v8437_v23, 6 }
 0x6c4   : > { %v9005_v6 = vrot.slane %v8469_v48, %v18347_v59  ;;  %v9093_v14 = vrot.slane %v19022_v27, %v18347_v59  ;;  %v8741_v3 = vrot.slane %v19029_v7, %v18337_v18  ;;  %v8577_v22 = vmul.f32 %v10212_v21, %v8561_v37 }
 0x6c5   : > { %v8413_v32 = vsub.f32 %v8397_v38, %v8405_v28  ;;  %v9298_v41 = vsel %vm9291_vm3, %v9289_v39, %v8697_v9  ;;  %v9137_v54 = vrot.slane %v8557_v11, %v18350_v1  ;;  %v8377_v57 = vmul.f32 -1.0925485, %v8341_v63 }
 0x6c6   : > { %v9351_v45 = vsel %vm9282_vm2, %v8961_v30, %v9005_v6  ;;  %v8601_v15 = vmul.f32 -0.5900436, %v19000_v5  ;;  %v8617_v50 = vsub.f32 %v19005_v49, %v10216_v62  ;;  %v8785_v17 = vrot.slane %v8373_v13, %v18337_v18 }
 0x6c7   : > { %v9359_v10 = vsel %vm9291_vm3, %v9351_v45, %v9049_v12  ;;  %v8597_v23 = vmul.f32 %v8589_v35, %v8581_v53  ;;  %v8965_v2 = vrot.slane %v8441_v8, %v18340_v34  ;;  %v9009_v44 = vrot.slane %v8469_v48, %v18331_v52 }
 0x6c8   : > { %v9367_v46 = vsel %vm9300_vm4, %v9359_v10, %v9093_v14  ;;  %v8357_v28 = vmul.f32 %v8349_v33, %v19000_v5  ;;  %v9307_v43 = vsel %vm9300_vm4, %v9298_v41, %v8741_v3  ;;  %v9181_v0 = vrot.slane %v8577_v22, %v18337_v18  ;;  %v8145_v5 = vpop.trf.xlu1 }
 0x6c9   : > { %v8417_v4 = vmul.f32 0.31539157, %v8413_v32  ;;  %v9375_v36 = vsel %vm9309_vm5, %v9367_v46, %v9137_v54  ;;  %v8657_v49 = vrot.slane %v8361_v40, %v18331_v52  ;;  %v8829_v51 = vrot.slane %v8377_v57, %v18347_v59 }
 0x6ca   : > { %v9053_v19 = vrot.slane %v19015_v16, %v18340_v34  ;;  %v8621_v55 = vmul.f32 %v8617_v50, %v8601_v15  ;;  %v9316_v8 = vsel %vm9309_vm5, %v9307_v43, %v8785_v17  ;;  %v9225_v48 = vrot.slane %v8597_v23, %v18350_v1 }
 0x6cb   : > { %v9352_v33 = vsel %vm9282_vm2, %v8965_v2, %v9009_v44  ;;  %v8421_v47 = vmul.f32 -1.0925485, %v8357_v28  ;;  %v9383_v31 = vsel %vm9318_vm6, %v9375_v36, %v9181_v0  ;;  %v8701_v30 = vrot.slane %v19019_v56, %v18334_v42 }
 0x6cc   : > { %v8873_v40 = vrot.slane %v8417_v4, %v18350_v1  ;;  %v9290_v59 = vsel %vm9282_vm2, 0.2820948, %v8657_v49  ;;  %v9097_v16 = vrot.slane %v19022_v27, %v18331_v52  ;;  %v9325_v6 = vsel %vm9318_vm6, %v9316_v8, %v8829_v51  ;;  %v8146_v27 = vpop.trf.xlu1 }
 0x6cd   : > { %v9269_v26 = vrot.slane %v8621_v55, %v18337_v18  ;;  %v9360_v24 = vsel %vm9291_vm3, %v9352_v33, %v9053_v19  ;;  %v9391_v60 = vsel %vm9327_vm7, %v9383_v31, %v9225_v48  ;;  %v8745_v61 = vrot.slane %v19029_v7, %v18340_v34 }
 0x6ce   : > { %v8917_v56 = vrot.slane %v8421_v47, %v18337_v18  ;;  %v9299_v1 = vsel %vm9291_vm3, %v9290_v59, %v8701_v30  ;;  %v9141_v12 = vrot.slane %v8557_v11, %v18334_v42  ;;  %v9334_v37 = vsel %vm9327_vm7, %v9325_v6, %v8873_v40 }
 0x6cf   : > { %v9368_v21 = vsel %vm9300_vm4, %v9360_v24, %v9097_v16  ;;  %v9399_v45 = vsel %vm9336_vm8, %v9391_v60, %v9269_v26  ;;  %v8789_v38 = vrot.slane %v8373_v13, %v18340_v34  ;;  %v9308_v63 = vsel %vm9300_vm4, %v9299_v1, %v8745_v61 }
 0x6d0   : > { %v9487_v9 = vmul.f32 %v9399_v45, %v8144_v29  ;;  %v9185_v7 = vrot.slane %v8577_v22, %v18340_v34  ;;  %v9343_v18 = vsel %vm9336_vm8, %v9334_v37, %v8917_v56  ;;  %v9559_v39 = vmul.f32 %v9399_v45, %v8146_v27 }
 0x6d1   : > { %v9376_v62 = vsel %vm9309_vm5, %v9368_v21, %v9141_v12  ;;  %v9415_v11 = vmul.f32 %v9399_v45, %v19013_v25  ;;  %v9479_v14 = vmul.f32 %v9343_v18, %v19026_v20  ;;  %v8833_v53 = vrot.slane %v8377_v57, %v18331_v52 }
 0x6d2   : > { %v9551_v35 = vmul.f32 %v9343_v18, %v8145_v5  ;;  %v9317_v10 = vsel %vm9309_vm5, %v9308_v63, %v8789_v38  ;;  %v9229_v13 = vrot.slane %v8597_v23, %v18334_v42  ;;  %v9407_v3 = vmul.f32 %v9343_v18, %v19009_v58 }
 0x6d3   : > { %v9531_v32 = vadd.f32 %v9487_v9, %v9479_v14  ;;  %v9384_v22 = vsel %vm9318_vm6, %v9376_v62, %v9185_v7  ;;  %v8877_v29 = vrot.slane %v8417_v4, %v18334_v42  ;;  %v9326_v25 = vsel %vm9318_vm6, %v9317_v10, %v8833_v53 }
 0x6d4   : > { %v9603_v41 = vadd.f32 %v9559_v39, %v9551_v35  ;;  %v9459_v15 = vadd.f32 %v9415_v11, %v9407_v3  ;;  %v9273_v20 = vrot.slane %v8621_v55, %v18340_v34  ;;  %v9392_v52 = vsel %vm9327_vm7, %v9384_v22, %v9229_v13 }
 0x6d5   : > { %v9532_v57 = vrot.slane %v9531_v32, 4  ;;  %v8921_v50 = vrot.slane %v8421_v47, %v18340_v34  ;;  %v9335_v58 = vsel %vm9327_vm7, %v9326_v25, %v8877_v29 }
 0x6d6   : > { %v9604_v46 = vrot.slane %v9603_v41, 4  ;;  %v9460_v23 = vrot.slane %v9459_v15, 4  ;;  %v9400_v2 = vsel %vm9336_vm8, %v9392_v52, %v9273_v20 }
 0x6d7   : > { %v9533_v28 = vadd.f32 %v9532_v57, %v9531_v32  ;;  %v9344_v42 = vsel %vm9336_vm8, %v9335_v58, %v8921_v50 }
 0x6d8   : > { %v9605_v43 = vadd.f32 %v9604_v46, %v9603_v41  ;;  %v9461_v36 = vadd.f32 %v9460_v23, %v9459_v15 }
 0x6d9   : > { %v9534_v51 = vrot.slane %v9533_v28, 2 }
 0x6da   : > { %v9606_v19 = vrot.slane %v9605_v43, 2  ;;  %v9462_v34 = vrot.slane %v9461_v36, 2 }
 0x6db   : > { %v9535_v33 = vadd.f32 %v9534_v51, %v9533_v28 }
 0x6dc   : > { %v9607_v31 = vadd.f32 %v9606_v19, %v9605_v43  ;;  %v9463_v40 = vadd.f32 %v9462_v34, %v9461_v36 }
 0x6dd   : > { %v9536_v6 = vrot.slane %v9535_v33, 1 }
 0x6de   : > { %v9608_v24 = vrot.slane %v9607_v31, 1  ;;  %v9464_v61 = vrot.slane %v9463_v40, 1 }
 0x6df   : > { %v9537_v27 = vadd.f32 %v9536_v6, %v9535_v33 }
 0x6e0   : > { %v9609_v45 = vadd.f32 %v9608_v24, %v9607_v31  ;;  %v9465_v9 = vadd.f32 %v9464_v61, %v9463_v40 }
 0x6e2   : > { %v9623_v18 = vsel %vm9282_vm2, %v9465_v9, %v9537_v27 }
 0x6e3   : > { %v9631_v62 = vsel %vm9291_vm3, %v9623_v18, %v9609_v45 }
 0x6e4   : > { %v10223_v35 = vmul.f32 -1.442695, %v9631_v62 }
 0x6e6   : > { %11872 = vpow2.f32 %v10223_v35 }
 0x6f0   : > { %v11873_v15 = vpop.eup %11872 }
 0x6f1   : > { %v9663_v25 = vadd.f32 1.0, %v11873_v15 }
 0x6f3   : > { %v8173_v54 = vpop.trf.xlu0 }
 0x6f4   : > { %v9408_v0 = vmul.f32 %v9344_v42, %v8173_v54 }
 0x6f7   : > { %v8174_v17 = vpop.trf.xlu0 }
 0x6f8   : > { %v9416_v44 = vmul.f32 %v9400_v2, %v8174_v17 }
 0x6fa   : > { %v9466_v49 = vadd.f32 %v9416_v44, %v9408_v0 }
 0x6fb   : > { %v8175_v4 = vpop.trf.xlu0 }
 0x6fc   : > { %v9480_v8 = vmul.f32 %v9344_v42, %v8175_v4  ;;  %v9467_v5 = vrot.slane %v9466_v49, 4 }
 0x6fe   : > { %v9468_v16 = vadd.f32 %v9467_v5, %v9466_v49 }
 0x6ff   : > { %v8176_v55 = vpop.trf.xlu0 }
 0x700   : > { %v9488_v48 = vmul.f32 %v9400_v2, %v8176_v55  ;;  %v9469_v37 = vrot.slane %v9468_v16, 2 }
 0x702   : > { %v9538_v47 = vadd.f32 %v9488_v48, %v9480_v8  ;;  %v9470_v7 = vadd.f32 %v9469_v37, %v9468_v16 }
 0x703   : > { %v8177_v30 = vpop.trf.xlu0 }
 0x704   : > { %v9539_v59 = vrot.slane %v9538_v47, 4  ;;  %v9552_v1 = vmul.f32 %v9344_v42, %v8177_v30  ;;  %v9471_v53 = vrot.slane %v9470_v7, 1 }
 0x706   : > { %v9540_v26 = vadd.f32 %v9539_v59, %v9538_v47  ;;  %v9472_v32 = vadd.f32 %v9471_v53, %v9470_v7 }
 0x707   : > { %v8178_v60 = vpop.trf.xlu0 }
 0x708   : > { %v9541_v56 = vrot.slane %v9540_v26, 2  ;;  %v9560_v12 = vmul.f32 %v9400_v2, %v8178_v60 }
 0x70a   : > { %v9610_v21 = vadd.f32 %v9560_v12, %v9552_v1  ;;  %v9542_v38 = vadd.f32 %v9541_v56, %v9540_v26 }
 0x70c   : > { %v9611_v63 = vrot.slane %v9610_v21, 4  ;;  %v9543_v11 = vrot.slane %v9542_v38, 1 }
 0x70e   : > { %v9612_v39 = vadd.f32 %v9611_v63, %v9610_v21  ;;  %v9544_v13 = vadd.f32 %v9543_v11, %v9542_v38 }
 0x710   : > { %v9613_v14 = vrot.slane %v9612_v39, 2  ;;  %v9624_v41 = vsel %vm9282_vm2, %v9472_v32, %v9544_v13 }
 0x712   : > { %v9614_v10 = vadd.f32 %v9613_v14, %v9612_v39 }
 0x714   : > { %v9615_v3 = vrot.slane %v9614_v10, 1 }
 0x716   : > { %v9616_v22 = vadd.f32 %v9615_v3, %v9614_v10 }
 0x718   : > { %v9632_v54 = vsel %vm9291_vm3, %v9624_v41, %v9616_v22 }
 0x719   : > { %v10224_v29 = vmul.f32 -1.442695, %v9632_v54 }
 0x71b   : > { %11874 = vpow2.f32 %v10224_v29 }
 0x71c   : > { %11876 = vrcp.f32 %v9663_v25 }
 0x725   : > { %v11875_v20 = vpop.eup %11874 }
 0x726   : > { %v9664_v52 = vadd.f32 1.0, %v11875_v20  ;;  %v11877_v57 = vpop.eup %11876 }
 0x728   : > { %11878 = vrcp.f32 %v9664_v52 }
 0x72f   : > { %9708 = sbr.rel (!%p12044_p5) target bundleno = 1873 (0x751), region = 60 }
 0x732   : > { %v11879_v50 = vpop.eup %11878 }
 0x733   : > { %v9692_v46 = vcombine.low %v11877_v57, %v11879_v50 }
 0x735   : > { %9700 = vst [vmem:[%s18810_s22 + $0x18] sm:$0x77] %v9692_v46 }
 0x736   : > { %s20693_s28 = smov (!%p9711_p12, %s9710_s28), 8 }
 0x737   : > { %s19111_s29 = sshll.u32 %s20693_s28, 6 }
 0x738   : > { %s9715_s14 = ssub.s32 512, %s19111_s29 }
 0x739   : > { %9716 = vsyncadd %s19106_s27, %s9715_s14  ;;  %p10228_p13 = scmp.ne.s32.totalorder %s19111_s29, 0  ;;  %s10234_s25 = sshll.u32 %s12027_s13, 9 }
 0x73a   : > { %s19120_s17 = scalar_lea.hbm %s19170_s9, %s10234_s25  ;;  %s9722_s24 = sshll.u32 %s18810_s22, 4  ;;  %s9723_s24 = int_to_ptr.vmem [resolvable:$true] %s9722_s24 }
 0x73b   : > { %s11889_s21 = scalar_lea.vmem %s9723_s24, %s19111_s29  ;;  %s11955_s23 = smov [#allocation2]  }
 0x73c   : > { %p11890_p0 = scmp.ne.s32.totalorder %s9723_s24, %s11889_s21  ;;  %s11893_s26 = sshll.u32 %s11955_s23, 4  ;;  %s11894_s26 = int_to_ptr.vmem [resolvable:$false] %s11893_s26 }
 0x73d   : > { %s11895_s28 = scalar_lea.vmem %s11894_s26, 1024  ;;  %p11896_p3 = scmp.lt.s32.totalorder %s9723_s24, %s11894_s26 }
 0x73e   : > { %p11891_p1 = pnand %p11890_p0, %p10228_p13  ;;  %p11897_p4 = scmp.lt.s32.totalorder %s11895_s28, %s11889_s21 }
 0x740   : > { %p11892_p2 = pneg %p11891_p1  ;;  %p11898_p5 = por %p11897_p4, %p11896_p3 }
 0x742   : > { %p11899_p7 = pnand %p11898_p5, %p11892_p2 }
 0x744   : > { %11902 = shalt.err (!%p11899_p7)
}
 0x745   : > { %s11903_s13 = scalar_lea.hbm %s19120_s17, %s19111_s29  ;;  %s11907_s25 = scalar_lea.hbm %s19170_s9, 640 }
 0x746   : > { %p11904_p8 = scmp.ne.s32.totalorder %s19120_s17, %s11903_s13  ;;  %p11908_p11 = scmp.lt.u32.totalorder %s19120_s17, %s19170_s9 }
 0x747   : > { %p11909_p12 = scmp.lt.u32.totalorder %s11907_s25, %s11903_s13  ;;  %p11911_p1 = scmp.lt.u32.totalorder %s11903_s13, %s19120_s17 }
 0x748   : > { %p11905_p9 = pnand %p11904_p8, %p10228_p13 }
 0x749   : > { %p11910_p0 = por %p11909_p12, %p11908_p11 }
 0x74a   : > { %p11906_p10 = pneg %p11905_p9 }
 0x74b   : > { %p11912_p2 = por %p11911_p1, %p11910_p0 }
 0x74d   : > { %p11913_p3 = pnand %p11912_p2, %p11906_p10 }
 0x74f   : > { %11916 = shalt.err (!%p11913_p3)
}
 0x750   : > { %9725 = dma.vmem_to_hbm [thread:$0]  (%p10228_p13), %s9723_s24, %s19111_s29, %s19120_s17, %s19106_s27  }
 0x751 PF: > { %p11292_p4 = scmp.ge.s32.totalorder %s11951_s12, 2  ;;  %s9734_s21 = sand.u32 1, %s11939_s30  }
 0x752   : > { %s9735_s23 = scalar_lea.sflag [#allocation3], %s9734_s21 }
 0x753   : > { %p11289_p5 = pnand %p11292_p4, %p12048_p6 }
 0x755   : > { %11934 = dma.done.wait (!%p11289_p5), %s9735_s23, 512  }
 0x756   : > { %11936 = vsyncadd (!%p11289_p5), %s9735_s23, 4294966784  ;;  %p19_p7 = scmp.ge.s32.totalorder %s12031_s15, 4   ;;  %s20686_s30 = smov %s11943_s10 }
 0x757   : > { %s20687_s10 = smov %s11947_s11  ;;  %s20688_s11 = smov %s12042_s18 }
 0x758   : > { %s20689_s12 = smov %s12031_s15  ;;  %21 = sbr.rel (!%p19_p7) target bundleno = 3 (0x3), region = 94 }
 0x75f   :  { %9740 = vsyncpa [#allocation3], 1 }
 0x760   :  { %9742 = vsyncpa [#allocation3 + $0x1], 1 }

</bundles_post_ra>
